<compile_context>
chip_gen: v6e
topology: v6e:2x2x1
jax: 0.10.0
libtpu: 0.0.40
codegen_flags: <defaults>
</compile_context>

<pallas_src>
import functools

import numpy as np
import jax
import jax.numpy as jnp
from jax.experimental import pallas as pl
from jax.experimental.pallas import tpu as pltpu


# ----------------------------------------------------------------------------
# Layer specification (mirrors the PyTorch SparseEncoder config)
# ----------------------------------------------------------------------------
_CONV_SPECS = (
    # name,        cin, cout, ksize,     stride,    pad,       submanifold
    ("conv_input",   4,  16, (3, 3, 3), (1, 1, 1), (1, 1, 1), True),
    ("enc1_0",      16,  16, (3, 3, 3), (1, 1, 1), (1, 1, 1), True),
    ("enc2_0",      16,  32, (3, 3, 3), (2, 2, 2), (1, 1, 1), False),
    ("enc2_1",      32,  32, (3, 3, 3), (1, 1, 1), (1, 1, 1), True),
    ("enc2_2",      32,  32, (3, 3, 3), (1, 1, 1), (1, 1, 1), True),
    ("enc3_0",      32,  64, (3, 3, 3), (2, 2, 2), (1, 1, 1), False),
    ("enc3_1",      64,  64, (3, 3, 3), (1, 1, 1), (1, 1, 1), True),
    ("enc3_2",      64,  64, (3, 3, 3), (1, 1, 1), (1, 1, 1), True),
    ("enc4_0",      64,  64, (3, 3, 3), (2, 2, 2), (0, 1, 1), False),
    ("enc4_1",      64,  64, (3, 3, 3), (1, 1, 1), (1, 1, 1), True),
    ("enc4_2",      64,  64, (3, 3, 3), (1, 1, 1), (1, 1, 1), True),
    ("conv_out",    64, 128, (3, 1, 1), (2, 1, 1), (0, 0, 0), False),
)

_LANE = 128        # lane-dense output width (no masked partial stores)
_MIN_CIN = 16      # pad tiny channel counts so K = taps*cin is 16-aligned (bf16)


def _round_up(v, m):
    return (v + m - 1) // m * m


def _cin_pad(cin):
    return max(cin, _MIN_CIN)


def _choose_row_tile(rows_needed):
    """(row_tile, padded_rows) for rows_needed = active rows + 1 sentinel row.

    Single tile only below 256 rows; otherwise >= 2 tiles (so the 'parallel'
    row axis can be split across v7x's two TensorCores), capped at 512 rows
    per tile (~85% of HBM roofline, ~5 MiB double-buffered VMEM worst case).
    """
    mp = _round_up(max(rows_needed, 1), 128)
    if mp <= 256:
        return mp, mp
    if mp <= 1024:
        tm = _round_up(mp // 2, 128)
        return tm, _round_up(mp, tm)
    return 512, _round_up(mp, 512)


# ----------------------------------------------------------------------------
# Pallas kernel: fused bf16 GEMM -> f32 acc, + folded-BN bias, ReLU, row mask,
# bf16 store.
# ----------------------------------------------------------------------------
def _gemm_bn_relu_kernel(x_ref, w_ref, b_ref, o_ref, *, n_valid, block_rows):
    acc = jnp.dot(x_ref[...], w_ref[...], preferred_element_type=jnp.float32)
    acc = acc + b_ref[...]
    acc = jnp.maximum(acc, 0.0)
    # Zero padded rows (row >= n_valid) so the next layer's zero-sentinel gather
    # stays exact (otherwise ReLU(0 + beta) = beta would leak through padding).
    row = pl.program_id(0) * block_rows + jax.lax.broadcasted_iota(
        jnp.int32, acc.shape, 0)
    acc = jnp.where(row < n_valid, acc, 0.0)
    o_ref[...] = acc.astype(o_ref.dtype)


def fused_gemm_bn_relu(x, w, bias, *, n_valid, row_tile):
    """y[:n_valid] = relu(x @ w + bias); rows >= n_valid are exactly zero.

    x: (Mp, K) bf16 with Mp a multiple of row_tile, K left at its natural size
       (full-extent block -> no K padding pass).
    w: (K, 128) bf16 (BN scale pre-folded, output channels zero-padded to 128).
    bias: (1, 128) f32 (BN shift).  Output: (Mp, 128) bf16, lane-dense stores.
    """
    mp, k = x.shape
    kw, npad = w.shape
    assert k == kw and mp % row_tile == 0 and npad % _LANE == 0
    return pl.pallas_call(
        functools.partial(_gemm_bn_relu_kernel, n_valid=n_valid,
                          block_rows=row_tile),
        out_shape=jax.ShapeDtypeStruct((mp, npad), jnp.bfloat16),
        grid=(mp // row_tile,),
        in_specs=[
            pl.BlockSpec((row_tile, k), lambda i: (i, 0)),
            pl.BlockSpec((k, npad), lambda i: (0, 0)),      # weights resident
            pl.BlockSpec((1, npad), lambda i: (0, 0)),
        ],
        out_specs=pl.BlockSpec((row_tile, npad), lambda i: (i, 0)),
        compiler_params=pltpu.CompilerParams(
            dimension_semantics=("parallel",)),   # row tiles independent
    )(x, w, bias)


# ----------------------------------------------------------------------------
# Host-side rulebook construction (numpy, once, from host coords)
# ----------------------------------------------------------------------------
def _out_dim(size, k, stride, pad):
    return (size + 2 * pad - k) // stride + 1


def _build_conv_table(coords_in, shape_in, batch_size, ksize, stride, pad, subm):
    """Output coords + (Nout, K) neighbor row indices (sentinel = n_in)."""
    D, H, W = shape_in
    kd, kh, kw = ksize
    sd, sh, sw = stride
    pd, ph, pw = pad
    n_in = coords_in.shape[0]
    idx_vol = np.full((batch_size, D + 2 * pd, H + 2 * ph, W + 2 * pw),
                      n_in, dtype=np.int32)
    idx_vol[coords_in[:, 0], coords_in[:, 1] + pd,
            coords_in[:, 2] + ph, coords_in[:, 3] + pw] = np.arange(
                n_in, dtype=np.int32)

    if subm:
        # SubMConv3d: output active set == input active set, same spatial shape.
        coords_out, shape_out = coords_in, shape_in
    else:
        # SparseConv3d: output site active iff any active input in its RF.
        Do = _out_dim(D, kd, sd, pd)
        Ho = _out_dim(H, kh, sh, ph)
        Wo = _out_dim(W, kw, sw, pw)
        shape_out = (Do, Ho, Wo)
        active = idx_vol < n_in
        out_mask = np.zeros((batch_size, Do, Ho, Wo), dtype=bool)
        for a in range(kd):
            for b in range(kh):
                for c in range(kw):
                    out_mask |= active[:, a:a + sd * (Do - 1) + 1:sd,
                                       b:b + sh * (Ho - 1) + 1:sh,
                                       c:c + sw * (Wo - 1) + 1:sw]
        coords_out = np.argwhere(out_mask).astype(np.int32)

    ob, oz, oy, ox = (coords_out[:, i] for i in range(4))
    nbr = np.empty((coords_out.shape[0], kd * kh * kw), dtype=np.int32)
    t = 0
    for a in range(kd):
        for b in range(kh):
            for c in range(kw):
                nbr[:, t] = idx_vol[ob, oz * sd + a, oy * sh + b, ox * sw + c]
                t += 1
    return coords_out, shape_out, nbr


def build_plan(coors, batch_size, sparse_shape):
    """Per-layer padded rulebooks + static row/channel metadata."""
    coords = np.asarray(coors, dtype=np.int32)
    shape = tuple(int(s) for s in sparse_shape)
    nbr_tables, metas = [], []
    for (name, cin, cout, ks, st, pd, subm) in _CONV_SPECS:
        n_in = coords.shape[0]
        coords_out, shape_out, nbr = _build_conv_table(
            coords, shape, batch_size, ks, st, pd, subm)
        m_out = int(coords_out.shape[0])
        row_tile, mp = _choose_row_tile(m_out + 1)   # +1: room for zero sentinel
        nbr_pad = np.full((mp, nbr.shape[1]), n_in, dtype=np.int32)
        nbr_pad[:m_out] = nbr
        nbr_tables.append(jnp.asarray(nbr_pad))
        metas.append((m_out, row_tile, _cin_pad(cin)))
        coords, shape = coords_out, shape_out
    return tuple(nbr_tables), tuple(metas), jnp.asarray(coords), shape


# ----------------------------------------------------------------------------
# Deterministic parameter init (synthetic; eval-BN folded, padded/bf16 once)
# ----------------------------------------------------------------------------
def init_params(key, bn_eps=1e-3, bn_gamma=1.0, bn_beta=0.01,
                bn_mean=0.0, bn_var=1.0):
    keys = jax.random.split(key, len(_CONV_SPECS))
    params = []
    for k, (name, cin, cout, ks, _, _, _) in zip(keys, _CONV_SPECS):
        taps = int(np.prod(ks))
        fan_in = taps * cin
        w = jax.random.normal(k, (taps, cin, cout), jnp.float32) / np.sqrt(fan_in)
        cpin = _cin_pad(cin)
        if cpin != cin:
            # padded input channels are always zero -> zero weight rows
            w = jnp.pad(w, ((0, 0), (0, cpin - cin), (0, 0)))
        # Eval-mode BN1d folded into the conv: for a real checkpoint use
        #   scale = gamma/sqrt(running_var+eps), shift = beta - running_mean*scale.
        scale = bn_gamma / np.sqrt(bn_var + bn_eps)
        shift = bn_beta - bn_mean * scale
        w_folded = (w * scale).reshape(taps * cpin, cout)
        wp = jnp.pad(w_folded, ((0, 0), (0, _LANE - cout))).astype(jnp.bfloat16)
        bp = jnp.zeros((1, _LANE), jnp.float32).at[0, :cout].set(shift)
        params.append((wp, bp))
    return tuple(params)


# ----------------------------------------------------------------------------
# Device forward (single jit, no host round-trips between layers)
# ----------------------------------------------------------------------------
@functools.partial(jax.jit, static_argnames=("metas", "batch_size", "out_shape"))
def sparse_encoder_forward(voxel_features, params, nbr_tables, out_coords, *,
                           metas, batch_size, out_shape):
    n0, c0 = voxel_features.shape
    # bf16 activations between layers; +8 zero rows guarantee the layer-0 gather
    # sentinel row (index n0) exists and is exactly zero; channels padded to 16.
    feats = jnp.pad(voxel_features.astype(jnp.bfloat16),
                    ((0, 8), (0, metas[0][2] - c0)))

    for nbr, (wp, bp), (m_out, row_tile, cin) in zip(nbr_tables, params, metas):
        src = feats if feats.shape[1] == cin else feats[:, :cin]
        # TODO(synk): this neighbor gather is still an XLA gather materializing
        # the (rows, K*Cin) bf16 im2col block in HBM; fully fusing it into the
        # Pallas kernel needs an in-kernel dynamic sublane gather / DMA gather
        # over a VMEM-resident feature table, which Mosaic cannot express
        # robustly via jnp.take today.
        gathered = jnp.take(src, nbr.reshape(-1), axis=0)       # (Mp*K, Cin) bf16
        x2d = gathered.reshape(nbr.shape[0], nbr.shape[1] * cin)
        feats = fused_gemm_bn_relu(x2d, wp, bp, n_valid=m_out, row_tile=row_tile)

    # out.dense(): (B, C, D, H, W) with zeros off the active set, then
    # .view(N, C*D, H, W).  Scatter is on a tiny tensor -> plain JAX.
    do, ho, wo = out_shape
    m_final = metas[-1][0]
    c_out = _CONV_SPECS[-1][2]
    active = feats[:m_final, :c_out].astype(jnp.float32)
    b4, z4, y4, x4 = (out_coords[:, i] for i in range(4))
    dense = jnp.zeros((batch_size, do, ho, wo, c_out), jnp.float32)
    dense = dense.at[b4, z4, y4, x4].set(active)
    spatial = jnp.transpose(dense, (0, 4, 1, 2, 3)).reshape(
        batch_size, c_out * do, ho, wo)

    # SparseSEBlock(channel=C*D, reduction=16): AdaptiveAvgPool2d(1) +
    # Linear(c, c//16, bias=False) + ReLU + Linear(c//16, c, bias=False) +
    # Sigmoid, weights constant-initialized to 1/in_features.
    # TODO(synk): tiny (B x C) compute, kept in plain JAX (not a Pallas hot path).
    c = c_out * do
    red = max(c // 16, 1)
    w1 = jnp.full((red, c), 1.0 / c, jnp.float32)      # fc[0].weight
    w2 = jnp.full((c, red), 1.0 / red, jnp.float32)    # fc[2].weight
    gate = jnp.mean(spatial, axis=(2, 3))              # (B, c)
    gate = jnp.maximum(gate @ w1.T, 0.0)
    gate = jax.nn.sigmoid(gate @ w2.T)
    return spatial * gate[:, :, None, None]


# ----------------------------------------------------------------------------
# Demo
# ----------------------------------------------------------------------------
if __name__ == "__main__":
    key = jax.random.PRNGKey(0)
    batch_size = 2
    in_channels = 4
    sparse_shape = (25, 16, 16)      # (D=z, H=y, W=x); D collapses to 1 at conv_out
    n_per_batch = 300
    D, H, W = sparse_shape

    k_params, k_coords, k_feat = jax.random.split(key, 3)
    params = init_params(k_params)

    # deterministic unique voxel coordinates per batch element
    coords_list = []
    ck = jax.random.split(k_coords, batch_size)
    for bi in range(batch_size):
        lin = np.asarray(jax.random.permutation(ck[bi], D * H * W)[:n_per_batch])
        zz, yy, xx = np.unravel_index(lin, (D, H, W))
        coords_list.append(np.stack(
            [np.full(n_per_batch, bi), zz, yy, xx], axis=1))
    coors = np.concatenate(coords_list, axis=0).astype(np.int32)   # (N,4) b,z,y,x
    n = coors.shape[0]

    # voxel features: (mean x, mean y, mean z, intensity) per voxel, deterministic
    noise = jax.random.uniform(k_feat, (n, in_channels), jnp.float32, -0.05, 0.05)
    px = (coors[:, 3].astype(np.float32) + 0.5) * 0.1
    py = (coors[:, 2].astype(np.float32) + 0.5) * 0.1 - 40.0
    pz = (coors[:, 1].astype(np.float32) + 0.5) * 0.2 - 3.0
    intensity = np.linspace(0.0, 1.0, n, dtype=np.float32)
    voxel_features = jnp.asarray(np.stack([px, py, pz, intensity], axis=1)) + noise

    # rulebooks built once on host from the integer coords (no mid-forward syncs)
    nbr_tables, metas, out_coords, out_shape = build_plan(
        coors, batch_size, sparse_shape)

    spatial_features = sparse_encoder_forward(
        voxel_features, params, nbr_tables, out_coords,
        metas=metas, batch_size=batch_size, out_shape=out_shape)
    jax.block_until_ready(spatial_features)

    Do, Ho, Wo = out_shape
    assert spatial_features.shape == (batch_size, 128 * Do, Ho, Wo)
    assert spatial_features.shape == (batch_size, 128, H // 8, W // 8)
    assert bool(jnp.all(jnp.isfinite(spatial_features)))
    print("KERNEL_OK")
</pallas_src>

<mosaic_0001>
module attributes {stable_mosaic.version = 11 : i64} {
  func.func @_gemm_bn_relu_kernel(%arg0: i32, %arg1: memref<384x432xbf16, #tpu.memory_space<vmem>>, %arg2: memref<432x128xbf16, #tpu.memory_space<vmem>>, %arg3: memref<1x128xf32, #tpu.memory_space<vmem>>, %arg4: memref<384x128xbf16, #tpu.memory_space<vmem>>) attributes {dimension_semantics = [#tpu.dimension_semantics<parallel>], iteration_bounds = array<i64: 2>, scalar_prefetch = 0 : i64, scratch_operands = 0 : i64, tpu.core_type = #tpu.core_type<tc>, window_params = [{transform_indices = @transform_0, window_bounds = array<i64: 384, 432>}, {pipeline_mode = #tpu.pipeline_mode<synchronous>, transform_indices = @transform_1, window_bounds = array<i64: 432, 128>}, {pipeline_mode = #tpu.pipeline_mode<synchronous>, transform_indices = @transform_2, window_bounds = array<i64: 1, 128>}, {transform_indices = @transform_3, window_bounds = array<i64: 384, 128>}]} {
    %c0 = arith.constant 0 : index
    %c0_0 = arith.constant 0 : index
    %0 = vector.load %arg1[%c0, %c0_0] : memref<384x432xbf16, #tpu.memory_space<vmem>>, vector<384x432xbf16>
    %c0_1 = arith.constant 0 : index
    %c0_2 = arith.constant 0 : index
    %1 = vector.load %arg2[%c0_1, %c0_2] : memref<432x128xbf16, #tpu.memory_space<vmem>>, vector<432x128xbf16>
    %cst = arith.constant dense<0.000000e+00> : vector<384x128xf32>
    %2 = tpu.matmul %0, %1, %cst {dimension_numbers = #tpu.dot_dimension_numbers<[1], [0], [0], [1], [0, 0, 1, 1], [], []>} : vector<384x432xbf16>, vector<432x128xbf16>, vector<384x128xf32> -> vector<384x128xf32>
    %c0_3 = arith.constant 0 : index
    %c0_4 = arith.constant 0 : index
    %3 = vector.load %arg3[%c0_3, %c0_4] : memref<1x128xf32, #tpu.memory_space<vmem>>, vector<1x128xf32>
    %4 = vector.broadcast %3 : vector<1x128xf32> to vector<384x128xf32>
    %5 = arith.addf %2, %4 : vector<384x128xf32>
    %cst_5 = arith.constant 0.000000e+00 : f32
    %6 = vector.broadcast %cst_5 : f32 to vector<384x128xf32>
    %7 = arith.maximumf %5, %6 : vector<384x128xf32>
    %c384_i32 = arith.constant 384 : i32
    %8 = arith.muli %arg0, %c384_i32 : i32
    %9 = tpu.iota {dimensions = array<i32: 0>} : vector<384x128xi32>
    %10 = vector.broadcast %8 : i32 to vector<384x128xi32>
    %11 = arith.addi %10, %9 : vector<384x128xi32>
    %c600_i32 = arith.constant 600 : i32
    %12 = vector.broadcast %c600_i32 : i32 to vector<384x128xi32>
    %13 = arith.cmpi slt, %11, %12 : vector<384x128xi32>
    %cst_6 = arith.constant 0.000000e+00 : f32
    %14 = vector.broadcast %cst_6 : f32 to vector<384x128xf32>
    %15 = arith.select %13, %7, %14 : vector<384x128xi1>, vector<384x128xf32>
    %16 = arith.truncf %15 : vector<384x128xf32> to vector<384x128xbf16>
    %c0_7 = arith.constant 0 : index
    %c0_8 = arith.constant 0 : index
    %17 = vector.load %arg4[%c0_7, %c0_8] : memref<384x128xbf16, #tpu.memory_space<vmem>>, vector<384x128xbf16>
    tpu.vector_store %arg4[%c0_7, %c0_8], %16 {strides = array<i32>} : memref<384x128xbf16, #tpu.memory_space<vmem>>, vector<384x128xbf16>,
    return
  }
  func.func @transform_0(%arg0: i32) -> (i32, i32) {
    %c0_i32 = arith.constant 0 : i32
    %c0_i32_0 = arith.constant 0 : i32
    return %arg0, %c0_i32 : i32, i32
  }
  func.func @transform_1(%arg0: i32) -> (i32, i32) {
    %c0_i32 = arith.constant 0 : i32
    %c0_i32_0 = arith.constant 0 : i32
    %c0_i32_1 = arith.constant 0 : i32
    return %c0_i32, %c0_i32_0 : i32, i32
  }
  func.func @transform_2(%arg0: i32) -> (i32, i32) {
    %c0_i32 = arith.constant 0 : i32
    %c0_i32_0 = arith.constant 0 : i32
    %c0_i32_1 = arith.constant 0 : i32
    return %c0_i32, %c0_i32_0 : i32, i32
  }
  func.func @transform_3(%arg0: i32) -> (i32, i32) {
    %c0_i32 = arith.constant 0 : i32
    %c0_i32_0 = arith.constant 0 : i32
    return %arg0, %c0_i32 : i32, i32
  }
}

module attributes {stable_mosaic.version = 11 : i64} {
  func.func @_gemm_bn_relu_kernel(%arg0: i32, %arg1: memref<512x432xbf16, #tpu.memory_space<vmem>>, %arg2: memref<432x128xbf16, #tpu.memory_space<vmem>>, %arg3: memref<1x128xf32, #tpu.memory_space<vmem>>, %arg4: memref<512x128xbf16, #tpu.memory_space<vmem>>) attributes {dimension_semantics = [#tpu.dimension_semantics<parallel>], iteration_bounds = array<i64: 3>, scalar_prefetch = 0 : i64, scratch_operands = 0 : i64, tpu.core_type = #tpu.core_type<tc>, window_params = [{transform_indices = @transform_0, window_bounds = array<i64: 512, 432>}, {pipeline_mode = #tpu.pipeline_mode<synchronous>, transform_indices = @transform_1, window_bounds = array<i64: 432, 128>}, {pipeline_mode = #tpu.pipeline_mode<synchronous>, transform_indices = @transform_2, window_bounds = array<i64: 1, 128>}, {transform_indices = @transform_3, window_bounds = array<i64: 512, 128>}]} {
    %c0 = arith.constant 0 : index
    %c0_0 = arith.constant 0 : index
    %0 = vector.load %arg1[%c0, %c0_0] : memref<512x432xbf16, #tpu.memory_space<vmem>>, vector<512x432xbf16>
    %c0_1 = arith.constant 0 : index
    %c0_2 = arith.constant 0 : index
    %1 = vector.load %arg2[%c0_1, %c0_2] : memref<432x128xbf16, #tpu.memory_space<vmem>>, vector<432x128xbf16>
    %cst = arith.constant dense<0.000000e+00> : vector<512x128xf32>
    %2 = tpu.matmul %0, %1, %cst {dimension_numbers = #tpu.dot_dimension_numbers<[1], [0], [0], [1], [0, 0, 1, 1], [], []>} : vector<512x432xbf16>, vector<432x128xbf16>, vector<512x128xf32> -> vector<512x128xf32>
    %c0_3 = arith.constant 0 : index
    %c0_4 = arith.constant 0 : index
    %3 = vector.load %arg3[%c0_3, %c0_4] : memref<1x128xf32, #tpu.memory_space<vmem>>, vector<1x128xf32>
    %4 = vector.broadcast %3 : vector<1x128xf32> to vector<512x128xf32>
    %5 = arith.addf %2, %4 : vector<512x128xf32>
    %cst_5 = arith.constant 0.000000e+00 : f32
    %6 = vector.broadcast %cst_5 : f32 to vector<512x128xf32>
    %7 = arith.maximumf %5, %6 : vector<512x128xf32>
    %c512_i32 = arith.constant 512 : i32
    %8 = arith.muli %arg0, %c512_i32 : i32
    %9 = tpu.iota {dimensions = array<i32: 0>} : vector<512x128xi32>
    %10 = vector.broadcast %8 : i32 to vector<512x128xi32>
    %11 = arith.addi %10, %9 : vector<512x128xi32>
    %c1096_i32 = arith.constant 1096 : i32
    %12 = vector.broadcast %c1096_i32 : i32 to vector<512x128xi32>
    %13 = arith.cmpi slt, %11, %12 : vector<512x128xi32>
    %cst_6 = arith.constant 0.000000e+00 : f32
    %14 = vector.broadcast %cst_6 : f32 to vector<512x128xf32>
    %15 = arith.select %13, %7, %14 : vector<512x128xi1>, vector<512x128xf32>
    %16 = arith.truncf %15 : vector<512x128xf32> to vector<512x128xbf16>
    %c0_7 = arith.constant 0 : index
    %c0_8 = arith.constant 0 : index
    %17 = vector.load %arg4[%c0_7, %c0_8] : memref<512x128xbf16, #tpu.memory_space<vmem>>, vector<512x128xbf16>
    tpu.vector_store %arg4[%c0_7, %c0_8], %16 {strides = array<i32>} : memref<512x128xbf16, #tpu.memory_space<vmem>>, vector<512x128xbf16>,
    return
  }
  func.func @transform_0(%arg0: i32) -> (i32, i32) {
    %c0_i32 = arith.constant 0 : i32
    %c0_i32_0 = arith.constant 0 : i32
    return %arg0, %c0_i32 : i32, i32
  }
  func.func @transform_1(%arg0: i32) -> (i32, i32) {
    %c0_i32 = arith.constant 0 : i32
    %c0_i32_0 = arith.constant 0 : i32
    %c0_i32_1 = arith.constant 0 : i32
    return %c0_i32, %c0_i32_0 : i32, i32
  }
  func.func @transform_2(%arg0: i32) -> (i32, i32) {
    %c0_i32 = arith.constant 0 : i32
    %c0_i32_0 = arith.constant 0 : i32
    %c0_i32_1 = arith.constant 0 : i32
    return %c0_i32, %c0_i32_0 : i32, i32
  }
  func.func @transform_3(%arg0: i32) -> (i32, i32) {
    %c0_i32 = arith.constant 0 : i32
    %c0_i32_0 = arith.constant 0 : i32
    return %arg0, %c0_i32 : i32, i32
  }
}

module attributes {stable_mosaic.version = 11 : i64} {
  func.func @_gemm_bn_relu_kernel(%arg0: i32, %arg1: memref<512x864xbf16, #tpu.memory_space<vmem>>, %arg2: memref<864x128xbf16, #tpu.memory_space<vmem>>, %arg3: memref<1x128xf32, #tpu.memory_space<vmem>>, %arg4: memref<512x128xbf16, #tpu.memory_space<vmem>>) attributes {dimension_semantics = [#tpu.dimension_semantics<parallel>], iteration_bounds = array<i64: 3>, scalar_prefetch = 0 : i64, scratch_operands = 0 : i64, tpu.core_type = #tpu.core_type<tc>, window_params = [{transform_indices = @transform_0, window_bounds = array<i64: 512, 864>}, {pipeline_mode = #tpu.pipeline_mode<synchronous>, transform_indices = @transform_1, window_bounds = array<i64: 864, 128>}, {pipeline_mode = #tpu.pipeline_mode<synchronous>, transform_indices = @transform_2, window_bounds = array<i64: 1, 128>}, {transform_indices = @transform_3, window_bounds = array<i64: 512, 128>}]} {
    %c0 = arith.constant 0 : index
    %c0_0 = arith.constant 0 : index
    %0 = vector.load %arg1[%c0, %c0_0] : memref<512x864xbf16, #tpu.memory_space<vmem>>, vector<512x864xbf16>
    %c0_1 = arith.constant 0 : index
    %c0_2 = arith.constant 0 : index
    %1 = vector.load %arg2[%c0_1, %c0_2] : memref<864x128xbf16, #tpu.memory_space<vmem>>, vector<864x128xbf16>
    %cst = arith.constant dense<0.000000e+00> : vector<512x128xf32>
    %2 = tpu.matmul %0, %1, %cst {dimension_numbers = #tpu.dot_dimension_numbers<[1], [0], [0], [1], [0, 0, 1, 1], [], []>} : vector<512x864xbf16>, vector<864x128xbf16>, vector<512x128xf32> -> vector<512x128xf32>
    %c0_3 = arith.constant 0 : index
    %c0_4 = arith.constant 0 : index
    %3 = vector.load %arg3[%c0_3, %c0_4] : memref<1x128xf32, #tpu.memory_space<vmem>>, vector<1x128xf32>
    %4 = vector.broadcast %3 : vector<1x128xf32> to vector<512x128xf32>
    %5 = arith.addf %2, %4 : vector<512x128xf32>
    %cst_5 = arith.constant 0.000000e+00 : f32
    %6 = vector.broadcast %cst_5 : f32 to vector<512x128xf32>
    %7 = arith.maximumf %5, %6 : vector<512x128xf32>
    %c512_i32 = arith.constant 512 : i32
    %8 = arith.muli %arg0, %c512_i32 : i32
    %9 = tpu.iota {dimensions = array<i32: 0>} : vector<512x128xi32>
    %10 = vector.broadcast %8 : i32 to vector<512x128xi32>
    %11 = arith.addi %10, %9 : vector<512x128xi32>
    %c1096_i32 = arith.constant 1096 : i32
    %12 = vector.broadcast %c1096_i32 : i32 to vector<512x128xi32>
    %13 = arith.cmpi slt, %11, %12 : vector<512x128xi32>
    %cst_6 = arith.constant 0.000000e+00 : f32
    %14 = vector.broadcast %cst_6 : f32 to vector<512x128xf32>
    %15 = arith.select %13, %7, %14 : vector<512x128xi1>, vector<512x128xf32>
    %16 = arith.truncf %15 : vector<512x128xf32> to vector<512x128xbf16>
    %c0_7 = arith.constant 0 : index
    %c0_8 = arith.constant 0 : index
    %17 = vector.load %arg4[%c0_7, %c0_8] : memref<512x128xbf16, #tpu.memory_space<vmem>>, vector<512x128xbf16>
    tpu.vector_store %arg4[%c0_7, %c0_8], %16 {strides = array<i32>} : memref<512x128xbf16, #tpu.memory_space<vmem>>, vector<512x128xbf16>,
    return
  }
  func.func @transform_0(%arg0: i32) -> (i32, i32) {
    %c0_i32 = arith.constant 0 : i32
    %c0_i32_0 = arith.constant 0 : i32
    return %arg0, %c0_i32 : i32, i32
  }
  func.func @transform_1(%arg0: i32) -> (i32, i32) {
    %c0_i32 = arith.constant 0 : i32
    %c0_i32_0 = arith.constant 0 : i32
    %c0_i32_1 = arith.constant 0 : i32
    return %c0_i32, %c0_i32_0 : i32, i32
  }
  func.func @transform_2(%arg0: i32) -> (i32, i32) {
    %c0_i32 = arith.constant 0 : i32
    %c0_i32_0 = arith.constant 0 : i32
    %c0_i32_1 = arith.constant 0 : i32
    return %c0_i32, %c0_i32_0 : i32, i32
  }
  func.func @transform_3(%arg0: i32) -> (i32, i32) {
    %c0_i32 = arith.constant 0 : i32
    %c0_i32_0 = arith.constant 0 : i32
    return %arg0, %c0_i32 : i32, i32
  }
}

module attributes {stable_mosaic.version = 11 : i64} {
  func.func @_gemm_bn_relu_kernel(%arg0: i32, %arg1: memref<256x864xbf16, #tpu.memory_space<vmem>>, %arg2: memref<864x128xbf16, #tpu.memory_space<vmem>>, %arg3: memref<1x128xf32, #tpu.memory_space<vmem>>, %arg4: memref<256x128xbf16, #tpu.memory_space<vmem>>) attributes {dimension_semantics = [#tpu.dimension_semantics<parallel>], iteration_bounds = array<i64: 1>, scalar_prefetch = 0 : i64, scratch_operands = 0 : i64, tpu.core_type = #tpu.core_type<tc>, window_params = [{transform_indices = @transform_0, window_bounds = array<i64: 256, 864>}, {pipeline_mode = #tpu.pipeline_mode<synchronous>, transform_indices = @transform_1, window_bounds = array<i64: 864, 128>}, {pipeline_mode = #tpu.pipeline_mode<synchronous>, transform_indices = @transform_2, window_bounds = array<i64: 1, 128>}, {transform_indices = @transform_3, window_bounds = array<i64: 256, 128>}]} {
    %c0 = arith.constant 0 : index
    %c0_0 = arith.constant 0 : index
    %0 = vector.load %arg1[%c0, %c0_0] : memref<256x864xbf16, #tpu.memory_space<vmem>>, vector<256x864xbf16>
    %c0_1 = arith.constant 0 : index
    %c0_2 = arith.constant 0 : index
    %1 = vector.load %arg2[%c0_1, %c0_2] : memref<864x128xbf16, #tpu.memory_space<vmem>>, vector<864x128xbf16>
    %cst = arith.constant dense<0.000000e+00> : vector<256x128xf32>
    %2 = tpu.matmul %0, %1, %cst {dimension_numbers = #tpu.dot_dimension_numbers<[1], [0], [0], [1], [0, 0, 1, 1], [], []>} : vector<256x864xbf16>, vector<864x128xbf16>, vector<256x128xf32> -> vector<256x128xf32>
    %c0_3 = arith.constant 0 : index
    %c0_4 = arith.constant 0 : index
    %3 = vector.load %arg3[%c0_3, %c0_4] : memref<1x128xf32, #tpu.memory_space<vmem>>, vector<1x128xf32>
    %4 = vector.broadcast %3 : vector<1x128xf32> to vector<256x128xf32>
    %5 = arith.addf %2, %4 : vector<256x128xf32>
    %cst_5 = arith.constant 0.000000e+00 : f32
    %6 = vector.broadcast %cst_5 : f32 to vector<256x128xf32>
    %7 = arith.maximumf %5, %6 : vector<256x128xf32>
    %c256_i32 = arith.constant 256 : i32
    %8 = arith.muli %arg0, %c256_i32 : i32
    %9 = tpu.iota {dimensions = array<i32: 0>} : vector<256x128xi32>
    %10 = vector.broadcast %8 : i32 to vector<256x128xi32>
    %11 = arith.addi %10, %9 : vector<256x128xi32>
    %c224_i32 = arith.constant 224 : i32
    %12 = vector.broadcast %c224_i32 : i32 to vector<256x128xi32>
    %13 = arith.cmpi slt, %11, %12 : vector<256x128xi32>
    %cst_6 = arith.constant 0.000000e+00 : f32
    %14 = vector.broadcast %cst_6 : f32 to vector<256x128xf32>
    %15 = arith.select %13, %7, %14 : vector<256x128xi1>, vector<256x128xf32>
    %16 = arith.truncf %15 : vector<256x128xf32> to vector<256x128xbf16>
    %c0_7 = arith.constant 0 : index
    %c0_8 = arith.constant 0 : index
    %17 = vector.load %arg4[%c0_7, %c0_8] : memref<256x128xbf16, #tpu.memory_space<vmem>>, vector<256x128xbf16>
    tpu.vector_store %arg4[%c0_7, %c0_8], %16 {strides = array<i32>} : memref<256x128xbf16, #tpu.memory_space<vmem>>, vector<256x128xbf16>,
    return
  }
  func.func @transform_0(%arg0: i32) -> (i32, i32) {
    %c0_i32 = arith.constant 0 : i32
    %c0_i32_0 = arith.constant 0 : i32
    return %arg0, %c0_i32 : i32, i32
  }
  func.func @transform_1(%arg0: i32) -> (i32, i32) {
    %c0_i32 = arith.constant 0 : i32
    %c0_i32_0 = arith.constant 0 : i32
    %c0_i32_1 = arith.constant 0 : i32
    return %c0_i32, %c0_i32_0 : i32, i32
  }
  func.func @transform_2(%arg0: i32) -> (i32, i32) {
    %c0_i32 = arith.constant 0 : i32
    %c0_i32_0 = arith.constant 0 : i32
    %c0_i32_1 = arith.constant 0 : i32
    return %c0_i32, %c0_i32_0 : i32, i32
  }
  func.func @transform_3(%arg0: i32) -> (i32, i32) {
    %c0_i32 = arith.constant 0 : i32
    %c0_i32_0 = arith.constant 0 : i32
    return %arg0, %c0_i32 : i32, i32
  }
}

module attributes {stable_mosaic.version = 11 : i64} {
  func.func @_gemm_bn_relu_kernel(%arg0: i32, %arg1: memref<256x1728xbf16, #tpu.memory_space<vmem>>, %arg2: memref<1728x128xbf16, #tpu.memory_space<vmem>>, %arg3: memref<1x128xf32, #tpu.memory_space<vmem>>, %arg4: memref<256x128xbf16, #tpu.memory_space<vmem>>) attributes {dimension_semantics = [#tpu.dimension_semantics<parallel>], iteration_bounds = array<i64: 1>, scalar_prefetch = 0 : i64, scratch_operands = 0 : i64, tpu.core_type = #tpu.core_type<tc>, window_params = [{transform_indices = @transform_0, window_bounds = array<i64: 256, 1728>}, {pipeline_mode = #tpu.pipeline_mode<synchronous>, transform_indices = @transform_1, window_bounds = array<i64: 1728, 128>}, {pipeline_mode = #tpu.pipeline_mode<synchronous>, transform_indices = @transform_2, window_bounds = array<i64: 1, 128>}, {transform_indices = @transform_3, window_bounds = array<i64: 256, 128>}]} {
    %c0 = arith.constant 0 : index
    %c0_0 = arith.constant 0 : index
    %0 = vector.load %arg1[%c0, %c0_0] : memref<256x1728xbf16, #tpu.memory_space<vmem>>, vector<256x1728xbf16>
    %c0_1 = arith.constant 0 : index
    %c0_2 = arith.constant 0 : index
    %1 = vector.load %arg2[%c0_1, %c0_2] : memref<1728x128xbf16, #tpu.memory_space<vmem>>, vector<1728x128xbf16>
    %cst = arith.constant dense<0.000000e+00> : vector<256x128xf32>
    %2 = tpu.matmul %0, %1, %cst {dimension_numbers = #tpu.dot_dimension_numbers<[1], [0], [0], [1], [0, 0, 1, 1], [], []>} : vector<256x1728xbf16>, vector<1728x128xbf16>, vector<256x128xf32> -> vector<256x128xf32>
    %c0_3 = arith.constant 0 : index
    %c0_4 = arith.constant 0 : index
    %3 = vector.load %arg3[%c0_3, %c0_4] : memref<1x128xf32, #tpu.memory_space<vmem>>, vector<1x128xf32>
    %4 = vector.broadcast %3 : vector<1x128xf32> to vector<256x128xf32>
    %5 = arith.addf %2, %4 : vector<256x128xf32>
    %cst_5 = arith.constant 0.000000e+00 : f32
    %6 = vector.broadcast %cst_5 : f32 to vector<256x128xf32>
    %7 = arith.maximumf %5, %6 : vector<256x128xf32>
    %c256_i32 = arith.constant 256 : i32
    %8 = arith.muli %arg0, %c256_i32 : i32
    %9 = tpu.iota {dimensions = array<i32: 0>} : vector<256x128xi32>
    %10 = vector.broadcast %8 : i32 to vector<256x128xi32>
    %11 = arith.addi %10, %9 : vector<256x128xi32>
    %c224_i32 = arith.constant 224 : i32
    %12 = vector.broadcast %c224_i32 : i32 to vector<256x128xi32>
    %13 = arith.cmpi slt, %11, %12 : vector<256x128xi32>
    %cst_6 = arith.constant 0.000000e+00 : f32
    %14 = vector.broadcast %cst_6 : f32 to vector<256x128xf32>
    %15 = arith.select %13, %7, %14 : vector<256x128xi1>, vector<256x128xf32>
    %16 = arith.truncf %15 : vector<256x128xf32> to vector<256x128xbf16>
    %c0_7 = arith.constant 0 : index
    %c0_8 = arith.constant 0 : index
    %17 = vector.load %arg4[%c0_7, %c0_8] : memref<256x128xbf16, #tpu.memory_space<vmem>>, vector<256x128xbf16>
    tpu.vector_store %arg4[%c0_7, %c0_8], %16 {strides = array<i32>} : memref<256x128xbf16, #tpu.memory_space<vmem>>, vector<256x128xbf16>,
    return
  }
  func.func @transform_0(%arg0: i32) -> (i32, i32) {
    %c0_i32 = arith.constant 0 : i32
    %c0_i32_0 = arith.constant 0 : i32
    return %arg0, %c0_i32 : i32, i32
  }
  func.func @transform_1(%arg0: i32) -> (i32, i32) {
    %c0_i32 = arith.constant 0 : i32
    %c0_i32_0 = arith.constant 0 : i32
    %c0_i32_1 = arith.constant 0 : i32
    return %c0_i32, %c0_i32_0 : i32, i32
  }
  func.func @transform_2(%arg0: i32) -> (i32, i32) {
    %c0_i32 = arith.constant 0 : i32
    %c0_i32_0 = arith.constant 0 : i32
    %c0_i32_1 = arith.constant 0 : i32
    return %c0_i32, %c0_i32_0 : i32, i32
  }
  func.func @transform_3(%arg0: i32) -> (i32, i32) {
    %c0_i32 = arith.constant 0 : i32
    %c0_i32_0 = arith.constant 0 : i32
    return %arg0, %c0_i32 : i32, i32
  }
}

module attributes {stable_mosaic.version = 11 : i64} {
  func.func @_gemm_bn_relu_kernel(%arg0: i32, %arg1: memref<128x1728xbf16, #tpu.memory_space<vmem>>, %arg2: memref<1728x128xbf16, #tpu.memory_space<vmem>>, %arg3: memref<1x128xf32, #tpu.memory_space<vmem>>, %arg4: memref<128x128xbf16, #tpu.memory_space<vmem>>) attributes {dimension_semantics = [#tpu.dimension_semantics<parallel>], iteration_bounds = array<i64: 1>, scalar_prefetch = 0 : i64, scratch_operands = 0 : i64, tpu.core_type = #tpu.core_type<tc>, window_params = [{transform_indices = @transform_0, window_bounds = array<i64: 128, 1728>}, {pipeline_mode = #tpu.pipeline_mode<synchronous>, transform_indices = @transform_1, window_bounds = array<i64: 1728, 128>}, {pipeline_mode = #tpu.pipeline_mode<synchronous>, transform_indices = @transform_2, window_bounds = array<i64: 1, 128>}, {transform_indices = @transform_3, window_bounds = array<i64: 128, 128>}]} {
    %c0 = arith.constant 0 : index
    %c0_0 = arith.constant 0 : index
    %0 = vector.load %arg1[%c0, %c0_0] : memref<128x1728xbf16, #tpu.memory_space<vmem>>, vector<128x1728xbf16>
    %c0_1 = arith.constant 0 : index
    %c0_2 = arith.constant 0 : index
    %1 = vector.load %arg2[%c0_1, %c0_2] : memref<1728x128xbf16, #tpu.memory_space<vmem>>, vector<1728x128xbf16>
    %cst = arith.constant dense<0.000000e+00> : vector<128x128xf32>
    %2 = tpu.matmul %0, %1, %cst {dimension_numbers = #tpu.dot_dimension_numbers<[1], [0], [0], [1], [0, 0, 1, 1], [], []>} : vector<128x1728xbf16>, vector<1728x128xbf16>, vector<128x128xf32> -> vector<128x128xf32>
    %c0_3 = arith.constant 0 : index
    %c0_4 = arith.constant 0 : index
    %3 = vector.load %arg3[%c0_3, %c0_4] : memref<1x128xf32, #tpu.memory_space<vmem>>, vector<1x128xf32>
    %4 = vector.broadcast %3 : vector<1x128xf32> to vector<128x128xf32>
    %5 = arith.addf %2, %4 : vector<128x128xf32>
    %cst_5 = arith.constant 0.000000e+00 : f32
    %6 = vector.broadcast %cst_5 : f32 to vector<128x128xf32>
    %7 = arith.maximumf %5, %6 : vector<128x128xf32>
    %c128_i32 = arith.constant 128 : i32
    %8 = arith.muli %arg0, %c128_i32 : i32
    %9 = tpu.iota {dimensions = array<i32: 0>} : vector<128x128xi32>
    %10 = vector.broadcast %8 : i32 to vector<128x128xi32>
    %11 = arith.addi %10, %9 : vector<128x128xi32>
    %c24_i32 = arith.constant 24 : i32
    %12 = vector.broadcast %c24_i32 : i32 to vector<128x128xi32>
    %13 = arith.cmpi slt, %11, %12 : vector<128x128xi32>
    %cst_6 = arith.constant 0.000000e+00 : f32
    %14 = vector.broadcast %cst_6 : f32 to vector<128x128xf32>
    %15 = arith.select %13, %7, %14 : vector<128x128xi1>, vector<128x128xf32>
    %16 = arith.truncf %15 : vector<128x128xf32> to vector<128x128xbf16>
    %c0_7 = arith.constant 0 : index
    %c0_8 = arith.constant 0 : index
    %17 = vector.load %arg4[%c0_7, %c0_8] : memref<128x128xbf16, #tpu.memory_space<vmem>>, vector<128x128xbf16>
    tpu.vector_store %arg4[%c0_7, %c0_8], %16 {strides = array<i32>} : memref<128x128xbf16, #tpu.memory_space<vmem>>, vector<128x128xbf16>,
    return
  }
  func.func @transform_0(%arg0: i32) -> (i32, i32) {
    %c0_i32 = arith.constant 0 : i32
    %c0_i32_0 = arith.constant 0 : i32
    return %arg0, %c0_i32 : i32, i32
  }
  func.func @transform_1(%arg0: i32) -> (i32, i32) {
    %c0_i32 = arith.constant 0 : i32
    %c0_i32_0 = arith.constant 0 : i32
    %c0_i32_1 = arith.constant 0 : i32
    return %c0_i32, %c0_i32_0 : i32, i32
  }
  func.func @transform_2(%arg0: i32) -> (i32, i32) {
    %c0_i32 = arith.constant 0 : i32
    %c0_i32_0 = arith.constant 0 : i32
    %c0_i32_1 = arith.constant 0 : i32
    return %c0_i32, %c0_i32_0 : i32, i32
  }
  func.func @transform_3(%arg0: i32) -> (i32, i32) {
    %c0_i32 = arith.constant 0 : i32
    %c0_i32_0 = arith.constant 0 : i32
    return %arg0, %c0_i32 : i32, i32
  }
}

module attributes {stable_mosaic.version = 11 : i64} {
  func.func @_gemm_bn_relu_kernel(%arg0: i32, %arg1: memref<128x192xbf16, #tpu.memory_space<vmem>>, %arg2: memref<192x128xbf16, #tpu.memory_space<vmem>>, %arg3: memref<1x128xf32, #tpu.memory_space<vmem>>, %arg4: memref<128x128xbf16, #tpu.memory_space<vmem>>) attributes {dimension_semantics = [#tpu.dimension_semantics<parallel>], iteration_bounds = array<i64: 1>, scalar_prefetch = 0 : i64, scratch_operands = 0 : i64, tpu.core_type = #tpu.core_type<tc>, window_params = [{transform_indices = @transform_0, window_bounds = array<i64: 128, 192>}, {pipeline_mode = #tpu.pipeline_mode<synchronous>, transform_indices = @transform_1, window_bounds = array<i64: 192, 128>}, {pipeline_mode = #tpu.pipeline_mode<synchronous>, transform_indices = @transform_2, window_bounds = array<i64: 1, 128>}, {transform_indices = @transform_3, window_bounds = array<i64: 128, 128>}]} {
    %c0 = arith.constant 0 : index
    %c0_0 = arith.constant 0 : index
    %0 = vector.load %arg1[%c0, %c0_0] : memref<128x192xbf16, #tpu.memory_space<vmem>>, vector<128x192xbf16>
    %c0_1 = arith.constant 0 : index
    %c0_2 = arith.constant 0 : index
    %1 = vector.load %arg2[%c0_1, %c0_2] : memref<192x128xbf16, #tpu.memory_space<vmem>>, vector<192x128xbf16>
    %cst = arith.constant dense<0.000000e+00> : vector<128x128xf32>
    %2 = tpu.matmul %0, %1, %cst {dimension_numbers = #tpu.dot_dimension_numbers<[1], [0], [0], [1], [0, 0, 1, 1], [], []>} : vector<128x192xbf16>, vector<192x128xbf16>, vector<128x128xf32> -> vector<128x128xf32>
    %c0_3 = arith.constant 0 : index
    %c0_4 = arith.constant 0 : index
    %3 = vector.load %arg3[%c0_3, %c0_4] : memref<1x128xf32, #tpu.memory_space<vmem>>, vector<1x128xf32>
    %4 = vector.broadcast %3 : vector<1x128xf32> to vector<128x128xf32>
    %5 = arith.addf %2, %4 : vector<128x128xf32>
    %cst_5 = arith.constant 0.000000e+00 : f32
    %6 = vector.broadcast %cst_5 : f32 to vector<128x128xf32>
    %7 = arith.maximumf %5, %6 : vector<128x128xf32>
    %c128_i32 = arith.constant 128 : i32
    %8 = arith.muli %arg0, %c128_i32 : i32
    %9 = tpu.iota {dimensions = array<i32: 0>} : vector<128x128xi32>
    %10 = vector.broadcast %8 : i32 to vector<128x128xi32>
    %11 = arith.addi %10, %9 : vector<128x128xi32>
    %c8_i32 = arith.constant 8 : i32
    %12 = vector.broadcast %c8_i32 : i32 to vector<128x128xi32>
    %13 = arith.cmpi slt, %11, %12 : vector<128x128xi32>
    %cst_6 = arith.constant 0.000000e+00 : f32
    %14 = vector.broadcast %cst_6 : f32 to vector<128x128xf32>
    %15 = arith.select %13, %7, %14 : vector<128x128xi1>, vector<128x128xf32>
    %16 = arith.truncf %15 : vector<128x128xf32> to vector<128x128xbf16>
    %c0_7 = arith.constant 0 : index
    %c0_8 = arith.constant 0 : index
    %17 = vector.load %arg4[%c0_7, %c0_8] : memref<128x128xbf16, #tpu.memory_space<vmem>>, vector<128x128xbf16>
    tpu.vector_store %arg4[%c0_7, %c0_8], %16 {strides = array<i32>} : memref<128x128xbf16, #tpu.memory_space<vmem>>, vector<128x128xbf16>,
    return
  }
  func.func @transform_0(%arg0: i32) -> (i32, i32) {
    %c0_i32 = arith.constant 0 : i32
    %c0_i32_0 = arith.constant 0 : i32
    return %arg0, %c0_i32 : i32, i32
  }
  func.func @transform_1(%arg0: i32) -> (i32, i32) {
    %c0_i32 = arith.constant 0 : i32
    %c0_i32_0 = arith.constant 0 : i32
    %c0_i32_1 = arith.constant 0 : i32
    return %c0_i32, %c0_i32_0 : i32, i32
  }
  func.func @transform_2(%arg0: i32) -> (i32, i32) {
    %c0_i32 = arith.constant 0 : i32
    %c0_i32_0 = arith.constant 0 : i32
    %c0_i32_1 = arith.constant 0 : i32
    return %c0_i32, %c0_i32_0 : i32, i32
  }
  func.func @transform_3(%arg0: i32) -> (i32, i32) {
    %c0_i32 = arith.constant 0 : i32
    %c0_i32_0 = arith.constant 0 : i32
    return %arg0, %c0_i32 : i32, i32
  }
}

</mosaic_0001>

<bundles_post_ra>
// kernel: sparse_encoder_forward.12
= control target key start
LH: loop header
LB: loop body
LE: loop exit
PB: predicated region body
PF: predicated region fallthrough
CT: control target
= control target key end

     0   :  { %s2623_s12 = smov 0   ;;  %s3055_s0 = inlined_call_operand.vmem [shape: bf16[768,432], index: 0, kind: input, shape index: {}]   ;;  %s3056_s1 = inlined_call_operand.vmem [shape: bf16[432,128], index: 1, kind: input, shape index: {}]   ;;  %s3057_s2 = inlined_call_operand.vmem [shape: f32[1,128], index: 2, kind: input, shape index: {}]   ;;  %s3058_s3 = inlined_call_operand.vmem [shape: bf16[768,128], index: 3, kind: output, shape index: {}]  }
   0x1 LB: > { %s2015_s13 = sadd.s32 4294967295, %s2600_s12   ;;  %p2019_p0 = scmp.ge.s32.totalorder %s2600_s12, 1  ;;  %s2600_s12 = sphi %s2623_s12, %s13_s12  }
   0x2   : > { %p139_p1 = scmp.lt.s32.totalorder %s2600_s12, 3 }
   0x4   : > { %p140_p2 = pnand %p2019_p0, %p139_p1 }
   0x5   : > { %s164_s24 = smul.u32 (!%p140_p2), 48, %s2015_s13 }
   0x6   : > { %143 = sbr.rel (%p140_p2) target bundleno = 467 (0x1d3), region = 32 }
   0x7   : > { %p165_p3 = scmp.lt.s32.totalorder (!%p140_p2), %s164_s24, 95  ;;  %s1524_s26 = smul.u32 (!%p140_p2), 384, %s2015_s13 }
   0xb   : > { %v2422_v0 = vld [vmem:[%s3056_s1 + $0x38] sm:$0xff]   ;;  %v2602_v1 = vmov 0   ;;  %v2423_v2 = vld [vmem:[%s3056_s1 + $0x30] sm:$0xff]   ;;  %v2424_v4 = vld [vmem:[%s3056_s1 + $0x28] sm:$0xff]   ;;  %s3060_s24 = smov (!%p165_p3, %s164_s24), 95  ;;  %vm953_vm0 = vcmask 392192  }
   0xc   : > { %1026 = vmatprep.subr.bf16.mxu0 %v2602_v1  ;;  %1251 = vmatprep.subr.bf16.mxu1 %v2602_v1  ;;  %v2427_v3 = vld [vmem:[%s3056_s1 + $0xb8] sm:$0xff]   ;;  %v2429_v5 = vld [vmem:[%s3056_s1 + $0xb0] sm:$0xff]   ;;  %v2425_v6 = vld [vmem:[%s3056_s1 + $0x20] sm:$0xff]   ;;  %s2221_s10 = sshll.u32 %s3060_s24, 4  ;;  %s2022_s13 = sshll.u32 %s3060_s24, 2 }
   0xd   : > { %1027 = vmatpush1.bf16.msra.mxu0 %v2422_v0  ;;  %1252 = vmatpush1.bf16.msra.mxu1 %v2427_v3  ;;  %v2431_v7 = vld [vmem:[%s3056_s1 + $0xa8] sm:$0xff]   ;;  %v2426_v8 = vld [vmem:[%s3056_s1 + $0x18] sm:$0xff]   ;;  %v2433_v9 = vld [vmem:[%s3056_s1 + $0xa0] sm:$0xff]   ;;  %s2691_s19 = scalar_lea.vmem %s3055_s0, %s2221_s10  ;;  %s2893_s30 = scalar_lea.vmem %s3058_s3, %s2022_s13 }
   0xe   : > { %1028 = vmatprep.subr.bf16.mxu0 %v2602_v1  ;;  %1253 = vmatprep.subr.bf16.mxu1 %v2602_v1  ;;  %v2428_v10 = vld [vmem:[%s3056_s1 + $0x10] sm:$0xff]   ;;  %v2435_v11 = vld [vmem:[%s3056_s1 + $0x98] sm:$0xff]   ;;  %v2430_v12 = vld [vmem:[%s3056_s1 + $0x8] sm:$0xff]  }
   0xf   : > { %v2437_v13 = vld [vmem:[%s3056_s1 + $0x90] sm:$0xff]   ;;  %v2432_v14 = vld [vmem:[%s3056_s1] sm:$0xff]   ;;  %v2439_v15 = vld [vmem:[%s3056_s1 + $0x88] sm:$0xff]  }
  0x10   : > { %v2450_v16 = vld [vmem:[%s2691_s19 + $0xc] ss:$16 sps:$4 sm:$0xff]   ;;  %v2454_v17 = vld [vmem:[%s2691_s19 + $0x4] ss:$16 sps:$4 sm:$0xff]   ;;  %v2448_v27 = vld [vmem:[%s2691_s19 + $0x8] ss:$16 sps:$4 sm:$0xff]  }
  0x11   : > { %1029 = vmatpush1.bf16.msra.mxu0 %v2423_v2  ;;  %1254 = vmatpush1.bf16.msra.mxu1 %v2429_v5  ;;  %v2434_v18 = vld [vmem:[%s3056_s1 + $0x78] sm:$0xff]   ;;  %v2441_v19 = vld [vmem:[%s3056_s1 + $0x80] sm:$0xff]   ;;  %v2436_v20 = vld [vmem:[%s3056_s1 + $0x70] sm:$0xff]  }
  0x12   : > { %1030 = vmatprep.subr.bf16.mxu0 %v2602_v1  ;;  %1255 = vmatprep.subr.bf16.mxu1 %v2602_v1  ;;  %v2443_v21 = vld [vmem:[%s3056_s1 + $0xd0] sm:$0xff]   ;;  %v2438_v22 = vld [vmem:[%s3056_s1 + $0x68] sm:$0xff]   ;;  %v2440_v24 = vld [vmem:[%s3056_s1 + $0x60] sm:$0xff]  }
  0x13   : > { %2147 = vmatprep.mubr.msk.bf16.mxu1 %vm953_vm0, %v2450_v16  ;;  %1058 = vmatprep.mubr.bf16.mxu0 %v2454_v17  ;;  %v2445_v23 = vld [vmem:[%s3056_s1 + $0xc8] sm:$0xff]   ;;  %v2447_v25 = vld [vmem:[%s3056_s1 + $0xc0] sm:$0xff]   ;;  %v2442_v26 = vld [vmem:[%s3056_s1 + $0x58] sm:$0xff]  }
  0x14   : > { %v2455_v28 = vld [vmem:[%s2691_s19 + $0x2c] ss:$16 sps:$4 sm:$0xff]   ;;  %v2444_v29 = vld [vmem:[%s3056_s1 + $0x50] sm:$0xff]   ;;  %v2457_v31 = vld [vmem:[%s2691_s19 + $0x28] ss:$16 sps:$4 sm:$0xff]  }
  0x15   : > { %1031 = vmatpush1.bf16.msra.mxu0 %v2424_v4  ;;  %1256 = vmatpush1.bf16.msra.mxu1 %v2431_v7  ;;  %v2446_v30 = vld [vmem:[%s3056_s1 + $0x48] sm:$0xff]   ;;  %v2451_v33 = vld [vmem:[%s3056_s1 + $0x40] sm:$0xff]  }
  0x16   : > { %1032 = vmatprep.subr.bf16.mxu0 %v2602_v1  ;;  %1257 = vmatprep.subr.bf16.mxu1 %v2602_v1  ;;  %v2461_v32 = vld [vmem:[%s2691_s19 + $0x4c] ss:$16 sps:$4 sm:$0xff]   ;;  %v2452_v34 = vld [vmem:[%s2691_s19] ss:$16 sps:$4 sm:$0xff]   ;;  %v2458_v35 = vld [vmem:[%s2691_s19 + $0x24] ss:$16 sps:$4 sm:$0xff]  }
  0x17   : > { %v2463_v36 = vld [vmem:[%s2691_s19 + $0x48] ss:$16 sps:$4 sm:$0xff]   ;;  %v2467_v37 = vld [vmem:[%s2691_s19 + $0x6c] ss:$16 sps:$4 sm:$0xff]   ;;  %v2460_v38 = vld [vmem:[%s2691_s19 + $0x20] ss:$16 sps:$4 sm:$0xff]  }
  0x18   : > { %v2464_v39 = vld [vmem:[%s2691_s19 + $0x44] ss:$16 sps:$4 sm:$0xff]   ;;  %v2469_v40 = vld [vmem:[%s2691_s19 + $0x68] ss:$16 sps:$4 sm:$0xff]   ;;  %v2473_v41 = vld [vmem:[%s2691_s19 + $0x8c] ss:$16 sps:$4 sm:$0xff]  }
  0x19   : > { %1033 = vmatpush1.bf16.msra.mxu0 %v2425_v6  ;;  %1258 = vmatpush1.bf16.msra.mxu1 %v2433_v9  ;;  %v2466_v42 = vld [vmem:[%s2691_s19 + $0x40] ss:$16 sps:$4 sm:$0xff]   ;;  %v2470_v43 = vld [vmem:[%s2691_s19 + $0x64] ss:$16 sps:$4 sm:$0xff]   ;;  %v2475_v44 = vld [vmem:[%s2691_s19 + $0x88] ss:$16 sps:$4 sm:$0xff]  }
  0x1a   : > { %1034 = vmatprep.subr.bf16.mxu0 %v2602_v1  ;;  %1259 = vmatprep.subr.bf16.mxu1 %v2602_v1  ;;  %v2479_v45 = vld [vmem:[%s2691_s19 + $0xac] ss:$16 sps:$4 sm:$0xff]   ;;  %v2472_v46 = vld [vmem:[%s2691_s19 + $0x60] ss:$16 sps:$4 sm:$0xff]   ;;  %v2476_v47 = vld [vmem:[%s2691_s19 + $0x84] ss:$16 sps:$4 sm:$0xff]  }
  0x1b   : > { %v2481_v48 = vld [vmem:[%s2691_s19 + $0xa8] ss:$16 sps:$4 sm:$0xff]   ;;  %v2485_v49 = vld [vmem:[%s2691_s19 + $0xcc] ss:$16 sps:$4 sm:$0xff]   ;;  %v2478_v50 = vld [vmem:[%s2691_s19 + $0x80] ss:$16 sps:$4 sm:$0xff]  }
  0x1c   : > { %v2482_v51 = vld [vmem:[%s2691_s19 + $0xa4] ss:$16 sps:$4 sm:$0xff]   ;;  %v2487_v52 = vld [vmem:[%s2691_s19 + $0xc8] ss:$16 sps:$4 sm:$0xff]   ;;  %v2491_v53 = vld [vmem:[%s2691_s19 + $0xec] ss:$16 sps:$4 sm:$0xff]  }
  0x1d   : > { %1035 = vmatpush1.bf16.msra.mxu0 %v2426_v8  ;;  %1260 = vmatpush1.bf16.msra.mxu1 %v2435_v11  ;;  %v2484_v54 = vld [vmem:[%s2691_s19 + $0xa0] ss:$16 sps:$4 sm:$0xff]   ;;  %v2488_v55 = vld [vmem:[%s2691_s19 + $0xc4] ss:$16 sps:$4 sm:$0xff]   ;;  %v2493_v56 = vld [vmem:[%s2691_s19 + $0xe8] ss:$16 sps:$4 sm:$0xff]  }
  0x1e   : > { %1036 = vmatprep.subr.bf16.mxu0 %v2602_v1  ;;  %1261 = vmatprep.subr.bf16.mxu1 %v2602_v1  ;;  %v2497_v57 = vld [vmem:[%s2691_s19 + $0x10c] ss:$16 sps:$4 sm:$0xff]   ;;  %v2490_v58 = vld [vmem:[%s2691_s19 + $0xc0] ss:$16 sps:$4 sm:$0xff]   ;;  %v2494_v59 = vld [vmem:[%s2691_s19 + $0xe4] ss:$16 sps:$4 sm:$0xff]  }
  0x1f   : > { %v2499_v60 = vld [vmem:[%s2691_s19 + $0x108] ss:$16 sps:$4 sm:$0xff]   ;;  %v2503_v61 = vld [vmem:[%s2691_s19 + $0x12c] ss:$16 sps:$4 sm:$0xff]   ;;  %v2496_v62 = vld [vmem:[%s2691_s19 + $0xe0] ss:$16 sps:$4 sm:$0xff]  }
  0x20   : > { %v2500_v63 = vld [vmem:[%s2691_s19 + $0x104] ss:$16 sps:$4 sm:$0xff]   ;;  %v2505_v0 = vld [vmem:[%s2691_s19 + $0x128] ss:$16 sps:$4 sm:$0xff]   ;;  %v2502_v2 = vld [vmem:[%s2691_s19 + $0x100] ss:$16 sps:$4 sm:$0xff]  }
  0x21   : > { %1037 = vmatpush1.bf16.msra.mxu0 %v2428_v10  ;;  %1262 = vmatpush1.bf16.msra.mxu1 %v2437_v13  ;;  %v2506_v3 = vld [vmem:[%s2691_s19 + $0x124] ss:$16 sps:$4 sm:$0xff]   ;;  %v2511_v4 = vld [vmem:[%s2691_s19 + $0x148] ss:$16 sps:$4 sm:$0xff]   ;;  %v2515_v5 = vld [vmem:[%s2691_s19 + $0x16c] ss:$16 sps:$4 sm:$0xff]  }
  0x22   : > { %1038 = vmatprep.subr.bf16.mxu0 %v2602_v1  ;;  %1263 = vmatprep.subr.bf16.mxu1 %v2602_v1  ;;  %v2508_v6 = vld [vmem:[%s2691_s19 + $0x120] ss:$16 sps:$4 sm:$0xff]   ;;  %v2512_v7 = vld [vmem:[%s2691_s19 + $0x144] ss:$16 sps:$4 sm:$0xff]   ;;  %v2517_v8 = vld [vmem:[%s2691_s19 + $0x168] ss:$16 sps:$4 sm:$0xff]  }
  0x23   : > { %v2521_v9 = vld [vmem:[%s2691_s19 + $0x18c] ss:$16 sps:$4 sm:$0xff]   ;;  %v2514_v10 = vld [vmem:[%s2691_s19 + $0x140] ss:$16 sps:$4 sm:$0xff]   ;;  %v2518_v11 = vld [vmem:[%s2691_s19 + $0x164] ss:$16 sps:$4 sm:$0xff]  }
  0x24   : > { %v2527_v13 = vld [vmem:[%s2691_s19 + $0x1ac] ss:$16 sps:$4 sm:$0xff]   ;;  %v2529_v16 = vld [vmem:[%s2691_s19 + $0x1a8] ss:$16 sps:$4 sm:$0xff]  }
  0x25   : > { %1039 = vmatpush1.bf16.msra.mxu0 %v2430_v12  ;;  %1264 = vmatpush1.bf16.msra.mxu1 %v2439_v15  ;;  %v2523_v12 = vld [vmem:[%s2691_s19 + $0x188] ss:$16 sps:$4 sm:$0xff]   ;;  %v2524_v15 = vld [vmem:[%s2691_s19 + $0x184] ss:$16 sps:$4 sm:$0xff]   ;;  %v2533_v17 = vld [vmem:[%s2691_s19 + $0x1cc] ss:$16 sps:$4 sm:$0xff]  }
  0x26   : > { %1040 = vmatprep.subr.bf16.mxu0 %v2602_v1  ;;  %1265 = vmatprep.subr.bf16.mxu1 %v2602_v1 }
  0x29   : > { %1041 = vmatpush1.bf16.msra.mxu0 %v2432_v14  ;;  %1266 = vmatpush1.bf16.msra.mxu1 %v2441_v19  ;;  %v2520_v14 = vld [vmem:[%s2691_s19 + $0x160] ss:$16 sps:$4 sm:$0xff]   ;;  %v2530_v19 = vld [vmem:[%s2691_s19 + $0x1a4] ss:$16 sps:$4 sm:$0xff]  }
  0x2a   : > { %1042 = vmatprep.subr.bf16.mxu0 %v2602_v1  ;;  %1277 = vmatprep.subr.bf16.mxu1 %v2602_v1 }
  0x2d   : > { %1043 = vmatpush2.bf16.msra.mxu0 %v2434_v18  ;;  %1278 = vmatpush2.bf16.msra.mxu1 %v2443_v21  ;;  %v2526_v18 = vld [vmem:[%s2691_s19 + $0x180] ss:$16 sps:$4 sm:$0xff]   ;;  %v2539_v21 = vld [vmem:[%s2691_s19 + $0x1ec] ss:$16 sps:$4 sm:$0xff]  }
  0x2e   : > { %1044 = vmatprep.subr.bf16.mxu0 %v2602_v1  ;;  %1279 = vmatprep.subr.bf16.mxu1 %v2602_v1 }
  0x31   : > { %1045 = vmatpush2.bf16.msra.mxu0 %v2436_v20  ;;  %1280 = vmatpush2.bf16.msra.mxu1 %v2445_v23  ;;  %v2535_v20 = vld [vmem:[%s2691_s19 + $0x1c8] ss:$16 sps:$4 sm:$0xff]   ;;  %v2536_v23 = vld [vmem:[%s2691_s19 + $0x1c4] ss:$16 sps:$4 sm:$0xff]  }
  0x32   : > { %1046 = vmatprep.subr.bf16.mxu0 %v2602_v1  ;;  %1281 = vmatprep.subr.bf16.mxu1 %v2602_v1 }
  0x35   : > { %1047 = vmatpush2.bf16.msra.mxu0 %v2438_v22  ;;  %1282 = vmatpush2.bf16.msra.mxu1 %v2447_v25  ;;  %v2532_v22 = vld [vmem:[%s2691_s19 + $0x1a0] ss:$16 sps:$4 sm:$0xff]   ;;  %v2545_v25 = vld [vmem:[%s2691_s19 + $0x20c] ss:$16 sps:$4 sm:$0xff]  }
  0x36   : > { %1048 = vmatprep.subr.bf16.mxu0 %v2602_v1 }
  0x38   : > { %1284 = vmatmul.mubr.bf16.vlgmr.msra.gmra.mxu1 %v2448_v27  ;;  %v2542_v27 = vld [vmem:[%s2691_s19 + $0x1e4] ss:$16 sps:$4 sm:$0xff]  }
  0x39   : > { %1049 = vmatpush2.bf16.msra.mxu0 %v2440_v24  ;;  %2148 = vmatprep.mubr.msk.bf16.mxu1 %vm953_vm0, %v2455_v28  ;;  %v2541_v24 = vld [vmem:[%s2691_s19 + $0x1e8] ss:$16 sps:$4 sm:$0xff]  }
  0x3a   : > { %1050 = vmatprep.subr.bf16.mxu0 %v2602_v1  ;;  %v2547_v28 = vld [vmem:[%s2691_s19 + $0x208] ss:$16 sps:$4 sm:$0xff]  }
  0x3d   : > { %1051 = vmatpush2.bf16.msra.mxu0 %v2442_v26  ;;  %v2538_v26 = vld [vmem:[%s2691_s19 + $0x1c0] ss:$16 sps:$4 sm:$0xff]  }
  0x3e   : > { %1052 = vmatprep.subr.bf16.mxu0 %v2602_v1 }
  0x40   : > { %1292 = vmatmul.mubr.bf16.gmra.mxu1 %v2457_v31  ;;  %v2548_v31 = vld [vmem:[%s2691_s19 + $0x204] ss:$16 sps:$4 sm:$0xff]  }
  0x41   : > { %1053 = vmatpush2.bf16.msra.mxu0 %v2444_v29  ;;  %2149 = vmatprep.mubr.msk.bf16.mxu1 %vm953_vm0, %v2461_v32  ;;  %v2551_v29 = vld [vmem:[%s2691_s19 + $0x22c] ss:$16 sps:$4 sm:$0xff]   ;;  %v2553_v32 = vld [vmem:[%s2691_s19 + $0x228] ss:$16 sps:$4 sm:$0xff]  }
  0x42   : > { %1054 = vmatprep.subr.bf16.mxu0 %v2602_v1 }
  0x45   : > { %1055 = vmatpush2.bf16.msra.mxu0 %v2446_v30  ;;  %v2544_v30 = vld [vmem:[%s2691_s19 + $0x1e0] ss:$16 sps:$4 sm:$0xff]  }
  0x46   : > { %1056 = vmatprep.subr.bf16.mxu0 %v2602_v1  ;;  %v2509_v1 = vld [vmem:[%s2691_s19 + $0x14c] ss:$16 sps:$4 sm:$0xff]  }
  0x48   : > { %1300 = vmatmul.mubr.bf16.gmra.mxu1 %v2463_v36  ;;  %v2559_v36 = vld [vmem:[%s2691_s19 + $0x248] ss:$16 sps:$4 sm:$0xff]  }
  0x49   : > { %1057 = vmatpush2.bf16.msra.mxu0 %v2451_v33  ;;  %2150 = vmatprep.mubr.msk.bf16.mxu1 %vm953_vm0, %v2467_v37  ;;  %v2557_v33 = vld [vmem:[%s2691_s19 + $0x24c] ss:$16 sps:$4 sm:$0xff]  }
  0x4a   : > { %v2563_v37 = vld [vmem:[%s2691_s19 + $0x26c] ss:$16 sps:$4 sm:$0xff]  }
  0x4c   : > { %1059 = vmatmul.mubr.bf16.vlgmr.msra.gmra.mxu0 %v2452_v34  ;;  %v2550_v34 = vld [vmem:[%s2691_s19 + $0x200] ss:$16 sps:$4 sm:$0xff]  }
  0x4d   : > { %1066 = vmatprep.mubr.bf16.mxu0 %v2458_v35  ;;  %v2554_v35 = vld [vmem:[%s2691_s19 + $0x224] ss:$16 sps:$4 sm:$0xff]  }
  0x50   : > { %1308 = vmatmul.mubr.bf16.gmra.mxu1 %v2469_v40  ;;  %v2565_v40 = vld [vmem:[%s2691_s19 + $0x268] ss:$16 sps:$4 sm:$0xff]  }
  0x51   : > { %2151 = vmatprep.mubr.msk.bf16.mxu1 %vm953_vm0, %v2473_v41  ;;  %v2569_v41 = vld [vmem:[%s2691_s19 + $0x28c] ss:$16 sps:$4 sm:$0xff]  }
  0x54   : > { %1067 = vmatmul.mubr.bf16.gmra.mxu0 %v2460_v38  ;;  %v2556_v38 = vld [vmem:[%s2691_s19 + $0x220] ss:$16 sps:$4 sm:$0xff]  }
  0x55   : > { %1074 = vmatprep.mubr.bf16.mxu0 %v2464_v39  ;;  %v2560_v39 = vld [vmem:[%s2691_s19 + $0x244] ss:$16 sps:$4 sm:$0xff]  }
  0x58   : > { %1316 = vmatmul.mubr.bf16.gmra.mxu1 %v2475_v44  ;;  %v2571_v44 = vld [vmem:[%s2691_s19 + $0x288] ss:$16 sps:$4 sm:$0xff]  }
  0x59   : > { %2152 = vmatprep.mubr.msk.bf16.mxu1 %vm953_vm0, %v2479_v45  ;;  %v2575_v45 = vld [vmem:[%s2691_s19 + $0x2ac] ss:$16 sps:$4 sm:$0xff]  }
  0x5c   : > { %1075 = vmatmul.mubr.bf16.gmra.mxu0 %v2466_v42  ;;  %v2562_v42 = vld [vmem:[%s2691_s19 + $0x240] ss:$16 sps:$4 sm:$0xff]  }
  0x5d   : > { %1082 = vmatprep.mubr.bf16.mxu0 %v2470_v43  ;;  %v2566_v43 = vld [vmem:[%s2691_s19 + $0x264] ss:$16 sps:$4 sm:$0xff]  }
  0x60   : > { %1324 = vmatmul.mubr.bf16.gmra.mxu1 %v2481_v48  ;;  %v2577_v48 = vld [vmem:[%s2691_s19 + $0x2a8] ss:$16 sps:$4 sm:$0xff]  }
  0x61   : > { %2153 = vmatprep.mubr.msk.bf16.mxu1 %vm953_vm0, %v2485_v49  ;;  %v2581_v49 = vld [vmem:[%s2691_s19 + $0x2cc] ss:$16 sps:$4 sm:$0xff]  }
  0x64   : > { %1083 = vmatmul.mubr.bf16.gmra.mxu0 %v2472_v46  ;;  %v2568_v46 = vld [vmem:[%s2691_s19 + $0x260] ss:$16 sps:$4 sm:$0xff]  }
  0x65   : > { %1090 = vmatprep.mubr.bf16.mxu0 %v2476_v47  ;;  %v2572_v47 = vld [vmem:[%s2691_s19 + $0x284] ss:$16 sps:$4 sm:$0xff]  }
  0x68   : > { %1332 = vmatmul.mubr.bf16.gmra.mxu1 %v2487_v52  ;;  %v2583_v52 = vld [vmem:[%s2691_s19 + $0x2c8] ss:$16 sps:$4 sm:$0xff]  }
  0x69   : > { %2154 = vmatprep.mubr.msk.bf16.mxu1 %vm953_vm0, %v2491_v53  ;;  %v2587_v53 = vld [vmem:[%s2691_s19 + $0x2ec] ss:$16 sps:$4 sm:$0xff]  }
  0x6c   : > { %1091 = vmatmul.mubr.bf16.gmra.mxu0 %v2478_v50  ;;  %v2574_v50 = vld [vmem:[%s2691_s19 + $0x280] ss:$16 sps:$4 sm:$0xff]  }
  0x6d   : > { %1098 = vmatprep.mubr.bf16.mxu0 %v2482_v51  ;;  %v2578_v51 = vld [vmem:[%s2691_s19 + $0x2a4] ss:$16 sps:$4 sm:$0xff]  }
  0x70   : > { %1340 = vmatmul.mubr.bf16.gmra.mxu1 %v2493_v56  ;;  %v2589_v56 = vld [vmem:[%s2691_s19 + $0x2e8] ss:$16 sps:$4 sm:$0xff]  }
  0x71   : > { %2155 = vmatprep.mubr.msk.bf16.mxu1 %vm953_vm0, %v2497_v57  ;;  %v2586_v57 = vld [vmem:[%s2691_s19 + $0x2c0] ss:$16 sps:$4 sm:$0xff]  }
  0x74   : > { %1099 = vmatmul.mubr.bf16.gmra.mxu0 %v2484_v54  ;;  %v2580_v54 = vld [vmem:[%s2691_s19 + $0x2a0] ss:$16 sps:$4 sm:$0xff]  }
  0x75   : > { %1106 = vmatprep.mubr.bf16.mxu0 %v2488_v55  ;;  %v2584_v55 = vld [vmem:[%s2691_s19 + $0x2c4] ss:$16 sps:$4 sm:$0xff]  }
  0x78   : > { %1348 = vmatmul.mubr.bf16.gmra.mxu1 %v2499_v60 }
  0x79   : > { %2156 = vmatprep.mubr.msk.bf16.mxu1 %vm953_vm0, %v2503_v61  ;;  %v2592_v61 = vld [vmem:[%s2691_s19 + $0x2e0] ss:$16 sps:$4 sm:$0xff]  }
  0x7c   : > { %1107 = vmatmul.mubr.bf16.gmra.mxu0 %v2490_v58  ;;  %v2590_v58 = vld [vmem:[%s2691_s19 + $0x2e4] ss:$16 sps:$4 sm:$0xff]  }
  0x7d   : > { %1114 = vmatprep.mubr.bf16.mxu0 %v2494_v59 }
  0x80   : > { %1356 = vmatmul.mubr.bf16.gmra.mxu1 %v2505_v0 }
  0x81   : > { %2157 = vmatprep.mubr.msk.bf16.mxu1 %vm953_vm0, %v2509_v1  ;;  %v1525_v1 = vlaneseq }
  0x84   : > { %1115 = vmatmul.mubr.bf16.gmra.mxu0 %v2496_v62 }
  0x85   : > { %1122 = vmatprep.mubr.bf16.mxu0 %v2500_v63 }
  0x88   : > { %1364 = vmatmul.mubr.bf16.gmra.mxu1 %v2511_v4  ;;  %v2874_v4 = vld [vmem:[%s3057_s2] ss:$0 sm:$0xff] }
  0x89   : > { %2158 = vmatprep.mubr.msk.bf16.mxu1 %vm953_vm0, %v2515_v5  ;;  %v2876_v5 = vshrl.u32 %v1525_v1, 7 }
  0x8c   : > { %1123 = vmatmul.mubr.bf16.gmra.mxu0 %v2502_v2 }
  0x8d   : > { %1130 = vmatprep.mubr.bf16.mxu0 %v2506_v3 }
  0x90   : > { %1372 = vmatmul.mubr.bf16.gmra.mxu1 %v2517_v8  ;;  %v1527_v8 = vadd.s32 8, %v2876_v5 }
  0x91   : > { %2159 = vmatprep.mubr.msk.bf16.mxu1 %vm953_vm0, %v2521_v9 }
  0x94   : > { %1131 = vmatmul.mubr.bf16.gmra.mxu0 %v2508_v6 }
  0x95   : > { %1138 = vmatprep.mubr.bf16.mxu0 %v2512_v7 }
  0x98   : > { %1380 = vmatmul.mubr.bf16.gmra.mxu1 %v2523_v12 }
  0x99   : > { %2160 = vmatprep.mubr.msk.bf16.mxu1 %vm953_vm0, %v2527_v13 }
  0x9c   : > { %1139 = vmatmul.mubr.bf16.gmra.mxu0 %v2514_v10  ;;  %v2880_v10 = vstv %s1524_s26 }
  0x9d   : > { %1146 = vmatprep.mubr.bf16.mxu0 %v2518_v11 }
  0xa0   : > { %1388 = vmatmul.mubr.bf16.gmra.mxu1 %v2529_v16 }
  0xa1   : > { %2161 = vmatprep.mubr.msk.bf16.mxu1 %vm953_vm0, %v2533_v17  ;;  %v1576_v17 = vadd.s32 %v2880_v10, %v1527_v8 }
  0xa3   : > { %vm1624_vm2 = vcmp.lt.s32.totalorder %v1576_v17, 600 }
  0xa4   : > { %1147 = vmatmul.mubr.bf16.gmra.mxu0 %v2520_v14 }
  0xa5   : > { %1154 = vmatprep.mubr.bf16.mxu0 %v2524_v15  ;;  %v1575_v15 = vadd.s32 %v2880_v10, %v2876_v5 }
  0xa7   : > { %vm1623_vm1 = vcmp.lt.s32.totalorder %v1575_v15, 600 }
  0xa8   : > { %1396 = vmatmul.mubr.bf16.gmra.mxu1 %v2535_v20 }
  0xa9   : > { %2162 = vmatprep.mubr.msk.bf16.mxu1 %vm953_vm0, %v2539_v21 }
  0xac   : > { %1155 = vmatmul.mubr.bf16.gmra.mxu0 %v2526_v18 }
  0xad   : > { %1162 = vmatprep.mubr.bf16.mxu0 %v2530_v19 }
  0xb0   : > { %1404 = vmatmul.mubr.bf16.gmra.mxu1 %v2541_v24 }
  0xb1   : > { %2163 = vmatprep.mubr.msk.bf16.mxu1 %vm953_vm0, %v2545_v25  ;;  %v1528_v25 = vadd.s32 16, %v2876_v5 }
  0xb4   : > { %1163 = vmatmul.mubr.bf16.gmra.mxu0 %v2532_v22 }
  0xb5   : > { %1170 = vmatprep.mubr.bf16.mxu0 %v2536_v23 }
  0xb8   : > { %1412 = vmatmul.mubr.bf16.gmra.mxu1 %v2547_v28 }
  0xb9   : > { %2164 = vmatprep.mubr.msk.bf16.mxu1 %vm953_vm0, %v2551_v29 }
  0xbc   : > { %1171 = vmatmul.mubr.bf16.gmra.mxu0 %v2538_v26  ;;  %v1529_v26 = vadd.s32 24, %v2876_v5 }
  0xbd   : > { %1178 = vmatprep.mubr.bf16.mxu0 %v2542_v27 }
  0xc0   : > { %1420 = vmatmul.mubr.bf16.gmra.mxu1 %v2553_v32 }
  0xc1   : > { %2165 = vmatprep.mubr.msk.bf16.mxu1 %vm953_vm0, %v2557_v33 }
  0xc4   : > { %1179 = vmatmul.mubr.bf16.gmra.mxu0 %v2544_v30 }
  0xc5   : > { %1186 = vmatprep.mubr.bf16.mxu0 %v2548_v31 }
  0xc8   : > { %1428 = vmatmul.mubr.bf16.gmra.mxu1 %v2559_v36  ;;  %v1577_v36 = vadd.s32 %v2880_v10, %v1528_v25 }
  0xc9   : > { %2166 = vmatprep.mubr.msk.bf16.mxu1 %vm953_vm0, %v2563_v37 }
  0xca   : > { %vm1625_vm3 = vcmp.lt.s32.totalorder %v1577_v36, 600 }
  0xcc   : > { %1187 = vmatmul.mubr.bf16.gmra.mxu0 %v2550_v34 }
  0xcd   : > { %1194 = vmatprep.mubr.bf16.mxu0 %v2554_v35 }
  0xd0   : > { %1436 = vmatmul.mubr.bf16.gmra.mxu1 %v2565_v40 }
  0xd1   : > { %2167 = vmatprep.mubr.msk.bf16.mxu1 %vm953_vm0, %v2569_v41 }
  0xd4   : > { %1195 = vmatmul.mubr.bf16.gmra.mxu0 %v2556_v38  ;;  %v1578_v38 = vadd.s32 %v2880_v10, %v1529_v26 }
  0xd5   : > { %1202 = vmatprep.mubr.bf16.mxu0 %v2560_v39 }
  0xd6   : > { %vm1626_vm4 = vcmp.lt.s32.totalorder %v1578_v38, 600 }
  0xd8   : > { %1444 = vmatmul.mubr.bf16.gmra.mxu1 %v2571_v44 }
  0xd9   : > { %2168 = vmatprep.mubr.msk.bf16.mxu1 %vm953_vm0, %v2575_v45 }
  0xdc   : > { %1203 = vmatmul.mubr.bf16.gmra.mxu0 %v2562_v42 }
  0xdd   : > { %1210 = vmatprep.mubr.bf16.mxu0 %v2566_v43 }
  0xe0   : > { %1452 = vmatmul.mubr.bf16.gmra.mxu1 %v2577_v48 }
  0xe1   : > { %2169 = vmatprep.mubr.msk.bf16.mxu1 %vm953_vm0, %v2581_v49 }
  0xe4   : > { %1211 = vmatmul.mubr.bf16.gmra.mxu0 %v2568_v46  ;;  %v1530_v46 = vadd.s32 32, %v2876_v5 }
  0xe5   : > { %1218 = vmatprep.mubr.bf16.mxu0 %v2572_v47  ;;  %v1531_v47 = vadd.s32 40, %v2876_v5 }
  0xe8   : > { %1460 = vmatmul.mubr.bf16.gmra.mxu1 %v2583_v52 }
  0xe9   : > { %2170 = vmatprep.mubr.msk.bf16.mxu1 %vm953_vm0, %v2587_v53 }
  0xec   : > { %1219 = vmatmul.mubr.bf16.gmra.mxu0 %v2574_v50 }
  0xed   : > { %1226 = vmatprep.mubr.bf16.mxu0 %v2578_v51 }
  0xf0   : > { %1468 = vmatmul.mubr.bf16.gmra.mxu1 %v2589_v56 }
  0xf4   : > { %1227 = vmatmul.mubr.bf16.gmra.mxu0 %v2580_v54 }
  0xf5   : > { %1234 = vmatprep.mubr.bf16.mxu0 %v2584_v55 }
  0xf8   : > { %v1285_v59 = vpop.f32.mrf.mxu1 }
  0xfa   : > { %v1287_v60 = vpop.f32.mrf.mxu1 }
  0xfc   : > { %1235 = vmatmul.mubr.bf16.gmra.mxu0 %v2586_v57  ;;  %v1288_v62 = vpop.f32.mrf.mxu1  ;;  %v1579_v57 = vadd.s32 %v2880_v10, %v1530_v46 }
  0xfd   : > { %1242 = vmatprep.mubr.bf16.mxu0 %v2590_v58 }
  0xfe   : > { %v1290_v63 = vpop.f32.mrf.mxu1  ;;  %vm1627_vm5 = vcmp.lt.s32.totalorder %v1579_v57, 600 }
 0x100   : > { %v1293_v0 = vpop.f32.mrf.mxu1 }
 0x102   : > { %v1295_v2 = vpop.f32.mrf.mxu1 }
 0x104   : > { %1243 = vmatmul.mubr.bf16.gmra.mxu0 %v2592_v61  ;;  %v1296_v3 = vpop.f32.mrf.mxu1 }
 0x106   : > { %v1298_v6 = vpop.f32.mrf.mxu1 }
 0x107   : > { %v1533_v6 = vadd.s32 56, %v2876_v5 }
 0x108   : > { %v1301_v11 = vpop.f32.mrf.mxu1 }
 0x10a   : > { %v1303_v14 = vpop.f32.mrf.mxu1 }
 0x10c   : > { %v1060_v7 = vpop.f32.mrf.mxu0  ;;  %v1304_v19 = vpop.f32.mrf.mxu1 }
 0x10d   : > { %v1061_v9 = vadd.f32 %v2874_v4, %v1060_v7 }
 0x10e   : > { %v1062_v12 = vpop.f32.mrf.mxu0  ;;  %v1306_v23 = vpop.f32.mrf.mxu1 }
 0x10f   : > { %v1286_v13 = vadd.f32 %v1285_v59, %v1061_v9  ;;  %v1580_v59 = vadd.s32 %v2880_v10, %v1531_v47 }
 0x110   : > { %v1063_v16 = vpop.f32.mrf.mxu0  ;;  %v1309_v29 = vpop.f32.mrf.mxu1 }
 0x111   : > { %v1064_v18 = vadd.f32 %v2874_v4, %v1063_v16  ;;  %v1476_v21 = vmax.f32 %v1286_v13, 0.0  ;;  %vm1628_vm6 = vcmp.lt.s32.totalorder %v1580_v59, 600 }
 0x112   : > { %v1065_v20 = vpop.f32.mrf.mxu0  ;;  %v1311_v34 = vpop.f32.mrf.mxu1 }
 0x113   : > { %v1289_v22 = vadd.f32 %v1288_v62, %v1064_v18  ;;  %v1671_v31 = vsel %vm1623_vm1, %v1476_v21, 0.0 }
 0x114   : > { %v1068_v24 = vpop.f32.mrf.mxu0  ;;  %v1312_v40 = vpop.f32.mrf.mxu1 }
 0x115   : > { %v1477_v27 = vmax.f32 %v1289_v22, 0.0  ;;  %v1069_v28 = vadd.f32 %v2874_v4, %v1068_v24 }
 0x116   : > { %v1070_v30 = vpop.f32.mrf.mxu0  ;;  %v1314_v44 = vpop.f32.mrf.mxu1 }
 0x117   : > { %v1672_v32 = vsel %vm1624_vm2, %v1477_v27, 0.0  ;;  %v1294_v33 = vadd.f32 %v1293_v0, %v1069_v28  ;;  %v1534_v27 = vadd.s32 64, %v2876_v5  ;;  %v1535_v28 = vadd.s32 72, %v2876_v5 }
 0x118   : > { %v2273_v35 = vpack.c.bf16 %v1672_v32, %v1671_v31  ;;  %v1071_v37 = vpop.f32.mrf.mxu0  ;;  %v1317_v50 = vpop.f32.mrf.mxu1 }
 0x119   : > { %v1072_v39 = vadd.f32 %v2874_v4, %v1071_v37  ;;  %v1478_v42 = vmax.f32 %v1294_v33, 0.0  ;;  %v1583_v38 = vadd.s32 %v2880_v10, %v1534_v27 }
 0x11a   : > { %2274 = vst [vmem:[%s2893_s30] sm:$0xff] %v2273_v35   ;;  %v1073_v41 = vpop.f32.mrf.mxu0  ;;  %v1319_v55 = vpop.f32.mrf.mxu1 }
 0x11b   : > { %v1297_v43 = vadd.f32 %v1296_v3, %v1072_v39  ;;  %v1673_v52 = vsel %vm1625_vm3, %v1478_v42, 0.0  ;;  %v1532_v3 = vadd.s32 48, %v2876_v5  ;;  %vm1631_vm9 = vcmp.lt.s32.totalorder %v1583_v38, 600 }
 0x11c   : > { %v1076_v45 = vpop.f32.mrf.mxu0  ;;  %v1320_v61 = vpop.f32.mrf.mxu1 }
 0x11d   : > { %v1479_v48 = vmax.f32 %v1297_v43, 0.0  ;;  %v1077_v49 = vadd.f32 %v2874_v4, %v1076_v45  ;;  %v1581_v17 = vadd.s32 %v2880_v10, %v1532_v3 }
 0x11e   : > { %v1078_v51 = vpop.f32.mrf.mxu0  ;;  %v1322_v1 = vpop.f32.mrf.mxu1 }
 0x11f   : > { %v1674_v53 = vsel %vm1626_vm4, %v1479_v48, 0.0  ;;  %v1302_v54 = vadd.f32 %v1301_v11, %v1077_v49  ;;  %vm1629_vm7 = vcmp.lt.s32.totalorder %v1581_v17, 600  ;;  %v1536_v48 = vadd.s32 80, %v2876_v5 }
 0x120   : > { %v2278_v56 = vpack.c.bf16 %v1674_v53, %v1673_v52  ;;  %v1079_v58 = vpop.f32.mrf.mxu0  ;;  %v1325_v9 = vpop.f32.mrf.mxu1  ;;  %v1537_v49 = vadd.s32 88, %v2876_v5 }
 0x121   : > { %v1080_v60 = vadd.f32 %v2874_v4, %v1079_v58  ;;  %v1480_v63 = vmax.f32 %v1302_v54, 0.0  ;;  %v1585_v59 = vadd.s32 %v2880_v10, %v1536_v48 }
 0x122   : > { %2390 = vst [vmem:[%s2893_s30 + $0x8] sm:$0xff] %v2278_v56   ;;  %v1081_v62 = vpop.f32.mrf.mxu0  ;;  %v1327_v15 = vpop.f32.mrf.mxu1 }
 0x123   : > { %v1305_v0 = vadd.f32 %v1304_v19, %v1080_v60  ;;  %v1675_v12 = vsel %vm1627_vm5, %v1480_v63, 0.0  ;;  %v1582_v19 = vadd.s32 %v2880_v10, %v1533_v6  ;;  %vm1633_vm11 = vcmp.lt.s32.totalorder %v1585_v59, 600 }
 0x124   : > { %v1084_v2 = vpop.f32.mrf.mxu0  ;;  %v1328_v21 = vpop.f32.mrf.mxu1 }
 0x125   : > { %v1481_v7 = vmax.f32 %v1305_v0, 0.0  ;;  %v1085_v8 = vadd.f32 %v2874_v4, %v1084_v2  ;;  %vm1630_vm8 = vcmp.lt.s32.totalorder %v1582_v19, 600 }
 0x126   : > { %v1086_v11 = vpop.f32.mrf.mxu0  ;;  %v1330_v25 = vpop.f32.mrf.mxu1 }
 0x127   : > { %v1676_v13 = vsel %vm1628_vm6, %v1481_v7, 0.0  ;;  %v1310_v14 = vadd.f32 %v1309_v29, %v1085_v8  ;;  %v1538_v7 = vadd.s32 96, %v2876_v5  ;;  %v1539_v8 = vadd.s32 104, %v2876_v5 }
 0x128   : > { %v2283_v16 = vpack.c.bf16 %v1676_v13, %v1675_v12  ;;  %v1087_v18 = vpop.f32.mrf.mxu0  ;;  %v1333_v31 = vpop.f32.mrf.mxu1 }
 0x129   : > { %v1088_v20 = vadd.f32 %v2874_v4, %v1087_v18  ;;  %v1482_v23 = vmax.f32 %v1310_v14, 0.0  ;;  %v1587_v19 = vadd.s32 %v2880_v10, %v1538_v7 }
 0x12a   : > { %2391 = vst [vmem:[%s2893_s30 + $0x10] sm:$0xff] %v2283_v16   ;;  %v1089_v22 = vpop.f32.mrf.mxu0  ;;  %v1335_v36 = vpop.f32.mrf.mxu1 }
 0x12b   : > { %v1313_v24 = vadd.f32 %v1312_v40, %v1088_v20  ;;  %v1677_v33 = vsel %vm1629_vm7, %v1482_v23, 0.0  ;;  %v1584_v40 = vadd.s32 %v2880_v10, %v1535_v28  ;;  %vm1635_vm13 = vcmp.lt.s32.totalorder %v1587_v19, 600 }
 0x12c   : > { %v1092_v26 = vpop.f32.mrf.mxu0  ;;  %v1336_v42 = vpop.f32.mrf.mxu1 }
 0x12d   : > { %v1483_v29 = vmax.f32 %v1313_v24, 0.0  ;;  %v1093_v30 = vadd.f32 %v2874_v4, %v1092_v26  ;;  %vm1632_vm10 = vcmp.lt.s32.totalorder %v1584_v40, 600 }
 0x12e   : > { %v1094_v32 = vpop.f32.mrf.mxu0  ;;  %v1338_v46 = vpop.f32.mrf.mxu1 }
 0x12f   : > { %v1678_v34 = vsel %vm1630_vm8, %v1483_v29, 0.0  ;;  %v1318_v35 = vadd.f32 %v1317_v50, %v1093_v30  ;;  %v1540_v29 = vadd.s32 112, %v2876_v5  ;;  %v1541_v30 = vadd.s32 120, %v2876_v5 }
 0x130   : > { %v2288_v37 = vpack.c.bf16 %v1678_v34, %v1677_v33  ;;  %v1095_v39 = vpop.f32.mrf.mxu0  ;;  %v1341_v52 = vpop.f32.mrf.mxu1 }
 0x131   : > { %v1096_v41 = vadd.f32 %v2874_v4, %v1095_v39  ;;  %v1484_v44 = vmax.f32 %v1318_v35, 0.0  ;;  %v1589_v40 = vadd.s32 %v2880_v10, %v1540_v29 }
 0x132   : > { %2392 = vst [vmem:[%s2893_s30 + $0x18] sm:$0xff] %v2288_v37   ;;  %v1097_v43 = vpop.f32.mrf.mxu0  ;;  %v1343_v57 = vpop.f32.mrf.mxu1 }
 0x133   : > { %v1321_v45 = vadd.f32 %v1320_v61, %v1096_v41  ;;  %v1679_v54 = vsel %vm1631_vm9, %v1484_v44, 0.0  ;;  %v1586_v61 = vadd.s32 %v2880_v10, %v1537_v49  ;;  %vm1637_vm15 = vcmp.lt.s32.totalorder %v1589_v40, 600 }
 0x134   : > { %v1100_v47 = vpop.f32.mrf.mxu0  ;;  %v1344_v63 = vpop.f32.mrf.mxu1 }
 0x135   : > { %v1485_v50 = vmax.f32 %v1321_v45, 0.0  ;;  %v1101_v51 = vadd.f32 %v2874_v4, %v1100_v47  ;;  %vm1634_vm12 = vcmp.lt.s32.totalorder %v1586_v61, 600 }
 0x136   : > { %v1102_v53 = vpop.f32.mrf.mxu0  ;;  %v1346_v3 = vpop.f32.mrf.mxu1 }
 0x137   : > { %v1680_v55 = vsel %vm1632_vm10, %v1485_v50, 0.0  ;;  %v1326_v56 = vadd.f32 %v1325_v9, %v1101_v51  ;;  %v1542_v50 = vadd.s32 128, %v2876_v5  ;;  %v1543_v51 = vadd.s32 136, %v2876_v5 }
 0x138   : > { %v2293_v58 = vpack.c.bf16 %v1680_v55, %v1679_v54  ;;  %v1103_v60 = vpop.f32.mrf.mxu0  ;;  %v1349_v12 = vpop.f32.mrf.mxu1 }
 0x139   : > { %v1104_v62 = vadd.f32 %v2874_v4, %v1103_v60  ;;  %v1486_v1 = vmax.f32 %v1326_v56, 0.0  ;;  %v1591_v61 = vadd.s32 %v2880_v10, %v1542_v50 }
 0x13a   : > { %2393 = vst [vmem:[%s2893_s30 + $0x20] sm:$0xff] %v2293_v58   ;;  %v1105_v0 = vpop.f32.mrf.mxu0  ;;  %v1351_v17 = vpop.f32.mrf.mxu1 }
 0x13b   : > { %v1329_v2 = vadd.f32 %v1328_v21, %v1104_v62  ;;  %v1681_v14 = vsel %vm1633_vm11, %v1486_v1, 0.0  ;;  %v1588_v21 = vadd.s32 %v2880_v10, %v1539_v8  ;;  %vm1639_vm1 = vcmp.lt.s32.totalorder %v1591_v61, 600 }
 0x13c   : > { %v1108_v6 = vpop.f32.mrf.mxu0  ;;  %v1352_v23 = vpop.f32.mrf.mxu1 }
 0x13d   : > { %v1487_v9 = vmax.f32 %v1329_v2, 0.0  ;;  %v1109_v11 = vadd.f32 %v2874_v4, %v1108_v6  ;;  %vm1636_vm14 = vcmp.lt.s32.totalorder %v1588_v21, 600 }
 0x13e   : > { %v1110_v13 = vpop.f32.mrf.mxu0  ;;  %v1354_v27 = vpop.f32.mrf.mxu1 }
 0x13f   : > { %v1682_v15 = vsel %vm1634_vm12, %v1487_v9, 0.0  ;;  %v1334_v16 = vadd.f32 %v1333_v31, %v1109_v11  ;;  %v1544_v9 = vadd.s32 144, %v2876_v5  ;;  %v1545_v11 = vadd.s32 152, %v2876_v5 }
 0x140   : > { %v2298_v18 = vpack.c.bf16 %v1682_v15, %v1681_v14  ;;  %v1111_v20 = vpop.f32.mrf.mxu0  ;;  %v1357_v33 = vpop.f32.mrf.mxu1 }
 0x141   : > { %v1112_v22 = vadd.f32 %v2874_v4, %v1111_v20  ;;  %v1488_v25 = vmax.f32 %v1334_v16, 0.0  ;;  %v1593_v21 = vadd.s32 %v2880_v10, %v1544_v9 }
 0x142   : > { %2394 = vst [vmem:[%s2893_s30 + $0x28] sm:$0xff] %v2298_v18   ;;  %v1113_v24 = vpop.f32.mrf.mxu0  ;;  %v1359_v38 = vpop.f32.mrf.mxu1 }
 0x143   : > { %v1337_v26 = vadd.f32 %v1336_v42, %v1112_v22  ;;  %v1683_v35 = vsel %vm1635_vm13, %v1488_v25, 0.0  ;;  %v1590_v42 = vadd.s32 %v2880_v10, %v1541_v30  ;;  %vm1641_vm3 = vcmp.lt.s32.totalorder %v1593_v21, 600 }
 0x144   : > { %v1116_v28 = vpop.f32.mrf.mxu0  ;;  %v1360_v44 = vpop.f32.mrf.mxu1 }
 0x145   : > { %v1489_v31 = vmax.f32 %v1337_v26, 0.0  ;;  %v1117_v32 = vadd.f32 %v2874_v4, %v1116_v28  ;;  %vm1638_vm0 = vcmp.lt.s32.totalorder %v1590_v42, 600 }
 0x146   : > { %v1118_v34 = vpop.f32.mrf.mxu0  ;;  %v1362_v48 = vpop.f32.mrf.mxu1 }
 0x147   : > { %v1684_v36 = vsel %vm1636_vm14, %v1489_v31, 0.0  ;;  %v1342_v37 = vadd.f32 %v1341_v52, %v1117_v32  ;;  %v1546_v31 = vadd.s32 160, %v2876_v5  ;;  %v1547_v32 = vadd.s32 168, %v2876_v5 }
 0x148   : > { %v2303_v39 = vpack.c.bf16 %v1684_v36, %v1683_v35  ;;  %v1119_v41 = vpop.f32.mrf.mxu0  ;;  %v1365_v54 = vpop.f32.mrf.mxu1 }
 0x149   : > { %v1120_v43 = vadd.f32 %v2874_v4, %v1119_v41  ;;  %v1490_v46 = vmax.f32 %v1342_v37, 0.0  ;;  %v1595_v42 = vadd.s32 %v2880_v10, %v1546_v31 }
 0x14a   : > { %2395 = vst [vmem:[%s2893_s30 + $0x30] sm:$0xff] %v2303_v39   ;;  %v1121_v45 = vpop.f32.mrf.mxu0  ;;  %v1367_v59 = vpop.f32.mrf.mxu1 }
 0x14b   : > { %v1345_v47 = vadd.f32 %v1344_v63, %v1120_v43  ;;  %v1685_v56 = vsel %vm1637_vm15, %v1490_v46, 0.0  ;;  %v1592_v63 = vadd.s32 %v2880_v10, %v1543_v51  ;;  %vm1643_vm5 = vcmp.lt.s32.totalorder %v1595_v42, 600 }
 0x14c   : > { %v1124_v49 = vpop.f32.mrf.mxu0  ;;  %v1368_v1 = vpop.f32.mrf.mxu1 }
 0x14d   : > { %v1491_v52 = vmax.f32 %v1345_v47, 0.0  ;;  %v1125_v53 = vadd.f32 %v2874_v4, %v1124_v49  ;;  %vm1640_vm2 = vcmp.lt.s32.totalorder %v1592_v63, 600 }
 0x14e   : > { %v1126_v55 = vpop.f32.mrf.mxu0  ;;  %v1370_v7 = vpop.f32.mrf.mxu1 }
 0x14f   : > { %v1686_v57 = vsel %vm1638_vm0, %v1491_v52, 0.0  ;;  %v1350_v58 = vadd.f32 %v1349_v12, %v1125_v53  ;;  %v1548_v52 = vadd.s32 176, %v2876_v5  ;;  %v1549_v53 = vadd.s32 184, %v2876_v5 }
 0x150   : > { %v2308_v60 = vpack.c.bf16 %v1686_v57, %v1685_v56  ;;  %v1127_v62 = vpop.f32.mrf.mxu0  ;;  %v1373_v14 = vpop.f32.mrf.mxu1 }
 0x151   : > { %v1128_v0 = vadd.f32 %v2874_v4, %v1127_v62  ;;  %v1492_v3 = vmax.f32 %v1350_v58, 0.0  ;;  %v1597_v63 = vadd.s32 %v2880_v10, %v1548_v52 }
 0x152   : > { %2396 = vst [vmem:[%s2893_s30 + $0x38] sm:$0xff] %v2308_v60   ;;  %v1129_v2 = vpop.f32.mrf.mxu0  ;;  %v1375_v19 = vpop.f32.mrf.mxu1 }
 0x153   : > { %v1353_v6 = vadd.f32 %v1352_v23, %v1128_v0  ;;  %v1687_v16 = vsel %vm1639_vm1, %v1492_v3, 0.0  ;;  %v1594_v23 = vadd.s32 %v2880_v10, %v1545_v11  ;;  %vm1645_vm7 = vcmp.lt.s32.totalorder %v1597_v63, 600 }
 0x154   : > { %v1132_v8 = vpop.f32.mrf.mxu0  ;;  %v1376_v25 = vpop.f32.mrf.mxu1 }
 0x155   : > { %v1493_v12 = vmax.f32 %v1353_v6, 0.0  ;;  %v1133_v13 = vadd.f32 %v2874_v4, %v1132_v8  ;;  %vm1642_vm4 = vcmp.lt.s32.totalorder %v1594_v23, 600 }
 0x156   : > { %v1134_v15 = vpop.f32.mrf.mxu0  ;;  %v1378_v29 = vpop.f32.mrf.mxu1 }
 0x157   : > { %v1688_v17 = vsel %vm1640_vm2, %v1493_v12, 0.0  ;;  %v1358_v18 = vadd.f32 %v1357_v33, %v1133_v13  ;;  %v1550_v12 = vadd.s32 192, %v2876_v5  ;;  %v1551_v13 = vadd.s32 200, %v2876_v5 }
 0x158   : > { %v2313_v20 = vpack.c.bf16 %v1688_v17, %v1687_v16  ;;  %v1135_v22 = vpop.f32.mrf.mxu0  ;;  %v1381_v35 = vpop.f32.mrf.mxu1 }
 0x159   : > { %v1136_v24 = vadd.f32 %v2874_v4, %v1135_v22  ;;  %v1494_v27 = vmax.f32 %v1358_v18, 0.0  ;;  %v1599_v23 = vadd.s32 %v2880_v10, %v1550_v12 }
 0x15a   : > { %2397 = vst [vmem:[%s2893_s30 + $0x40] sm:$0xff] %v2313_v20   ;;  %v1137_v26 = vpop.f32.mrf.mxu0  ;;  %v1383_v40 = vpop.f32.mrf.mxu1 }
 0x15b   : > { %v1361_v28 = vadd.f32 %v1360_v44, %v1136_v24  ;;  %v1689_v37 = vsel %vm1641_vm3, %v1494_v27, 0.0  ;;  %v1596_v44 = vadd.s32 %v2880_v10, %v1547_v32  ;;  %vm1647_vm9 = vcmp.lt.s32.totalorder %v1599_v23, 600 }
 0x15c   : > { %v1140_v30 = vpop.f32.mrf.mxu0  ;;  %v1384_v46 = vpop.f32.mrf.mxu1 }
 0x15d   : > { %v1495_v33 = vmax.f32 %v1361_v28, 0.0  ;;  %v1141_v34 = vadd.f32 %v2874_v4, %v1140_v30  ;;  %vm1644_vm6 = vcmp.lt.s32.totalorder %v1596_v44, 600 }
 0x15e   : > { %v1142_v36 = vpop.f32.mrf.mxu0  ;;  %v1386_v50 = vpop.f32.mrf.mxu1 }
 0x15f   : > { %v1690_v38 = vsel %vm1642_vm4, %v1495_v33, 0.0  ;;  %v1366_v39 = vadd.f32 %v1365_v54, %v1141_v34  ;;  %v1552_v33 = vadd.s32 208, %v2876_v5  ;;  %v1553_v34 = vadd.s32 216, %v2876_v5 }
 0x160   : > { %v2318_v41 = vpack.c.bf16 %v1690_v38, %v1689_v37  ;;  %v1143_v43 = vpop.f32.mrf.mxu0  ;;  %v1389_v56 = vpop.f32.mrf.mxu1 }
 0x161   : > { %v1144_v45 = vadd.f32 %v2874_v4, %v1143_v43  ;;  %v1496_v48 = vmax.f32 %v1366_v39, 0.0  ;;  %v1601_v44 = vadd.s32 %v2880_v10, %v1552_v33 }
 0x162   : > { %2398 = vst [vmem:[%s2893_s30 + $0x48] sm:$0xff] %v2318_v41   ;;  %v1145_v47 = vpop.f32.mrf.mxu0  ;;  %v1391_v61 = vpop.f32.mrf.mxu1 }
 0x163   : > { %v1369_v49 = vadd.f32 %v1368_v1, %v1144_v45  ;;  %v1691_v58 = vsel %vm1643_vm5, %v1496_v48, 0.0  ;;  %v1598_v1 = vadd.s32 %v2880_v10, %v1549_v53  ;;  %vm1649_vm11 = vcmp.lt.s32.totalorder %v1601_v44, 600 }
 0x164   : > { %v1148_v51 = vpop.f32.mrf.mxu0  ;;  %v1392_v3 = vpop.f32.mrf.mxu1 }
 0x165   : > { %v1497_v54 = vmax.f32 %v1369_v49, 0.0  ;;  %v1149_v55 = vadd.f32 %v2874_v4, %v1148_v51  ;;  %vm1646_vm8 = vcmp.lt.s32.totalorder %v1598_v1, 600 }
 0x166   : > { %v1150_v57 = vpop.f32.mrf.mxu0  ;;  %v1394_v9 = vpop.f32.mrf.mxu1 }
 0x167   : > { %v1692_v59 = vsel %vm1644_vm6, %v1497_v54, 0.0  ;;  %v1374_v60 = vadd.f32 %v1373_v14, %v1149_v55  ;;  %v1554_v54 = vadd.s32 224, %v2876_v5  ;;  %v1555_v55 = vadd.s32 232, %v2876_v5 }
 0x168   : > { %v2323_v62 = vpack.c.bf16 %v1692_v59, %v1691_v58  ;;  %v1151_v0 = vpop.f32.mrf.mxu0  ;;  %v1397_v16 = vpop.f32.mrf.mxu1 }
 0x169   : > { %v1152_v2 = vadd.f32 %v2874_v4, %v1151_v0  ;;  %v1498_v7 = vmax.f32 %v1374_v60, 0.0  ;;  %v1603_v1 = vadd.s32 %v2880_v10, %v1554_v54 }
 0x16a   : > { %2399 = vst [vmem:[%s2893_s30 + $0x50] sm:$0xff] %v2323_v62   ;;  %v1153_v6 = vpop.f32.mrf.mxu0  ;;  %v1399_v21 = vpop.f32.mrf.mxu1 }
 0x16b   : > { %v1377_v8 = vadd.f32 %v1376_v25, %v1152_v2  ;;  %v1693_v18 = vsel %vm1645_vm7, %v1498_v7, 0.0  ;;  %v1600_v25 = vadd.s32 %v2880_v10, %v1551_v13  ;;  %vm1651_vm13 = vcmp.lt.s32.totalorder %v1603_v1, 600 }
 0x16c   : > { %v1156_v11 = vpop.f32.mrf.mxu0  ;;  %v1400_v27 = vpop.f32.mrf.mxu1 }
 0x16d   : > { %v1499_v14 = vmax.f32 %v1377_v8, 0.0  ;;  %v1157_v15 = vadd.f32 %v2874_v4, %v1156_v11  ;;  %vm1648_vm10 = vcmp.lt.s32.totalorder %v1600_v25, 600 }
 0x16e   : > { %v1158_v17 = vpop.f32.mrf.mxu0  ;;  %v1402_v31 = vpop.f32.mrf.mxu1 }
 0x16f   : > { %v1694_v19 = vsel %vm1646_vm8, %v1499_v14, 0.0  ;;  %v1382_v20 = vadd.f32 %v1381_v35, %v1157_v15  ;;  %v1556_v14 = vadd.s32 240, %v2876_v5  ;;  %v1557_v15 = vadd.s32 248, %v2876_v5 }
 0x170   : > { %v2328_v22 = vpack.c.bf16 %v1694_v19, %v1693_v18  ;;  %v1159_v24 = vpop.f32.mrf.mxu0  ;;  %v1405_v37 = vpop.f32.mrf.mxu1 }
 0x171   : > { %v1160_v26 = vadd.f32 %v2874_v4, %v1159_v24  ;;  %v1500_v29 = vmax.f32 %v1382_v20, 0.0  ;;  %v1605_v25 = vadd.s32 %v2880_v10, %v1556_v14 }
 0x172   : > { %2400 = vst [vmem:[%s2893_s30 + $0x58] sm:$0xff] %v2328_v22   ;;  %v1161_v28 = vpop.f32.mrf.mxu0  ;;  %v1407_v42 = vpop.f32.mrf.mxu1 }
 0x173   : > { %v1385_v30 = vadd.f32 %v1384_v46, %v1160_v26  ;;  %v1695_v39 = vsel %vm1647_vm9, %v1500_v29, 0.0  ;;  %v1602_v46 = vadd.s32 %v2880_v10, %v1553_v34  ;;  %vm1653_vm15 = vcmp.lt.s32.totalorder %v1605_v25, 600 }
 0x174   : > { %v1164_v32 = vpop.f32.mrf.mxu0  ;;  %v1408_v48 = vpop.f32.mrf.mxu1 }
 0x175   : > { %v1501_v35 = vmax.f32 %v1385_v30, 0.0  ;;  %v1165_v36 = vadd.f32 %v2874_v4, %v1164_v32  ;;  %vm1650_vm12 = vcmp.lt.s32.totalorder %v1602_v46, 600 }
 0x176   : > { %v1166_v38 = vpop.f32.mrf.mxu0  ;;  %v1410_v52 = vpop.f32.mrf.mxu1 }
 0x177   : > { %v1696_v40 = vsel %vm1648_vm10, %v1501_v35, 0.0  ;;  %v1390_v41 = vadd.f32 %v1389_v56, %v1165_v36  ;;  %v1558_v35 = vadd.s32 256, %v2876_v5  ;;  %v1559_v36 = vadd.s32 264, %v2876_v5 }
 0x178   : > { %v2333_v43 = vpack.c.bf16 %v1696_v40, %v1695_v39  ;;  %v1167_v45 = vpop.f32.mrf.mxu0  ;;  %v1413_v58 = vpop.f32.mrf.mxu1 }
 0x179   : > { %v1168_v47 = vadd.f32 %v2874_v4, %v1167_v45  ;;  %v1502_v50 = vmax.f32 %v1390_v41, 0.0  ;;  %v1607_v46 = vadd.s32 %v2880_v10, %v1558_v35 }
 0x17a   : > { %2401 = vst [vmem:[%s2893_s30 + $0x60] sm:$0xff] %v2333_v43   ;;  %v1169_v49 = vpop.f32.mrf.mxu0  ;;  %v1415_v63 = vpop.f32.mrf.mxu1 }
 0x17b   : > { %v1393_v51 = vadd.f32 %v1392_v3, %v1168_v47  ;;  %v1697_v60 = vsel %vm1649_vm11, %v1502_v50, 0.0  ;;  %v1604_v3 = vadd.s32 %v2880_v10, %v1555_v55  ;;  %vm1655_vm1 = vcmp.lt.s32.totalorder %v1607_v46, 600 }
 0x17c   : > { %v1172_v53 = vpop.f32.mrf.mxu0  ;;  %v1416_v7 = vpop.f32.mrf.mxu1 }
 0x17d   : > { %v1503_v56 = vmax.f32 %v1393_v51, 0.0  ;;  %v1173_v57 = vadd.f32 %v2874_v4, %v1172_v53  ;;  %vm1652_vm14 = vcmp.lt.s32.totalorder %v1604_v3, 600 }
 0x17e   : > { %v1174_v59 = vpop.f32.mrf.mxu0  ;;  %v1418_v12 = vpop.f32.mrf.mxu1 }
 0x17f   : > { %v1698_v61 = vsel %vm1650_vm12, %v1503_v56, 0.0  ;;  %v1398_v62 = vadd.f32 %v1397_v16, %v1173_v57  ;;  %v1560_v56 = vadd.s32 272, %v2876_v5  ;;  %v1561_v57 = vadd.s32 280, %v2876_v5 }
 0x180   : > { %v2338_v0 = vpack.c.bf16 %v1698_v61, %v1697_v60  ;;  %v1175_v2 = vpop.f32.mrf.mxu0  ;;  %v1421_v18 = vpop.f32.mrf.mxu1 }
 0x181   : > { %v1176_v6 = vadd.f32 %v2874_v4, %v1175_v2  ;;  %v1504_v9 = vmax.f32 %v1398_v62, 0.0  ;;  %v1609_v3 = vadd.s32 %v2880_v10, %v1560_v56 }
 0x182   : > { %2402 = vst [vmem:[%s2893_s30 + $0x68] sm:$0xff] %v2338_v0   ;;  %v1177_v8 = vpop.f32.mrf.mxu0  ;;  %v1423_v23 = vpop.f32.mrf.mxu1 }
 0x183   : > { %v1401_v11 = vadd.f32 %v1400_v27, %v1176_v6  ;;  %v1699_v20 = vsel %vm1651_vm13, %v1504_v9, 0.0  ;;  %v1606_v27 = vadd.s32 %v2880_v10, %v1557_v15  ;;  %vm1657_vm3 = vcmp.lt.s32.totalorder %v1609_v3, 600 }
 0x184   : > { %v1180_v13 = vpop.f32.mrf.mxu0  ;;  %v1424_v29 = vpop.f32.mrf.mxu1 }
 0x185   : > { %v1505_v16 = vmax.f32 %v1401_v11, 0.0  ;;  %v1181_v17 = vadd.f32 %v2874_v4, %v1180_v13  ;;  %vm1654_vm0 = vcmp.lt.s32.totalorder %v1606_v27, 600 }
 0x186   : > { %v1182_v19 = vpop.f32.mrf.mxu0  ;;  %v1426_v33 = vpop.f32.mrf.mxu1 }
 0x187   : > { %v1700_v21 = vsel %vm1652_vm14, %v1505_v16, 0.0  ;;  %v1406_v22 = vadd.f32 %v1405_v37, %v1181_v17  ;;  %v1562_v16 = vadd.s32 288, %v2876_v5  ;;  %v1563_v17 = vadd.s32 296, %v2876_v5 }
 0x188   : > { %v2343_v24 = vpack.c.bf16 %v1700_v21, %v1699_v20  ;;  %v1183_v26 = vpop.f32.mrf.mxu0  ;;  %v1429_v39 = vpop.f32.mrf.mxu1 }
 0x189   : > { %v1184_v28 = vadd.f32 %v2874_v4, %v1183_v26  ;;  %v1506_v31 = vmax.f32 %v1406_v22, 0.0  ;;  %v1611_v27 = vadd.s32 %v2880_v10, %v1562_v16 }
 0x18a   : > { %2403 = vst [vmem:[%s2893_s30 + $0x70] sm:$0xff] %v2343_v24   ;;  %v1185_v30 = vpop.f32.mrf.mxu0  ;;  %v1431_v44 = vpop.f32.mrf.mxu1 }
 0x18b   : > { %v1409_v32 = vadd.f32 %v1408_v48, %v1184_v28  ;;  %v1701_v41 = vsel %vm1653_vm15, %v1506_v31, 0.0  ;;  %v1608_v48 = vadd.s32 %v2880_v10, %v1559_v36  ;;  %vm1659_vm5 = vcmp.lt.s32.totalorder %v1611_v27, 600 }
 0x18c   : > { %v1188_v34 = vpop.f32.mrf.mxu0  ;;  %v1432_v50 = vpop.f32.mrf.mxu1 }
 0x18d   : > { %v1507_v37 = vmax.f32 %v1409_v32, 0.0  ;;  %v1189_v38 = vadd.f32 %v2874_v4, %v1188_v34  ;;  %vm1656_vm2 = vcmp.lt.s32.totalorder %v1608_v48, 600 }
 0x18e   : > { %v1190_v40 = vpop.f32.mrf.mxu0  ;;  %v1434_v54 = vpop.f32.mrf.mxu1 }
 0x18f   : > { %v1702_v42 = vsel %vm1654_vm0, %v1507_v37, 0.0  ;;  %v1414_v43 = vadd.f32 %v1413_v58, %v1189_v38  ;;  %v1564_v37 = vadd.s32 304, %v2876_v5  ;;  %v1565_v38 = vadd.s32 312, %v2876_v5 }
 0x190   : > { %v2348_v45 = vpack.c.bf16 %v1702_v42, %v1701_v41  ;;  %v1191_v47 = vpop.f32.mrf.mxu0  ;;  %v1437_v60 = vpop.f32.mrf.mxu1 }
 0x191   : > { %v1192_v49 = vadd.f32 %v2874_v4, %v1191_v47  ;;  %v1508_v52 = vmax.f32 %v1414_v43, 0.0  ;;  %v1613_v48 = vadd.s32 %v2880_v10, %v1564_v37 }
 0x192   : > { %2404 = vst [vmem:[%s2893_s30 + $0x78] sm:$0xff] %v2348_v45   ;;  %v1193_v51 = vpop.f32.mrf.mxu0  ;;  %v1439_v1 = vpop.f32.mrf.mxu1 }
 0x193   : > { %v1417_v53 = vadd.f32 %v1416_v7, %v1192_v49  ;;  %v1703_v62 = vsel %vm1655_vm1, %v1508_v52, 0.0  ;;  %v1610_v7 = vadd.s32 %v2880_v10, %v1561_v57  ;;  %vm1661_vm7 = vcmp.lt.s32.totalorder %v1613_v48, 600 }
 0x194   : > { %v1196_v55 = vpop.f32.mrf.mxu0  ;;  %v1440_v9 = vpop.f32.mrf.mxu1 }
 0x195   : > { %v1509_v58 = vmax.f32 %v1417_v53, 0.0  ;;  %v1197_v59 = vadd.f32 %v2874_v4, %v1196_v55  ;;  %vm1658_vm4 = vcmp.lt.s32.totalorder %v1610_v7, 600 }
 0x196   : > { %v1198_v61 = vpop.f32.mrf.mxu0  ;;  %v1442_v14 = vpop.f32.mrf.mxu1 }
 0x197   : > { %v1704_v63 = vsel %vm1656_vm2, %v1509_v58, 0.0  ;;  %v1422_v0 = vadd.f32 %v1421_v18, %v1197_v59  ;;  %v1566_v58 = vadd.s32 320, %v2876_v5  ;;  %v1567_v59 = vadd.s32 328, %v2876_v5 }
 0x198   : > { %v2353_v2 = vpack.c.bf16 %v1704_v63, %v1703_v62  ;;  %v1199_v6 = vpop.f32.mrf.mxu0  ;;  %v1445_v20 = vpop.f32.mrf.mxu1 }
 0x199   : > { %v1200_v8 = vadd.f32 %v2874_v4, %v1199_v6  ;;  %v1510_v12 = vmax.f32 %v1422_v0, 0.0  ;;  %v1615_v7 = vadd.s32 %v2880_v10, %v1566_v58 }
 0x19a   : > { %2405 = vst [vmem:[%s2893_s30 + $0x80] sm:$0xff] %v2353_v2   ;;  %v1201_v11 = vpop.f32.mrf.mxu0  ;;  %v1447_v25 = vpop.f32.mrf.mxu1 }
 0x19b   : > { %v1425_v13 = vadd.f32 %v1424_v29, %v1200_v8  ;;  %v1705_v22 = vsel %vm1657_vm3, %v1510_v12, 0.0  ;;  %v1612_v29 = vadd.s32 %v2880_v10, %v1563_v17  ;;  %vm1663_vm9 = vcmp.lt.s32.totalorder %v1615_v7, 600 }
 0x19c   : > { %v1204_v15 = vpop.f32.mrf.mxu0  ;;  %v1448_v31 = vpop.f32.mrf.mxu1 }
 0x19d   : > { %v1511_v18 = vmax.f32 %v1425_v13, 0.0  ;;  %v1205_v19 = vadd.f32 %v2874_v4, %v1204_v15  ;;  %vm1660_vm6 = vcmp.lt.s32.totalorder %v1612_v29, 600 }
 0x19e   : > { %v1206_v21 = vpop.f32.mrf.mxu0  ;;  %v1450_v35 = vpop.f32.mrf.mxu1 }
 0x19f   : > { %v1706_v23 = vsel %vm1658_vm4, %v1511_v18, 0.0  ;;  %v1430_v24 = vadd.f32 %v1429_v39, %v1205_v19  ;;  %v1568_v18 = vadd.s32 336, %v2876_v5  ;;  %v1569_v19 = vadd.s32 344, %v2876_v5 }
 0x1a0   : > { %v2358_v26 = vpack.c.bf16 %v1706_v23, %v1705_v22  ;;  %v1207_v28 = vpop.f32.mrf.mxu0  ;;  %v1453_v41 = vpop.f32.mrf.mxu1 }
 0x1a1   : > { %v1208_v30 = vadd.f32 %v2874_v4, %v1207_v28  ;;  %v1512_v33 = vmax.f32 %v1430_v24, 0.0  ;;  %v1617_v29 = vadd.s32 %v2880_v10, %v1568_v18 }
 0x1a2   : > { %2406 = vst [vmem:[%s2893_s30 + $0x88] sm:$0xff] %v2358_v26   ;;  %v1209_v32 = vpop.f32.mrf.mxu0  ;;  %v1455_v46 = vpop.f32.mrf.mxu1 }
 0x1a3   : > { %v1433_v34 = vadd.f32 %v1432_v50, %v1208_v30  ;;  %v1707_v43 = vsel %vm1659_vm5, %v1512_v33, 0.0  ;;  %v1614_v50 = vadd.s32 %v2880_v10, %v1565_v38  ;;  %v2593_v32 = vld [vmem:[%s3057_s2] ss:$0 sm:$0xff]  ;;  %vm1665_vm11 = vcmp.lt.s32.totalorder %v1617_v29, 600 }
 0x1a4   : > { %v1212_v36 = vpop.f32.mrf.mxu0  ;;  %v1456_v52 = vpop.f32.mrf.mxu1 }
 0x1a5   : > { %v1513_v39 = vmax.f32 %v1433_v34, 0.0  ;;  %v1213_v40 = vadd.f32 %v2874_v4, %v1212_v36  ;;  %vm1662_vm8 = vcmp.lt.s32.totalorder %v1614_v50, 600 }
 0x1a6   : > { %v1214_v42 = vpop.f32.mrf.mxu0  ;;  %v1458_v56 = vpop.f32.mrf.mxu1 }
 0x1a7   : > { %v1708_v44 = vsel %vm1660_vm6, %v1513_v39, 0.0  ;;  %v1438_v45 = vadd.f32 %v1437_v60, %v1213_v40  ;;  %v1570_v39 = vadd.s32 352, %v2876_v5  ;;  %v1571_v40 = vadd.s32 360, %v2876_v5 }
 0x1a8   : > { %v2363_v47 = vpack.c.bf16 %v1708_v44, %v1707_v43  ;;  %v1215_v49 = vpop.f32.mrf.mxu0  ;;  %v1461_v62 = vpop.f32.mrf.mxu1  ;;  %v1572_v56 = vadd.s32 368, %v2876_v5 }
 0x1a9   : > { %v1216_v51 = vadd.f32 %v2874_v4, %v1215_v49  ;;  %v1514_v54 = vmax.f32 %v1438_v45, 0.0  ;;  %v1619_v48 = vadd.s32 %v2880_v10, %v1570_v39  ;;  %v1620_v50 = vadd.s32 %v2880_v10, %v1571_v40 }
 0x1aa   : > { %2407 = vst [vmem:[%s2893_s30 + $0x90] sm:$0xff] %v2363_v47   ;;  %v1217_v53 = vpop.f32.mrf.mxu0  ;;  %v1463_v3 = vpop.f32.mrf.mxu1 }
 0x1ab   : > { %v1441_v55 = vadd.f32 %v1440_v9, %v1216_v51  ;;  %v1709_v0 = vsel %vm1661_vm7, %v1514_v54, 0.0  ;;  %v1616_v9 = vadd.s32 %v2880_v10, %v1567_v59  ;;  %vm1667_vm13 = vcmp.lt.s32.totalorder %v1619_v48, 600 }
 0x1ac   : > { %v1220_v57 = vpop.f32.mrf.mxu0  ;;  %v1464_v12 = vpop.f32.mrf.mxu1  ;;  %vm1668_vm14 = vcmp.lt.s32.totalorder %v1620_v50, 600 }
 0x1ad   : > { %v1515_v60 = vmax.f32 %v1441_v55, 0.0  ;;  %v1221_v61 = vadd.f32 %v2874_v4, %v1220_v57  ;;  %vm1664_vm10 = vcmp.lt.s32.totalorder %v1616_v9, 600  ;;  %v1573_v57 = vadd.s32 376, %v2876_v5 }
 0x1ae   : > { %v1222_v63 = vpop.f32.mrf.mxu0  ;;  %v1466_v16 = vpop.f32.mrf.mxu1 }
 0x1af   : > { %v1710_v1 = vsel %vm1662_vm8, %v1515_v60, 0.0  ;;  %v1446_v2 = vadd.f32 %v1445_v20, %v1221_v61  ;;  %v1622_v3 = vadd.s32 %v2880_v10, %v1573_v57 }
 0x1b0   : > { %v2368_v6 = vpack.c.bf16 %v1710_v1, %v1709_v0  ;;  %v1223_v8 = vpop.f32.mrf.mxu0  ;;  %v1469_v22 = vpop.f32.mrf.mxu1  ;;  %v1621_v1 = vadd.s32 %v2880_v10, %v1572_v56 }
 0x1b1   : > { %v1224_v11 = vadd.f32 %v2874_v4, %v1223_v8  ;;  %v1516_v14 = vmax.f32 %v1446_v2, 0.0  ;;  %vm1670_vm0 = vcmp.lt.s32.totalorder %v1622_v3, 600 }
 0x1b2   : > { %2408 = vst [vmem:[%s2893_s30 + $0x98] sm:$0xff] %v2368_v6   ;;  %v1225_v13 = vpop.f32.mrf.mxu0  ;;  %v1471_v27 = vpop.f32.mrf.mxu1  ;;  %vm1669_vm15 = vcmp.lt.s32.totalorder %v1621_v1, 600 }
 0x1b3   : > { %v1449_v15 = vadd.f32 %v1448_v31, %v1224_v11  ;;  %v1711_v24 = vsel %vm1663_vm9, %v1516_v14, 0.0  ;;  %v1618_v31 = vadd.s32 %v2880_v10, %v1569_v19 }
 0x1b4   : > { %v1228_v17 = vpop.f32.mrf.mxu0  ;;  %v1472_v34 = vpop.f32.mrf.mxu1 }
 0x1b5   : > { %v1517_v20 = vmax.f32 %v1449_v15, 0.0  ;;  %v1229_v21 = vadd.f32 %v2874_v4, %v1228_v17  ;;  %vm1666_vm12 = vcmp.lt.s32.totalorder %v1618_v31, 600 }
 0x1b6   : > { %v1230_v23 = vpop.f32.mrf.mxu0  ;;  %v1474_v37 = vpop.f32.mrf.mxu1 }
 0x1b7   : > { %v1712_v25 = vsel %vm1664_vm10, %v1517_v20, 0.0  ;;  %v1454_v26 = vadd.f32 %v1453_v41, %v1229_v21 }
 0x1b8   : > { %v2373_v28 = vpack.c.bf16 %v1712_v25, %v1711_v24  ;;  %v1231_v30 = vpop.f32.mrf.mxu0 }
 0x1b9   : > { %v1232_v33 = vadd.f32 %v2593_v32, %v1231_v30  ;;  %v1518_v35 = vmax.f32 %v1454_v26, 0.0 }
 0x1ba   : > { %2409 = vst [vmem:[%s2893_s30 + $0xa0] sm:$0xff] %v2373_v28   ;;  %v1233_v4 = vpop.f32.mrf.mxu0 }
 0x1bb   : > { %v1457_v36 = vadd.f32 %v1456_v52, %v1232_v33  ;;  %v1713_v44 = vsel %vm1665_vm11, %v1518_v35, 0.0 }
 0x1bc   : > { %v1236_v38 = vpop.f32.mrf.mxu0 }
 0x1bd   : > { %v1519_v41 = vmax.f32 %v1457_v36, 0.0  ;;  %v1237_v42 = vadd.f32 %v2593_v32, %v1236_v38 }
 0x1be   : > { %v1238_v43 = vpop.f32.mrf.mxu0 }
 0x1bf   : > { %v1714_v45 = vsel %vm1666_vm12, %v1519_v41, 0.0  ;;  %v1462_v46 = vadd.f32 %v1461_v62, %v1237_v42 }
 0x1c0   : > { %v2378_v47 = vpack.c.bf16 %v1714_v45, %v1713_v44  ;;  %v1239_v49 = vpop.f32.mrf.mxu0 }
 0x1c1   : > { %v1240_v51 = vadd.f32 %v2593_v32, %v1239_v49  ;;  %v1520_v53 = vmax.f32 %v1462_v46, 0.0 }
 0x1c2   : > { %2410 = vst [vmem:[%s2893_s30 + $0xa8] sm:$0xff] %v2378_v47   ;;  %v1241_v52 = vpop.f32.mrf.mxu0 }
 0x1c3   : > { %v1465_v54 = vadd.f32 %v1464_v12, %v1240_v51  ;;  %v1715_v61 = vsel %vm1667_vm13, %v1520_v53, 0.0 }
 0x1c4   : > { %v1244_v55 = vpop.f32.mrf.mxu0 }
 0x1c5   : > { %v1521_v58 = vmax.f32 %v1465_v54, 0.0  ;;  %v1245_v59 = vadd.f32 %v2593_v32, %v1244_v55 }
 0x1c6   : > { %v1246_v60 = vpop.f32.mrf.mxu0 }
 0x1c7   : > { %v1716_v62 = vsel %vm1668_vm14, %v1521_v58, 0.0  ;;  %v1470_v63 = vadd.f32 %v1469_v22, %v1245_v59 }
 0x1c8   : > { %v2383_v0 = vpack.c.bf16 %v1716_v62, %v1715_v61  ;;  %v1247_v2 = vpop.f32.mrf.mxu0 }
 0x1c9   : > { %v1248_v6 = vadd.f32 %v2593_v32, %v1247_v2  ;;  %v1522_v8 = vmax.f32 %v1470_v63, 0.0 }
 0x1ca   : > { %2411 = vst [vmem:[%s2893_s30 + $0xb0] sm:$0xff] %v2383_v0   ;;  %v1249_v7 = vpop.f32.mrf.mxu0 }
 0x1cb   : > { %v1473_v9 = vadd.f32 %v1472_v34, %v1248_v6  ;;  %v1717_v11 = vsel %vm1669_vm15, %v1522_v8, 0.0 }
 0x1cd   : > { %v1523_v5 = vmax.f32 %v1473_v9, 0.0 }
 0x1cf   : > { %v1718_v12 = vsel %vm1670_vm0, %v1523_v5, 0.0 }
 0x1d0   : > { %v2388_v13 = vpack.c.bf16 %v1718_v12, %v1717_v11 }
 0x1d2   : > { %2412 = vst [vmem:[%s2893_s30 + $0xb8] sm:$0xff] %v2388_v13  }
 0x1d3 PF: > { %s13_s12 = sadd.s32 1, %s2600_s12  }
 0x1d4   : > { %p10_p4 = scmp.ge.s32.totalorder %s13_s12, 4  }
 0x1d6   :  { %12 = sbr.rel (!%p10_p4) target bundleno = 1 (0x1), region = 62 }

// kernel: sparse_encoder_forward.14
= control target key start
LH: loop header
LB: loop body
LE: loop exit
PB: predicated region body
PF: predicated region fallthrough
CT: control target
= control target key end

     0   :  { %s3290_s12 = smov 0   ;;  %s3855_s0 = inlined_call_operand.vmem [shape: bf16[1536,432], index: 0, kind: input, shape index: {}]   ;;  %s3856_s1 = inlined_call_operand.vmem [shape: bf16[432,128], index: 1, kind: input, shape index: {}]   ;;  %s3857_s2 = inlined_call_operand.vmem [shape: f32[1,128], index: 2, kind: input, shape index: {}]   ;;  %s3858_s3 = inlined_call_operand.vmem [shape: bf16[1536,128], index: 3, kind: output, shape index: {}]  }
   0x1 LB: > { %s2511_s13 = sadd.s32 4294967295, %s3267_s12   ;;  %p2515_p0 = scmp.ge.s32.totalorder %s3267_s12, 1  ;;  %s3267_s12 = sphi %s3290_s12, %s13_s12  }
   0x2   : > { %p139_p1 = scmp.lt.s32.totalorder %s3267_s12, 4 }
   0x4   : > { %p140_p2 = pnand %p2515_p0, %p139_p1 }
   0x5   : > { %s2516_s26 = sshll.u32 (!%p140_p2), %s2511_s13, 6  ;;  %s2709_s28 = sshll.u32 (!%p140_p2), %s2511_s13, 9 }
   0x6   : > { %143 = sbr.rel (%p140_p2) target bundleno = 531 (0x213), region = 32  ;;  %p165_p3 = scmp.lt.s32.totalorder (!%p140_p2), %s2516_s26, 191 }
   0xb   : > { %v3041_v0 = vld [vmem:[%s3856_s1 + $0x38] sm:$0xff]   ;;  %v3269_v1 = vmov 0   ;;  %v3042_v2 = vld [vmem:[%s3856_s1 + $0x30] sm:$0xff]   ;;  %v3043_v4 = vld [vmem:[%s3856_s1 + $0x28] sm:$0xff]   ;;  %s3860_s26 = smov (!%p165_p3, %s2516_s26), 191  ;;  %vm1137_vm0 = vcmask 392192  }
   0xc   : > { %1234 = vmatprep.subr.bf16.mxu0 %v3269_v1  ;;  %1523 = vmatprep.subr.bf16.mxu1 %v3269_v1  ;;  %v3046_v3 = vld [vmem:[%s3856_s1 + $0xb8] sm:$0xff]   ;;  %v3048_v5 = vld [vmem:[%s3856_s1 + $0xb0] sm:$0xff]   ;;  %v3044_v6 = vld [vmem:[%s3856_s1 + $0x20] sm:$0xff]   ;;  %s2776_s10 = sshll.u32 %s3860_s26, 4  ;;  %s2520_s13 = sshll.u32 %s3860_s26, 2 }
   0xd   : > { %1235 = vmatpush1.bf16.msra.mxu0 %v3041_v0  ;;  %1524 = vmatpush1.bf16.msra.mxu1 %v3046_v3  ;;  %v3050_v7 = vld [vmem:[%s3856_s1 + $0xa8] sm:$0xff]   ;;  %v3045_v8 = vld [vmem:[%s3856_s1 + $0x18] sm:$0xff]   ;;  %v3052_v9 = vld [vmem:[%s3856_s1 + $0xa0] sm:$0xff]   ;;  %s3358_s19 = scalar_lea.vmem %s3855_s0, %s2776_s10  ;;  %s3587_s30 = scalar_lea.vmem %s3858_s3, %s2520_s13 }
   0xe   : > { %1236 = vmatprep.subr.bf16.mxu0 %v3269_v1  ;;  %1525 = vmatprep.subr.bf16.mxu1 %v3269_v1  ;;  %v3047_v10 = vld [vmem:[%s3856_s1 + $0x10] sm:$0xff]   ;;  %v3054_v11 = vld [vmem:[%s3856_s1 + $0x98] sm:$0xff]   ;;  %v3049_v12 = vld [vmem:[%s3856_s1 + $0x8] sm:$0xff]  }
   0xf   : > { %v3056_v13 = vld [vmem:[%s3856_s1 + $0x90] sm:$0xff]   ;;  %v3051_v14 = vld [vmem:[%s3856_s1] sm:$0xff]   ;;  %v3058_v15 = vld [vmem:[%s3856_s1 + $0x88] sm:$0xff]  }
  0x10   : > { %v3069_v16 = vld [vmem:[%s3358_s19 + $0xc] ss:$16 sps:$4 sm:$0xff]   ;;  %v3073_v17 = vld [vmem:[%s3358_s19 + $0x4] ss:$16 sps:$4 sm:$0xff]   ;;  %v3067_v27 = vld [vmem:[%s3358_s19 + $0x8] ss:$16 sps:$4 sm:$0xff]  }
  0x11   : > { %1237 = vmatpush1.bf16.msra.mxu0 %v3042_v2  ;;  %1526 = vmatpush1.bf16.msra.mxu1 %v3048_v5  ;;  %v3053_v18 = vld [vmem:[%s3856_s1 + $0x78] sm:$0xff]   ;;  %v3060_v19 = vld [vmem:[%s3856_s1 + $0x80] sm:$0xff]   ;;  %v3055_v20 = vld [vmem:[%s3856_s1 + $0x70] sm:$0xff]  }
  0x12   : > { %1238 = vmatprep.subr.bf16.mxu0 %v3269_v1  ;;  %1527 = vmatprep.subr.bf16.mxu1 %v3269_v1  ;;  %v3062_v21 = vld [vmem:[%s3856_s1 + $0xd0] sm:$0xff]   ;;  %v3057_v22 = vld [vmem:[%s3856_s1 + $0x68] sm:$0xff]   ;;  %v3059_v24 = vld [vmem:[%s3856_s1 + $0x60] sm:$0xff]  }
  0x13   : > { %2677 = vmatprep.mubr.msk.bf16.mxu1 %vm1137_vm0, %v3069_v16  ;;  %1266 = vmatprep.mubr.bf16.mxu0 %v3073_v17  ;;  %v3064_v23 = vld [vmem:[%s3856_s1 + $0xc8] sm:$0xff]   ;;  %v3066_v25 = vld [vmem:[%s3856_s1 + $0xc0] sm:$0xff]   ;;  %v3061_v26 = vld [vmem:[%s3856_s1 + $0x58] sm:$0xff]  }
  0x14   : > { %v3074_v28 = vld [vmem:[%s3358_s19 + $0x2c] ss:$16 sps:$4 sm:$0xff]   ;;  %v3063_v29 = vld [vmem:[%s3856_s1 + $0x50] sm:$0xff]   ;;  %v3076_v31 = vld [vmem:[%s3358_s19 + $0x28] ss:$16 sps:$4 sm:$0xff]  }
  0x15   : > { %1239 = vmatpush1.bf16.msra.mxu0 %v3043_v4  ;;  %1528 = vmatpush1.bf16.msra.mxu1 %v3050_v7  ;;  %v3065_v30 = vld [vmem:[%s3856_s1 + $0x48] sm:$0xff]   ;;  %v3070_v33 = vld [vmem:[%s3856_s1 + $0x40] sm:$0xff]  }
  0x16   : > { %1240 = vmatprep.subr.bf16.mxu0 %v3269_v1  ;;  %1529 = vmatprep.subr.bf16.mxu1 %v3269_v1  ;;  %v3080_v32 = vld [vmem:[%s3358_s19 + $0x4c] ss:$16 sps:$4 sm:$0xff]   ;;  %v3071_v34 = vld [vmem:[%s3358_s19] ss:$16 sps:$4 sm:$0xff]   ;;  %v3077_v35 = vld [vmem:[%s3358_s19 + $0x24] ss:$16 sps:$4 sm:$0xff]  }
  0x17   : > { %v3082_v36 = vld [vmem:[%s3358_s19 + $0x48] ss:$16 sps:$4 sm:$0xff]   ;;  %v3086_v37 = vld [vmem:[%s3358_s19 + $0x6c] ss:$16 sps:$4 sm:$0xff]   ;;  %v3079_v38 = vld [vmem:[%s3358_s19 + $0x20] ss:$16 sps:$4 sm:$0xff]  }
  0x18   : > { %v3083_v39 = vld [vmem:[%s3358_s19 + $0x44] ss:$16 sps:$4 sm:$0xff]   ;;  %v3088_v40 = vld [vmem:[%s3358_s19 + $0x68] ss:$16 sps:$4 sm:$0xff]   ;;  %v3092_v41 = vld [vmem:[%s3358_s19 + $0x8c] ss:$16 sps:$4 sm:$0xff]  }
  0x19   : > { %1241 = vmatpush1.bf16.msra.mxu0 %v3044_v6  ;;  %1530 = vmatpush1.bf16.msra.mxu1 %v3052_v9  ;;  %v3085_v42 = vld [vmem:[%s3358_s19 + $0x40] ss:$16 sps:$4 sm:$0xff]   ;;  %v3089_v43 = vld [vmem:[%s3358_s19 + $0x64] ss:$16 sps:$4 sm:$0xff]   ;;  %v3094_v44 = vld [vmem:[%s3358_s19 + $0x88] ss:$16 sps:$4 sm:$0xff]  }
  0x1a   : > { %1242 = vmatprep.subr.bf16.mxu0 %v3269_v1  ;;  %1531 = vmatprep.subr.bf16.mxu1 %v3269_v1  ;;  %v3098_v45 = vld [vmem:[%s3358_s19 + $0xac] ss:$16 sps:$4 sm:$0xff]   ;;  %v3091_v46 = vld [vmem:[%s3358_s19 + $0x60] ss:$16 sps:$4 sm:$0xff]   ;;  %v3095_v47 = vld [vmem:[%s3358_s19 + $0x84] ss:$16 sps:$4 sm:$0xff]  }
  0x1b   : > { %v3100_v48 = vld [vmem:[%s3358_s19 + $0xa8] ss:$16 sps:$4 sm:$0xff]   ;;  %v3104_v49 = vld [vmem:[%s3358_s19 + $0xcc] ss:$16 sps:$4 sm:$0xff]   ;;  %v3097_v50 = vld [vmem:[%s3358_s19 + $0x80] ss:$16 sps:$4 sm:$0xff]  }
  0x1c   : > { %v3101_v51 = vld [vmem:[%s3358_s19 + $0xa4] ss:$16 sps:$4 sm:$0xff]   ;;  %v3106_v52 = vld [vmem:[%s3358_s19 + $0xc8] ss:$16 sps:$4 sm:$0xff]   ;;  %v3110_v53 = vld [vmem:[%s3358_s19 + $0xec] ss:$16 sps:$4 sm:$0xff]  }
  0x1d   : > { %1243 = vmatpush1.bf16.msra.mxu0 %v3045_v8  ;;  %1532 = vmatpush1.bf16.msra.mxu1 %v3054_v11  ;;  %v3103_v54 = vld [vmem:[%s3358_s19 + $0xa0] ss:$16 sps:$4 sm:$0xff]   ;;  %v3107_v55 = vld [vmem:[%s3358_s19 + $0xc4] ss:$16 sps:$4 sm:$0xff]   ;;  %v3112_v56 = vld [vmem:[%s3358_s19 + $0xe8] ss:$16 sps:$4 sm:$0xff]  }
  0x1e   : > { %1244 = vmatprep.subr.bf16.mxu0 %v3269_v1  ;;  %1533 = vmatprep.subr.bf16.mxu1 %v3269_v1  ;;  %v3116_v57 = vld [vmem:[%s3358_s19 + $0x10c] ss:$16 sps:$4 sm:$0xff]   ;;  %v3109_v58 = vld [vmem:[%s3358_s19 + $0xc0] ss:$16 sps:$4 sm:$0xff]   ;;  %v3113_v59 = vld [vmem:[%s3358_s19 + $0xe4] ss:$16 sps:$4 sm:$0xff]  }
  0x1f   : > { %v3118_v60 = vld [vmem:[%s3358_s19 + $0x108] ss:$16 sps:$4 sm:$0xff]   ;;  %v3122_v61 = vld [vmem:[%s3358_s19 + $0x12c] ss:$16 sps:$4 sm:$0xff]   ;;  %v3115_v62 = vld [vmem:[%s3358_s19 + $0xe0] ss:$16 sps:$4 sm:$0xff]  }
  0x20   : > { %v3119_v63 = vld [vmem:[%s3358_s19 + $0x104] ss:$16 sps:$4 sm:$0xff]   ;;  %v3124_v0 = vld [vmem:[%s3358_s19 + $0x128] ss:$16 sps:$4 sm:$0xff]   ;;  %v3121_v2 = vld [vmem:[%s3358_s19 + $0x100] ss:$16 sps:$4 sm:$0xff]  }
  0x21   : > { %1245 = vmatpush1.bf16.msra.mxu0 %v3047_v10  ;;  %1534 = vmatpush1.bf16.msra.mxu1 %v3056_v13  ;;  %v3125_v3 = vld [vmem:[%s3358_s19 + $0x124] ss:$16 sps:$4 sm:$0xff]   ;;  %v3130_v4 = vld [vmem:[%s3358_s19 + $0x148] ss:$16 sps:$4 sm:$0xff]   ;;  %v3134_v5 = vld [vmem:[%s3358_s19 + $0x16c] ss:$16 sps:$4 sm:$0xff]  }
  0x22   : > { %1246 = vmatprep.subr.bf16.mxu0 %v3269_v1  ;;  %1535 = vmatprep.subr.bf16.mxu1 %v3269_v1  ;;  %v3127_v6 = vld [vmem:[%s3358_s19 + $0x120] ss:$16 sps:$4 sm:$0xff]   ;;  %v3131_v7 = vld [vmem:[%s3358_s19 + $0x144] ss:$16 sps:$4 sm:$0xff]   ;;  %v3136_v8 = vld [vmem:[%s3358_s19 + $0x168] ss:$16 sps:$4 sm:$0xff]  }
  0x23   : > { %v3140_v9 = vld [vmem:[%s3358_s19 + $0x18c] ss:$16 sps:$4 sm:$0xff]   ;;  %v3133_v10 = vld [vmem:[%s3358_s19 + $0x140] ss:$16 sps:$4 sm:$0xff]   ;;  %v3137_v11 = vld [vmem:[%s3358_s19 + $0x164] ss:$16 sps:$4 sm:$0xff]  }
  0x24   : > { %v3146_v13 = vld [vmem:[%s3358_s19 + $0x1ac] ss:$16 sps:$4 sm:$0xff]   ;;  %v3148_v16 = vld [vmem:[%s3358_s19 + $0x1a8] ss:$16 sps:$4 sm:$0xff]  }
  0x25   : > { %1247 = vmatpush1.bf16.msra.mxu0 %v3049_v12  ;;  %1536 = vmatpush1.bf16.msra.mxu1 %v3058_v15  ;;  %v3142_v12 = vld [vmem:[%s3358_s19 + $0x188] ss:$16 sps:$4 sm:$0xff]   ;;  %v3143_v15 = vld [vmem:[%s3358_s19 + $0x184] ss:$16 sps:$4 sm:$0xff]   ;;  %v3152_v17 = vld [vmem:[%s3358_s19 + $0x1cc] ss:$16 sps:$4 sm:$0xff]  }
  0x26   : > { %1248 = vmatprep.subr.bf16.mxu0 %v3269_v1  ;;  %1537 = vmatprep.subr.bf16.mxu1 %v3269_v1 }
  0x29   : > { %1249 = vmatpush1.bf16.msra.mxu0 %v3051_v14  ;;  %1538 = vmatpush1.bf16.msra.mxu1 %v3060_v19  ;;  %v3139_v14 = vld [vmem:[%s3358_s19 + $0x160] ss:$16 sps:$4 sm:$0xff]   ;;  %v3149_v19 = vld [vmem:[%s3358_s19 + $0x1a4] ss:$16 sps:$4 sm:$0xff]  }
  0x2a   : > { %1250 = vmatprep.subr.bf16.mxu0 %v3269_v1  ;;  %1549 = vmatprep.subr.bf16.mxu1 %v3269_v1 }
  0x2d   : > { %1251 = vmatpush2.bf16.msra.mxu0 %v3053_v18  ;;  %1550 = vmatpush2.bf16.msra.mxu1 %v3062_v21  ;;  %v3145_v18 = vld [vmem:[%s3358_s19 + $0x180] ss:$16 sps:$4 sm:$0xff]   ;;  %v3158_v21 = vld [vmem:[%s3358_s19 + $0x1ec] ss:$16 sps:$4 sm:$0xff]  }
  0x2e   : > { %1252 = vmatprep.subr.bf16.mxu0 %v3269_v1  ;;  %1551 = vmatprep.subr.bf16.mxu1 %v3269_v1 }
  0x31   : > { %1253 = vmatpush2.bf16.msra.mxu0 %v3055_v20  ;;  %1552 = vmatpush2.bf16.msra.mxu1 %v3064_v23  ;;  %v3154_v20 = vld [vmem:[%s3358_s19 + $0x1c8] ss:$16 sps:$4 sm:$0xff]   ;;  %v3155_v23 = vld [vmem:[%s3358_s19 + $0x1c4] ss:$16 sps:$4 sm:$0xff]  }
  0x32   : > { %1254 = vmatprep.subr.bf16.mxu0 %v3269_v1  ;;  %1553 = vmatprep.subr.bf16.mxu1 %v3269_v1 }
  0x35   : > { %1255 = vmatpush2.bf16.msra.mxu0 %v3057_v22  ;;  %1554 = vmatpush2.bf16.msra.mxu1 %v3066_v25  ;;  %v3151_v22 = vld [vmem:[%s3358_s19 + $0x1a0] ss:$16 sps:$4 sm:$0xff]   ;;  %v3164_v25 = vld [vmem:[%s3358_s19 + $0x20c] ss:$16 sps:$4 sm:$0xff]  }
  0x36   : > { %1256 = vmatprep.subr.bf16.mxu0 %v3269_v1 }
  0x38   : > { %1556 = vmatmul.mubr.bf16.vlgmr.msra.gmra.mxu1 %v3067_v27  ;;  %v3161_v27 = vld [vmem:[%s3358_s19 + $0x1e4] ss:$16 sps:$4 sm:$0xff]  }
  0x39   : > { %1257 = vmatpush2.bf16.msra.mxu0 %v3059_v24  ;;  %2678 = vmatprep.mubr.msk.bf16.mxu1 %vm1137_vm0, %v3074_v28  ;;  %v3160_v24 = vld [vmem:[%s3358_s19 + $0x1e8] ss:$16 sps:$4 sm:$0xff]  }
  0x3a   : > { %1258 = vmatprep.subr.bf16.mxu0 %v3269_v1  ;;  %v3166_v28 = vld [vmem:[%s3358_s19 + $0x208] ss:$16 sps:$4 sm:$0xff]  }
  0x3d   : > { %1259 = vmatpush2.bf16.msra.mxu0 %v3061_v26  ;;  %v3157_v26 = vld [vmem:[%s3358_s19 + $0x1c0] ss:$16 sps:$4 sm:$0xff]  }
  0x3e   : > { %1260 = vmatprep.subr.bf16.mxu0 %v3269_v1 }
  0x40   : > { %1564 = vmatmul.mubr.bf16.gmra.mxu1 %v3076_v31  ;;  %v3167_v31 = vld [vmem:[%s3358_s19 + $0x204] ss:$16 sps:$4 sm:$0xff]  }
  0x41   : > { %1261 = vmatpush2.bf16.msra.mxu0 %v3063_v29  ;;  %2679 = vmatprep.mubr.msk.bf16.mxu1 %vm1137_vm0, %v3080_v32  ;;  %v3170_v29 = vld [vmem:[%s3358_s19 + $0x22c] ss:$16 sps:$4 sm:$0xff]   ;;  %v3172_v32 = vld [vmem:[%s3358_s19 + $0x228] ss:$16 sps:$4 sm:$0xff]  }
  0x42   : > { %1262 = vmatprep.subr.bf16.mxu0 %v3269_v1 }
  0x45   : > { %1263 = vmatpush2.bf16.msra.mxu0 %v3065_v30  ;;  %v3163_v30 = vld [vmem:[%s3358_s19 + $0x1e0] ss:$16 sps:$4 sm:$0xff]  }
  0x46   : > { %1264 = vmatprep.subr.bf16.mxu0 %v3269_v1  ;;  %v3128_v1 = vld [vmem:[%s3358_s19 + $0x14c] ss:$16 sps:$4 sm:$0xff]  }
  0x48   : > { %1572 = vmatmul.mubr.bf16.gmra.mxu1 %v3082_v36  ;;  %v3178_v36 = vld [vmem:[%s3358_s19 + $0x248] ss:$16 sps:$4 sm:$0xff]  }
  0x49   : > { %1265 = vmatpush2.bf16.msra.mxu0 %v3070_v33  ;;  %2680 = vmatprep.mubr.msk.bf16.mxu1 %vm1137_vm0, %v3086_v37  ;;  %v3176_v33 = vld [vmem:[%s3358_s19 + $0x24c] ss:$16 sps:$4 sm:$0xff]  }
  0x4a   : > { %v3182_v37 = vld [vmem:[%s3358_s19 + $0x26c] ss:$16 sps:$4 sm:$0xff]  }
  0x4c   : > { %1267 = vmatmul.mubr.bf16.vlgmr.msra.gmra.mxu0 %v3071_v34  ;;  %v3169_v34 = vld [vmem:[%s3358_s19 + $0x200] ss:$16 sps:$4 sm:$0xff]  }
  0x4d   : > { %1274 = vmatprep.mubr.bf16.mxu0 %v3077_v35  ;;  %v3173_v35 = vld [vmem:[%s3358_s19 + $0x224] ss:$16 sps:$4 sm:$0xff]  }
  0x50   : > { %1580 = vmatmul.mubr.bf16.gmra.mxu1 %v3088_v40  ;;  %v3184_v40 = vld [vmem:[%s3358_s19 + $0x268] ss:$16 sps:$4 sm:$0xff]  }
  0x51   : > { %2681 = vmatprep.mubr.msk.bf16.mxu1 %vm1137_vm0, %v3092_v41  ;;  %v3188_v41 = vld [vmem:[%s3358_s19 + $0x28c] ss:$16 sps:$4 sm:$0xff]  }
  0x54   : > { %1275 = vmatmul.mubr.bf16.gmra.mxu0 %v3079_v38  ;;  %v3175_v38 = vld [vmem:[%s3358_s19 + $0x220] ss:$16 sps:$4 sm:$0xff]  }
  0x55   : > { %1282 = vmatprep.mubr.bf16.mxu0 %v3083_v39  ;;  %v3179_v39 = vld [vmem:[%s3358_s19 + $0x244] ss:$16 sps:$4 sm:$0xff]  }
  0x58   : > { %1588 = vmatmul.mubr.bf16.gmra.mxu1 %v3094_v44  ;;  %v3190_v44 = vld [vmem:[%s3358_s19 + $0x288] ss:$16 sps:$4 sm:$0xff]  }
  0x59   : > { %2682 = vmatprep.mubr.msk.bf16.mxu1 %vm1137_vm0, %v3098_v45  ;;  %v3194_v45 = vld [vmem:[%s3358_s19 + $0x2ac] ss:$16 sps:$4 sm:$0xff]  }
  0x5c   : > { %1283 = vmatmul.mubr.bf16.gmra.mxu0 %v3085_v42  ;;  %v3181_v42 = vld [vmem:[%s3358_s19 + $0x240] ss:$16 sps:$4 sm:$0xff]  }
  0x5d   : > { %1290 = vmatprep.mubr.bf16.mxu0 %v3089_v43  ;;  %v3185_v43 = vld [vmem:[%s3358_s19 + $0x264] ss:$16 sps:$4 sm:$0xff]  }
  0x60   : > { %1596 = vmatmul.mubr.bf16.gmra.mxu1 %v3100_v48  ;;  %v3196_v48 = vld [vmem:[%s3358_s19 + $0x2a8] ss:$16 sps:$4 sm:$0xff]  }
  0x61   : > { %2683 = vmatprep.mubr.msk.bf16.mxu1 %vm1137_vm0, %v3104_v49  ;;  %v3200_v49 = vld [vmem:[%s3358_s19 + $0x2cc] ss:$16 sps:$4 sm:$0xff]  }
  0x64   : > { %1291 = vmatmul.mubr.bf16.gmra.mxu0 %v3091_v46  ;;  %v3187_v46 = vld [vmem:[%s3358_s19 + $0x260] ss:$16 sps:$4 sm:$0xff]  }
  0x65   : > { %1298 = vmatprep.mubr.bf16.mxu0 %v3095_v47  ;;  %v3191_v47 = vld [vmem:[%s3358_s19 + $0x284] ss:$16 sps:$4 sm:$0xff]  }
  0x68   : > { %1604 = vmatmul.mubr.bf16.gmra.mxu1 %v3106_v52  ;;  %v3202_v52 = vld [vmem:[%s3358_s19 + $0x2c8] ss:$16 sps:$4 sm:$0xff]  }
  0x69   : > { %2684 = vmatprep.mubr.msk.bf16.mxu1 %vm1137_vm0, %v3110_v53  ;;  %v3206_v53 = vld [vmem:[%s3358_s19 + $0x2ec] ss:$16 sps:$4 sm:$0xff]  }
  0x6c   : > { %1299 = vmatmul.mubr.bf16.gmra.mxu0 %v3097_v50  ;;  %v3193_v50 = vld [vmem:[%s3358_s19 + $0x280] ss:$16 sps:$4 sm:$0xff]  }
  0x6d   : > { %1306 = vmatprep.mubr.bf16.mxu0 %v3101_v51  ;;  %v3197_v51 = vld [vmem:[%s3358_s19 + $0x2a4] ss:$16 sps:$4 sm:$0xff]  }
  0x70   : > { %1612 = vmatmul.mubr.bf16.gmra.mxu1 %v3112_v56  ;;  %v3208_v56 = vld [vmem:[%s3358_s19 + $0x2e8] ss:$16 sps:$4 sm:$0xff]  }
  0x71   : > { %2685 = vmatprep.mubr.msk.bf16.mxu1 %vm1137_vm0, %v3116_v57  ;;  %v3212_v57 = vld [vmem:[%s3358_s19 + $0x30c] ss:$16 sps:$4 sm:$0xff]  }
  0x74   : > { %1307 = vmatmul.mubr.bf16.gmra.mxu0 %v3103_v54  ;;  %v3199_v54 = vld [vmem:[%s3358_s19 + $0x2a0] ss:$16 sps:$4 sm:$0xff]  }
  0x75   : > { %1314 = vmatprep.mubr.bf16.mxu0 %v3107_v55  ;;  %v3203_v55 = vld [vmem:[%s3358_s19 + $0x2c4] ss:$16 sps:$4 sm:$0xff]  }
  0x78   : > { %1620 = vmatmul.mubr.bf16.gmra.mxu1 %v3118_v60  ;;  %v3214_v60 = vld [vmem:[%s3358_s19 + $0x308] ss:$16 sps:$4 sm:$0xff]  }
  0x79   : > { %2686 = vmatprep.mubr.msk.bf16.mxu1 %vm1137_vm0, %v3122_v61  ;;  %v3218_v61 = vld [vmem:[%s3358_s19 + $0x32c] ss:$16 sps:$4 sm:$0xff]  }
  0x7c   : > { %1315 = vmatmul.mubr.bf16.gmra.mxu0 %v3109_v58  ;;  %v3205_v58 = vld [vmem:[%s3358_s19 + $0x2c0] ss:$16 sps:$4 sm:$0xff]  }
  0x7d   : > { %1322 = vmatprep.mubr.bf16.mxu0 %v3113_v59  ;;  %v3209_v59 = vld [vmem:[%s3358_s19 + $0x2e4] ss:$16 sps:$4 sm:$0xff]  }
  0x80   : > { %1628 = vmatmul.mubr.bf16.gmra.mxu1 %v3124_v0  ;;  %v3211_v0 = vld [vmem:[%s3358_s19 + $0x2e0] ss:$16 sps:$4 sm:$0xff]  }
  0x81   : > { %2687 = vmatprep.mubr.msk.bf16.mxu1 %vm1137_vm0, %v3128_v1  ;;  %v3215_v1 = vld [vmem:[%s3358_s19 + $0x304] ss:$16 sps:$4 sm:$0xff]  }
  0x84   : > { %1323 = vmatmul.mubr.bf16.gmra.mxu0 %v3115_v62 }
  0x85   : > { %1330 = vmatprep.mubr.bf16.mxu0 %v3119_v63 }
  0x88   : > { %1636 = vmatmul.mubr.bf16.gmra.mxu1 %v3130_v4  ;;  %v3224_v4 = vld [vmem:[%s3358_s19 + $0x34c] ss:$16 sps:$4 sm:$0xff]  }
  0x89   : > { %2688 = vmatprep.mubr.msk.bf16.mxu1 %vm1137_vm0, %v3134_v5 }
  0x8c   : > { %1331 = vmatmul.mubr.bf16.gmra.mxu0 %v3121_v2 }
  0x8d   : > { %1338 = vmatprep.mubr.bf16.mxu0 %v3125_v3  ;;  %v3220_v3 = vld [vmem:[%s3358_s19 + $0x328] ss:$16 sps:$4 sm:$0xff]  }
  0x90   : > { %1644 = vmatmul.mubr.bf16.gmra.mxu1 %v3136_v8 }
  0x91   : > { %2689 = vmatprep.mubr.msk.bf16.mxu1 %vm1137_vm0, %v3140_v9  ;;  %v3217_v9 = vld [vmem:[%s3358_s19 + $0x300] ss:$16 sps:$4 sm:$0xff]  }
  0x94   : > { %1339 = vmatmul.mubr.bf16.gmra.mxu0 %v3127_v6 }
  0x95   : > { %1346 = vmatprep.mubr.bf16.mxu0 %v3131_v7  ;;  %v1877_v7 = vlaneseq }
  0x98   : > { %1652 = vmatmul.mubr.bf16.gmra.mxu1 %v3142_v12  ;;  %v3226_v12 = vld [vmem:[%s3358_s19 + $0x348] ss:$16 sps:$4 sm:$0xff]  }
  0x99   : > { %2690 = vmatprep.mubr.msk.bf16.mxu1 %vm1137_vm0, %v3146_v13  ;;  %v3553_v13 = vld [vmem:[%s3857_s2] ss:$0 sm:$0xff] }
  0x9c   : > { %1347 = vmatmul.mubr.bf16.gmra.mxu0 %v3133_v10  ;;  %v3221_v10 = vld [vmem:[%s3358_s19 + $0x324] ss:$16 sps:$4 sm:$0xff]  }
  0x9d   : > { %1354 = vmatprep.mubr.bf16.mxu0 %v3137_v11 }
  0xa0   : > { %1660 = vmatmul.mubr.bf16.gmra.mxu1 %v3148_v16 }
  0xa1   : > { %2691 = vmatprep.mubr.msk.bf16.mxu1 %vm1137_vm0, %v3152_v17 }
  0xa4   : > { %1355 = vmatmul.mubr.bf16.gmra.mxu0 %v3139_v14  ;;  %v3557_v14 = vshrl.u32 %v1877_v7, 7 }
  0xa5   : > { %1362 = vmatprep.mubr.bf16.mxu0 %v3143_v15  ;;  %v3230_v15 = vld [vmem:[%s3358_s19 + $0x36c] ss:$16 sps:$4 sm:$0xff]  }
  0xa8   : > { %1668 = vmatmul.mubr.bf16.gmra.mxu1 %v3154_v20  ;;  %v3562_v20 = vstv %s2709_s28 }
  0xa9   : > { %2692 = vmatprep.mubr.msk.bf16.mxu1 %vm1137_vm0, %v3158_v21 }
  0xac   : > { %1363 = vmatmul.mubr.bf16.gmra.mxu0 %v3145_v18  ;;  %v1879_v18 = vadd.s32 8, %v3557_v14 }
  0xad   : > { %1370 = vmatprep.mubr.bf16.mxu0 %v3149_v19 }
  0xb0   : > { %1676 = vmatmul.mubr.bf16.gmra.mxu1 %v3160_v24 }
  0xb1   : > { %2693 = vmatprep.mubr.msk.bf16.mxu1 %vm1137_vm0, %v3164_v25  ;;  %v1943_v25 = vadd.s32 %v3562_v20, %v3557_v14 }
  0xb3   : > { %vm2007_vm1 = vcmp.lt.s32.totalorder %v1943_v25, 1096 }
  0xb4   : > { %1371 = vmatmul.mubr.bf16.gmra.mxu0 %v3151_v22 }
  0xb5   : > { %1378 = vmatprep.mubr.bf16.mxu0 %v3155_v23 }
  0xb8   : > { %1684 = vmatmul.mubr.bf16.gmra.mxu1 %v3166_v28  ;;  %v3223_v28 = vld [vmem:[%s3358_s19 + $0x320] ss:$16 sps:$4 sm:$0xff]  }
  0xb9   : > { %2694 = vmatprep.mubr.msk.bf16.mxu1 %vm1137_vm0, %v3170_v29 }
  0xbc   : > { %1379 = vmatmul.mubr.bf16.gmra.mxu0 %v3157_v26 }
  0xbd   : > { %1386 = vmatprep.mubr.bf16.mxu0 %v3161_v27  ;;  %v1944_v27 = vadd.s32 %v3562_v20, %v1879_v18  ;;  %v3241_v18 = vld [vmem:[%s3358_s19 + $0x384] ss:$16 sps:$4 sm:$0xff]  }
  0xbf   : > { %vm2008_vm2 = vcmp.lt.s32.totalorder %v1944_v27, 1096 }
  0xc0   : > { %1692 = vmatmul.mubr.bf16.gmra.mxu1 %v3172_v32  ;;  %v3232_v32 = vld [vmem:[%s3358_s19 + $0x368] ss:$16 sps:$4 sm:$0xff]  }
  0xc1   : > { %2695 = vmatprep.mubr.msk.bf16.mxu1 %vm1137_vm0, %v3176_v33 }
  0xc4   : > { %1387 = vmatmul.mubr.bf16.gmra.mxu0 %v3163_v30  ;;  %v3227_v30 = vld [vmem:[%s3358_s19 + $0x344] ss:$16 sps:$4 sm:$0xff]  }
  0xc5   : > { %1394 = vmatprep.mubr.bf16.mxu0 %v3167_v31 }
  0xc8   : > { %1700 = vmatmul.mubr.bf16.gmra.mxu1 %v3178_v36 }
  0xc9   : > { %2696 = vmatprep.mubr.msk.bf16.mxu1 %vm1137_vm0, %v3182_v37 }
  0xcc   : > { %1395 = vmatmul.mubr.bf16.gmra.mxu0 %v3169_v34  ;;  %v3236_v34 = vld [vmem:[%s3358_s19 + $0x38c] ss:$16 sps:$4 sm:$0xff]  }
  0xcd   : > { %1402 = vmatprep.mubr.bf16.mxu0 %v3173_v35 }
  0xd0   : > { %1708 = vmatmul.mubr.bf16.gmra.mxu1 %v3184_v40  ;;  %v1881_v40 = vadd.s32 24, %v3557_v14 }
  0xd1   : > { %2697 = vmatprep.mubr.msk.bf16.mxu1 %vm1137_vm0, %v3188_v41 }
  0xd4   : > { %1403 = vmatmul.mubr.bf16.gmra.mxu0 %v3175_v38 }
  0xd5   : > { %1410 = vmatprep.mubr.bf16.mxu0 %v3179_v39  ;;  %v1880_v39 = vadd.s32 16, %v3557_v14 }
  0xd8   : > { %1716 = vmatmul.mubr.bf16.gmra.mxu1 %v3190_v44 }
  0xd9   : > { %2698 = vmatprep.mubr.msk.bf16.mxu1 %vm1137_vm0, %v3194_v45 }
  0xdc   : > { %1411 = vmatmul.mubr.bf16.gmra.mxu0 %v3181_v42 }
  0xdd   : > { %1418 = vmatprep.mubr.bf16.mxu0 %v3185_v43 }
  0xe0   : > { %1724 = vmatmul.mubr.bf16.gmra.mxu1 %v3196_v48 }
  0xe1   : > { %2699 = vmatprep.mubr.msk.bf16.mxu1 %vm1137_vm0, %v3200_v49 }
  0xe4   : > { %1419 = vmatmul.mubr.bf16.gmra.mxu0 %v3187_v46 }
  0xe5   : > { %1426 = vmatprep.mubr.bf16.mxu0 %v3191_v47 }
  0xe8   : > { %1732 = vmatmul.mubr.bf16.gmra.mxu1 %v3202_v52  ;;  %v1946_v52 = vadd.s32 %v3562_v20, %v1881_v40 }
  0xe9   : > { %2700 = vmatprep.mubr.msk.bf16.mxu1 %vm1137_vm0, %v3206_v53  ;;  %v3229_v53 = vld [vmem:[%s3358_s19 + $0x340] ss:$16 sps:$4 sm:$0xff]  }
  0xea   : > { %vm2010_vm4 = vcmp.lt.s32.totalorder %v1946_v52, 1096 }
  0xec   : > { %1427 = vmatmul.mubr.bf16.gmra.mxu0 %v3193_v50  ;;  %v1945_v50 = vadd.s32 %v3562_v20, %v1880_v39 }
  0xed   : > { %1434 = vmatprep.mubr.bf16.mxu0 %v3197_v51 }
  0xee   : > { %vm2009_vm3 = vcmp.lt.s32.totalorder %v1945_v50, 1096 }
  0xf0   : > { %1740 = vmatmul.mubr.bf16.gmra.mxu1 %v3208_v56 }
  0xf1   : > { %2701 = vmatprep.mubr.msk.bf16.mxu1 %vm1137_vm0, %v3212_v57  ;;  %v3238_v57 = vld [vmem:[%s3358_s19 + $0x388] ss:$16 sps:$4 sm:$0xff]  }
  0xf4   : > { %1435 = vmatmul.mubr.bf16.gmra.mxu0 %v3199_v54 }
  0xf5   : > { %1442 = vmatprep.mubr.bf16.mxu0 %v3203_v55  ;;  %v3233_v55 = vld [vmem:[%s3358_s19 + $0x364] ss:$16 sps:$4 sm:$0xff]  }
  0xf8   : > { %v1557_v62 = vpop.f32.mrf.mxu1  ;;  %1748 = vmatmul.mubr.bf16.gmra.mxu1 %v3214_v60 }
  0xf9   : > { %2702 = vmatprep.mubr.msk.bf16.mxu1 %vm1137_vm0, %v3218_v61 }
  0xfa   : > { %v1559_v63 = vpop.f32.mrf.mxu1 }
  0xfc   : > { %1443 = vmatmul.mubr.bf16.gmra.mxu0 %v3205_v58  ;;  %v1560_v2 = vpop.f32.mrf.mxu1 }
  0xfd   : > { %1450 = vmatprep.mubr.bf16.mxu0 %v3209_v59  ;;  %v3242_v59 = vld [vmem:[%s3358_s19 + $0x3ac] ss:$16 sps:$4 sm:$0xff]  }
  0xfe   : > { %v1562_v5 = vpop.f32.mrf.mxu1 }
 0x100   : > { %v1565_v6 = vpop.f32.mrf.mxu1  ;;  %1756 = vmatmul.mubr.bf16.gmra.mxu1 %v3220_v3 }
 0x101   : > { %2703 = vmatprep.mubr.msk.bf16.mxu1 %vm1137_vm0, %v3224_v4 }
 0x102   : > { %v1567_v8 = vpop.f32.mrf.mxu1 }
 0x104   : > { %1451 = vmatmul.mubr.bf16.gmra.mxu0 %v3211_v0  ;;  %v3547_v11 = vpop.f32.mrf.mxu1  ;;  %v1882_v0 = vadd.s32 32, %v3557_v14 }
 0x105   : > { %1458 = vmatprep.mubr.bf16.mxu0 %v3215_v1  ;;  %v1883_v1 = vadd.s32 40, %v3557_v14 }
 0x106   : > { %v1570_v16 = vpop.f32.mrf.mxu1 }
 0x107   : > { %v3235_v16 = vld [vmem:[%s3358_s19 + $0x360] ss:$16 sps:$4 sm:$0xff]  }
 0x108   : > { %v3564_v21 = vpop.f32.mrf.mxu1  ;;  %1764 = vmatmul.mubr.bf16.gmra.mxu1 %v3226_v12 }
 0x109   : > { %2704 = vmatprep.mubr.msk.bf16.mxu1 %vm1137_vm0, %v3230_v15  ;;  %v1948_v15 = vadd.s32 %v3562_v20, %v1883_v1 }
 0x10a   : > { %v1575_v24 = vpop.f32.mrf.mxu1 }
 0x10b   : > { %v3248_v24 = vld [vmem:[%s3358_s19 + $0x3cc] ss:$16 sps:$4 sm:$0xff]   ;;  %vm2012_vm6 = vcmp.lt.s32.totalorder %v1948_v15, 1096  ;;  %v1888_v15 = vadd.s32 80, %v3557_v14 }
 0x10c   : > { %v1268_v17 = vpop.f32.mrf.mxu0  ;;  %1459 = vmatmul.mubr.bf16.gmra.mxu0 %v3217_v9  ;;  %v3573_v31 = vpop.f32.mrf.mxu1 }
 0x10d   : > { %v1269_v19 = vadd.f32 %v3553_v13, %v1268_v17  ;;  %1466 = vmatprep.mubr.bf16.mxu0 %v3221_v10 }
 0x10e   : > { %v1270_v22 = vpop.f32.mrf.mxu0  ;;  %v1578_v37 = vpop.f32.mrf.mxu1 }
 0x10f   : > { %v1558_v23 = vadd.f32 %v1557_v62, %v1269_v19  ;;  %v3244_v22 = vld [vmem:[%s3358_s19 + $0x3a8] ss:$16 sps:$4 sm:$0xff]  }
 0x110   : > { %v1271_v26 = vpop.f32.mrf.mxu0  ;;  %v3581_v43 = vpop.f32.mrf.mxu1  ;;  %1772 = vmatmul.mubr.bf16.gmra.mxu1 %v3232_v32 }
 0x111   : > { %v1272_v29 = vadd.f32 %v3553_v13, %v1271_v26  ;;  %v1812_v35 = vmax.f32 %v1558_v23, 0.0  ;;  %2705 = vmatprep.mubr.msk.bf16.mxu1 %vm1137_vm0, %v3236_v34 }
 0x112   : > { %v1273_v33 = vpop.f32.mrf.mxu0  ;;  %v1583_v48 = vpop.f32.mrf.mxu1 }
 0x113   : > { %v1561_v36 = vadd.f32 %v1560_v2, %v1272_v29  ;;  %v2071_v45 = vsel %vm2007_vm1, %v1812_v35, 0.0  ;;  %v1885_v29 = vadd.s32 56, %v3557_v14 }
 0x114   : > { %v1276_v38 = vpop.f32.mrf.mxu0  ;;  %1467 = vmatmul.mubr.bf16.gmra.mxu0 %v3223_v28  ;;  %v3594_v56 = vpop.f32.mrf.mxu1  ;;  %v1884_v28 = vadd.s32 48, %v3557_v14 }
 0x115   : > { %v1813_v41 = vmax.f32 %v1561_v36, 0.0  ;;  %v1277_v42 = vadd.f32 %v3553_v13, %v1276_v38  ;;  %1474 = vmatprep.mubr.bf16.mxu0 %v3227_v30 }
 0x116   : > { %v1278_v44 = vpop.f32.mrf.mxu0  ;;  %v1586_v62 = vpop.f32.mrf.mxu1  ;;  %v1949_v39 = vadd.s32 %v3562_v20, %v1884_v28 }
 0x117   : > { %v2072_v46 = vsel %vm2008_vm2, %v1813_v41, 0.0  ;;  %v1566_v47 = vadd.f32 %v1565_v6, %v1277_v42  ;;  %v1950_v41 = vadd.s32 %v3562_v20, %v1885_v29  ;;  %v3239_v42 = vld [vmem:[%s3358_s19 + $0x380] ss:$16 sps:$4 sm:$0xff]  }
 0x118   : > { %v2844_v49 = vpack.c.bf16 %v2072_v46, %v2071_v45  ;;  %v1279_v51 = vpop.f32.mrf.mxu0  ;;  %v3603_v4 = vpop.f32.mrf.mxu1  ;;  %1780 = vmatmul.mubr.bf16.gmra.mxu1 %v3238_v57  ;;  %v3247_v45 = vld [vmem:[%s3358_s19 + $0x3a4] ss:$16 sps:$4 sm:$0xff]   ;;  %vm2013_vm7 = vcmp.lt.s32.totalorder %v1949_v39, 1096  ;;  %v1890_v39 = vadd.s32 96, %v3557_v14 }
 0x119   : > { %v1280_v54 = vadd.f32 %v3553_v13, %v1279_v51  ;;  %v1814_v60 = vmax.f32 %v1566_v47, 0.0  ;;  %2706 = vmatprep.mubr.msk.bf16.mxu1 %vm1137_vm0, %v3242_v59  ;;  %v3250_v47 = vld [vmem:[%s3358_s19 + $0x3c8] ss:$16 sps:$4 sm:$0xff]   ;;  %vm2014_vm8 = vcmp.lt.s32.totalorder %v1950_v41, 1096 }
 0x11a   : > { %2845 = vst [vmem:[%s3587_s30] sm:$0xff] %v2844_v49   ;;  %v1281_v58 = vpop.f32.mrf.mxu0  ;;  %v1591_v9 = vpop.f32.mrf.mxu1  ;;  %v3254_v49 = vld [vmem:[%s3358_s19 + $0x3ec] ss:$16 sps:$4 sm:$0xff]  }
 0x11b   : > { %v1569_v61 = vadd.f32 %v3547_v11, %v1280_v54  ;;  %v2073_v6 = vsel %vm2009_vm3, %v1814_v60, 0.0  ;;  %v1947_v11 = vadd.s32 %v3562_v20, %v1882_v0  ;;  %v1887_v54 = vadd.s32 72, %v3557_v14 }
 0x11c   : > { %v1284_v63 = vpop.f32.mrf.mxu0  ;;  %1475 = vmatmul.mubr.bf16.gmra.mxu0 %v3229_v53  ;;  %v3612_v19 = vpop.f32.mrf.mxu1  ;;  %v1886_v53 = vadd.s32 64, %v3557_v14 }
 0x11d   : > { %v1815_v2 = vmax.f32 %v1569_v61, 0.0  ;;  %v1285_v3 = vadd.f32 %v3553_v13, %v1284_v63  ;;  %1482 = vmatprep.mubr.bf16.mxu0 %v3233_v55  ;;  %vm2011_vm5 = vcmp.lt.s32.totalorder %v1947_v11, 1096 }
 0x11e   : > { %v1286_v5 = vpop.f32.mrf.mxu0  ;;  %v1594_v26 = vpop.f32.mrf.mxu1  ;;  %v1951_v0 = vadd.s32 %v3562_v20, %v1886_v53  ;;  %v3257_v53 = vld [vmem:[%s3358_s19 + $0x3e0] ss:$16 sps:$4 sm:$0xff]  }
 0x11f   : > { %v2074_v7 = vsel %vm2010_vm4, %v1815_v2, 0.0  ;;  %v1574_v8 = vadd.f32 %v3564_v21, %v1285_v3  ;;  %v1952_v2 = vadd.s32 %v3562_v20, %v1887_v54  ;;  %v3245_v3 = vld [vmem:[%s3358_s19 + $0x3a0] ss:$16 sps:$4 sm:$0xff]  }
 0x120   : > { %v2849_v10 = vpack.c.bf16 %v2074_v7, %v2073_v6  ;;  %v1287_v12 = vpop.f32.mrf.mxu0  ;;  %v3621_v33 = vpop.f32.mrf.mxu1  ;;  %1788 = vmatmul.mubr.bf16.gmra.mxu1 %v3244_v22  ;;  %v3253_v6 = vld [vmem:[%s3358_s19 + $0x3c4] ss:$16 sps:$4 sm:$0xff]   ;;  %vm2015_vm9 = vcmp.lt.s32.totalorder %v1951_v0, 1096 }
 0x121   : > { %v1288_v17 = vadd.f32 %v3553_v13, %v1287_v12  ;;  %v1816_v25 = vmax.f32 %v1574_v8, 0.0  ;;  %2707 = vmatprep.mubr.msk.bf16.mxu1 %vm1137_vm0, %v3248_v24  ;;  %v3256_v8 = vld [vmem:[%s3358_s19 + $0x3e8] ss:$16 sps:$4 sm:$0xff]   ;;  %vm2016_vm10 = vcmp.lt.s32.totalorder %v1952_v2, 1096 }
 0x122   : > { %3001 = vst [vmem:[%s3587_s30 + $0x8] sm:$0xff] %v2849_v10   ;;  %v1289_v23 = vpop.f32.mrf.mxu0  ;;  %v1599_v37 = vpop.f32.mrf.mxu1 }
 0x123   : > { %v1577_v21 = vadd.f32 %v3573_v31, %v1288_v17  ;;  %v2075_v34 = vsel %vm2011_vm5, %v1816_v25, 0.0 }
 0x124   : > { %v1292_v27 = vpop.f32.mrf.mxu0  ;;  %1483 = vmatmul.mubr.bf16.gmra.mxu0 %v3235_v16  ;;  %v3630_v46 = vpop.f32.mrf.mxu1  ;;  %v1889_v16 = vadd.s32 88, %v3557_v14 }
 0x125   : > { %v1817_v30 = vmax.f32 %v1577_v21, 0.0  ;;  %v1293_v32 = vadd.f32 %v3553_v13, %v1292_v27  ;;  %1490 = vmatprep.mubr.bf16.mxu0 %v3241_v18  ;;  %v1953_v27 = vadd.s32 %v3562_v20, %v1888_v15 }
 0x126   : > { %v1294_v31 = vpop.f32.mrf.mxu0  ;;  %v1602_v51 = vpop.f32.mrf.mxu1  ;;  %v1954_v29 = vadd.s32 %v3562_v20, %v1889_v16 }
 0x127   : > { %v2076_v35 = vsel %vm2012_vm6, %v1817_v30, 0.0  ;;  %v1582_v36 = vadd.f32 %v3581_v43, %v1293_v32  ;;  %v3251_v30 = vld [vmem:[%s3358_s19 + $0x3c0] ss:$16 sps:$4 sm:$0xff]   ;;  %v3259_v31 = vld [vmem:[%s3358_s19 + $0x3e4] ss:$16 sps:$4 sm:$0xff]   ;;  %vm2017_vm11 = vcmp.lt.s32.totalorder %v1953_v27, 1096 }
 0x128   : > { %v2854_v38 = vpack.c.bf16 %v2076_v35, %v2075_v34  ;;  %v1295_v40 = vpop.f32.mrf.mxu0  ;;  %v3639_v58 = vpop.f32.mrf.mxu1  ;;  %1796 = vmatmul.mubr.bf16.gmra.mxu1 %v3250_v47  ;;  %vm2018_vm12 = vcmp.lt.s32.totalorder %v1954_v29, 1096 }
 0x129   : > { %v1296_v44 = vadd.f32 %v3553_v13, %v1295_v40  ;;  %v1818_v50 = vmax.f32 %v1582_v36, 0.0  ;;  %2708 = vmatprep.mubr.msk.bf16.mxu1 %vm1137_vm0, %v3254_v49  ;;  %v1891_v40 = vadd.s32 104, %v3557_v14 }
 0x12a   : > { %3002 = vst [vmem:[%s3587_s30 + $0x10] sm:$0xff] %v2854_v38   ;;  %v1297_v48 = vpop.f32.mrf.mxu0  ;;  %v1607_v62 = vpop.f32.mrf.mxu1 }
 0x12b   : > { %v1585_v43 = vadd.f32 %v3594_v56, %v1296_v44  ;;  %v2077_v59 = vsel %vm2013_vm7, %v1818_v50, 0.0  ;;  %v1893_v62 = vadd.s32 120, %v3557_v14 }
 0x12c   : > { %v1300_v52 = vpop.f32.mrf.mxu0  ;;  %1491 = vmatmul.mubr.bf16.gmra.mxu0 %v3239_v42  ;;  %v1608_v7 = vpop.f32.mrf.mxu1 }
 0x12d   : > { %v1819_v55 = vmax.f32 %v1585_v43, 0.0  ;;  %v1301_v57 = vadd.f32 %v3553_v13, %v1300_v52  ;;  %1498 = vmatprep.mubr.bf16.mxu0 %v3247_v45  ;;  %v1955_v43 = vadd.s32 %v3562_v20, %v1890_v39  ;;  %v1956_v52 = vadd.s32 %v3562_v20, %v1891_v40 }
 0x12e   : > { %v1302_v56 = vpop.f32.mrf.mxu0  ;;  %v1610_v12 = vpop.f32.mrf.mxu1 }
 0x12f   : > { %v2078_v60 = vsel %vm2014_vm8, %v1819_v55, 0.0  ;;  %v1590_v61 = vadd.f32 %v3603_v4, %v1301_v57  ;;  %vm2019_vm13 = vcmp.lt.s32.totalorder %v1955_v43, 1096  ;;  %vm2020_vm14 = vcmp.lt.s32.totalorder %v1956_v52, 1096 }
 0x130   : > { %v2859_v63 = vpack.c.bf16 %v2078_v60, %v2077_v59  ;;  %v1303_v1 = vpop.f32.mrf.mxu0  ;;  %v1613_v22 = vpop.f32.mrf.mxu1  ;;  %1804 = vmatmul.mubr.bf16.gmra.mxu1 %v3256_v8 }
 0x131   : > { %v1304_v5 = vadd.f32 %v3553_v13, %v1303_v1  ;;  %v1820_v10 = vmax.f32 %v1590_v61, 0.0 }
 0x132   : > { %3003 = vst [vmem:[%s3587_s30 + $0x18] sm:$0xff] %v2859_v63   ;;  %v1305_v9 = vpop.f32.mrf.mxu0  ;;  %v1615_v21 = vpop.f32.mrf.mxu1 }
 0x133   : > { %v1593_v11 = vadd.f32 %v3612_v19, %v1304_v5  ;;  %v2079_v19 = vsel %vm2015_vm9, %v1820_v10, 0.0 }
 0x134   : > { %v1308_v4 = vpop.f32.mrf.mxu0  ;;  %1499 = vmatmul.mubr.bf16.gmra.mxu0 %v3245_v3  ;;  %v1616_v34 = vpop.f32.mrf.mxu1 }
 0x135   : > { %v1821_v17 = vmax.f32 %v1593_v11, 0.0  ;;  %v1309_v18 = vadd.f32 %v3553_v13, %v1308_v4  ;;  %1506 = vmatprep.mubr.bf16.mxu0 %v3253_v6  ;;  %v1958_v11 = vadd.s32 %v3562_v20, %v1893_v62 }
 0x136   : > { %v1310_v23 = vpop.f32.mrf.mxu0  ;;  %v1618_v38 = vpop.f32.mrf.mxu1 }
 0x137   : > { %v2080_v24 = vsel %vm2016_vm10, %v1821_v17, 0.0  ;;  %v1598_v25 = vadd.f32 %v3621_v33, %v1309_v18  ;;  %vm2022_vm0 = vcmp.lt.s32.totalorder %v1958_v11, 1096 }
 0x138   : > { %v2864_v26 = vpack.c.bf16 %v2080_v24, %v2079_v19  ;;  %v1311_v28 = vpop.f32.mrf.mxu0  ;;  %v1621_v44 = vpop.f32.mrf.mxu1  ;;  %v1895_v19 = vadd.s32 136, %v3557_v14 }
 0x139   : > { %v1312_v32 = vadd.f32 %v3553_v13, %v1311_v28  ;;  %v1822_v36 = vmax.f32 %v1598_v25, 0.0 }
 0x13a   : > { %3004 = vst [vmem:[%s3587_s30 + $0x20] sm:$0xff] %v2864_v26   ;;  %v1313_v35 = vpop.f32.mrf.mxu0  ;;  %v1623_v49 = vpop.f32.mrf.mxu1 }
 0x13b   : > { %v1601_v37 = vadd.f32 %v3630_v46, %v1312_v32  ;;  %v2081_v47 = vsel %vm2017_vm11, %v1822_v36, 0.0  ;;  %v1960_v35 = vadd.s32 %v3562_v20, %v1895_v19 }
 0x13c   : > { %v1316_v33 = vpop.f32.mrf.mxu0  ;;  %1507 = vmatmul.mubr.bf16.gmra.mxu0 %v3251_v30  ;;  %v1624_v55 = vpop.f32.mrf.mxu1 }
 0x13d   : > { %v1823_v41 = vmax.f32 %v1601_v37, 0.0  ;;  %v1317_v42 = vadd.f32 %v3553_v13, %v1316_v33  ;;  %1514 = vmatprep.mubr.bf16.mxu0 %v3259_v31  ;;  %vm2024_vm2 = vcmp.lt.s32.totalorder %v1960_v35, 1096 }
 0x13e   : > { %v1318_v45 = vpop.f32.mrf.mxu0  ;;  %v1626_v60 = vpop.f32.mrf.mxu1 }
 0x13f   : > { %v2082_v48 = vsel %vm2018_vm12, %v1823_v41, 0.0  ;;  %v1606_v46 = vadd.f32 %v3639_v58, %v1317_v42  ;;  %v1892_v58 = vadd.s32 112, %v3557_v14  ;;  %v1896_v42 = vadd.s32 144, %v3557_v14 }
 0x140   : > { %v2869_v50 = vpack.c.bf16 %v2082_v48, %v2081_v47  ;;  %v1319_v51 = vpop.f32.mrf.mxu0  ;;  %v1629_v1 = vpop.f32.mrf.mxu1 }
 0x141   : > { %v1320_v54 = vadd.f32 %v3553_v13, %v1319_v51  ;;  %v1824_v56 = vmax.f32 %v1606_v46, 0.0  ;;  %v1957_v9 = vadd.s32 %v3562_v20, %v1892_v58 }
 0x142   : > { %3005 = vst [vmem:[%s3587_s30 + $0x28] sm:$0xff] %v2869_v50   ;;  %v1321_v57 = vpop.f32.mrf.mxu0  ;;  %v1631_v8 = vpop.f32.mrf.mxu1 }
 0x143   : > { %v1609_v59 = vadd.f32 %v1608_v7, %v1320_v54  ;;  %v2083_v3 = vsel %vm2019_vm13, %v1824_v56, 0.0  ;;  %vm2021_vm15 = vcmp.lt.s32.totalorder %v1957_v9, 1096 }
 0x144   : > { %v1324_v61 = vpop.f32.mrf.mxu0  ;;  %1515 = vmatmul.mubr.bf16.gmra.mxu0 %v3257_v53  ;;  %v1632_v4 = vpop.f32.mrf.mxu1  ;;  %v1961_v53 = vadd.s32 %v3562_v20, %v1896_v42 }
 0x145   : > { %v1825_v63 = vmax.f32 %v1609_v59, 0.0  ;;  %v1325_v0 = vadd.f32 %v3553_v13, %v1324_v61 }
 0x146   : > { %v1326_v2 = vpop.f32.mrf.mxu0  ;;  %v1634_v18 = vpop.f32.mrf.mxu1  ;;  %vm2025_vm3 = vcmp.lt.s32.totalorder %v1961_v53, 1096 }
 0x147   : > { %v2084_v5 = vsel %vm2020_vm14, %v1825_v63, 0.0  ;;  %v1614_v6 = vadd.f32 %v1613_v22, %v1325_v0  ;;  %v1894_v22 = vadd.s32 128, %v3557_v14  ;;  %v1898_v63 = vadd.s32 160, %v3557_v14 }
 0x148   : > { %v2874_v7 = vpack.c.bf16 %v2084_v5, %v2083_v3  ;;  %v1327_v10 = vpop.f32.mrf.mxu0  ;;  %v1637_v21 = vpop.f32.mrf.mxu1  ;;  %v1899_v0 = vadd.s32 168, %v3557_v14 }
 0x149   : > { %v1328_v12 = vadd.f32 %v3553_v13, %v1327_v10  ;;  %v1826_v16 = vmax.f32 %v1614_v6, 0.0  ;;  %v1959_v31 = vadd.s32 %v3562_v20, %v1894_v22  ;;  %v1963_v11 = vadd.s32 %v3562_v20, %v1898_v63 }
 0x14a   : > { %3006 = vst [vmem:[%s3587_s30 + $0x30] sm:$0xff] %v2874_v7   ;;  %v1329_v15 = vpop.f32.mrf.mxu0  ;;  %v1639_v30 = vpop.f32.mrf.mxu1 }
 0x14b   : > { %v1617_v17 = vadd.f32 %v1616_v34, %v1328_v12  ;;  %v2085_v27 = vsel %vm2021_vm15, %v1826_v16, 0.0  ;;  %vm2023_vm1 = vcmp.lt.s32.totalorder %v1959_v31, 1096  ;;  %vm2027_vm5 = vcmp.lt.s32.totalorder %v1963_v11, 1096 }
 0x14c   : > { %v1332_v23 = vpop.f32.mrf.mxu0  ;;  %v1640_v37 = vpop.f32.mrf.mxu1 }
 0x14d   : > { %v1827_v24 = vmax.f32 %v1617_v17, 0.0  ;;  %v1333_v25 = vadd.f32 %v3553_v13, %v1332_v23 }
 0x14e   : > { %v1334_v26 = vpop.f32.mrf.mxu0  ;;  %v1642_v40 = vpop.f32.mrf.mxu1 }
 0x14f   : > { %v2086_v28 = vsel %vm2022_vm0, %v1827_v24, 0.0  ;;  %v1622_v29 = vadd.f32 %v1621_v44, %v1333_v25  ;;  %v1897_v44 = vadd.s32 152, %v3557_v14  ;;  %v1900_v24 = vadd.s32 176, %v3557_v14 }
 0x150   : > { %v2879_v32 = vpack.c.bf16 %v2086_v28, %v2085_v27  ;;  %v1335_v34 = vpop.f32.mrf.mxu0  ;;  %v1645_v48 = vpop.f32.mrf.mxu1  ;;  %v1901_v25 = vadd.s32 184, %v3557_v14 }
 0x151   : > { %v1336_v36 = vadd.f32 %v3553_v13, %v1335_v34  ;;  %v1828_v33 = vmax.f32 %v1622_v29, 0.0  ;;  %v1965_v35 = vadd.s32 %v3562_v20, %v1900_v24 }
 0x152   : > { %3007 = vst [vmem:[%s3587_s30 + $0x38] sm:$0xff] %v2879_v32   ;;  %v1337_v38 = vpop.f32.mrf.mxu0  ;;  %v1647_v51 = vpop.f32.mrf.mxu1 }
 0x153   : > { %v1625_v39 = vadd.f32 %v1624_v55, %v1336_v36  ;;  %v2087_v49 = vsel %vm2023_vm1, %v1828_v33, 0.0  ;;  %v1962_v55 = vadd.s32 %v3562_v20, %v1897_v44  ;;  %vm2029_vm7 = vcmp.lt.s32.totalorder %v1965_v35, 1096 }
 0x154   : > { %v1340_v41 = vpop.f32.mrf.mxu0  ;;  %v1648_v56 = vpop.f32.mrf.mxu1 }
 0x155   : > { %v1829_v45 = vmax.f32 %v1625_v39, 0.0  ;;  %v1341_v47 = vadd.f32 %v3553_v13, %v1340_v41  ;;  %vm2026_vm4 = vcmp.lt.s32.totalorder %v1962_v55, 1096 }
 0x156   : > { %v1342_v46 = vpop.f32.mrf.mxu0  ;;  %v1650_v58 = vpop.f32.mrf.mxu1 }
 0x157   : > { %v2088_v50 = vsel %vm2024_vm2, %v1829_v45, 0.0  ;;  %v1630_v43 = vadd.f32 %v1629_v1, %v1341_v47  ;;  %v1902_v45 = vadd.s32 192, %v3557_v14  ;;  %v1903_v47 = vadd.s32 200, %v3557_v14 }
 0x158   : > { %v2884_v52 = vpack.c.bf16 %v2088_v50, %v2087_v49  ;;  %v1343_v54 = vpop.f32.mrf.mxu0  ;;  %v1653_v3 = vpop.f32.mrf.mxu1 }
 0x159   : > { %v1344_v57 = vadd.f32 %v3553_v13, %v1343_v54  ;;  %v1830_v60 = vmax.f32 %v1630_v43, 0.0  ;;  %v1967_v55 = vadd.s32 %v3562_v20, %v1902_v45 }
 0x15a   : > { %3008 = vst [vmem:[%s3587_s30 + $0x40] sm:$0xff] %v2884_v52   ;;  %v1345_v59 = vpop.f32.mrf.mxu0  ;;  %v1655_v9 = vpop.f32.mrf.mxu1 }
 0x15b   : > { %v1633_v61 = vadd.f32 %v1632_v4, %v1344_v57  ;;  %v2089_v6 = vsel %vm2025_vm3, %v1830_v60, 0.0  ;;  %v1964_v4 = vadd.s32 %v3562_v20, %v1899_v0  ;;  %vm2031_vm9 = vcmp.lt.s32.totalorder %v1967_v55, 1096 }
 0x15c   : > { %v1348_v62 = vpop.f32.mrf.mxu0  ;;  %v1656_v16 = vpop.f32.mrf.mxu1 }
 0x15d   : > { %v1831_v1 = vmax.f32 %v1633_v61, 0.0  ;;  %v1349_v2 = vadd.f32 %v3553_v13, %v1348_v62  ;;  %vm2028_vm6 = vcmp.lt.s32.totalorder %v1964_v4, 1096 }
 0x15e   : > { %v1350_v5 = vpop.f32.mrf.mxu0  ;;  %v1658_v22 = vpop.f32.mrf.mxu1 }
 0x15f   : > { %v2090_v8 = vsel %vm2026_vm4, %v1831_v1, 0.0  ;;  %v1638_v7 = vadd.f32 %v1637_v21, %v1349_v2  ;;  %v1904_v1 = vadd.s32 208, %v3557_v14  ;;  %v1905_v2 = vadd.s32 216, %v3557_v14 }
 0x160   : > { %v2889_v10 = vpack.c.bf16 %v2090_v8, %v2089_v6  ;;  %v1351_v12 = vpop.f32.mrf.mxu0  ;;  %v1661_v27 = vpop.f32.mrf.mxu1 }
 0x161   : > { %v1352_v15 = vadd.f32 %v3553_v13, %v1351_v12  ;;  %v1832_v18 = vmax.f32 %v1638_v7, 0.0  ;;  %v1969_v4 = vadd.s32 %v3562_v20, %v1904_v1 }
 0x162   : > { %3009 = vst [vmem:[%s3587_s30 + $0x48] sm:$0xff] %v2889_v10   ;;  %v1353_v17 = vpop.f32.mrf.mxu0  ;;  %v1663_v31 = vpop.f32.mrf.mxu1 }
 0x163   : > { %v1641_v23 = vadd.f32 %v1640_v37, %v1352_v15  ;;  %v2091_v29 = vsel %vm2027_vm5, %v1832_v18, 0.0  ;;  %v1966_v37 = vadd.s32 %v3562_v20, %v1901_v25  ;;  %vm2033_vm11 = vcmp.lt.s32.totalorder %v1969_v4, 1096 }
 0x164   : > { %v1356_v19 = vpop.f32.mrf.mxu0  ;;  %v1664_v33 = vpop.f32.mrf.mxu1 }
 0x165   : > { %v1833_v21 = vmax.f32 %v1641_v23, 0.0  ;;  %v1357_v26 = vadd.f32 %v3553_v13, %v1356_v19  ;;  %vm2030_vm8 = vcmp.lt.s32.totalorder %v1966_v37, 1096 }
 0x166   : > { %v1358_v28 = vpop.f32.mrf.mxu0  ;;  %v1666_v42 = vpop.f32.mrf.mxu1 }
 0x167   : > { %v2092_v30 = vsel %vm2028_vm6, %v1833_v21, 0.0  ;;  %v1646_v32 = vadd.f32 %v1645_v48, %v1357_v26  ;;  %v1906_v21 = vadd.s32 224, %v3557_v14  ;;  %v1907_v26 = vadd.s32 232, %v3557_v14 }
 0x168   : > { %v2894_v34 = vpack.c.bf16 %v2092_v30, %v2091_v29  ;;  %v1359_v36 = vpop.f32.mrf.mxu0  ;;  %v1669_v49 = vpop.f32.mrf.mxu1 }
 0x169   : > { %v1360_v38 = vadd.f32 %v3553_v13, %v1359_v36  ;;  %v1834_v40 = vmax.f32 %v1646_v32, 0.0  ;;  %v1971_v37 = vadd.s32 %v3562_v20, %v1906_v21 }
 0x16a   : > { %3010 = vst [vmem:[%s3587_s30 + $0x50] sm:$0xff] %v2894_v34   ;;  %v1361_v39 = vpop.f32.mrf.mxu0  ;;  %v1671_v53 = vpop.f32.mrf.mxu1 }
 0x16b   : > { %v1649_v41 = vadd.f32 %v1648_v56, %v1360_v38  ;;  %v2093_v43 = vsel %vm2029_vm7, %v1834_v40, 0.0  ;;  %v1968_v56 = vadd.s32 %v3562_v20, %v1903_v47  ;;  %vm2035_vm13 = vcmp.lt.s32.totalorder %v1971_v37, 1096 }
 0x16c   : > { %v1364_v44 = vpop.f32.mrf.mxu0  ;;  %v1672_v60 = vpop.f32.mrf.mxu1 }
 0x16d   : > { %v1835_v48 = vmax.f32 %v1649_v41, 0.0  ;;  %v1365_v46 = vadd.f32 %v3553_v13, %v1364_v44  ;;  %vm2032_vm10 = vcmp.lt.s32.totalorder %v1968_v56, 1096 }
 0x16e   : > { %v1366_v50 = vpop.f32.mrf.mxu0  ;;  %v1674_v63 = vpop.f32.mrf.mxu1 }
 0x16f   : > { %v2094_v51 = vsel %vm2030_vm8, %v1835_v48, 0.0  ;;  %v1654_v52 = vadd.f32 %v1653_v3, %v1365_v46  ;;  %v1908_v48 = vadd.s32 240, %v3557_v14  ;;  %v1909_v46 = vadd.s32 248, %v3557_v14 }
 0x170   : > { %v2899_v54 = vpack.c.bf16 %v2094_v51, %v2093_v43  ;;  %v1367_v57 = vpop.f32.mrf.mxu0  ;;  %v1677_v6 = vpop.f32.mrf.mxu1 }
 0x171   : > { %v1368_v59 = vadd.f32 %v3553_v13, %v1367_v57  ;;  %v1836_v58 = vmax.f32 %v1654_v52, 0.0  ;;  %v1973_v56 = vadd.s32 %v3562_v20, %v1908_v48 }
 0x172   : > { %3011 = vst [vmem:[%s3587_s30 + $0x58] sm:$0xff] %v2899_v54   ;;  %v1369_v61 = vpop.f32.mrf.mxu0  ;;  %v1679_v11 = vpop.f32.mrf.mxu1 }
 0x173   : > { %v1657_v62 = vadd.f32 %v1656_v16, %v1368_v59  ;;  %v2095_v7 = vsel %vm2031_vm9, %v1836_v58, 0.0  ;;  %v1970_v16 = vadd.s32 %v3562_v20, %v1905_v2  ;;  %vm2037_vm15 = vcmp.lt.s32.totalorder %v1973_v56, 1096 }
 0x174   : > { %v1372_v0 = vpop.f32.mrf.mxu0  ;;  %v1680_v18 = vpop.f32.mrf.mxu1 }
 0x175   : > { %v1837_v3 = vmax.f32 %v1657_v62, 0.0  ;;  %v1373_v5 = vadd.f32 %v3553_v13, %v1372_v0  ;;  %vm2034_vm12 = vcmp.lt.s32.totalorder %v1970_v16, 1096 }
 0x176   : > { %v1374_v8 = vpop.f32.mrf.mxu0  ;;  %v1682_v24 = vpop.f32.mrf.mxu1 }
 0x177   : > { %v2096_v9 = vsel %vm2032_vm10, %v1837_v3, 0.0  ;;  %v1662_v10 = vadd.f32 %v1661_v27, %v1373_v5  ;;  %v1910_v3 = vadd.s32 256, %v3557_v14  ;;  %v1911_v5 = vadd.s32 264, %v3557_v14 }
 0x178   : > { %v2904_v12 = vpack.c.bf16 %v2096_v9, %v2095_v7  ;;  %v1375_v15 = vpop.f32.mrf.mxu0  ;;  %v1685_v29 = vpop.f32.mrf.mxu1 }
 0x179   : > { %v1376_v17 = vadd.f32 %v3553_v13, %v1375_v15  ;;  %v1838_v22 = vmax.f32 %v1662_v10, 0.0  ;;  %v1975_v16 = vadd.s32 %v3562_v20, %v1910_v3 }
 0x17a   : > { %3012 = vst [vmem:[%s3587_s30 + $0x60] sm:$0xff] %v2904_v12   ;;  %v1377_v23 = vpop.f32.mrf.mxu0  ;;  %v1687_v35 = vpop.f32.mrf.mxu1 }
 0x17b   : > { %v1665_v19 = vadd.f32 %v1664_v33, %v1376_v17  ;;  %v2097_v32 = vsel %vm2033_vm11, %v1838_v22, 0.0  ;;  %v1972_v33 = vadd.s32 %v3562_v20, %v1907_v26  ;;  %vm2039_vm1 = vcmp.lt.s32.totalorder %v1975_v16, 1096 }
 0x17c   : > { %v1380_v25 = vpop.f32.mrf.mxu0  ;;  %v1688_v40 = vpop.f32.mrf.mxu1 }
 0x17d   : > { %v1839_v27 = vmax.f32 %v1665_v19, 0.0  ;;  %v1381_v28 = vadd.f32 %v3553_v13, %v1380_v25  ;;  %vm2036_vm14 = vcmp.lt.s32.totalorder %v1972_v33, 1096 }
 0x17e   : > { %v1382_v30 = vpop.f32.mrf.mxu0  ;;  %v1690_v45 = vpop.f32.mrf.mxu1 }
 0x17f   : > { %v2098_v31 = vsel %vm2034_vm12, %v1839_v27, 0.0  ;;  %v1670_v34 = vadd.f32 %v1669_v49, %v1381_v28  ;;  %v1912_v27 = vadd.s32 272, %v3557_v14  ;;  %v1913_v28 = vadd.s32 280, %v3557_v14 }
 0x180   : > { %v2909_v36 = vpack.c.bf16 %v2098_v31, %v2097_v32  ;;  %v1383_v38 = vpop.f32.mrf.mxu0  ;;  %v1693_v43 = vpop.f32.mrf.mxu1 }
 0x181   : > { %v1384_v39 = vadd.f32 %v3553_v13, %v1383_v38  ;;  %v1840_v42 = vmax.f32 %v1670_v34, 0.0  ;;  %v1977_v33 = vadd.s32 %v3562_v20, %v1912_v27 }
 0x182   : > { %3013 = vst [vmem:[%s3587_s30 + $0x68] sm:$0xff] %v2909_v36   ;;  %v1385_v41 = vpop.f32.mrf.mxu0  ;;  %v1695_v55 = vpop.f32.mrf.mxu1 }
 0x183   : > { %v1673_v44 = vadd.f32 %v1672_v60, %v1384_v39  ;;  %v2099_v52 = vsel %vm2035_vm13, %v1840_v42, 0.0  ;;  %v1974_v60 = vadd.s32 %v3562_v20, %v1909_v46  ;;  %vm2041_vm3 = vcmp.lt.s32.totalorder %v1977_v33, 1096 }
 0x184   : > { %v1388_v47 = vpop.f32.mrf.mxu0  ;;  %v1696_v58 = vpop.f32.mrf.mxu1 }
 0x185   : > { %v1841_v49 = vmax.f32 %v1673_v44, 0.0  ;;  %v1389_v50 = vadd.f32 %v3553_v13, %v1388_v47  ;;  %vm2038_vm0 = vcmp.lt.s32.totalorder %v1974_v60, 1096 }
 0x186   : > { %v1390_v51 = vpop.f32.mrf.mxu0  ;;  %v1698_v1 = vpop.f32.mrf.mxu1 }
 0x187   : > { %v2100_v53 = vsel %vm2036_vm14, %v1841_v49, 0.0  ;;  %v1678_v54 = vadd.f32 %v1677_v6, %v1389_v50  ;;  %v1914_v49 = vadd.s32 288, %v3557_v14  ;;  %v1915_v50 = vadd.s32 296, %v3557_v14 }
 0x188   : > { %v2914_v57 = vpack.c.bf16 %v2100_v53, %v2099_v52  ;;  %v1391_v59 = vpop.f32.mrf.mxu0  ;;  %v1701_v7 = vpop.f32.mrf.mxu1 }
 0x189   : > { %v1392_v61 = vadd.f32 %v3553_v13, %v1391_v59  ;;  %v1842_v63 = vmax.f32 %v1678_v54, 0.0  ;;  %v1979_v60 = vadd.s32 %v3562_v20, %v1914_v49 }
 0x18a   : > { %3014 = vst [vmem:[%s3587_s30 + $0x70] sm:$0xff] %v2914_v57   ;;  %v1393_v62 = vpop.f32.mrf.mxu0  ;;  %v1703_v4 = vpop.f32.mrf.mxu1 }
 0x18b   : > { %v1681_v0 = vadd.f32 %v1680_v18, %v1392_v61  ;;  %v2101_v10 = vsel %vm2037_vm15, %v1842_v63, 0.0  ;;  %v1976_v18 = vadd.s32 %v3562_v20, %v1911_v5  ;;  %vm2043_vm5 = vcmp.lt.s32.totalorder %v1979_v60, 1096 }
 0x18c   : > { %v1396_v2 = vpop.f32.mrf.mxu0  ;;  %v1704_v22 = vpop.f32.mrf.mxu1 }
 0x18d   : > { %v1843_v6 = vmax.f32 %v1681_v0, 0.0  ;;  %v1397_v8 = vadd.f32 %v3553_v13, %v1396_v2  ;;  %vm2040_vm2 = vcmp.lt.s32.totalorder %v1976_v18, 1096 }
 0x18e   : > { %v1398_v9 = vpop.f32.mrf.mxu0  ;;  %v1706_v21 = vpop.f32.mrf.mxu1 }
 0x18f   : > { %v2102_v11 = vsel %vm2038_vm0, %v1843_v6, 0.0  ;;  %v1686_v12 = vadd.f32 %v1685_v29, %v1397_v8  ;;  %v1916_v6 = vadd.s32 304, %v3557_v14  ;;  %v1917_v8 = vadd.s32 312, %v3557_v14 }
 0x190   : > { %v2919_v15 = vpack.c.bf16 %v2102_v11, %v2101_v10  ;;  %v1399_v17 = vpop.f32.mrf.mxu0  ;;  %v1709_v32 = vpop.f32.mrf.mxu1 }
 0x191   : > { %v1400_v23 = vadd.f32 %v3553_v13, %v1399_v17  ;;  %v1844_v24 = vmax.f32 %v1686_v12, 0.0  ;;  %v1981_v18 = vadd.s32 %v3562_v20, %v1916_v6 }
 0x192   : > { %3015 = vst [vmem:[%s3587_s30 + $0x78] sm:$0xff] %v2919_v15   ;;  %v1401_v19 = vpop.f32.mrf.mxu0  ;;  %v1711_v37 = vpop.f32.mrf.mxu1 }
 0x193   : > { %v1689_v25 = vadd.f32 %v1688_v40, %v1400_v23  ;;  %v2103_v34 = vsel %vm2039_vm1, %v1844_v24, 0.0  ;;  %v1978_v40 = vadd.s32 %v3562_v20, %v1913_v28  ;;  %v3763_v19 = vld [vmem:[%s3857_s2] ss:$0 sm:$0xff]  ;;  %vm2045_vm7 = vcmp.lt.s32.totalorder %v1981_v18, 1096 }
 0x194   : > { %v1404_v26 = vpop.f32.mrf.mxu0  ;;  %v1712_v42 = vpop.f32.mrf.mxu1 }
 0x195   : > { %v1845_v29 = vmax.f32 %v1689_v25, 0.0  ;;  %v1405_v30 = vadd.f32 %v3553_v13, %v1404_v26  ;;  %vm2042_vm4 = vcmp.lt.s32.totalorder %v1978_v40, 1096 }
 0x196   : > { %v1406_v31 = vpop.f32.mrf.mxu0  ;;  %v1714_v48 = vpop.f32.mrf.mxu1 }
 0x197   : > { %v2104_v35 = vsel %vm2040_vm2, %v1845_v29, 0.0  ;;  %v1694_v36 = vadd.f32 %v1693_v43, %v1405_v30  ;;  %v1918_v29 = vadd.s32 320, %v3557_v14  ;;  %v1919_v30 = vadd.s32 328, %v3557_v14 }
 0x198   : > { %v2924_v38 = vpack.c.bf16 %v2104_v35, %v2103_v34  ;;  %v1407_v39 = vpop.f32.mrf.mxu0  ;;  %v1717_v52 = vpop.f32.mrf.mxu1 }
 0x199   : > { %v1408_v41 = vadd.f32 %v3553_v13, %v1407_v39  ;;  %v1846_v45 = vmax.f32 %v1694_v36, 0.0  ;;  %v1983_v40 = vadd.s32 %v3562_v20, %v1918_v29 }
 0x19a   : > { %3016 = vst [vmem:[%s3587_s30 + $0x80] sm:$0xff] %v2924_v38   ;;  %v1409_v44 = vpop.f32.mrf.mxu0  ;;  %v1719_v56 = vpop.f32.mrf.mxu1 }
 0x19b   : > { %v1697_v47 = vadd.f32 %v1696_v58, %v1408_v41  ;;  %v2105_v54 = vsel %vm2041_vm3, %v1846_v45, 0.0  ;;  %v1980_v58 = vadd.s32 %v3562_v20, %v1915_v50  ;;  %vm2047_vm9 = vcmp.lt.s32.totalorder %v1983_v40, 1096 }
 0x19c   : > { %v1412_v46 = vpop.f32.mrf.mxu0  ;;  %v1720_v63 = vpop.f32.mrf.mxu1 }
 0x19d   : > { %v1847_v43 = vmax.f32 %v1697_v47, 0.0  ;;  %v1413_v51 = vadd.f32 %v3553_v13, %v1412_v46  ;;  %vm2044_vm6 = vcmp.lt.s32.totalorder %v1980_v58, 1096 }
 0x19e   : > { %v1414_v53 = vpop.f32.mrf.mxu0  ;;  %v1722_v3 = vpop.f32.mrf.mxu1 }
 0x19f   : > { %v2106_v55 = vsel %vm2042_vm4, %v1847_v43, 0.0  ;;  %v1702_v57 = vadd.f32 %v1701_v7, %v1413_v51  ;;  %v1920_v43 = vadd.s32 336, %v3557_v14  ;;  %v1921_v51 = vadd.s32 344, %v3557_v14 }
 0x1a0   : > { %v2929_v59 = vpack.c.bf16 %v2106_v55, %v2105_v54  ;;  %v1415_v61 = vpop.f32.mrf.mxu0  ;;  %v1725_v10 = vpop.f32.mrf.mxu1 }
 0x1a1   : > { %v1416_v62 = vadd.f32 %v3553_v13, %v1415_v61  ;;  %v1848_v1 = vmax.f32 %v1702_v57, 0.0  ;;  %v1985_v58 = vadd.s32 %v3562_v20, %v1920_v43 }
 0x1a2   : > { %3017 = vst [vmem:[%s3587_s30 + $0x88] sm:$0xff] %v2929_v59   ;;  %v1417_v0 = vpop.f32.mrf.mxu0  ;;  %v1727_v16 = vpop.f32.mrf.mxu1 }
 0x1a3   : > { %v1705_v2 = vadd.f32 %v1704_v22, %v1416_v62  ;;  %v2107_v12 = vsel %vm2043_vm5, %v1848_v1, 0.0  ;;  %v1982_v22 = vadd.s32 %v3562_v20, %v1917_v8  ;;  %vm2049_vm11 = vcmp.lt.s32.totalorder %v1985_v58, 1096 }
 0x1a4   : > { %v1420_v5 = vpop.f32.mrf.mxu0 }
 0x1a5   : > { %v1849_v7 = vmax.f32 %v1705_v2, 0.0  ;;  %v1421_v9 = vadd.f32 %v3553_v13, %v1420_v5  ;;  %v1728_v13 = vpop.f32.mrf.mxu1  ;;  %vm2046_vm8 = vcmp.lt.s32.totalorder %v1982_v22, 1096 }
 0x1a6   : > { %v1422_v11 = vpop.f32.mrf.mxu0 }
 0x1a7   : > { %v2108_v4 = vsel %vm2044_vm6, %v1849_v7, 0.0  ;;  %v1710_v15 = vadd.f32 %v1709_v32, %v1421_v9  ;;  %v1730_v27 = vpop.f32.mrf.mxu1  ;;  %v1922_v7 = vadd.s32 352, %v3557_v14  ;;  %v1923_v9 = vadd.s32 360, %v3557_v14 }
 0x1a8   : > { %v2934_v17 = vpack.c.bf16 %v2108_v4, %v2107_v12  ;;  %v1423_v23 = vpop.f32.mrf.mxu0 }
 0x1a9   : > { %v1424_v24 = vadd.f32 %v3763_v19, %v1423_v23  ;;  %v1850_v21 = vmax.f32 %v1710_v15, 0.0  ;;  %v1733_v34 = vpop.f32.mrf.mxu1  ;;  %v1987_v22 = vadd.s32 %v3562_v20, %v1922_v7 }
 0x1aa   : > { %3018 = vst [vmem:[%s3587_s30 + $0x90] sm:$0xff] %v2934_v17   ;;  %v1425_v25 = vpop.f32.mrf.mxu0 }
 0x1ab   : > { %v1713_v26 = vadd.f32 %v1712_v42, %v1424_v24  ;;  %v2109_v36 = vsel %vm2045_vm7, %v1850_v21, 0.0  ;;  %v1735_v33 = vpop.f32.mrf.mxu1  ;;  %v1984_v42 = vadd.s32 %v3562_v20, %v1919_v30  ;;  %vm2051_vm13 = vcmp.lt.s32.totalorder %v1987_v22, 1096 }
 0x1ac   : > { %v1428_v28 = vpop.f32.mrf.mxu0 }
 0x1ad   : > { %v1851_v32 = vmax.f32 %v1713_v26, 0.0  ;;  %v1429_v31 = vadd.f32 %v3763_v19, %v1428_v28  ;;  %v1736_v45 = vpop.f32.mrf.mxu1  ;;  %vm2048_vm10 = vcmp.lt.s32.totalorder %v1984_v42, 1096 }
 0x1ae   : > { %v1430_v35 = vpop.f32.mrf.mxu0 }
 0x1af   : > { %v2110_v37 = vsel %vm2046_vm8, %v1851_v32, 0.0  ;;  %v1718_v38 = vadd.f32 %v1717_v52, %v1429_v31  ;;  %v1738_v49 = vpop.f32.mrf.mxu1  ;;  %v1924_v32 = vadd.s32 368, %v3557_v14  ;;  %v1925_v31 = vadd.s32 376, %v3557_v14 }
 0x1b0   : > { %v2939_v39 = vpack.c.bf16 %v2110_v37, %v2109_v36  ;;  %v1431_v41 = vpop.f32.mrf.mxu0 }
 0x1b1   : > { %v1432_v44 = vadd.f32 %v3763_v19, %v1431_v41  ;;  %v1852_v48 = vmax.f32 %v1718_v38, 0.0  ;;  %v1741_v54 = vpop.f32.mrf.mxu1  ;;  %v1989_v42 = vadd.s32 %v3562_v20, %v1924_v32 }
 0x1b2   : > { %3019 = vst [vmem:[%s3587_s30 + $0x98] sm:$0xff] %v2939_v39   ;;  %v1433_v47 = vpop.f32.mrf.mxu0 }
 0x1b3   : > { %v1721_v46 = vadd.f32 %v1720_v63, %v1432_v44  ;;  %v2111_v57 = vsel %vm2047_vm9, %v1852_v48, 0.0  ;;  %v1743_v60 = vpop.f32.mrf.mxu1  ;;  %v1986_v63 = vadd.s32 %v3562_v20, %v1921_v51  ;;  %vm2053_vm15 = vcmp.lt.s32.totalorder %v1989_v42, 1096 }
 0x1b4   : > { %v1436_v50 = vpop.f32.mrf.mxu0 }
 0x1b5   : > { %v1853_v52 = vmax.f32 %v1721_v46, 0.0  ;;  %v1437_v53 = vadd.f32 %v3763_v19, %v1436_v50  ;;  %v1744_v1 = vpop.f32.mrf.mxu1  ;;  %vm2050_vm12 = vcmp.lt.s32.totalorder %v1986_v63, 1096 }
 0x1b6   : > { %v1438_v55 = vpop.f32.mrf.mxu0 }
 0x1b7   : > { %v2112_v56 = vsel %vm2048_vm10, %v1853_v52, 0.0  ;;  %v1726_v59 = vadd.f32 %v1725_v10, %v1437_v53  ;;  %v1746_v6 = vpop.f32.mrf.mxu1  ;;  %v1926_v52 = vadd.s32 384, %v3557_v14  ;;  %v1927_v53 = vadd.s32 392, %v3557_v14 }
 0x1b8   : > { %v2944_v61 = vpack.c.bf16 %v2112_v56, %v2111_v57  ;;  %v1439_v62 = vpop.f32.mrf.mxu0 }
 0x1b9   : > { %v1440_v0 = vadd.f32 %v3763_v19, %v1439_v62  ;;  %v1854_v3 = vmax.f32 %v1726_v59, 0.0  ;;  %v1749_v12 = vpop.f32.mrf.mxu1  ;;  %v1991_v63 = vadd.s32 %v3562_v20, %v1926_v52 }
 0x1ba   : > { %3020 = vst [vmem:[%s3587_s30 + $0xa0] sm:$0xff] %v2944_v61   ;;  %v1441_v2 = vpop.f32.mrf.mxu0 }
 0x1bb   : > { %v1729_v5 = vadd.f32 %v1728_v13, %v1440_v0  ;;  %v2113_v15 = vsel %vm2049_vm11, %v1854_v3, 0.0  ;;  %v1751_v18 = vpop.f32.mrf.mxu1  ;;  %v1988_v13 = vadd.s32 %v3562_v20, %v1923_v9  ;;  %vm2055_vm1 = vcmp.lt.s32.totalorder %v1991_v63, 1096 }
 0x1bc   : > { %v1444_v8 = vpop.f32.mrf.mxu0 }
 0x1bd   : > { %v1855_v10 = vmax.f32 %v1729_v5, 0.0  ;;  %v1445_v11 = vadd.f32 %v3763_v19, %v1444_v8  ;;  %v1752_v21 = vpop.f32.mrf.mxu1  ;;  %vm2052_vm14 = vcmp.lt.s32.totalorder %v1988_v13, 1096 }
 0x1be   : > { %v1446_v4 = vpop.f32.mrf.mxu0 }
 0x1bf   : > { %v2114_v16 = vsel %vm2050_vm12, %v1855_v10, 0.0  ;;  %v1734_v17 = vadd.f32 %v1733_v34, %v1445_v11  ;;  %v1754_v29 = vpop.f32.mrf.mxu1  ;;  %v1928_v10 = vadd.s32 400, %v3557_v14  ;;  %v1929_v11 = vadd.s32 408, %v3557_v14 }
 0x1c0   : > { %v2949_v23 = vpack.c.bf16 %v2114_v16, %v2113_v15  ;;  %v1447_v24 = vpop.f32.mrf.mxu0 }
 0x1c1   : > { %v1448_v25 = vadd.f32 %v3763_v19, %v1447_v24  ;;  %v1856_v27 = vmax.f32 %v1734_v17, 0.0  ;;  %v1757_v36 = vpop.f32.mrf.mxu1  ;;  %v1993_v13 = vadd.s32 %v3562_v20, %v1928_v10 }
 0x1c2   : > { %3021 = vst [vmem:[%s3587_s30 + $0xa8] sm:$0xff] %v2949_v23   ;;  %v1449_v26 = vpop.f32.mrf.mxu0 }
 0x1c3   : > { %v1737_v28 = vadd.f32 %v1736_v45, %v1448_v25  ;;  %v2115_v38 = vsel %vm2051_vm13, %v1856_v27, 0.0  ;;  %v1759_v40 = vpop.f32.mrf.mxu1  ;;  %v1990_v45 = vadd.s32 %v3562_v20, %v1925_v31  ;;  %vm2057_vm3 = vcmp.lt.s32.totalorder %v1993_v13, 1096 }
 0x1c4   : > { %v1452_v30 = vpop.f32.mrf.mxu0 }
 0x1c5   : > { %v1857_v34 = vmax.f32 %v1737_v28, 0.0  ;;  %v1453_v35 = vadd.f32 %v3763_v19, %v1452_v30  ;;  %v1760_v48 = vpop.f32.mrf.mxu1  ;;  %vm2054_vm0 = vcmp.lt.s32.totalorder %v1990_v45, 1096 }
 0x1c6   : > { %v1454_v37 = vpop.f32.mrf.mxu0 }
 0x1c7   : > { %v2116_v33 = vsel %vm2052_vm14, %v1857_v34, 0.0  ;;  %v1742_v39 = vadd.f32 %v1741_v54, %v1453_v35  ;;  %v1762_v43 = vpop.f32.mrf.mxu1  ;;  %v1930_v34 = vadd.s32 416, %v3557_v14  ;;  %v1931_v35 = vadd.s32 424, %v3557_v14 }
 0x1c8   : > { %v2954_v41 = vpack.c.bf16 %v2116_v33, %v2115_v38  ;;  %v1455_v44 = vpop.f32.mrf.mxu0 }
 0x1c9   : > { %v1456_v47 = vadd.f32 %v3763_v19, %v1455_v44  ;;  %v1858_v49 = vmax.f32 %v1742_v39, 0.0  ;;  %v1765_v57 = vpop.f32.mrf.mxu1  ;;  %v1995_v45 = vadd.s32 %v3562_v20, %v1930_v34 }
 0x1ca   : > { %3022 = vst [vmem:[%s3587_s30 + $0xb0] sm:$0xff] %v2954_v41   ;;  %v1457_v46 = vpop.f32.mrf.mxu0 }
 0x1cb   : > { %v1745_v50 = vadd.f32 %v1744_v1, %v1456_v47  ;;  %v2117_v59 = vsel %vm2053_vm15, %v1858_v49, 0.0  ;;  %v1767_v58 = vpop.f32.mrf.mxu1  ;;  %v1992_v1 = vadd.s32 %v3562_v20, %v1927_v53  ;;  %vm2059_vm5 = vcmp.lt.s32.totalorder %v1995_v45, 1096 }
 0x1cc   : > { %v1460_v51 = vpop.f32.mrf.mxu0 }
 0x1cd   : > { %v1859_v54 = vmax.f32 %v1745_v50, 0.0  ;;  %v1461_v55 = vadd.f32 %v3763_v19, %v1460_v51  ;;  %v1768_v3 = vpop.f32.mrf.mxu1  ;;  %vm2056_vm2 = vcmp.lt.s32.totalorder %v1992_v1, 1096 }
 0x1ce   : > { %v1462_v56 = vpop.f32.mrf.mxu0 }
 0x1cf   : > { %v2118_v60 = vsel %vm2054_vm0, %v1859_v54, 0.0  ;;  %v1750_v61 = vadd.f32 %v1749_v12, %v1461_v55  ;;  %v1770_v7 = vpop.f32.mrf.mxu1  ;;  %v1932_v54 = vadd.s32 432, %v3557_v14  ;;  %v1933_v55 = vadd.s32 440, %v3557_v14 }
 0x1d0   : > { %v2959_v62 = vpack.c.bf16 %v2118_v60, %v2117_v59  ;;  %v1463_v0 = vpop.f32.mrf.mxu0 }
 0x1d1   : > { %v1464_v2 = vadd.f32 %v3763_v19, %v1463_v0  ;;  %v1860_v6 = vmax.f32 %v1750_v61, 0.0  ;;  %v1773_v15 = vpop.f32.mrf.mxu1  ;;  %v1997_v1 = vadd.s32 %v3562_v20, %v1932_v54 }
 0x1d2   : > { %3023 = vst [vmem:[%s3587_s30 + $0xb8] sm:$0xff] %v2959_v62   ;;  %v1465_v5 = vpop.f32.mrf.mxu0 }
 0x1d3   : > { %v1753_v8 = vadd.f32 %v1752_v21, %v1464_v2  ;;  %v2119_v17 = vsel %vm2055_vm1, %v1860_v6, 0.0  ;;  %v1775_v22 = vpop.f32.mrf.mxu1  ;;  %v1994_v21 = vadd.s32 %v3562_v20, %v1929_v11  ;;  %vm2061_vm7 = vcmp.lt.s32.totalorder %v1997_v1, 1096 }
 0x1d4   : > { %v1468_v9 = vpop.f32.mrf.mxu0 }
 0x1d5   : > { %v1861_v12 = vmax.f32 %v1753_v8, 0.0  ;;  %v1469_v4 = vadd.f32 %v3763_v19, %v1468_v9  ;;  %v1776_v27 = vpop.f32.mrf.mxu1  ;;  %vm2058_vm4 = vcmp.lt.s32.totalorder %v1994_v21, 1096 }
 0x1d6   : > { %v1470_v16 = vpop.f32.mrf.mxu0 }
 0x1d7   : > { %v2120_v18 = vsel %vm2056_vm2, %v1861_v12, 0.0  ;;  %v1758_v23 = vadd.f32 %v1757_v36, %v1469_v4  ;;  %v1778_v32 = vpop.f32.mrf.mxu1  ;;  %v1934_v12 = vadd.s32 448, %v3557_v14  ;;  %v1935_v4 = vadd.s32 456, %v3557_v14 }
 0x1d8   : > { %v2964_v24 = vpack.c.bf16 %v2120_v18, %v2119_v17  ;;  %v1471_v25 = vpop.f32.mrf.mxu0 }
 0x1d9   : > { %v1472_v26 = vadd.f32 %v3763_v19, %v1471_v25  ;;  %v1862_v29 = vmax.f32 %v1758_v23, 0.0  ;;  %v1781_v38 = vpop.f32.mrf.mxu1  ;;  %v1999_v21 = vadd.s32 %v3562_v20, %v1934_v12 }
 0x1da   : > { %3024 = vst [vmem:[%s3587_s30 + $0xc0] sm:$0xff] %v2964_v24   ;;  %v1473_v28 = vpop.f32.mrf.mxu0 }
 0x1db   : > { %v1761_v30 = vadd.f32 %v1760_v48, %v1472_v26  ;;  %v2121_v39 = vsel %vm2057_vm3, %v1862_v29, 0.0  ;;  %v1783_v42 = vpop.f32.mrf.mxu1  ;;  %v1996_v48 = vadd.s32 %v3562_v20, %v1931_v35  ;;  %vm2063_vm9 = vcmp.lt.s32.totalorder %v1999_v21, 1096 }
 0x1dc   : > { %v1476_v31 = vpop.f32.mrf.mxu0 }
 0x1dd   : > { %v1863_v36 = vmax.f32 %v1761_v30, 0.0  ;;  %v1477_v37 = vadd.f32 %v3763_v19, %v1476_v31  ;;  %v1784_v49 = vpop.f32.mrf.mxu1  ;;  %vm2060_vm6 = vcmp.lt.s32.totalorder %v1996_v48, 1096 }
 0x1de   : > { %v1478_v33 = vpop.f32.mrf.mxu0 }
 0x1df   : > { %v2122_v40 = vsel %vm2058_vm4, %v1863_v36, 0.0  ;;  %v1766_v41 = vadd.f32 %v1765_v57, %v1477_v37  ;;  %v1786_v52 = vpop.f32.mrf.mxu1  ;;  %v1936_v36 = vadd.s32 464, %v3557_v14  ;;  %v1937_v37 = vadd.s32 472, %v3557_v14 }
 0x1e0   : > { %v2969_v44 = vpack.c.bf16 %v2122_v40, %v2121_v39  ;;  %v1479_v47 = vpop.f32.mrf.mxu0 }
 0x1e1   : > { %v1480_v46 = vadd.f32 %v3763_v19, %v1479_v47  ;;  %v1864_v43 = vmax.f32 %v1766_v41, 0.0  ;;  %v1789_v59 = vpop.f32.mrf.mxu1  ;;  %v2001_v48 = vadd.s32 %v3562_v20, %v1936_v36 }
 0x1e2   : > { %3025 = vst [vmem:[%s3587_s30 + $0xc8] sm:$0xff] %v2969_v44   ;;  %v1481_v50 = vpop.f32.mrf.mxu0 }
 0x1e3   : > { %v1769_v51 = vadd.f32 %v1768_v3, %v1480_v46  ;;  %v2123_v61 = vsel %vm2059_vm5, %v1864_v43, 0.0  ;;  %v1791_v63 = vpop.f32.mrf.mxu1  ;;  %v1998_v3 = vadd.s32 %v3562_v20, %v1933_v55  ;;  %vm2065_vm11 = vcmp.lt.s32.totalorder %v2001_v48, 1096 }
 0x1e4   : > { %v1484_v53 = vpop.f32.mrf.mxu0 }
 0x1e5   : > { %v1865_v57 = vmax.f32 %v1769_v51, 0.0  ;;  %v1485_v56 = vadd.f32 %v3763_v19, %v1484_v53  ;;  %v1792_v6 = vpop.f32.mrf.mxu1  ;;  %vm2062_vm8 = vcmp.lt.s32.totalorder %v1998_v3, 1096 }
 0x1e6   : > { %v1486_v60 = vpop.f32.mrf.mxu0 }
 0x1e7   : > { %v2124_v58 = vsel %vm2060_vm6, %v1865_v57, 0.0  ;;  %v1774_v62 = vadd.f32 %v1773_v15, %v1485_v56  ;;  %v1794_v10 = vpop.f32.mrf.mxu1  ;;  %v1938_v57 = vadd.s32 480, %v3557_v14  ;;  %v1939_v56 = vadd.s32 488, %v3557_v14 }
 0x1e8   : > { %v2974_v0 = vpack.c.bf16 %v2124_v58, %v2123_v61  ;;  %v1487_v2 = vpop.f32.mrf.mxu0  ;;  %v1940_v10 = vadd.s32 496, %v3557_v14 }
 0x1e9   : > { %v1488_v5 = vadd.f32 %v3763_v19, %v1487_v2  ;;  %v1866_v7 = vmax.f32 %v1774_v62, 0.0  ;;  %v1797_v17 = vpop.f32.mrf.mxu1  ;;  %v2003_v1 = vadd.s32 %v3562_v20, %v1938_v57  ;;  %v2004_v3 = vadd.s32 %v3562_v20, %v1939_v56 }
 0x1ea   : > { %3026 = vst [vmem:[%s3587_s30 + $0xd0] sm:$0xff] %v2974_v0   ;;  %v1489_v8 = vpop.f32.mrf.mxu0 }
 0x1eb   : > { %v1777_v9 = vadd.f32 %v1776_v27, %v1488_v5  ;;  %v2125_v23 = vsel %vm2061_vm7, %v1866_v7, 0.0  ;;  %v1799_v13 = vpop.f32.mrf.mxu1  ;;  %v2000_v27 = vadd.s32 %v3562_v20, %v1935_v4  ;;  %vm2067_vm13 = vcmp.lt.s32.totalorder %v2003_v1, 1096 }
 0x1ec   : > { %v1492_v11 = vpop.f32.mrf.mxu0  ;;  %vm2068_vm14 = vcmp.lt.s32.totalorder %v2004_v3, 1096 }
 0x1ed   : > { %v1867_v15 = vmax.f32 %v1777_v9, 0.0  ;;  %v1493_v16 = vadd.f32 %v3763_v19, %v1492_v11  ;;  %v1800_v29 = vpop.f32.mrf.mxu1  ;;  %vm2064_vm10 = vcmp.lt.s32.totalorder %v2000_v27, 1096  ;;  %v1941_v11 = vadd.s32 504, %v3557_v14 }
 0x1ee   : > { %v1494_v18 = vpop.f32.mrf.mxu0 }
 0x1ef   : > { %v2126_v22 = vsel %vm2062_vm8, %v1867_v15, 0.0  ;;  %v1782_v24 = vadd.f32 %v1781_v38, %v1493_v16  ;;  %v1802_v34 = vpop.f32.mrf.mxu1  ;;  %v2006_v13 = vadd.s32 %v3562_v20, %v1941_v11 }
 0x1f0   : > { %v2979_v25 = vpack.c.bf16 %v2126_v22, %v2125_v23  ;;  %v1495_v26 = vpop.f32.mrf.mxu0  ;;  %v2005_v22 = vadd.s32 %v3562_v20, %v1940_v10 }
 0x1f1   : > { %v1496_v28 = vadd.f32 %v3763_v19, %v1495_v26  ;;  %v1868_v32 = vmax.f32 %v1782_v24, 0.0  ;;  %v1805_v39 = vpop.f32.mrf.mxu1  ;;  %vm2070_vm0 = vcmp.lt.s32.totalorder %v2006_v13, 1096 }
 0x1f2   : > { %3027 = vst [vmem:[%s3587_s30 + $0xd8] sm:$0xff] %v2979_v25   ;;  %v1497_v30 = vpop.f32.mrf.mxu0  ;;  %vm2069_vm15 = vcmp.lt.s32.totalorder %v2005_v22, 1096 }
 0x1f3   : > { %v1785_v31 = vadd.f32 %v1784_v49, %v1496_v28  ;;  %v2127_v41 = vsel %vm2063_vm9, %v1868_v32, 0.0  ;;  %v1807_v45 = vpop.f32.mrf.mxu1  ;;  %v2002_v49 = vadd.s32 %v3562_v20, %v1937_v37 }
 0x1f4   : > { %v1500_v35 = vpop.f32.mrf.mxu0 }
 0x1f5   : > { %v1869_v38 = vmax.f32 %v1785_v31, 0.0  ;;  %v1501_v33 = vadd.f32 %v3763_v19, %v1500_v35  ;;  %v1808_v43 = vpop.f32.mrf.mxu1  ;;  %vm2066_vm12 = vcmp.lt.s32.totalorder %v2002_v49, 1096 }
 0x1f6   : > { %v1502_v40 = vpop.f32.mrf.mxu0 }
 0x1f7   : > { %v2128_v42 = vsel %vm2064_vm10, %v1869_v38, 0.0  ;;  %v1790_v44 = vadd.f32 %v1789_v59, %v1501_v33  ;;  %v1810_v54 = vpop.f32.mrf.mxu1 }
 0x1f8   : > { %v2984_v47 = vpack.c.bf16 %v2128_v42, %v2127_v41  ;;  %v1503_v46 = vpop.f32.mrf.mxu0 }
 0x1f9   : > { %v1504_v50 = vadd.f32 %v3763_v19, %v1503_v46  ;;  %v1870_v52 = vmax.f32 %v1790_v44, 0.0 }
 0x1fa   : > { %3028 = vst [vmem:[%s3587_s30 + $0xe0] sm:$0xff] %v2984_v47   ;;  %v1505_v51 = vpop.f32.mrf.mxu0 }
 0x1fb   : > { %v1793_v53 = vadd.f32 %v1792_v6, %v1504_v50  ;;  %v2129_v58 = vsel %vm2065_vm11, %v1870_v52, 0.0 }
 0x1fc   : > { %v1508_v55 = vpop.f32.mrf.mxu0 }
 0x1fd   : > { %v1871_v59 = vmax.f32 %v1793_v53, 0.0  ;;  %v1509_v60 = vadd.f32 %v3763_v19, %v1508_v55 }
 0x1fe   : > { %v1510_v61 = vpop.f32.mrf.mxu0 }
 0x1ff   : > { %v2130_v62 = vsel %vm2066_vm12, %v1871_v59, 0.0  ;;  %v1798_v63 = vadd.f32 %v1797_v17, %v1509_v60 }
 0x200   : > { %v2989_v0 = vpack.c.bf16 %v2130_v62, %v2129_v58  ;;  %v1511_v2 = vpop.f32.mrf.mxu0 }
 0x201   : > { %v1512_v5 = vadd.f32 %v3763_v19, %v1511_v2  ;;  %v1872_v8 = vmax.f32 %v1798_v63, 0.0 }
 0x202   : > { %3029 = vst [vmem:[%s3587_s30 + $0xe8] sm:$0xff] %v2989_v0   ;;  %v1513_v6 = vpop.f32.mrf.mxu0 }
 0x203   : > { %v1801_v7 = vadd.f32 %v1800_v29, %v1512_v5  ;;  %v2131_v16 = vsel %vm2067_vm13, %v1872_v8, 0.0 }
 0x204   : > { %v1516_v9 = vpop.f32.mrf.mxu0 }
 0x205   : > { %v1873_v12 = vmax.f32 %v1801_v7, 0.0  ;;  %v1517_v4 = vadd.f32 %v3763_v19, %v1516_v9 }
 0x206   : > { %v1518_v15 = vpop.f32.mrf.mxu0 }
 0x207   : > { %v2132_v17 = vsel %vm2068_vm14, %v1873_v12, 0.0  ;;  %v1806_v18 = vadd.f32 %v1805_v39, %v1517_v4 }
 0x208   : > { %v2994_v23 = vpack.c.bf16 %v2132_v17, %v2131_v16  ;;  %v1519_v24 = vpop.f32.mrf.mxu0 }
 0x209   : > { %v1520_v25 = vadd.f32 %v3763_v19, %v1519_v24  ;;  %v1874_v26 = vmax.f32 %v1806_v18, 0.0 }
 0x20a   : > { %3030 = vst [vmem:[%s3587_s30 + $0xf0] sm:$0xff] %v2994_v23   ;;  %v1521_v21 = vpop.f32.mrf.mxu0 }
 0x20b   : > { %v1809_v14 = vadd.f32 %v1808_v43, %v1520_v25  ;;  %v2133_v28 = vsel %vm2069_vm15, %v1874_v26, 0.0 }
 0x20d   : > { %v1875_v27 = vmax.f32 %v1809_v14, 0.0 }
 0x20f   : > { %v2134_v29 = vsel %vm2070_vm0, %v1875_v27, 0.0 }
 0x210   : > { %v2999_v30 = vpack.c.bf16 %v2134_v29, %v2133_v28 }
 0x212   : > { %3031 = vst [vmem:[%s3587_s30 + $0xf8] sm:$0xff] %v2999_v30  }
 0x213 PF: > { %s13_s12 = sadd.s32 1, %s3267_s12  }
 0x214   : > { %p10_p4 = scmp.ge.s32.totalorder %s13_s12, 5  }
 0x216   :  { %12 = sbr.rel (!%p10_p4) target bundleno = 1 (0x1), region = 62 }

// kernel: sparse_encoder_forward.15
= control target key start
LH: loop header
LB: loop body
LE: loop exit
PB: predicated region body
PF: predicated region fallthrough
CT: control target
= control target key end

     0   :  { %s5147_s12 = smov 0   ;;  %s6490_s0 = inlined_call_operand.vmem [shape: bf16[1536,864], index: 0, kind: input, shape index: {}]   ;;  %s6491_s1 = inlined_call_operand.vmem [shape: bf16[864,128], index: 1, kind: input, shape index: {}]   ;;  %s6492_s2 = inlined_call_operand.vmem [shape: f32[1,128], index: 2, kind: input, shape index: {}]   ;;  %s6493_s3 = inlined_call_operand.vmem [shape: bf16[1536,128], index: 3, kind: output, shape index: {}]  }
   0x1 LB: > { %s3945_s13 = sadd.s32 4294967295, %s5124_s12   ;;  %p3949_p0 = scmp.ge.s32.totalorder %s5124_s12, 1  ;;  %s5124_s12 = sphi %s5147_s12, %s13_s12  }
   0x2   : > { %p139_p1 = scmp.lt.s32.totalorder %s5124_s12, 4 }
   0x4   : > { %p140_p2 = pnand %p3949_p0, %p139_p1 }
   0x6   : > { %143 = sbr.rel (%p140_p2) target bundleno = 723 (0x2d3), region = 32 }
   0xb   : > { %v4743_v0 = vld [vmem:[%s6491_s1 + $0x38] sm:$0xff]   ;;  %v5126_v1 = vmov 0   ;;  %s3950_s16 = sshll.u32 %s3945_s13, 6  ;;  %v4744_v2 = vld [vmem:[%s6491_s1 + $0x30] sm:$0xff]   ;;  %v4745_v3 = vld [vmem:[%s6491_s1 + $0x28] sm:$0xff]   ;;  %vm1993_vm0 = vcmask 785408  }
   0xc   : > { %2090 = vmatprep.subr.bf16.mxu0 %v5126_v1  ;;  %4701 = vmatprep.subr.bf16.mxu1 %v5126_v1  ;;  %p165_p3 = scmp.lt.s32.totalorder %s3950_s16, 191  ;;  %v4746_v4 = vld [vmem:[%s6491_s1 + $0x20] sm:$0xff]   ;;  %v4747_v5 = vld [vmem:[%s6491_s1 + $0x18] sm:$0xff]   ;;  %v4748_v7 = vld [vmem:[%s6491_s1 + $0x10] sm:$0xff]   ;;  %s4265_s11 = sshll.u32 %s3945_s13, 9 }
   0xd   : > { %2091 = vmatpush1.bf16.msra.mxu0 %v4743_v0  ;;  %4717 = vmatpush1.bf16.msra.mxu1 %v4743_v0  ;;  %v4749_v9 = vld [vmem:[%s6491_s1 + $0x8] sm:$0xff]   ;;  %v4750_v10 = vld [vmem:[%s6491_s1] sm:$0xff]   ;;  %v4751_v11 = vld [vmem:[%s6491_s1 + $0x78] sm:$0xff]  }
   0xe   : > { %2092 = vmatprep.subr.bf16.mxu0 %v5126_v1  ;;  %4702 = vmatprep.subr.bf16.mxu1 %v5126_v1  ;;  %s6571_s16 = smov (!%p165_p3, %s3950_s16), 191  ;;  %v4752_v12 = vld [vmem:[%s6491_s1 + $0x70] sm:$0xff]   ;;  %v4753_v13 = vld [vmem:[%s6491_s1 + $0x68] sm:$0xff]   ;;  %v4754_v14 = vld [vmem:[%s6491_s1 + $0x60] sm:$0xff]  }
   0xf   : > { %s4733_s23 = smul.u32 28, %s6571_s16  ;;  %v4755_v15 = vld [vmem:[%s6491_s1 + $0x58] sm:$0xff]   ;;  %v4756_v16 = vld [vmem:[%s6491_s1 + $0x50] sm:$0xff]   ;;  %v4757_v17 = vld [vmem:[%s6491_s1 + $0x48] sm:$0xff]   ;;  %s3953_s13 = sshll.u32 %s6571_s16, 2 }
  0x10   : > { %v4758_v18 = vld [vmem:[%s6491_s1 + $0x40] sm:$0xff]   ;;  %v4765_v21 = vld [vmem:[%s6491_s1 + $0xb8] sm:$0xff]   ;;  %v4767_v25 = vld [vmem:[%s6491_s1 + $0xb0] sm:$0xff]   ;;  %s6171_s15 = scalar_lea.vmem %s6493_s3, %s3953_s13 }
  0x11   : > { %2093 = vmatpush1.bf16.msra.mxu0 %v4744_v2  ;;  %4718 = vmatpush1.bf16.msra.mxu1 %v4744_v2  ;;  %s5186_s28 = scalar_lea.vmem %s6490_s0, %s4733_s23  ;;  %v4766_v22 = vld [vmem:[%s6491_s1 + $0x138] sm:$0xff]   ;;  %v4776_v26 = vld [vmem:[%s6491_s1 + $0x130] sm:$0xff]   ;;  %v4774_v29 = vld [vmem:[%s6491_s1 + $0xa8] sm:$0xff]  }
  0x12   : > { %2094 = vmatprep.subr.bf16.mxu0 %v5126_v1  ;;  %4703 = vmatprep.subr.bf16.mxu1 %v5126_v1  ;;  %v4761_v6 = vld [vmem:[%s5186_s28 + $0x4] ss:$28 sps:$4 sm:$0xff]   ;;  %v4768_v23 = vld [vmem:[%s5186_s28 + $0x3c] ss:$28 sps:$4 sm:$0xff]   ;;  %v4777_v30 = vld [vmem:[%s5186_s28 + $0x74] ss:$28 sps:$4 sm:$0xff]  }
  0x13   : > { %v4764_v8 = vld [vmem:[%s5186_s28 + $0x544] ss:$28 sps:$4 sm:$0xff]   ;;  %2122 = vmatprep.mubr.bf16.mxu0 %v4761_v6  ;;  %v4770_v24 = vld [vmem:[%s5186_s28 + $0x57c] ss:$28 sps:$4 sm:$0xff]   ;;  %v4779_v31 = vld [vmem:[%s5186_s28 + $0x5b4] ss:$28 sps:$4 sm:$0xff]  }
  0x14   : > { %2314 = vmatprep.mubr.bf16.mxu1 %v4764_v8  ;;  %v4759_v19 = vld [vmem:[%s5186_s28] ss:$28 sps:$4 sm:$0xff]   ;;  %v4772_v27 = vld [vmem:[%s5186_s28 + $0x38] ss:$28 sps:$4 sm:$0xff]   ;;  %v4792_v32 = vld [vmem:[%s6491_s1 + $0x128] sm:$0xff]  }
  0x15   : > { %2095 = vmatpush1.bf16.msra.mxu0 %v4745_v3  ;;  %4719 = vmatpush1.bf16.msra.mxu1 %v4745_v3  ;;  %v4762_v20 = vld [vmem:[%s5186_s28 + $0x540] ss:$28 sps:$4 sm:$0xff]   ;;  %v4773_v28 = vld [vmem:[%s5186_s28 + $0x578] ss:$28 sps:$4 sm:$0xff]   ;;  %v4781_v34 = vld [vmem:[%s5186_s28 + $0x70] ss:$28 sps:$4 sm:$0xff]  }
  0x16   : > { %2096 = vmatprep.subr.bf16.mxu0 %v5126_v1  ;;  %4704 = vmatprep.subr.bf16.mxu1 %v5126_v1  ;;  %v4775_v33 = vld [vmem:[%s6491_s1 + $0xa0] sm:$0xff]   ;;  %v4782_v36 = vld [vmem:[%s5186_s28 + $0x5b0] ss:$28 sps:$4 sm:$0xff]   ;;  %v4783_v37 = vld [vmem:[%s6491_s1 + $0x98] sm:$0xff]  }
  0x17   : > { %v4802_v35 = vld [vmem:[%s6491_s1 + $0x120] sm:$0xff]   ;;  %v4785_v38 = vld [vmem:[%s5186_s28 + $0xac] ss:$28 sps:$4 sm:$0xff]   ;;  %v4818_v40 = vld [vmem:[%s6491_s1 + $0x118] sm:$0xff]  }
  0x18   : > { %v4787_v39 = vld [vmem:[%s5186_s28 + $0x5ec] ss:$28 sps:$4 sm:$0xff]   ;;  %v4784_v41 = vld [vmem:[%s6491_s1 + $0x90] sm:$0xff]   ;;  %v4794_v45 = vld [vmem:[%s5186_s28 + $0xe4] ss:$28 sps:$4 sm:$0xff]  }
  0x19   : > { %2097 = vmatpush1.bf16.msra.mxu0 %v4746_v4  ;;  %4720 = vmatpush1.bf16.msra.mxu1 %v4746_v4  ;;  %v4789_v42 = vld [vmem:[%s5186_s28 + $0xa8] ss:$28 sps:$4 sm:$0xff]   ;;  %v4828_v47 = vld [vmem:[%s6491_s1 + $0x110] sm:$0xff]   ;;  %v4798_v50 = vld [vmem:[%s5186_s28 + $0xe0] ss:$28 sps:$4 sm:$0xff]  }
  0x1a   : > { %2098 = vmatprep.subr.bf16.mxu0 %v5126_v1  ;;  %4705 = vmatprep.subr.bf16.mxu1 %v5126_v1  ;;  %v4790_v43 = vld [vmem:[%s5186_s28 + $0x5e8] ss:$28 sps:$4 sm:$0xff]   ;;  %v4799_v51 = vld [vmem:[%s5186_s28 + $0x620] ss:$28 sps:$4 sm:$0xff]   ;;  %v4801_v56 = vld [vmem:[%s6491_s1 + $0xf0] sm:$0xff]  }
  0x1b   : > { %v4791_v44 = vld [vmem:[%s6491_s1 + $0x88] sm:$0xff]   ;;  %v4796_v46 = vld [vmem:[%s5186_s28 + $0x624] ss:$28 sps:$4 sm:$0xff]   ;;  %v4800_v52 = vld [vmem:[%s6491_s1 + $0xf8] sm:$0xff]  }
  0x1c   : > { %v4793_v48 = vld [vmem:[%s6491_s1 + $0x80] sm:$0xff]   ;;  %v4842_v49 = vld [vmem:[%s6491_s1 + $0x108] sm:$0xff]   ;;  %v4803_v53 = vld [vmem:[%s5186_s28 + $0x11c] ss:$28 sps:$4 sm:$0xff]  }
  0x1d   : > { %2099 = vmatpush1.bf16.msra.mxu0 %v4747_v5  ;;  %4721 = vmatpush1.bf16.msra.mxu1 %v4747_v5  ;;  %v4805_v54 = vld [vmem:[%s5186_s28 + $0x65c] ss:$28 sps:$4 sm:$0xff]   ;;  %v4849_v55 = vld [vmem:[%s6491_s1 + $0x100] sm:$0xff]   ;;  %v4809_v59 = vld [vmem:[%s6491_s1 + $0xe8] sm:$0xff]  }
  0x1e   : > { %2100 = vmatprep.subr.bf16.mxu0 %v5126_v1  ;;  %4706 = vmatprep.subr.bf16.mxu1 %v5126_v1  ;;  %v4807_v57 = vld [vmem:[%s5186_s28 + $0x118] ss:$28 sps:$4 sm:$0xff]   ;;  %v4810_v63 = vld [vmem:[%s6491_s1 + $0xe0] sm:$0xff]   ;;  %v4815_v0 = vld [vmem:[%s5186_s28 + $0x150] ss:$28 sps:$4 sm:$0xff]  }
  0x1f   : > { %v4808_v58 = vld [vmem:[%s5186_s28 + $0x658] ss:$28 sps:$4 sm:$0xff]   ;;  %v4816_v3 = vld [vmem:[%s5186_s28 + $0x690] ss:$28 sps:$4 sm:$0xff]  }
  0x20   : > { %v4811_v60 = vld [vmem:[%s5186_s28 + $0x154] ss:$28 sps:$4 sm:$0xff]   ;;  %v4862_v62 = vld [vmem:[%s6491_s1 + $0x178] sm:$0xff]   ;;  %v4820_v5 = vld [vmem:[%s5186_s28 + $0x18c] ss:$28 sps:$4 sm:$0xff]  }
  0x21   : > { %2101 = vmatpush1.bf16.msra.mxu0 %v4748_v7  ;;  %4722 = vmatpush1.bf16.msra.mxu1 %v4748_v7  ;;  %v4813_v61 = vld [vmem:[%s5186_s28 + $0x694] ss:$28 sps:$4 sm:$0xff]   ;;  %v4817_v4 = vld [vmem:[%s6491_s1 + $0xd8] sm:$0xff]   ;;  %v4822_v6 = vld [vmem:[%s5186_s28 + $0x6cc] ss:$28 sps:$4 sm:$0xff]  }
  0x22   : > { %2102 = vmatprep.subr.bf16.mxu0 %v5126_v1  ;;  %4707 = vmatprep.subr.bf16.mxu1 %v5126_v1  ;;  %v4870_v2 = vld [vmem:[%s6491_s1 + $0x170] sm:$0xff]   ;;  %v4883_v7 = vld [vmem:[%s6491_s1 + $0x168] sm:$0xff]  }
  0x23   : > { %v4819_v8 = vld [vmem:[%s6491_s1 + $0xd0] sm:$0xff]  }
  0x25   : > { %2103 = vmatpush1.bf16.msra.mxu0 %v4749_v9  ;;  %4723 = vmatpush1.bf16.msra.mxu1 %v4749_v9  ;;  %v4824_v9 = vld [vmem:[%s5186_s28 + $0x188] ss:$28 sps:$4 sm:$0xff]  }
  0x26   : > { %2104 = vmatprep.subr.bf16.mxu0 %v5126_v1  ;;  %4708 = vmatprep.subr.bf16.mxu1 %v5126_v1 }
  0x29   : > { %2105 = vmatpush1.bf16.msra.mxu0 %v4750_v10  ;;  %4724 = vmatpush1.bf16.msra.mxu1 %v4750_v10  ;;  %v4825_v10 = vld [vmem:[%s5186_s28 + $0x6c8] ss:$28 sps:$4 sm:$0xff]  }
  0x2a   : > { %2106 = vmatprep.subr.bf16.mxu0 %v5126_v1  ;;  %4709 = vmatprep.subr.bf16.mxu1 %v5126_v1 }
  0x2d   : > { %2107 = vmatpush2.bf16.msra.mxu0 %v4751_v11  ;;  %4725 = vmatpush2.bf16.msra.mxu1 %v4751_v11  ;;  %v4826_v11 = vld [vmem:[%s6491_s1 + $0xc8] sm:$0xff]  }
  0x2e   : > { %2108 = vmatprep.subr.bf16.mxu0 %v5126_v1  ;;  %4710 = vmatprep.subr.bf16.mxu1 %v5126_v1 }
  0x31   : > { %2109 = vmatpush2.bf16.msra.mxu0 %v4752_v12  ;;  %4726 = vmatpush2.bf16.msra.mxu1 %v4752_v12  ;;  %v4829_v12 = vld [vmem:[%s5186_s28 + $0x1c4] ss:$28 sps:$4 sm:$0xff]  }
  0x32   : > { %2110 = vmatprep.subr.bf16.mxu0 %v5126_v1  ;;  %4711 = vmatprep.subr.bf16.mxu1 %v5126_v1 }
  0x35   : > { %2111 = vmatpush2.bf16.msra.mxu0 %v4753_v13  ;;  %4727 = vmatpush2.bf16.msra.mxu1 %v4753_v13  ;;  %v4833_v13 = vld [vmem:[%s5186_s28 + $0xc] ss:$28 sps:$4 sm:$0xff]  }
  0x36   : > { %2112 = vmatprep.subr.bf16.mxu0 %v5126_v1  ;;  %4712 = vmatprep.subr.bf16.mxu1 %v5126_v1 }
  0x39   : > { %2113 = vmatpush2.bf16.msra.mxu0 %v4754_v14  ;;  %4728 = vmatpush2.bf16.msra.mxu1 %v4754_v14  ;;  %v4890_v14 = vld [vmem:[%s6491_s1 + $0x160] sm:$0xff]  }
  0x3a   : > { %2114 = vmatprep.subr.bf16.mxu0 %v5126_v1  ;;  %4713 = vmatprep.subr.bf16.mxu1 %v5126_v1 }
  0x3d   : > { %2115 = vmatpush2.bf16.msra.mxu0 %v4755_v15  ;;  %4729 = vmatpush2.bf16.msra.mxu1 %v4755_v15  ;;  %v4827_v15 = vld [vmem:[%s6491_s1 + $0xc0] sm:$0xff]  }
  0x3e   : > { %2116 = vmatprep.subr.bf16.mxu0 %v5126_v1  ;;  %4714 = vmatprep.subr.bf16.mxu1 %v5126_v1 }
  0x41   : > { %2117 = vmatpush2.bf16.msra.mxu0 %v4756_v16  ;;  %4730 = vmatpush2.bf16.msra.mxu1 %v4756_v16  ;;  %v4835_v16 = vld [vmem:[%s6491_s1 + $0x1a8] sm:$0xff]  }
  0x42   : > { %2118 = vmatprep.subr.bf16.mxu0 %v5126_v1  ;;  %4715 = vmatprep.subr.bf16.mxu1 %v5126_v1 }
  0x45   : > { %2119 = vmatpush2.bf16.msra.mxu0 %v4757_v17  ;;  %4731 = vmatpush2.bf16.msra.mxu1 %v4757_v17  ;;  %v4903_v17 = vld [vmem:[%s6491_s1 + $0x158] sm:$0xff]  }
  0x46   : > { %2120 = vmatprep.subr.bf16.mxu0 %v5126_v1  ;;  %4716 = vmatprep.subr.bf16.mxu1 %v5126_v1 }
  0x49   : > { %2121 = vmatpush2.bf16.msra.mxu0 %v4758_v18  ;;  %4732 = vmatpush2.bf16.msra.mxu1 %v4758_v18  ;;  %v4831_v18 = vld [vmem:[%s5186_s28 + $0x8] ss:$28 sps:$4 sm:$0xff]  }
  0x4a   : > { %2379 = vmatprep.subr.bf16.mxu1 %v5126_v1  ;;  %2668 = vmatprep.subr.bf16.mxu0 %v5126_v1 }
  0x4c   : > { %2123 = vmatmul.mubr.bf16.vlgmr.msra.gmra.mxu0 %v4759_v19  ;;  %2315 = vmatmul.mubr.bf16.vlgmr.msra.gmra.mxu1 %v4762_v20  ;;  %v4834_v19 = vld [vmem:[%s5186_s28 + $0x1c0] ss:$28 sps:$4 sm:$0xff]  }
  0x4d   : > { %2380 = vmatpush1.bf16.msra.mxu1 %v4765_v21  ;;  %2669 = vmatpush1.bf16.msra.mxu0 %v4766_v22  ;;  %v4836_v20 = vld [vmem:[%s5186_s28 + $0x1fc] ss:$28 sps:$4 sm:$0xff]   ;;  %v4838_v21 = vld [vmem:[%s5186_s28 + $0x44] ss:$28 sps:$4 sm:$0xff]  }
  0x4e   : > { %2381 = vmatprep.subr.bf16.mxu1 %v5126_v1  ;;  %2130 = vmatprep.mubr.bf16.mxu0 %v4768_v23  ;;  %v4869_v22 = vld [vmem:[%s6491_s1 + $0x1a0] sm:$0xff]   ;;  %v4911_v23 = vld [vmem:[%s6491_s1 + $0x150] sm:$0xff]  }
  0x4f   : > { %2322 = vmatprep.mubr.bf16.mxu1 %v4770_v24  ;;  %2670 = vmatprep.subr.bf16.mxu0 %v5126_v1  ;;  %v4904_v24 = vld [vmem:[%s6491_s1 + $0x198] sm:$0xff]  }
  0x51   : > { %2382 = vmatpush1.bf16.msra.mxu1 %v4767_v25  ;;  %2671 = vmatpush1.bf16.msra.mxu0 %v4776_v26  ;;  %v4840_v25 = vld [vmem:[%s5186_s28 + $0x1f8] ss:$28 sps:$4 sm:$0xff]   ;;  %v4841_v26 = vld [vmem:[%s5186_s28 + $0x40] ss:$28 sps:$4 sm:$0xff]  }
  0x52   : > { %2383 = vmatprep.subr.bf16.mxu1 %v5126_v1  ;;  %2672 = vmatprep.subr.bf16.mxu0 %v5126_v1 }
  0x54   : > { %2131 = vmatmul.mubr.bf16.gmra.mxu0 %v4772_v27  ;;  %2323 = vmatmul.mubr.bf16.gmra.mxu1 %v4773_v28  ;;  %v4843_v27 = vld [vmem:[%s5186_s28 + $0x234] ss:$28 sps:$4 sm:$0xff]   ;;  %v4845_v28 = vld [vmem:[%s5186_s28 + $0x7c] ss:$28 sps:$4 sm:$0xff]  }
  0x55   : > { %2384 = vmatpush1.bf16.msra.mxu1 %v4774_v29  ;;  %2138 = vmatprep.mubr.bf16.mxu0 %v4777_v30  ;;  %v4924_v29 = vld [vmem:[%s6491_s1 + $0x148] sm:$0xff]   ;;  %v4944_v30 = vld [vmem:[%s6491_s1 + $0x190] sm:$0xff]  }
  0x56   : > { %2385 = vmatprep.subr.bf16.mxu1 %v5126_v1  ;;  %2330 = vmatprep.mubr.bf16.mxu1 %v4779_v31  ;;  %v4931_v31 = vld [vmem:[%s6491_s1 + $0x140] sm:$0xff]  }
  0x57   : > { %2673 = vmatpush1.bf16.msra.mxu0 %v4792_v32  ;;  %v4847_v32 = vld [vmem:[%s5186_s28 + $0x230] ss:$28 sps:$4 sm:$0xff]  }
  0x58   : > { %2674 = vmatprep.subr.bf16.mxu0 %v5126_v1 }
  0x59   : > { %2386 = vmatpush1.bf16.msra.mxu1 %v4775_v33  ;;  %v4848_v33 = vld [vmem:[%s5186_s28 + $0x78] ss:$28 sps:$4 sm:$0xff]  }
  0x5a   : > { %2387 = vmatprep.subr.bf16.mxu1 %v5126_v1 }
  0x5b   : > { %2675 = vmatpush1.bf16.msra.mxu0 %v4802_v35  ;;  %v4852_v35 = vld [vmem:[%s5186_s28 + $0xb4] ss:$28 sps:$4 sm:$0xff]  }
  0x5c   : > { %2139 = vmatmul.mubr.bf16.gmra.mxu0 %v4781_v34  ;;  %2331 = vmatmul.mubr.bf16.gmra.mxu1 %v4782_v36  ;;  %v4850_v34 = vld [vmem:[%s5186_s28 + $0x26c] ss:$28 sps:$4 sm:$0xff]  }
  0x5d   : > { %2388 = vmatpush1.bf16.msra.mxu1 %v4783_v37  ;;  %2146 = vmatprep.mubr.bf16.mxu0 %v4785_v38  ;;  %v4854_v36 = vld [vmem:[%s5186_s28 + $0x268] ss:$28 sps:$4 sm:$0xff]   ;;  %v4855_v37 = vld [vmem:[%s5186_s28 + $0xb0] ss:$28 sps:$4 sm:$0xff]  }
  0x5e   : > { %2389 = vmatprep.subr.bf16.mxu1 %v5126_v1  ;;  %2338 = vmatprep.mubr.bf16.mxu1 %v4787_v39  ;;  %v4856_v38 = vld [vmem:[%s5186_s28 + $0x2a4] ss:$28 sps:$4 sm:$0xff]  }
  0x5f   : > { %2676 = vmatprep.subr.bf16.mxu0 %v5126_v1  ;;  %v4860_v39 = vld [vmem:[%s5186_s28 + $0x2a0] ss:$28 sps:$4 sm:$0xff]  }
  0x60   : > { %2677 = vmatpush1.bf16.msra.mxu0 %v4818_v40  ;;  %v4861_v40 = vld [vmem:[%s5186_s28 + $0xe8] ss:$28 sps:$4 sm:$0xff]  }
  0x61   : > { %2390 = vmatpush1.bf16.msra.mxu1 %v4784_v41  ;;  %2678 = vmatprep.subr.bf16.mxu0 %v5126_v1  ;;  %v4863_v41 = vld [vmem:[%s5186_s28 + $0x2dc] ss:$28 sps:$4 sm:$0xff]  }
  0x62   : > { %2391 = vmatprep.subr.bf16.mxu1 %v5126_v1 }
  0x64   : > { %2147 = vmatmul.mubr.bf16.gmra.mxu0 %v4789_v42  ;;  %2339 = vmatmul.mubr.bf16.gmra.mxu1 %v4790_v43  ;;  %v4865_v42 = vld [vmem:[%s5186_s28 + $0x124] ss:$28 sps:$4 sm:$0xff]   ;;  %v4867_v43 = vld [vmem:[%s5186_s28 + $0x2d8] ss:$28 sps:$4 sm:$0xff]  }
  0x65   : > { %2392 = vmatpush1.bf16.msra.mxu1 %v4791_v44  ;;  %2154 = vmatprep.mubr.bf16.mxu0 %v4794_v45  ;;  %v4868_v44 = vld [vmem:[%s5186_s28 + $0x120] ss:$28 sps:$4 sm:$0xff]   ;;  %v4871_v45 = vld [vmem:[%s5186_s28 + $0x314] ss:$28 sps:$4 sm:$0xff]  }
  0x66   : > { %2393 = vmatprep.subr.bf16.mxu1 %v5126_v1  ;;  %2346 = vmatprep.mubr.bf16.mxu1 %v4796_v46  ;;  %v4873_v46 = vld [vmem:[%s5186_s28 + $0x15c] ss:$28 sps:$4 sm:$0xff]  }
  0x67   : > { %2679 = vmatpush1.bf16.msra.mxu0 %v4828_v47  ;;  %v4875_v47 = vld [vmem:[%s5186_s28 + $0x310] ss:$28 sps:$4 sm:$0xff]  }
  0x68   : > { %2680 = vmatprep.subr.bf16.mxu0 %v5126_v1 }
  0x69   : > { %2394 = vmatpush1.bf16.msra.mxu1 %v4793_v48  ;;  %v4876_v48 = vld [vmem:[%s5186_s28 + $0x158] ss:$28 sps:$4 sm:$0xff]  }
  0x6a   : > { %2395 = vmatprep.subr.bf16.mxu1 %v5126_v1 }
  0x6b   : > { %2681 = vmatpush1.bf16.msra.mxu0 %v4842_v49  ;;  %v4975_v49 = vld [vmem:[%s6491_s1 + $0x188] sm:$0xff]  }
  0x6c   : > { %2155 = vmatmul.mubr.bf16.gmra.mxu0 %v4798_v50  ;;  %2347 = vmatmul.mubr.bf16.gmra.mxu1 %v4799_v51  ;;  %v4877_v50 = vld [vmem:[%s5186_s28 + $0x34c] ss:$28 sps:$4 sm:$0xff]   ;;  %v4879_v51 = vld [vmem:[%s5186_s28 + $0x194] ss:$28 sps:$4 sm:$0xff]  }
  0x6d   : > { %2396 = vmatpush2.bf16.msra.mxu1 %v4800_v52  ;;  %2162 = vmatprep.mubr.bf16.mxu0 %v4803_v53  ;;  %v4881_v52 = vld [vmem:[%s5186_s28 + $0x348] ss:$28 sps:$4 sm:$0xff]   ;;  %v4882_v53 = vld [vmem:[%s5186_s28 + $0x190] ss:$28 sps:$4 sm:$0xff]  }
  0x6e   : > { %2397 = vmatprep.subr.bf16.mxu1 %v5126_v1  ;;  %2354 = vmatprep.mubr.bf16.mxu1 %v4805_v54  ;;  %v4884_v54 = vld [vmem:[%s5186_s28 + $0x384] ss:$28 sps:$4 sm:$0xff]  }
  0x6f   : > { %2682 = vmatprep.subr.bf16.mxu0 %v5126_v1 }
  0x70   : > { %2683 = vmatpush1.bf16.msra.mxu0 %v4849_v55  ;;  %v4886_v55 = vld [vmem:[%s5186_s28 + $0x1cc] ss:$28 sps:$4 sm:$0xff]  }
  0x71   : > { %2398 = vmatpush2.bf16.msra.mxu1 %v4801_v56  ;;  %2684 = vmatprep.subr.bf16.mxu0 %v5126_v1  ;;  %v4888_v56 = vld [vmem:[%s5186_s28 + $0x380] ss:$28 sps:$4 sm:$0xff]  }
  0x72   : > { %2399 = vmatprep.subr.bf16.mxu1 %v5126_v1 }
  0x74   : > { %2163 = vmatmul.mubr.bf16.gmra.mxu0 %v4807_v57  ;;  %2355 = vmatmul.mubr.bf16.gmra.mxu1 %v4808_v58  ;;  %v4889_v57 = vld [vmem:[%s5186_s28 + $0x1c8] ss:$28 sps:$4 sm:$0xff]   ;;  %v4891_v58 = vld [vmem:[%s5186_s28 + $0x3bc] ss:$28 sps:$4 sm:$0xff]  }
  0x75   : > { %2400 = vmatpush2.bf16.msra.mxu1 %v4809_v59  ;;  %2170 = vmatprep.mubr.bf16.mxu0 %v4811_v60  ;;  %v4893_v59 = vld [vmem:[%s5186_s28 + $0x204] ss:$28 sps:$4 sm:$0xff]   ;;  %v4895_v60 = vld [vmem:[%s5186_s28 + $0x3b8] ss:$28 sps:$4 sm:$0xff]  }
  0x76   : > { %2401 = vmatprep.subr.bf16.mxu1 %v5126_v1  ;;  %2362 = vmatprep.mubr.bf16.mxu1 %v4813_v61  ;;  %v4896_v61 = vld [vmem:[%s5186_s28 + $0x200] ss:$28 sps:$4 sm:$0xff]  }
  0x77   : > { %2685 = vmatpush2.bf16.msra.mxu0 %v4862_v62  ;;  %v4897_v62 = vld [vmem:[%s5186_s28 + $0x3f4] ss:$28 sps:$4 sm:$0xff]  }
  0x78   : > { %2686 = vmatprep.subr.bf16.mxu0 %v5126_v1 }
  0x79   : > { %2402 = vmatpush2.bf16.msra.mxu1 %v4810_v63  ;;  %v4899_v63 = vld [vmem:[%s5186_s28 + $0x23c] ss:$28 sps:$4 sm:$0xff]  }
  0x7a   : > { %2403 = vmatprep.subr.bf16.mxu1 %v5126_v1 }
  0x7b   : > { %2687 = vmatpush2.bf16.msra.mxu0 %v4870_v2  ;;  %v4902_v2 = vld [vmem:[%s5186_s28 + $0x238] ss:$28 sps:$4 sm:$0xff]  }
  0x7c   : > { %2171 = vmatmul.mubr.bf16.gmra.mxu0 %v4815_v0  ;;  %2363 = vmatmul.mubr.bf16.gmra.mxu1 %v4816_v3  ;;  %v4901_v0 = vld [vmem:[%s5186_s28 + $0x3f0] ss:$28 sps:$4 sm:$0xff]  }
  0x7d   : > { %2404 = vmatpush2.bf16.msra.mxu1 %v4817_v4  ;;  %2178 = vmatprep.mubr.bf16.mxu0 %v4820_v5  ;;  %v4905_v3 = vld [vmem:[%s5186_s28 + $0x42c] ss:$28 sps:$4 sm:$0xff]   ;;  %v4907_v4 = vld [vmem:[%s5186_s28 + $0x274] ss:$28 sps:$4 sm:$0xff]  }
  0x7e   : > { %2405 = vmatprep.subr.bf16.mxu1 %v5126_v1  ;;  %2370 = vmatprep.mubr.bf16.mxu1 %v4822_v6  ;;  %v4909_v5 = vld [vmem:[%s5186_s28 + $0x428] ss:$28 sps:$4 sm:$0xff]   ;;  %v4910_v6 = vld [vmem:[%s5186_s28 + $0x270] ss:$28 sps:$4 sm:$0xff]  }
  0x7f   : > { %2688 = vmatprep.subr.bf16.mxu0 %v5126_v1 }
  0x80   : > { %2689 = vmatpush2.bf16.msra.mxu0 %v4883_v7  ;;  %v4912_v7 = vld [vmem:[%s5186_s28 + $0x464] ss:$28 sps:$4 sm:$0xff]  }
  0x81   : > { %2406 = vmatpush2.bf16.msra.mxu1 %v4819_v8  ;;  %2690 = vmatprep.subr.bf16.mxu0 %v5126_v1  ;;  %v4914_v8 = vld [vmem:[%s5186_s28 + $0x2ac] ss:$28 sps:$4 sm:$0xff]  }
  0x82   : > { %2407 = vmatprep.subr.bf16.mxu1 %v5126_v1 }
  0x84   : > { %2179 = vmatmul.mubr.bf16.gmra.mxu0 %v4824_v9  ;;  %2371 = vmatmul.mubr.bf16.gmra.mxu1 %v4825_v10  ;;  %v5006_v9 = vld [vmem:[%s6491_s1 + $0x180] sm:$0xff]  }
  0x85   : > { %2408 = vmatpush2.bf16.msra.mxu1 %v4826_v11  ;;  %2186 = vmatprep.mubr.bf16.mxu0 %v4829_v12  ;;  %v4916_v10 = vld [vmem:[%s5186_s28 + $0x460] ss:$28 sps:$4 sm:$0xff]   ;;  %v4917_v11 = vld [vmem:[%s5186_s28 + $0x2a8] ss:$28 sps:$4 sm:$0xff]  }
  0x86   : > { %2409 = vmatprep.subr.bf16.mxu1 %v5126_v1  ;;  %2411 = vmatprep.mubr.bf16.mxu1 %v4833_v13  ;;  %v4918_v12 = vld [vmem:[%s5186_s28 + $0x49c] ss:$28 sps:$4 sm:$0xff]   ;;  %v4920_v13 = vld [vmem:[%s5186_s28 + $0x2e4] ss:$28 sps:$4 sm:$0xff]  }
  0x87   : > { %2691 = vmatpush2.bf16.msra.mxu0 %v4890_v14  ;;  %v4922_v14 = vld [vmem:[%s5186_s28 + $0x498] ss:$28 sps:$4 sm:$0xff]  }
  0x88   : > { %2692 = vmatprep.subr.bf16.mxu0 %v5126_v1 }
  0x89   : > { %2410 = vmatpush2.bf16.msra.mxu1 %v4827_v15  ;;  %v4923_v15 = vld [vmem:[%s5186_s28 + $0x2e0] ss:$28 sps:$4 sm:$0xff]  }
  0x8a   : > { %4625 = vmatprep.subr.bf16.mxu1 %v4835_v16 }
  0x8b   : > { %2693 = vmatpush2.bf16.msra.mxu0 %v4903_v17  ;;  %v4927_v17 = vld [vmem:[%s5186_s28 + $0x31c] ss:$28 sps:$4 sm:$0xff]  }
  0x8c   : > { %2187 = vmatmul.mubr.bf16.gmra.mxu0 %v4834_v19  ;;  %2412 = vmatmul.mubr.bf16.vlgmr.msra.gmra.mxu1 %v4831_v18  ;;  %v4929_v18 = vld [vmem:[%s5186_s28 + $0x4d0] ss:$28 sps:$4 sm:$0xff]   ;;  %v4930_v19 = vld [vmem:[%s5186_s28 + $0x318] ss:$28 sps:$4 sm:$0xff]  }
  0x8d   : > { %4626 = vmatpush3.bf16.msra.mxu1 %v4835_v16  ;;  %2194 = vmatprep.mubr.bf16.mxu0 %v4836_v20  ;;  %v4925_v16 = vld [vmem:[%s5186_s28 + $0x4d4] ss:$28 sps:$4 sm:$0xff]   ;;  %v4932_v20 = vld [vmem:[%s5186_s28 + $0x50c] ss:$28 sps:$4 sm:$0xff]  }
  0x8e   : > { %2419 = vmatprep.mubr.bf16.mxu1 %v4838_v21  ;;  %4627 = vmatprep.subr.bf16.mxu1 %v4869_v22  ;;  %v4934_v21 = vld [vmem:[%s5186_s28 + $0x354] ss:$28 sps:$4 sm:$0xff]  }
  0x8f   : > { %2694 = vmatprep.subr.bf16.mxu0 %v5126_v1 }
  0x90   : > { %2695 = vmatpush2.bf16.msra.mxu0 %v4911_v23  ;;  %v4937_v23 = vld [vmem:[%s5186_s28 + $0x350] ss:$28 sps:$4 sm:$0xff]  }
  0x91   : > { %4628 = vmatpush3.bf16.msra.mxu1 %v4869_v22  ;;  %2696 = vmatprep.subr.bf16.mxu0 %v5126_v1  ;;  %v4936_v22 = vld [vmem:[%s5186_s28 + $0x508] ss:$28 sps:$4 sm:$0xff]  }
  0x92   : > { %4629 = vmatprep.subr.bf16.mxu1 %v4904_v24 }
  0x94   : > { %2195 = vmatmul.mubr.bf16.gmra.mxu0 %v4840_v25  ;;  %2420 = vmatmul.mubr.bf16.gmra.mxu1 %v4841_v26  ;;  %v4942_v25 = vld [vmem:[%s5186_s28 + $0x14] ss:$28 sps:$4 sm:$0xff]  }
  0x95   : > { %2202 = vmatprep.mubr.bf16.mxu0 %v4843_v27  ;;  %2427 = vmatprep.mubr.bf16.mxu1 %v4845_v28  ;;  %v4940_v26 = vld [vmem:[%s5186_s28 + $0x10] ss:$28 sps:$4 sm:$0xff]   ;;  %v4943_v27 = vld [vmem:[%s5186_s28 + $0x388] ss:$28 sps:$4 sm:$0xff]  }
  0x96   : > { %4630 = vmatpush3.bf16.msra.mxu1 %v4904_v24  ;;  %2697 = vmatpush2.bf16.msra.mxu0 %v4924_v29  ;;  %v4938_v24 = vld [vmem:[%s5186_s28 + $0x38c] ss:$28 sps:$4 sm:$0xff]   ;;  %v4945_v28 = vld [vmem:[%s5186_s28 + $0x3c4] ss:$28 sps:$4 sm:$0xff]  }
  0x97   : > { %2698 = vmatprep.subr.bf16.mxu0 %v5126_v1  ;;  %4631 = vmatprep.subr.bf16.mxu1 %v4944_v30  ;;  %v4858_v1 = vld [vmem:[%s5186_s28 + $0xec] ss:$28 sps:$4 sm:$0xff]  }
  0x98   : > { %v4947_v29 = vld [vmem:[%s5186_s28 + $0x4c] ss:$28 sps:$4 sm:$0xff]  }
  0x9a   : > { %2699 = vmatpush2.bf16.msra.mxu0 %v4931_v31  ;;  %4632 = vmatpush3.bf16.msra.mxu1 %v4944_v30 }
  0x9b   : > { %4633 = vmatprep.subr.bf16.mxu1 %v4975_v49 }
  0x9c   : > { %2203 = vmatmul.mubr.bf16.gmra.mxu0 %v4847_v32  ;;  %2428 = vmatmul.mubr.bf16.gmra.mxu1 %v4848_v33 }
  0x9d   : > { %2210 = vmatprep.mubr.bf16.mxu0 %v4850_v34  ;;  %2435 = vmatprep.mubr.bf16.mxu1 %v4852_v35 }
  0x9e   : > { %4634 = vmatpush3.bf16.msra.mxu1 %v4975_v49  ;;  %v4957_v49 = vld [vmem:[%s5186_s28 + $0x434] ss:$28 sps:$4 sm:$0xff]  }
  0x9f   : > { %4635 = vmatprep.subr.bf16.mxu1 %v5006_v9 }
  0xa2   : > { %4636 = vmatpush3.bf16.msra.mxu1 %v5006_v9  ;;  %v4966_v9 = vld [vmem:[%s5186_s28 + $0xf0] ss:$28 sps:$4 sm:$0xff]  }
  0xa4   : > { %2211 = vmatmul.mubr.bf16.gmra.mxu0 %v4854_v36  ;;  %2436 = vmatmul.mubr.bf16.gmra.mxu1 %v4855_v37  ;;  %v4949_v36 = vld [vmem:[%s5186_s28 + $0x3c0] ss:$28 sps:$4 sm:$0xff]   ;;  %v4950_v37 = vld [vmem:[%s5186_s28 + $0x48] ss:$28 sps:$4 sm:$0xff]  }
  0xa5   : > { %2218 = vmatprep.mubr.bf16.mxu0 %v4856_v38  ;;  %2443 = vmatprep.mubr.bf16.mxu1 %v4858_v1  ;;  %v4951_v38 = vld [vmem:[%s5186_s28 + $0x3fc] ss:$28 sps:$4 sm:$0xff]   ;;  %v4953_v1 = vld [vmem:[%s5186_s28 + $0x84] ss:$28 sps:$4 sm:$0xff]  }
  0xac   : > { %2219 = vmatmul.mubr.bf16.gmra.mxu0 %v4860_v39  ;;  %2444 = vmatmul.mubr.bf16.gmra.mxu1 %v4861_v40 }
  0xad   : > { %2226 = vmatprep.mubr.bf16.mxu0 %v4863_v41  ;;  %2451 = vmatprep.mubr.bf16.mxu1 %v4865_v42 }
  0xb4   : > { %2227 = vmatmul.mubr.bf16.gmra.mxu0 %v4867_v43  ;;  %2452 = vmatmul.mubr.bf16.gmra.mxu1 %v4868_v44 }
  0xb5   : > { %2234 = vmatprep.mubr.bf16.mxu0 %v4871_v45  ;;  %2459 = vmatprep.mubr.bf16.mxu1 %v4873_v46 }
  0xbc   : > { %2235 = vmatmul.mubr.bf16.gmra.mxu0 %v4875_v47  ;;  %2460 = vmatmul.mubr.bf16.gmra.mxu1 %v4876_v48  ;;  %v4955_v47 = vld [vmem:[%s5186_s28 + $0x3f8] ss:$28 sps:$4 sm:$0xff]   ;;  %v4956_v48 = vld [vmem:[%s5186_s28 + $0x80] ss:$28 sps:$4 sm:$0xff]  }
  0xbd   : > { %2242 = vmatprep.mubr.bf16.mxu0 %v4877_v50  ;;  %2467 = vmatprep.mubr.bf16.mxu1 %v4879_v51  ;;  %v4959_v50 = vld [vmem:[%s5186_s28 + $0xbc] ss:$28 sps:$4 sm:$0xff]  }
  0xc4   : > { %2243 = vmatmul.mubr.bf16.gmra.mxu0 %v4881_v52  ;;  %2468 = vmatmul.mubr.bf16.gmra.mxu1 %v4882_v53 }
  0xc5   : > { %2250 = vmatprep.mubr.bf16.mxu0 %v4884_v54  ;;  %2475 = vmatprep.mubr.bf16.mxu1 %v4886_v55 }
  0xcc   : > { %2251 = vmatmul.mubr.bf16.gmra.mxu0 %v4888_v56  ;;  %2476 = vmatmul.mubr.bf16.gmra.mxu1 %v4889_v57 }
  0xcd   : > { %2258 = vmatprep.mubr.bf16.mxu0 %v4891_v58  ;;  %2483 = vmatprep.mubr.bf16.mxu1 %v4893_v59  ;;  %v4961_v59 = vld [vmem:[%s5186_s28 + $0x430] ss:$28 sps:$4 sm:$0xff]  }
  0xd4   : > { %2259 = vmatmul.mubr.bf16.gmra.mxu0 %v4895_v60  ;;  %2484 = vmatmul.mubr.bf16.gmra.mxu1 %v4896_v61  ;;  %v4962_v60 = vld [vmem:[%s5186_s28 + $0xb8] ss:$28 sps:$4 sm:$0xff]   ;;  %v4965_v61 = vld [vmem:[%s5186_s28 + $0x46c] ss:$28 sps:$4 sm:$0xff]  }
  0xd5   : > { %2266 = vmatprep.mubr.bf16.mxu0 %v4897_v62  ;;  %2491 = vmatprep.mubr.bf16.mxu1 %v4899_v63  ;;  %v4968_v62 = vld [vmem:[%s5186_s28 + $0xf4] ss:$28 sps:$4 sm:$0xff]  }
  0xdc   : > { %2267 = vmatmul.mubr.bf16.gmra.mxu0 %v4901_v0  ;;  %2492 = vmatmul.mubr.bf16.gmra.mxu1 %v4902_v2 }
  0xdd   : > { %2274 = vmatprep.mubr.bf16.mxu0 %v4905_v3  ;;  %2499 = vmatprep.mubr.bf16.mxu1 %v4907_v4 }
  0xe4   : > { %2275 = vmatmul.mubr.bf16.gmra.mxu0 %v4909_v5  ;;  %2500 = vmatmul.mubr.bf16.gmra.mxu1 %v4910_v6 }
  0xe5   : > { %2282 = vmatprep.mubr.bf16.mxu0 %v4912_v7  ;;  %2507 = vmatprep.mubr.bf16.mxu1 %v4914_v8  ;;  %v4963_v8 = vld [vmem:[%s5186_s28 + $0x468] ss:$28 sps:$4 sm:$0xff]  }
  0xec   : > { %2283 = vmatmul.mubr.bf16.gmra.mxu0 %v4916_v10  ;;  %2508 = vmatmul.mubr.bf16.gmra.mxu1 %v4917_v11  ;;  %v4971_v10 = vld [vmem:[%s5186_s28 + $0x4a4] ss:$28 sps:$4 sm:$0xff]   ;;  %v4974_v11 = vld [vmem:[%s5186_s28 + $0x12c] ss:$28 sps:$4 sm:$0xff]  }
  0xed   : > { %2290 = vmatprep.mubr.bf16.mxu0 %v4918_v12  ;;  %2515 = vmatprep.mubr.bf16.mxu1 %v4920_v13 }
  0xf4   : > { %2291 = vmatmul.mubr.bf16.gmra.mxu0 %v4922_v14  ;;  %2516 = vmatmul.mubr.bf16.gmra.mxu1 %v4923_v15 }
  0xf5   : > { %2298 = vmatprep.mubr.bf16.mxu0 %v4925_v16  ;;  %2523 = vmatprep.mubr.bf16.mxu1 %v4927_v17 }
  0xfc   : > { %2299 = vmatmul.mubr.bf16.gmra.mxu0 %v4929_v18  ;;  %2524 = vmatmul.mubr.bf16.gmra.mxu1 %v4930_v19 }
  0xfd   : > { %2306 = vmatprep.mubr.bf16.mxu0 %v4932_v20  ;;  %2531 = vmatprep.mubr.bf16.mxu1 %v4934_v21  ;;  %v4969_v20 = vld [vmem:[%s5186_s28 + $0x4a0] ss:$28 sps:$4 sm:$0xff]   ;;  %v4972_v21 = vld [vmem:[%s5186_s28 + $0x128] ss:$28 sps:$4 sm:$0xff]  }
 0x104   : > { %2307 = vmatmul.mubr.bf16.gmra.mxu0 %v4936_v22  ;;  %2532 = vmatmul.mubr.bf16.gmra.mxu1 %v4937_v23  ;;  %v4978_v22 = vld [vmem:[%s5186_s28 + $0x4dc] ss:$28 sps:$4 sm:$0xff]   ;;  %v4981_v23 = vld [vmem:[%s5186_s28 + $0x164] ss:$28 sps:$4 sm:$0xff]  }
 0x105   : > { %2539 = vmatprep.mubr.bf16.mxu1 %v4938_v24  ;;  %2700 = vmatprep.mubr.bf16.mxu0 %v4942_v25 }
 0x10c   : > { %v5493_v30 = vpop.f32.mrf.mxu0  ;;  %v5495_v31 = vpop.f32.mrf.mxu1  ;;  %2540 = vmatmul.mubr.bf16.gmra.mxu1 %v4943_v27  ;;  %2701 = vmatmul.mubr.bf16.vlgmr.msra.gmra.mxu0 %v4940_v26 }
 0x10d   : > { %2547 = vmatprep.mubr.bf16.mxu1 %v4945_v28  ;;  %2708 = vmatprep.mubr.bf16.mxu0 %v4947_v29 }
 0x10e   : > { %v2126_v32 = vpop.f32.mrf.mxu0  ;;  %v2318_v33 = vpop.f32.mrf.mxu1 }
 0x110   : > { %v5497_v34 = vpop.f32.mrf.mxu0  ;;  %v5499_v35 = vpop.f32.mrf.mxu1 }
 0x112   : > { %v2129_v39 = vpop.f32.mrf.mxu0  ;;  %v2321_v40 = vpop.f32.mrf.mxu1 }
 0x114   : > { %v5505_v41 = vpop.f32.mrf.mxu0  ;;  %v5507_v42 = vpop.f32.mrf.mxu1  ;;  %2548 = vmatmul.mubr.bf16.gmra.mxu1 %v4949_v36  ;;  %2709 = vmatmul.mubr.bf16.gmra.mxu0 %v4950_v37  ;;  %v4976_v36 = vld [vmem:[%s5186_s28 + $0x4d8] ss:$28 sps:$4 sm:$0xff]   ;;  %v4979_v37 = vld [vmem:[%s5186_s28 + $0x160] ss:$28 sps:$4 sm:$0xff]  }
 0x115   : > { %2555 = vmatprep.mubr.bf16.mxu1 %v4951_v38  ;;  %2716 = vmatprep.mubr.bf16.mxu0 %v4953_v1  ;;  %v4984_v38 = vld [vmem:[%s5186_s28 + $0x514] ss:$28 sps:$4 sm:$0xff]   ;;  %v4987_v1 = vld [vmem:[%s5186_s28 + $0x19c] ss:$28 sps:$4 sm:$0xff]  }
 0x116   : > { %v2134_v43 = vpop.f32.mrf.mxu0  ;;  %v2326_v44 = vpop.f32.mrf.mxu1 }
 0x118   : > { %v5509_v45 = vpop.f32.mrf.mxu0  ;;  %v5511_v46 = vpop.f32.mrf.mxu1 }
 0x11a   : > { %v2137_v51 = vpop.f32.mrf.mxu0  ;;  %v2329_v52 = vpop.f32.mrf.mxu1 }
 0x11b   : > { %v4982_v51 = vld [vmem:[%s5186_s28 + $0x510] ss:$28 sps:$4 sm:$0xff]   ;;  %v4985_v52 = vld [vmem:[%s5186_s28 + $0x198] ss:$28 sps:$4 sm:$0xff]  }
 0x11c   : > { %v5517_v53 = vpop.f32.mrf.mxu0  ;;  %v5519_v54 = vpop.f32.mrf.mxu1  ;;  %2556 = vmatmul.mubr.bf16.gmra.mxu1 %v4955_v47  ;;  %2717 = vmatmul.mubr.bf16.gmra.mxu0 %v4956_v48 }
 0x11d   : > { %2563 = vmatprep.mubr.bf16.mxu1 %v4957_v49  ;;  %2724 = vmatprep.mubr.bf16.mxu0 %v4959_v50 }
 0x11e   : > { %v2142_v55 = vpop.f32.mrf.mxu0  ;;  %v2334_v56 = vpop.f32.mrf.mxu1 }
 0x11f   : > { %v4990_v55 = vld [vmem:[%s5186_s28 + $0x54c] ss:$28 sps:$4 sm:$0xff]   ;;  %v4993_v56 = vld [vmem:[%s5186_s28 + $0x1d4] ss:$28 sps:$4 sm:$0xff]  }
 0x120   : > { %v5521_v57 = vpop.f32.mrf.mxu0  ;;  %v5523_v58 = vpop.f32.mrf.mxu1 }
 0x122   : > { %v2145_v63 = vpop.f32.mrf.mxu0  ;;  %v2337_v0 = vpop.f32.mrf.mxu1 }
 0x124   : > { %v5529_v2 = vpop.f32.mrf.mxu0  ;;  %v5531_v3 = vpop.f32.mrf.mxu1  ;;  %2564 = vmatmul.mubr.bf16.gmra.mxu1 %v4961_v59  ;;  %2725 = vmatmul.mubr.bf16.gmra.mxu0 %v4962_v60 }
 0x125   : > { %2571 = vmatprep.mubr.bf16.mxu1 %v4965_v61  ;;  %2732 = vmatprep.mubr.bf16.mxu0 %v4968_v62 }
 0x126   : > { %v2150_v4 = vpop.f32.mrf.mxu0  ;;  %v2342_v5 = vpop.f32.mrf.mxu1 }
 0x127   : > { %v5584_v4 = vld [vmem:[%s6492_s2] ss:$0 sm:$0xff] }
 0x128   : > { %v5533_v6 = vpop.f32.mrf.mxu0  ;;  %v5535_v7 = vpop.f32.mrf.mxu1 }
 0x12a   : > { %v2153_v12 = vpop.f32.mrf.mxu0  ;;  %v2345_v13 = vpop.f32.mrf.mxu1 }
 0x12b   : > { %v4999_v12 = vld [vmem:[%s5186_s28 + $0x20c] ss:$28 sps:$4 sm:$0xff]  }
 0x12c   : > { %v5541_v14 = vpop.f32.mrf.mxu0  ;;  %v5543_v15 = vpop.f32.mrf.mxu1  ;;  %2572 = vmatmul.mubr.bf16.gmra.mxu1 %v4963_v8  ;;  %2733 = vmatmul.mubr.bf16.gmra.mxu0 %v4966_v9  ;;  %v4988_v9 = vld [vmem:[%s5186_s28 + $0x548] ss:$28 sps:$4 sm:$0xff]  }
 0x12d   : > { %6494 = vst [vmem:[#allocation2_spill] sm:$0xff] %v5543_v15  ;;  %2579 = vmatprep.mubr.bf16.mxu1 %v4971_v10  ;;  %2740 = vmatprep.mubr.bf16.mxu0 %v4974_v11  ;;  %v4991_v10 = vld [vmem:[%s5186_s28 + $0x1d0] ss:$28 sps:$4 sm:$0xff]   ;;  %v4996_v11 = vld [vmem:[%s5186_s28 + $0x584] ss:$28 sps:$4 sm:$0xff]  }
 0x12e   : > { %v2158_v16 = vpop.f32.mrf.mxu0  ;;  %v2350_v17 = vpop.f32.mrf.mxu1 }
 0x12f   : > { %v2125_v17 = vadd.f32 %v5584_v4, %v5493_v30  ;;  %v4994_v30 = vld [vmem:[%s5186_s28 + $0x580] ss:$28 sps:$4 sm:$0xff]  }
 0x130   : > { %v5545_v18 = vpop.f32.mrf.mxu0  ;;  %v5547_v19 = vpop.f32.mrf.mxu1 }
 0x131   : > { %6495 = vst [vmem:[#allocation3_spill] sm:$0xff] %v5547_v19  ;;  %v5065_v19 = vld [vmem:[%s5186_s28 + $0x248] ss:$28 sps:$4 sm:$0xff]  }
 0x132   : > { %v2161_v24 = vpop.f32.mrf.mxu0  ;;  %v2353_v25 = vpop.f32.mrf.mxu1 }
 0x133   : > { %v2128_v25 = vadd.f32 %v5584_v4, %v5497_v34 }
 0x134   : > { %v5553_v26 = vpop.f32.mrf.mxu0  ;;  %v5555_v27 = vpop.f32.mrf.mxu1  ;;  %2580 = vmatmul.mubr.bf16.gmra.mxu1 %v4969_v20  ;;  %2741 = vmatmul.mubr.bf16.gmra.mxu0 %v4972_v21 }
 0x135   : > { %6496 = vst [vmem:[#allocation4_spill] sm:$0xff] %v5555_v27  ;;  %2587 = vmatprep.mubr.bf16.mxu1 %v4978_v22  ;;  %2748 = vmatprep.mubr.bf16.mxu0 %v4981_v23 }
 0x136   : > { %v2166_v28 = vpop.f32.mrf.mxu0  ;;  %v2358_v29 = vpop.f32.mrf.mxu1 }
 0x138   : > { %v5557_v32 = vpop.f32.mrf.mxu0  ;;  %v5559_v33 = vpop.f32.mrf.mxu1 }
 0x139   : > { %6497 = vst [vmem:[#allocation5_spill] sm:$0xff] %v5559_v33  ;;  %v5060_v33 = vld [vmem:[%s5186_s28 + $0x1d8] ss:$28 sps:$4 sm:$0xff]  }
 0x13a   : > { %v2169_v39 = vpop.f32.mrf.mxu0  ;;  %v2361_v40 = vpop.f32.mrf.mxu1 }
 0x13c   : > { %v5565_v43 = vpop.f32.mrf.mxu0  ;;  %v5567_v44 = vpop.f32.mrf.mxu1  ;;  %2588 = vmatmul.mubr.bf16.gmra.mxu1 %v4976_v36  ;;  %2749 = vmatmul.mubr.bf16.gmra.mxu0 %v4979_v37  ;;  %v4997_v36 = vld [vmem:[%s5186_s28 + $0x208] ss:$28 sps:$4 sm:$0xff]  }
 0x13d   : > { %6498 = vst [vmem:[#allocation6_spill] sm:$0xff] %v5567_v44  ;;  %2595 = vmatprep.mubr.bf16.mxu1 %v4984_v38  ;;  %2756 = vmatprep.mubr.bf16.mxu0 %v4987_v1  ;;  %v5002_v38 = vld [vmem:[%s5186_s28 + $0x5bc] ss:$28 sps:$4 sm:$0xff]   ;;  %v5005_v1 = vld [vmem:[%s5186_s28 + $0x244] ss:$28 sps:$4 sm:$0xff]  }
 0x13e   : > { %v2174_v47 = vpop.f32.mrf.mxu0  ;;  %v2366_v48 = vpop.f32.mrf.mxu1 }
 0x13f   : > { %v2133_v47 = vadd.f32 %v5584_v4, %v5505_v41  ;;  %v5000_v41 = vld [vmem:[%s5186_s28 + $0x5b8] ss:$28 sps:$4 sm:$0xff]  }
 0x140   : > { %v5569_v49 = vpop.f32.mrf.mxu0  ;;  %v5571_v50 = vpop.f32.mrf.mxu1 }
 0x141   : > { %6499 = vst [vmem:[#allocation7_spill] sm:$0xff] %v5571_v50  ;;  %v5055_v50 = vld [vmem:[%s5186_s28 + $0x168] ss:$28 sps:$4 sm:$0xff]  }
 0x142   : > { %v2177_v59 = vpop.f32.mrf.mxu0  ;;  %v2369_v60 = vpop.f32.mrf.mxu1 }
 0x144   : > { %v5577_v61 = vpop.f32.mrf.mxu0  ;;  %v5579_v62 = vpop.f32.mrf.mxu1  ;;  %2596 = vmatmul.mubr.bf16.gmra.mxu1 %v4982_v51  ;;  %2757 = vmatmul.mubr.bf16.gmra.mxu0 %v4985_v52 }
 0x145   : > { %6500 = vst [vmem:[#allocation8_spill] sm:$0xff] %v5579_v62  ;;  %2603 = vmatprep.mubr.bf16.mxu1 %v4990_v55  ;;  %2764 = vmatprep.mubr.bf16.mxu0 %v4993_v56  ;;  %v2136_v56 = vadd.f32 %v5584_v4, %v5509_v45 }
 0x146   : > { %v2182_v63 = vpop.f32.mrf.mxu0  ;;  %v2374_v0 = vpop.f32.mrf.mxu1 }
 0x147   : > { %v5003_v63 = vld [vmem:[%s5186_s28 + $0x240] ss:$28 sps:$4 sm:$0xff]  }
 0x148   : > { %v5586_v5 = vpop.f32.mrf.mxu0  ;;  %v5588_v8 = vpop.f32.mrf.mxu1 }
 0x149   : > { %6501 = vst [vmem:[#allocation9_spill] sm:$0xff] %v5588_v8  ;;  %v5050_v8 = vld [vmem:[%s5186_s28 + $0xf8] ss:$28 sps:$4 sm:$0xff]  }
 0x14a   : > { %v2185_v13 = vpop.f32.mrf.mxu0  ;;  %v2377_v16 = vpop.f32.mrf.mxu1 }
 0x14b   : > { %v2141_v13 = vadd.f32 %v5584_v4, %v5517_v53  ;;  %v5007_v53 = vld [vmem:[%s5186_s28 + $0x5f0] ss:$28 sps:$4 sm:$0xff]  }
 0x14c   : > { %v5596_v20 = vpop.f32.mrf.mxu0  ;;  %v2413_v21 = vpop.f32.mrf.mxu1  ;;  %2604 = vmatmul.mubr.bf16.gmra.mxu1 %v4988_v9  ;;  %2765 = vmatmul.mubr.bf16.gmra.mxu0 %v4991_v10  ;;  %v5009_v9 = vld [vmem:[%s5186_s28 + $0x5f4] ss:$28 sps:$4 sm:$0xff]   ;;  %v5012_v10 = vld [vmem:[%s5186_s28 + $0x27c] ss:$28 sps:$4 sm:$0xff]  }
 0x14d   : > { %v5598_v22 = vadd.f32 %v2413_v21, %v2125_v17  ;;  %2611 = vmatprep.mubr.bf16.mxu1 %v4996_v11  ;;  %2772 = vmatprep.mubr.bf16.mxu0 %v4999_v12 }
 0x14e   : > { %v2190_v23 = vpop.f32.mrf.mxu0  ;;  %v2415_v24 = vpop.f32.mrf.mxu1 }
 0x14f   : > { %v2144_v24 = vadd.f32 %v5584_v4, %v5521_v57 }
 0x150   : > { %v5602_v28 = vpop.f32.mrf.mxu0  ;;  %v2416_v29 = vpop.f32.mrf.mxu1 }
 0x151   : > { %v5606_v37 = vadd.f32 %v2416_v29, %v2128_v25 }
 0x152   : > { %v2193_v39 = vpop.f32.mrf.mxu0  ;;  %v2418_v40 = vpop.f32.mrf.mxu1 }
 0x154   : > { %v5612_v48 = vpop.f32.mrf.mxu0  ;;  %v2421_v34 = vpop.f32.mrf.mxu1  ;;  %2612 = vmatmul.mubr.bf16.gmra.mxu1 %v4994_v30  ;;  %2773 = vmatmul.mubr.bf16.gmra.mxu0 %v4997_v36  ;;  %v5010_v30 = vld [vmem:[%s5186_s28 + $0x278] ss:$28 sps:$4 sm:$0xff]  }
 0x155   : > { %v5614_v51 = vadd.f32 %v2421_v34, %v2133_v47  ;;  %2619 = vmatprep.mubr.bf16.mxu1 %v5002_v38  ;;  %2780 = vmatprep.mubr.bf16.mxu0 %v5005_v1  ;;  %v5015_v38 = vld [vmem:[%s5186_s28 + $0x62c] ss:$28 sps:$4 sm:$0xff]   ;;  %v5018_v1 = vld [vmem:[%s5186_s28 + $0x2b4] ss:$28 sps:$4 sm:$0xff]   ;;  %v2149_v47 = vadd.f32 %v5584_v4, %v5529_v2 }
 0x156   : > { %v2198_v52 = vpop.f32.mrf.mxu0  ;;  %v2423_v55 = vpop.f32.mrf.mxu1  ;;  %v5013_v2 = vld [vmem:[%s5186_s28 + $0x628] ss:$28 sps:$4 sm:$0xff]  }
 0x158   : > { %v5618_v59 = vpop.f32.mrf.mxu0  ;;  %v2424_v60 = vpop.f32.mrf.mxu1 }
 0x159   : > { %v5622_v0 = vadd.f32 %v2424_v60, %v2136_v56  ;;  %v2152_v60 = vadd.f32 %v5584_v4, %v5533_v6 }
 0x15a   : > { %v2201_v11 = vpop.f32.mrf.mxu0  ;;  %v2426_v12 = vpop.f32.mrf.mxu1 }
 0x15b   : > { %v5021_v11 = vld [vmem:[%s5186_s28 + $0x664] ss:$28 sps:$4 sm:$0xff]   ;;  %v5024_v12 = vld [vmem:[%s5186_s28 + $0x2ec] ss:$28 sps:$4 sm:$0xff]  }
 0x15c   : > { %v5628_v16 = vpop.f32.mrf.mxu0  ;;  %v2429_v45 = vpop.f32.mrf.mxu1  ;;  %2620 = vmatmul.mubr.bf16.gmra.mxu1 %v5000_v41  ;;  %2781 = vmatmul.mubr.bf16.gmra.mxu0 %v5003_v63 }
 0x15d   : > { %v5630_v17 = vadd.f32 %v2429_v45, %v2141_v13  ;;  %2627 = vmatprep.mubr.bf16.mxu1 %v5009_v9  ;;  %2788 = vmatprep.mubr.bf16.mxu0 %v5012_v10  ;;  %v5016_v9 = vld [vmem:[%s5186_s28 + $0x2b0] ss:$28 sps:$4 sm:$0xff]  }
 0x15e   : > { %v2206_v21 = vpop.f32.mrf.mxu0  ;;  %v2431_v23 = vpop.f32.mrf.mxu1 }
 0x15f   : > { %v2157_v21 = vadd.f32 %v5584_v4, %v5541_v14  ;;  %v5019_v14 = vld [vmem:[%s5186_s28 + $0x660] ss:$28 sps:$4 sm:$0xff]  }
 0x160   : > { %v5634_v25 = vpop.f32.mrf.mxu0  ;;  %v2432_v29 = vpop.f32.mrf.mxu1 }
 0x161   : > { %v5638_v36 = vadd.f32 %v2432_v29, %v2144_v24 }
 0x162   : > { %v2209_v39 = vpop.f32.mrf.mxu0  ;;  %v2434_v40 = vpop.f32.mrf.mxu1 }
 0x163   : > { %v5022_v39 = vld [vmem:[%s5186_s28 + $0x2e8] ss:$28 sps:$4 sm:$0xff]  }
 0x164   : > { %v5644_v34 = vpop.f32.mrf.mxu0  ;;  %v2437_v57 = vpop.f32.mrf.mxu1  ;;  %2628 = vmatmul.mubr.bf16.gmra.mxu1 %v5007_v53  ;;  %2789 = vmatmul.mubr.bf16.gmra.mxu0 %v5010_v30  ;;  %v2160_v30 = vadd.f32 %v5584_v4, %v5545_v18 }
 0x165   : > { %v5646_v52 = vadd.f32 %v2437_v57, %v2149_v47  ;;  %2635 = vmatprep.mubr.bf16.mxu1 %v5015_v38  ;;  %2796 = vmatprep.mubr.bf16.mxu0 %v5018_v1  ;;  %v5027_v47 = vld [vmem:[%s5186_s28 + $0x69c] ss:$28 sps:$4 sm:$0xff]   ;;  %v5030_v57 = vld [vmem:[%s5186_s28 + $0x324] ss:$28 sps:$4 sm:$0xff]  }
 0x166   : > { %v2214_v55 = vpop.f32.mrf.mxu0  ;;  %v2439_v56 = vpop.f32.mrf.mxu1 }
 0x168   : > { %v5650_v41 = vpop.f32.mrf.mxu0  ;;  %v2440_v63 = vpop.f32.mrf.mxu1 }
 0x169   : > { %v5654_v10 = vadd.f32 %v2440_v63, %v2152_v60  ;;  %v2165_v60 = vadd.f32 %v5584_v4, %v5553_v26  ;;  %v5025_v26 = vld [vmem:[%s5186_s28 + $0x698] ss:$28 sps:$4 sm:$0xff]  }
 0x16a   : > { %v2217_v13 = vpop.f32.mrf.mxu0  ;;  %v2442_v45 = vpop.f32.mrf.mxu1 }
 0x16c   : > { %v5660_v23 = vpop.f32.mrf.mxu0  ;;  %v2445_v6 = vpop.f32.mrf.mxu1  ;;  %2636 = vmatmul.mubr.bf16.gmra.mxu1 %v5013_v2  ;;  %2797 = vmatmul.mubr.bf16.gmra.mxu0 %v5016_v9 }
 0x16d   : > { %v5662_v24 = vadd.f32 %v2445_v6, %v2157_v21  ;;  %2643 = vmatprep.mubr.bf16.mxu1 %v5021_v11  ;;  %2804 = vmatprep.mubr.bf16.mxu0 %v5024_v12  ;;  %v2168_v12 = vadd.f32 %v5584_v4, %v5557_v32  ;;  %v5028_v21 = vld [vmem:[%s5186_s28 + $0x320] ss:$28 sps:$4 sm:$0xff]  }
 0x16e   : > { %v2222_v29 = vpop.f32.mrf.mxu0  ;;  %v2447_v53 = vpop.f32.mrf.mxu1 }
 0x16f   : > { %v5033_v29 = vld [vmem:[%s5186_s28 + $0x6d4] ss:$28 sps:$4 sm:$0xff]   ;;  %v5036_v53 = vld [vmem:[%s5186_s28 + $0x35c] ss:$28 sps:$4 sm:$0xff]  }
 0x170   : > { %v5666_v38 = vpop.f32.mrf.mxu0  ;;  %v2448_v1 = vpop.f32.mrf.mxu1 }
 0x171   : > { %v5670_v40 = vadd.f32 %v2448_v1, %v2160_v30 }
 0x172   : > { %v2225_v55 = vpop.f32.mrf.mxu0  ;;  %v2450_v56 = vpop.f32.mrf.mxu1 }
 0x173   : > { %v2176_v56 = vadd.f32 %v5584_v4, %v5569_v49 }
 0x174   : > { %v5676_v63 = vpop.f32.mrf.mxu0  ;;  %v2453_v18 = vpop.f32.mrf.mxu1  ;;  %2644 = vmatmul.mubr.bf16.gmra.mxu1 %v5019_v14  ;;  %2805 = vmatmul.mubr.bf16.gmra.mxu0 %v5022_v39  ;;  %v2173_v14 = vadd.f32 %v5584_v4, %v5565_v43  ;;  %v5031_v43 = vld [vmem:[%s5186_s28 + $0x6d0] ss:$28 sps:$4 sm:$0xff]  }
 0x175   : > { %v5678_v2 = vadd.f32 %v2453_v18, %v2165_v60  ;;  %2651 = vmatprep.mubr.bf16.mxu1 %v5027_v47  ;;  %2812 = vmatprep.mubr.bf16.mxu0 %v5030_v57 }
 0x176   : > { %v2230_v9 = vpop.f32.mrf.mxu0  ;;  %v2455_v11 = vpop.f32.mrf.mxu1 }
 0x177   : > { %v5034_v9 = vld [vmem:[%s5186_s28 + $0x358] ss:$28 sps:$4 sm:$0xff]  }
 0x178   : > { %v5682_v13 = vpop.f32.mrf.mxu0  ;;  %v2456_v45 = vpop.f32.mrf.mxu1 }
 0x179   : > { %v5686_v6 = vadd.f32 %v2456_v45, %v2168_v12  ;;  %v5039_v12 = vld [vmem:[%s5186_s28 + $0x394] ss:$28 sps:$4 sm:$0xff]  }
 0x17a   : > { %v2233_v30 = vpop.f32.mrf.mxu0  ;;  %v2458_v1 = vpop.f32.mrf.mxu1  ;;  %v5040_v45 = vld [vmem:[%s5186_s28 + $0x18] ss:$28 sps:$4 sm:$0xff]  }
 0x17c   : > { %v5692_v39 = vpop.f32.mrf.mxu0  ;;  %v2461_v32 = vpop.f32.mrf.mxu1  ;;  %2652 = vmatmul.mubr.bf16.gmra.mxu1 %v5025_v26  ;;  %2813 = vmatmul.mubr.bf16.gmra.mxu0 %v5028_v21 }
 0x17d   : > { %v5694_v47 = vadd.f32 %v2461_v32, %v2173_v14  ;;  %2659 = vmatprep.mubr.bf16.mxu1 %v5033_v29  ;;  %2820 = vmatprep.mubr.bf16.mxu0 %v5036_v53  ;;  %v2181_v29 = vadd.f32 %v5584_v4, %v5577_v61  ;;  %v2184_v32 = vadd.f32 %v5584_v4, %v5586_v5 }
 0x17e   : > { %v2238_v57 = vpop.f32.mrf.mxu0  ;;  %v2463_v55 = vpop.f32.mrf.mxu1 }
 0x17f   : > { %v5037_v55 = vld [vmem:[%s5186_s28 + $0x390] ss:$28 sps:$4 sm:$0xff]  }
 0x180   : > { %v5698_v60 = vpop.f32.mrf.mxu0  ;;  %v2464_v18 = vpop.f32.mrf.mxu1 }
 0x181   : > { %v5702_v11 = vadd.f32 %v2464_v18, %v2176_v56  ;;  %v5041_v56 = vld [vmem:[%s5186_s28 + $0x50] ss:$28 sps:$4 sm:$0xff]  }
 0x182   : > { %v2241_v26 = vpop.f32.mrf.mxu0  ;;  %v2466_v21 = vpop.f32.mrf.mxu1 }
 0x183   : > { %v5044_v26 = vld [vmem:[%s5186_s28 + $0x3cc] ss:$28 sps:$4 sm:$0xff]  }
 0x184   : > { %v5708_v53 = vpop.f32.mrf.mxu0  ;;  %v2469_v49 = vpop.f32.mrf.mxu1  ;;  %2660 = vmatmul.mubr.bf16.gmra.mxu1 %v5031_v43  ;;  %2821 = vmatmul.mubr.bf16.gmra.mxu0 %v5034_v9  ;;  %v5045_v43 = vld [vmem:[%s5186_s28 + $0x88] ss:$28 sps:$4 sm:$0xff]  }
 0x185   : > { %v5710_v30 = vadd.f32 %v2469_v49, %v2181_v29  ;;  %2828 = vmatprep.mubr.bf16.mxu0 %v5039_v12  ;;  %4637 = vmatprep.mubr.msk.bf16.mxu1 %vm1993_vm0, %v5040_v45  ;;  %v2189_v45 = vadd.f32 %v5584_v4, %v5596_v20 }
 0x186   : > { %v2246_v1 = vpop.f32.mrf.mxu0  ;;  %v2471_v14 = vpop.f32.mrf.mxu1 }
 0x187   : > { %v2192_v14 = vadd.f32 %v5584_v4, %v5602_v28 }
 0x188   : > { %v5715_v57 = vpop.f32.mrf.mxu0  ;;  %v2472_v61 = vpop.f32.mrf.mxu1 }
 0x189   : > { %v5719_v18 = vadd.f32 %v2472_v61, %v2184_v32  ;;  %v5042_v61 = vld [vmem:[%s5186_s28 + $0x3c8] ss:$28 sps:$4 sm:$0xff]  }
 0x18a   : > { %v2249_v9 = vpop.f32.mrf.mxu0  ;;  %v2474_v12 = vpop.f32.mrf.mxu1 }
 0x18b   : > { %v5046_v9 = vld [vmem:[%s5186_s28 + $0xc0] ss:$28 sps:$4 sm:$0xff]  }
 0x18c   : > { %v5725_v21 = vpop.f32.mrf.mxu0  ;;  %v2477_v5 = vpop.f32.mrf.mxu1  ;;  %2829 = vmatmul.mubr.bf16.gmra.mxu0 %v5037_v55  ;;  %4638 = vmatmul.mubr.msk.bf16.vlgmr.msra.gmra.mxu1 %vm1993_vm0, %v5041_v56  ;;  %v5049_v55 = vld [vmem:[%s5186_s28 + $0x404] ss:$28 sps:$4 sm:$0xff]  }
 0x18d   : > { %v5728_v29 = vadd.f32 %v2477_v5, %v2189_v45  ;;  %2836 = vmatprep.mubr.bf16.mxu0 %v5044_v26  ;;  %4641 = vmatprep.mubr.msk.bf16.mxu1 %vm1993_vm0, %v5045_v43  ;;  %v2197_v43 = vadd.f32 %v5584_v4, %v5612_v48 }
 0x18e   : > { %v2254_v49 = vpop.f32.mrf.mxu0  ;;  %v2479_v1 = vpop.f32.mrf.mxu1 }
 0x190   : > { %v5733_v32 = vpop.f32.mrf.mxu0  ;;  %v2480_v20 = vpop.f32.mrf.mxu1 }
 0x191   : > { %v5737_v12 = vadd.f32 %v2480_v20, %v2192_v14  ;;  %v2200_v14 = vadd.f32 %v5584_v4, %v5618_v59 }
 0x192   : > { %v2257_v56 = vpop.f32.mrf.mxu0  ;;  %v2482_v26 = vpop.f32.mrf.mxu1 }
 0x193   : > { %v5047_v56 = vld [vmem:[%s5186_s28 + $0x400] ss:$28 sps:$4 sm:$0xff]   ;;  %v5051_v26 = vld [vmem:[%s5186_s28 + $0x130] ss:$28 sps:$4 sm:$0xff]  }
 0x194   : > { %v5743_v45 = vpop.f32.mrf.mxu0  ;;  %v2485_v28 = vpop.f32.mrf.mxu1  ;;  %2837 = vmatmul.mubr.bf16.gmra.mxu0 %v5042_v61  ;;  %4642 = vmatmul.mubr.msk.bf16.gmra.mxu1 %vm1993_vm0, %v5046_v9  ;;  %v5054_v61 = vld [vmem:[%s5186_s28 + $0x43c] ss:$28 sps:$4 sm:$0xff]  }
 0x195   : > { %v5746_v5 = vadd.f32 %v2485_v28, %v2197_v43  ;;  %2844 = vmatprep.mubr.bf16.mxu0 %v5049_v55  ;;  %4645 = vmatprep.mubr.msk.bf16.mxu1 %vm1993_vm0, %v5050_v8  ;;  %v2205_v8 = vadd.f32 %v5584_v4, %v5628_v16 }
 0x196   : > { %v2262_v49 = vpop.f32.mrf.mxu0  ;;  %v2487_v1 = vpop.f32.mrf.mxu1 }
 0x198   : > { %v5751_v20 = vpop.f32.mrf.mxu0  ;;  %v2488_v48 = vpop.f32.mrf.mxu1 }
 0x199   : > { %v5755_v62 = vadd.f32 %v2488_v48, %v2200_v14  ;;  %v2208_v14 = vadd.f32 %v5584_v4, %v5634_v25 }
 0x19a   : > { %v2265_v9 = vpop.f32.mrf.mxu0  ;;  %v2490_v55 = vpop.f32.mrf.mxu1 }
 0x19b   : > { %v5052_v9 = vld [vmem:[%s5186_s28 + $0x438] ss:$28 sps:$4 sm:$0xff]   ;;  %v5056_v55 = vld [vmem:[%s5186_s28 + $0x1a0] ss:$28 sps:$4 sm:$0xff]  }
 0x19c   : > { %v5761_v43 = vpop.f32.mrf.mxu0  ;;  %v2493_v59 = vpop.f32.mrf.mxu1  ;;  %2845 = vmatmul.mubr.bf16.gmra.mxu0 %v5047_v56  ;;  %4646 = vmatmul.mubr.msk.bf16.gmra.mxu1 %vm1993_vm0, %v5051_v26  ;;  %v5059_v56 = vld [vmem:[%s5186_s28 + $0x474] ss:$28 sps:$4 sm:$0xff]  }
 0x19d   : > { %v5764_v28 = vadd.f32 %v2493_v59, %v2205_v8  ;;  %2852 = vmatprep.mubr.bf16.mxu0 %v5054_v61  ;;  %4649 = vmatprep.mubr.msk.bf16.mxu1 %vm1993_vm0, %v5055_v50  ;;  %v2213_v50 = vadd.f32 %v5584_v4, %v5644_v34 }
 0x19e   : > { %v2270_v49 = vpop.f32.mrf.mxu0  ;;  %v2495_v1 = vpop.f32.mrf.mxu1 }
 0x1a0   : > { %v5769_v48 = vpop.f32.mrf.mxu0  ;;  %v2496_v16 = vpop.f32.mrf.mxu1 }
 0x1a1   : > { %v5773_v44 = vadd.f32 %v2496_v16, %v2208_v14  ;;  %v2216_v14 = vadd.f32 %v5584_v4, %v5650_v41 }
 0x1a2   : > { %v2273_v26 = vpop.f32.mrf.mxu0  ;;  %v2498_v61 = vpop.f32.mrf.mxu1 }
 0x1a3   : > { %v5057_v26 = vld [vmem:[%s5186_s28 + $0x470] ss:$28 sps:$4 sm:$0xff]  }
 0x1a4   : > { %v5779_v8 = vpop.f32.mrf.mxu0  ;;  %v2501_v25 = vpop.f32.mrf.mxu1  ;;  %2853 = vmatmul.mubr.bf16.gmra.mxu0 %v5052_v9  ;;  %4650 = vmatmul.mubr.msk.bf16.gmra.mxu1 %vm1993_vm0, %v5056_v55  ;;  %v5061_v61 = vld [vmem:[%s5186_s28 + $0x210] ss:$28 sps:$4 sm:$0xff]  }
 0x1a5   : > { %v5782_v59 = vadd.f32 %v2501_v25, %v2213_v50  ;;  %2860 = vmatprep.mubr.bf16.mxu0 %v5059_v56  ;;  %4653 = vmatprep.mubr.msk.bf16.mxu1 %vm1993_vm0, %v5060_v33  ;;  %v5064_v9 = vld [vmem:[%s5186_s28 + $0x4ac] ss:$28 sps:$4 sm:$0xff]   ;;  %v2221_v33 = vadd.f32 %v5584_v4, %v5660_v23 }
 0x1a6   : > { %v2278_v49 = vpop.f32.mrf.mxu0  ;;  %v2503_v1 = vpop.f32.mrf.mxu1 }
 0x1a8   : > { %v5787_v16 = vpop.f32.mrf.mxu0  ;;  %v2504_v34 = vpop.f32.mrf.mxu1 }
 0x1a9   : > { %v5791_v27 = vadd.f32 %v2504_v34, %v2216_v14  ;;  %v2224_v14 = vadd.f32 %v5584_v4, %v5666_v38 }
 0x1aa   : > { %v2281_v55 = vpop.f32.mrf.mxu0  ;;  %v2506_v56 = vpop.f32.mrf.mxu1 }
 0x1ab   : > { %6502 = vst [vmem:[#allocation10_spill] sm:$0xff] %v5791_v27  ;;  %v5062_v55 = vld [vmem:[%s5186_s28 + $0x4a8] ss:$28 sps:$4 sm:$0xff]   ;;  %v5066_v56 = vld [vmem:[%s5186_s28 + $0x280] ss:$28 sps:$4 sm:$0xff]  }
 0x1ac   : > { %v5797_v50 = vpop.f32.mrf.mxu0  ;;  %v2509_v41 = vpop.f32.mrf.mxu1  ;;  %2861 = vmatmul.mubr.bf16.gmra.mxu0 %v5057_v26  ;;  %4654 = vmatmul.mubr.msk.bf16.gmra.mxu1 %vm1993_vm0, %v5061_v61  ;;  %v5069_v26 = vld [vmem:[%s5186_s28 + $0x4e4] ss:$28 sps:$4 sm:$0xff]   ;;  %v5070_v27 = vld [vmem:[%s5186_s28 + $0x2b8] ss:$28 sps:$4 sm:$0xff]  }
 0x1ad   : > { %v5800_v25 = vadd.f32 %v2509_v41, %v2221_v33  ;;  %2868 = vmatprep.mubr.bf16.mxu0 %v5064_v9  ;;  %4657 = vmatprep.mubr.msk.bf16.mxu1 %vm1993_vm0, %v5065_v19  ;;  %v2229_v19 = vadd.f32 %v5584_v4, %v5676_v63 }
 0x1ae   : > { %v2286_v49 = vpop.f32.mrf.mxu0  ;;  %v2511_v1 = vpop.f32.mrf.mxu1 }
 0x1af   : > { %6503 = vst [vmem:[#allocation11_spill] sm:$0xff] %v5800_v25  ;;  %v5075_v25 = vld [vmem:[%s5186_s28 + $0x328] ss:$28 sps:$4 sm:$0xff]  }
 0x1b0   : > { %v5805_v34 = vpop.f32.mrf.mxu0  ;;  %v2512_v23 = vpop.f32.mrf.mxu1 }
 0x1b1   : > { %v5809_v15 = vadd.f32 %v2512_v23, %v2224_v14  ;;  %v2232_v14 = vadd.f32 %v5584_v4, %v5682_v13 }
 0x1b2   : > { %v2289_v61 = vpop.f32.mrf.mxu0  ;;  %v2514_v9 = vpop.f32.mrf.mxu1 }
 0x1b3   : > { %6504 = vst [vmem:[#allocation12_spill] sm:$0xff] %v5809_v15  ;;  %v5067_v61 = vld [vmem:[%s5186_s28 + $0x4e0] ss:$28 sps:$4 sm:$0xff]   ;;  %v5071_v9 = vld [vmem:[%s5186_s28 + $0x2f0] ss:$28 sps:$4 sm:$0xff]  }
 0x1b4   : > { %v5815_v33 = vpop.f32.mrf.mxu0  ;;  %v2517_v38 = vpop.f32.mrf.mxu1  ;;  %2869 = vmatmul.mubr.bf16.gmra.mxu0 %v5062_v55  ;;  %4658 = vmatmul.mubr.msk.bf16.gmra.mxu1 %vm1993_vm0, %v5066_v56  ;;  %v5074_v55 = vld [vmem:[%s5186_s28 + $0x51c] ss:$28 sps:$4 sm:$0xff]  }
 0x1b5   : > { %v5818_v41 = vadd.f32 %v2517_v38, %v2229_v19  ;;  %2876 = vmatprep.mubr.bf16.mxu0 %v5069_v26  ;;  %4661 = vmatprep.mubr.msk.bf16.mxu1 %vm1993_vm0, %v5070_v27  ;;  %v2237_v27 = vadd.f32 %v5584_v4, %v5692_v39 }
 0x1b6   : > { %v2294_v49 = vpop.f32.mrf.mxu0  ;;  %v2519_v1 = vpop.f32.mrf.mxu1 }
 0x1b7   : > { %6505 = vst [vmem:[#allocation13_spill] sm:$0xff] %v5818_v41  ;;  %v5080_v41 = vld [vmem:[%s5186_s28 + $0x398] ss:$28 sps:$4 sm:$0xff]  }
 0x1b8   : > { %v5823_v23 = vpop.f32.mrf.mxu0  ;;  %v2520_v63 = vpop.f32.mrf.mxu1 }
 0x1b9   : > { %v5827_v15 = vadd.f32 %v2520_v63, %v2232_v14  ;;  %v2240_v14 = vadd.f32 %v5584_v4, %v5698_v60 }
 0x1ba   : > { %v2297_v56 = vpop.f32.mrf.mxu0  ;;  %v2522_v26 = vpop.f32.mrf.mxu1 }
 0x1bb   : > { %6506 = vst [vmem:[#allocation14_spill] sm:$0xff] %v5827_v15  ;;  %v5072_v56 = vld [vmem:[%s5186_s28 + $0x518] ss:$28 sps:$4 sm:$0xff]   ;;  %v5076_v26 = vld [vmem:[%s5186_s28 + $0x360] ss:$28 sps:$4 sm:$0xff]  }
 0x1bc   : > { %v5833_v19 = vpop.f32.mrf.mxu0  ;;  %v2525_v13 = vpop.f32.mrf.mxu1  ;;  %2877 = vmatmul.mubr.bf16.gmra.mxu0 %v5067_v61  ;;  %4662 = vmatmul.mubr.msk.bf16.gmra.mxu1 %vm1993_vm0, %v5071_v9  ;;  %v5079_v61 = vld [vmem:[%s5186_s28 + $0x554] ss:$28 sps:$4 sm:$0xff]  }
 0x1bd   : > { %v5836_v38 = vadd.f32 %v2525_v13, %v2237_v27  ;;  %2884 = vmatprep.mubr.bf16.mxu0 %v5074_v55  ;;  %4665 = vmatprep.mubr.msk.bf16.mxu1 %vm1993_vm0, %v5075_v25  ;;  %v2245_v25 = vadd.f32 %v5584_v4, %v5708_v53 }
 0x1be   : > { %v2302_v49 = vpop.f32.mrf.mxu0  ;;  %v2527_v1 = vpop.f32.mrf.mxu1 }
 0x1bf   : > { %6507 = vst [vmem:[#allocation15_spill] sm:$0xff] %v5836_v38  ;;  %v5085_v38 = vld [vmem:[%s5186_s28 + $0x408] ss:$28 sps:$4 sm:$0xff]  }
 0x1c0   : > { %v5841_v63 = vpop.f32.mrf.mxu0  ;;  %v2528_v39 = vpop.f32.mrf.mxu1 }
 0x1c1   : > { %v5845_v15 = vadd.f32 %v2528_v39, %v2240_v14  ;;  %v2248_v14 = vadd.f32 %v5584_v4, %v5715_v57 }
 0x1c2   : > { %v2305_v9 = vpop.f32.mrf.mxu0  ;;  %v2530_v55 = vpop.f32.mrf.mxu1 }
 0x1c3   : > { %6508 = vst [vmem:[#allocation16_spill] sm:$0xff] %v5845_v15  ;;  %v5077_v9 = vld [vmem:[%s5186_s28 + $0x550] ss:$28 sps:$4 sm:$0xff]  }
 0x1c4   : > { %v5851_v27 = vpop.f32.mrf.mxu0  ;;  %v2533_v60 = vpop.f32.mrf.mxu1  ;;  %2885 = vmatmul.mubr.bf16.gmra.mxu0 %v5072_v56  ;;  %4666 = vmatmul.mubr.msk.bf16.gmra.mxu1 %vm1993_vm0, %v5076_v26  ;;  %v5081_v55 = vld [vmem:[%s5186_s28 + $0x3d0] ss:$28 sps:$4 sm:$0xff]  }
 0x1c5   : > { %v5854_v13 = vadd.f32 %v2533_v60, %v2245_v25  ;;  %2892 = vmatprep.mubr.bf16.mxu0 %v5079_v61  ;;  %4669 = vmatprep.mubr.msk.bf16.mxu1 %vm1993_vm0, %v5080_v41  ;;  %v5084_v56 = vld [vmem:[%s5186_s28 + $0x58c] ss:$28 sps:$4 sm:$0xff]   ;;  %v2253_v41 = vadd.f32 %v5584_v4, %v5725_v21  ;;  %v2256_v21 = vadd.f32 %v5584_v4, %v5733_v32 }
 0x1c6   : > { %v2310_v49 = vpop.f32.mrf.mxu0  ;;  %v2535_v1 = vpop.f32.mrf.mxu1 }
 0x1c8   : > { %v5859_v39 = vpop.f32.mrf.mxu0  ;;  %v2536_v53 = vpop.f32.mrf.mxu1 }
 0x1c9   : > { %v5863_v15 = vadd.f32 %v2536_v53, %v2248_v14 }
 0x1ca   : > { %v2313_v26 = vpop.f32.mrf.mxu0  ;;  %v2538_v25 = vpop.f32.mrf.mxu1 }
 0x1cb   : > { %6509 = vst [vmem:[#allocation17_spill] sm:$0xff] %v5863_v15  ;;  %v5082_v25 = vld [vmem:[%s5186_s28 + $0x588] ss:$28 sps:$4 sm:$0xff]  }
 0x1cc   : > { %v2541_v61 = vpop.f32.mrf.mxu1  ;;  %v2702_v60 = vpop.f32.mrf.mxu0  ;;  %2893 = vmatmul.mubr.bf16.gmra.mxu0 %v5077_v9  ;;  %4670 = vmatmul.mubr.msk.bf16.gmra.mxu1 %vm1993_vm0, %v5081_v55  ;;  %v5086_v9 = vld [vmem:[%s5186_s28 + $0x440] ss:$28 sps:$4 sm:$0xff]  }
 0x1cd   : > { %v5870_v57 = vadd.f32 %v2541_v61, %v2253_v41  ;;  %v5873_v49 = vadd.f32 %v2702_v60, %v5598_v22  ;;  %2900 = vmatprep.mubr.bf16.mxu0 %v5084_v56  ;;  %4673 = vmatprep.mubr.msk.bf16.mxu1 %vm1993_vm0, %v5085_v38  ;;  %v5089_v41 = vld [vmem:[%s5186_s28 + $0x5c4] ss:$28 sps:$4 sm:$0xff]   ;;  %v5090_v22 = vld [vmem:[%s5186_s28 + $0x478] ss:$28 sps:$4 sm:$0xff]   ;;  %v2261_v38 = vadd.f32 %v5584_v4, %v5743_v45 }
 0x1ce   : > { %v2543_v1 = vpop.f32.mrf.mxu1  ;;  %v2704_v14 = vpop.f32.mrf.mxu0  ;;  %v2264_v45 = vadd.f32 %v5584_v4, %v5751_v20 }
 0x1d0   : > { %v2544_v53 = vpop.f32.mrf.mxu1  ;;  %v2705_v26 = vpop.f32.mrf.mxu0 }
 0x1d1   : > { %v5880_v15 = vadd.f32 %v2544_v53, %v2256_v21  ;;  %v5883_v55 = vadd.f32 %v2705_v26, %v5606_v37 }
 0x1d2   : > { %v2546_v61 = vpop.f32.mrf.mxu1  ;;  %v2707_v56 = vpop.f32.mrf.mxu0 }
 0x1d3   : > { %v5087_v61 = vld [vmem:[%s5186_s28 + $0x5c0] ss:$28 sps:$4 sm:$0xff]  }
 0x1d4   : > { %v2549_v60 = vpop.f32.mrf.mxu1  ;;  %v2710_v32 = vpop.f32.mrf.mxu0  ;;  %2901 = vmatmul.mubr.bf16.gmra.mxu0 %v5082_v25  ;;  %4674 = vmatmul.mubr.msk.bf16.gmra.mxu1 %vm1993_vm0, %v5086_v9  ;;  %v5091_v25 = vld [vmem:[%s5186_s28 + $0x4b0] ss:$28 sps:$4 sm:$0xff]  }
 0x1d5   : > { %v5890_v1 = vadd.f32 %v2549_v60, %v2261_v38  ;;  %v5893_v37 = vadd.f32 %v2710_v32, %v5614_v51  ;;  %2908 = vmatprep.mubr.bf16.mxu0 %v5089_v41  ;;  %4677 = vmatprep.mubr.msk.bf16.mxu1 %vm1993_vm0, %v5090_v22  ;;  %v5094_v38 = vld [vmem:[%s5186_s28 + $0x5fc] ss:$28 sps:$4 sm:$0xff]   ;;  %v5095_v51 = vld [vmem:[%s5186_s28 + $0x4e8] ss:$28 sps:$4 sm:$0xff]   ;;  %v2269_v22 = vadd.f32 %v5584_v4, %v5761_v43 }
 0x1d6   : > { %v2551_v14 = vpop.f32.mrf.mxu1  ;;  %v2712_v21 = vpop.f32.mrf.mxu0  ;;  %v2272_v43 = vadd.f32 %v5584_v4, %v5769_v48 }
 0x1d8   : > { %v2552_v53 = vpop.f32.mrf.mxu1  ;;  %v2713_v26 = vpop.f32.mrf.mxu0 }
 0x1d9   : > { %v5900_v56 = vadd.f32 %v2552_v53, %v2264_v45  ;;  %v5903_v9 = vadd.f32 %v2713_v26, %v5622_v0 }
 0x1da   : > { %v2554_v60 = vpop.f32.mrf.mxu1  ;;  %v2715_v41 = vpop.f32.mrf.mxu0 }
 0x1db   : > { %v5092_v60 = vld [vmem:[%s5186_s28 + $0x5f8] ss:$28 sps:$4 sm:$0xff]  }
 0x1dc   : > { %v2557_v32 = vpop.f32.mrf.mxu1  ;;  %v2718_v20 = vpop.f32.mrf.mxu0  ;;  %2909 = vmatmul.mubr.bf16.gmra.mxu0 %v5087_v61  ;;  %4678 = vmatmul.mubr.msk.bf16.gmra.mxu1 %vm1993_vm0, %v5091_v25  ;;  %v5096_v61 = vld [vmem:[%s5186_s28 + $0x520] ss:$28 sps:$4 sm:$0xff]  }
 0x1dd   : > { %v5910_v14 = vadd.f32 %v2557_v32, %v2269_v22  ;;  %v5913_v0 = vadd.f32 %v2718_v20, %v5630_v17  ;;  %2916 = vmatprep.mubr.bf16.mxu0 %v5094_v38  ;;  %4681 = vmatprep.mubr.msk.bf16.mxu1 %vm1993_vm0, %v5095_v51  ;;  %v5099_v22 = vld [vmem:[%s5186_s28 + $0x634] ss:$28 sps:$4 sm:$0xff]   ;;  %v2277_v51 = vadd.f32 %v5584_v4, %v5779_v8 }
 0x1de   : > { %v2559_v21 = vpop.f32.mrf.mxu1  ;;  %v2720_v45 = vpop.f32.mrf.mxu0  ;;  %v5100_v17 = vld [vmem:[%s5186_s28 + $0x558] ss:$28 sps:$4 sm:$0xff]   ;;  %v2280_v8 = vadd.f32 %v5584_v4, %v5787_v16 }
 0x1e0   : > { %v2560_v53 = vpop.f32.mrf.mxu1  ;;  %v2721_v26 = vpop.f32.mrf.mxu0 }
 0x1e1   : > { %v5920_v41 = vadd.f32 %v2560_v53, %v2272_v43  ;;  %v5923_v25 = vadd.f32 %v2721_v26, %v5638_v36 }
 0x1e2   : > { %v2562_v32 = vpop.f32.mrf.mxu1  ;;  %v2723_v38 = vpop.f32.mrf.mxu0 }
 0x1e3   : > { %v5097_v32 = vld [vmem:[%s5186_s28 + $0x630] ss:$28 sps:$4 sm:$0xff]  }
 0x1e4   : > { %v2565_v20 = vpop.f32.mrf.mxu1  ;;  %v2726_v48 = vpop.f32.mrf.mxu0  ;;  %2917 = vmatmul.mubr.bf16.gmra.mxu0 %v5092_v60  ;;  %4682 = vmatmul.mubr.msk.bf16.gmra.mxu1 %vm1993_vm0, %v5096_v61  ;;  %v5101_v60 = vld [vmem:[%s5186_s28 + $0x590] ss:$28 sps:$4 sm:$0xff]  }
 0x1e5   : > { %v5930_v21 = vadd.f32 %v2565_v20, %v2277_v51  ;;  %v5933_v36 = vadd.f32 %v2726_v48, %v5646_v52  ;;  %2924 = vmatprep.mubr.bf16.mxu0 %v5099_v22  ;;  %4685 = vmatprep.mubr.msk.bf16.mxu1 %vm1993_vm0, %v5100_v17  ;;  %v5104_v51 = vld [vmem:[%s5186_s28 + $0x66c] ss:$28 sps:$4 sm:$0xff]   ;;  %v2285_v17 = vadd.f32 %v5584_v4, %v5797_v50 }
 0x1e6   : > { %v2567_v45 = vpop.f32.mrf.mxu1  ;;  %v2728_v43 = vpop.f32.mrf.mxu0  ;;  %v5105_v52 = vld [vmem:[%s5186_s28 + $0x5c8] ss:$28 sps:$4 sm:$0xff]   ;;  %v2288_v50 = vadd.f32 %v5584_v4, %v5805_v34 }
 0x1e8   : > { %v2568_v53 = vpop.f32.mrf.mxu1  ;;  %v2729_v26 = vpop.f32.mrf.mxu0 }
 0x1e9   : > { %v5940_v38 = vadd.f32 %v2568_v53, %v2280_v8  ;;  %v5943_v61 = vadd.f32 %v2729_v26, %v5654_v10 }
 0x1ea   : > { %v2570_v20 = vpop.f32.mrf.mxu1  ;;  %v2731_v22 = vpop.f32.mrf.mxu0 }
 0x1eb   : > { %v5102_v20 = vld [vmem:[%s5186_s28 + $0x668] ss:$28 sps:$4 sm:$0xff]  }
 0x1ec   : > { %v2573_v48 = vpop.f32.mrf.mxu1  ;;  %v2734_v16 = vpop.f32.mrf.mxu0  ;;  %2925 = vmatmul.mubr.bf16.gmra.mxu0 %v5097_v32  ;;  %4686 = vmatmul.mubr.msk.bf16.gmra.mxu1 %vm1993_vm0, %v5101_v60  ;;  %v5106_v32 = vld [vmem:[%s5186_s28 + $0x600] ss:$28 sps:$4 sm:$0xff]  }
 0x1ed   : > { %v5950_v45 = vadd.f32 %v2573_v48, %v2285_v17  ;;  %v5953_v10 = vadd.f32 %v2734_v16, %v5662_v24  ;;  %2932 = vmatprep.mubr.bf16.mxu0 %v5104_v51  ;;  %4689 = vmatprep.mubr.msk.bf16.mxu1 %vm1993_vm0, %v5105_v52  ;;  %v5109_v17 = vld [vmem:[%s5186_s28 + $0x6a4] ss:$28 sps:$4 sm:$0xff]   ;;  %v5110_v24 = vld [vmem:[%s5186_s28 + $0x638] ss:$28 sps:$4 sm:$0xff]   ;;  %v2293_v52 = vadd.f32 %v5584_v4, %v5815_v33 }
 0x1ee   : > { %v2575_v43 = vpop.f32.mrf.mxu1  ;;  %v2736_v8 = vpop.f32.mrf.mxu0  ;;  %v2296_v33 = vadd.f32 %v5584_v4, %v5823_v23 }
 0x1f0   : > { %v2576_v53 = vpop.f32.mrf.mxu1  ;;  %v2737_v26 = vpop.f32.mrf.mxu0 }
 0x1f1   : > { %v5960_v22 = vadd.f32 %v2576_v53, %v2288_v50  ;;  %v5963_v60 = vadd.f32 %v2737_v26, %v5670_v40 }
 0x1f2   : > { %v2578_v48 = vpop.f32.mrf.mxu1  ;;  %v2739_v51 = vpop.f32.mrf.mxu0 }
 0x1f3   : > { %6510 = vst [vmem:[#allocation18_spill] sm:$0xff] %v5960_v22  ;;  %v5107_v48 = vld [vmem:[%s5186_s28 + $0x6a0] ss:$28 sps:$4 sm:$0xff]  }
 0x1f4   : > { %v2581_v16 = vpop.f32.mrf.mxu1  ;;  %v2742_v34 = vpop.f32.mrf.mxu0  ;;  %2933 = vmatmul.mubr.bf16.gmra.mxu0 %v5102_v20  ;;  %4690 = vmatmul.mubr.msk.bf16.gmra.mxu1 %vm1993_vm0, %v5106_v32  ;;  %v5111_v20 = vld [vmem:[%s5186_s28 + $0x670] ss:$28 sps:$4 sm:$0xff]  }
 0x1f5   : > { %v5970_v43 = vadd.f32 %v2581_v16, %v2293_v52  ;;  %v5973_v40 = vadd.f32 %v2742_v34, %v5678_v2  ;;  %2940 = vmatprep.mubr.bf16.mxu0 %v5109_v17  ;;  %4693 = vmatprep.mubr.msk.bf16.mxu1 %vm1993_vm0, %v5110_v24  ;;  %v5114_v52 = vld [vmem:[%s5186_s28 + $0x6dc] ss:$28 sps:$4 sm:$0xff]   ;;  %v5115_v2 = vld [vmem:[%s5186_s28 + $0x6a8] ss:$28 sps:$4 sm:$0xff]   ;;  %v2301_v24 = vadd.f32 %v5584_v4, %v5833_v19 }
 0x1f6   : > { %v2583_v8 = vpop.f32.mrf.mxu1  ;;  %v2744_v50 = vpop.f32.mrf.mxu0 }
 0x1f8   : > { %v2584_v53 = vpop.f32.mrf.mxu1  ;;  %v2745_v26 = vpop.f32.mrf.mxu0 }
 0x1f9   : > { %v5980_v51 = vadd.f32 %v2584_v53, %v2296_v33  ;;  %v5983_v32 = vadd.f32 %v2745_v26, %v5686_v6  ;;  %v2304_v53 = vadd.f32 %v5584_v4, %v5841_v63 }
 0x1fa   : > { %v2586_v16 = vpop.f32.mrf.mxu1  ;;  %v2747_v17 = vpop.f32.mrf.mxu0 }
 0x1fb   : > { %6511 = vst [vmem:[#allocation19_spill] sm:$0xff] %v5980_v51  ;;  %v5112_v16 = vld [vmem:[%s5186_s28 + $0x6d8] ss:$28 sps:$4 sm:$0xff]   ;;  %v5116_v17 = vld [vmem:[%s5186_s28 + $0x6e0] ss:$28 sps:$4 sm:$0xff]  }
 0x1fc   : > { %v2589_v34 = vpop.f32.mrf.mxu1  ;;  %v2750_v23 = vpop.f32.mrf.mxu0  ;;  %2941 = vmatmul.mubr.bf16.gmra.mxu0 %v5107_v48  ;;  %4694 = vmatmul.mubr.msk.bf16.gmra.mxu1 %vm1993_vm0, %v5111_v20 }
 0x1fd   : > { %v5990_v8 = vadd.f32 %v2589_v34, %v2301_v24  ;;  %v5993_v50 = vadd.f32 %v2750_v23, %v5694_v47  ;;  %2948 = vmatprep.mubr.bf16.mxu0 %v5114_v52  ;;  %4697 = vmatprep.mubr.msk.bf16.mxu1 %vm1993_vm0, %v5115_v2  ;;  %v2309_v52 = vadd.f32 %v5584_v4, %v5851_v27 }
 0x1fe   : > { %v2591_v6 = vpop.f32.mrf.mxu1  ;;  %v2752_v33 = vpop.f32.mrf.mxu0 }
 0x1ff   : > { %6512 = vst [vmem:[#allocation20_spill] sm:$0xff] %v5990_v8 }
 0x200   : > { %v2592_v26 = vpop.f32.mrf.mxu1  ;;  %v2753_v19 = vpop.f32.mrf.mxu0 }
 0x201   : > { %v6000_v48 = vadd.f32 %v2592_v26, %v2304_v53  ;;  %v6003_v20 = vadd.f32 %v2753_v19, %v5702_v11  ;;  %v2312_v11 = vadd.f32 %v5584_v4, %v5859_v39 }
 0x202   : > { %v2594_v24 = vpop.f32.mrf.mxu1  ;;  %v2755_v47 = vpop.f32.mrf.mxu0 }
 0x203   : > { %6513 = vst [vmem:[#allocation21_spill] sm:$0xff] %v6000_v48 }
 0x204   : > { %v2597_v2 = vpop.f32.mrf.mxu1  ;;  %v2758_v34 = vpop.f32.mrf.mxu0  ;;  %2949 = vmatmul.mubr.bf16.gmra.mxu0 %v5112_v16  ;;  %4698 = vmatmul.mubr.msk.bf16.gmra.mxu1 %vm1993_vm0, %v5116_v17  ;;  %v2317_v17 = vadd.f32 %v5584_v4, %v5495_v31 }
 0x205   : > { %v6008_v63 = vadd.f32 %v2597_v2, %v2309_v52  ;;  %v6011_v23 = vadd.f32 %v2758_v34, %v5710_v30 }
 0x206   : > { %v2599_v6 = vpop.f32.mrf.mxu1  ;;  %v2760_v33 = vpop.f32.mrf.mxu0 }
 0x207   : > { %6514 = vst [vmem:[#allocation22_spill] sm:$0xff] %v6008_v63  ;;  %v2320_v6 = vadd.f32 %v5584_v4, %v5499_v35 }
 0x208   : > { %v2600_v53 = vpop.f32.mrf.mxu1  ;;  %v2761_v26 = vpop.f32.mrf.mxu0 }
 0x209   : > { %v6015_v19 = vadd.f32 %v2600_v53, %v2312_v11  ;;  %v6018_v27 = vadd.f32 %v2761_v26, %v5719_v18 }
 0x20a   : > { %v2602_v16 = vpop.f32.mrf.mxu1  ;;  %v2763_v24 = vpop.f32.mrf.mxu0 }
 0x20b   : > { %6515 = vst [vmem:[#allocation23_spill] sm:$0xff] %v6015_v19  ;;  %v6037_v16 = vld [vmem:[%s6492_s2] ss:$0 sm:$0xff] }
 0x20c   : > { %v2605_v47 = vpop.f32.mrf.mxu1  ;;  %v2766_v30 = vpop.f32.mrf.mxu0 }
 0x20d   : > { %v6022_v52 = vadd.f32 %v2605_v47, %v2317_v17  ;;  %v6025_v2 = vadd.f32 %v2766_v30, %v5728_v29  ;;  %v2325_v29 = vadd.f32 %v6037_v16, %v5507_v42  ;;  %v2328_v30 = vadd.f32 %v6037_v16, %v5511_v46 }
 0x20e   : > { %v2607_v39 = vpop.f32.mrf.mxu1  ;;  %v2768_v34 = vpop.f32.mrf.mxu0 }
 0x20f   : > { %6516 = vst [vmem:[#allocation24_spill] sm:$0xff] %v6022_v52  ;;  %v6540_v52 = vld [vmem:[#allocation7_spill] sm:$0xff] }
 0x210   : > { %v2608_v33 = vpop.f32.mrf.mxu1  ;;  %v2769_v18 = vpop.f32.mrf.mxu0 }
 0x211   : > { %v6029_v11 = vadd.f32 %v2608_v33, %v2320_v6  ;;  %v6032_v53 = vadd.f32 %v2769_v18, %v5737_v12 }
 0x212   : > { %v2610_v31 = vpop.f32.mrf.mxu1  ;;  %v2771_v26 = vpop.f32.mrf.mxu0 }
 0x213   : > { %6517 = vst [vmem:[#allocation25_spill] sm:$0xff] %v6029_v11  ;;  %v2333_v31 = vadd.f32 %v6037_v16, %v5519_v54  ;;  %v6534_v11 = vld [vmem:[#allocation5_spill] sm:$0xff] }
 0x214   : > { %v2613_v24 = vpop.f32.mrf.mxu1  ;;  %v2774_v17 = vpop.f32.mrf.mxu0 }
 0x215   : > { %v6041_v35 = vadd.f32 %v2613_v24, %v2325_v29  ;;  %v6044_v4 = vadd.f32 %v2774_v17, %v5746_v5 }
 0x216   : > { %v2615_v47 = vpop.f32.mrf.mxu1  ;;  %v2776_v12 = vpop.f32.mrf.mxu0 }
 0x217   : > { %6518 = vst [vmem:[#allocation26_spill] sm:$0xff] %v6041_v35  ;;  %v2336_v47 = vadd.f32 %v6037_v16, %v5523_v58 }
 0x218   : > { %v2616_v39 = vpop.f32.mrf.mxu1  ;;  %v2777_v34 = vpop.f32.mrf.mxu0 }
 0x219   : > { %v6048_v6 = vadd.f32 %v2616_v39, %v2328_v30  ;;  %v6051_v33 = vadd.f32 %v2777_v34, %v5755_v62 }
 0x21a   : > { %v2618_v42 = vpop.f32.mrf.mxu1  ;;  %v2779_v18 = vpop.f32.mrf.mxu0 }
 0x21b   : > { %6519 = vst [vmem:[#allocation27_spill] sm:$0xff] %v6048_v6  ;;  %v2341_v42 = vadd.f32 %v6037_v16, %v5531_v3  ;;  %v6537_v6 = vld [vmem:[#allocation6_spill] sm:$0xff] }
 0x21c   : > { %v2621_v26 = vpop.f32.mrf.mxu1  ;;  %v2782_v5 = vpop.f32.mrf.mxu0 }
 0x21d   : > { %v6055_v29 = vadd.f32 %v2621_v26, %v2333_v31  ;;  %v6058_v24 = vadd.f32 %v2782_v5, %v5764_v28 }
 0x21e   : > { %v2623_v46 = vpop.f32.mrf.mxu1  ;;  %v2784_v17 = vpop.f32.mrf.mxu0 }
 0x21f   : > { %6520 = vst [vmem:[#allocation28_spill] sm:$0xff] %v6055_v29  ;;  %v2344_v46 = vadd.f32 %v6037_v16, %v5535_v7  ;;  %v6528_v29 = vld [vmem:[#allocation3_spill] sm:$0xff] }
 0x220   : > { %v2624_v12 = vpop.f32.mrf.mxu1  ;;  %v2785_v62 = vpop.f32.mrf.mxu0 }
 0x221   : > { %v6062_v30 = vadd.f32 %v2624_v12, %v2336_v47  ;;  %v6065_v39 = vadd.f32 %v2785_v62, %v5773_v44  ;;  %v6524_v12 = vld [vmem:[#allocation10_spill] sm:$0xff] }
 0x222   : > { %v2626_v54 = vpop.f32.mrf.mxu1  ;;  %v2787_v34 = vpop.f32.mrf.mxu0 }
 0x223   : > { %6521 = vst [vmem:[#allocation29_spill] sm:$0xff] %v6062_v30  ;;  %v6525_v34 = vld [vmem:[#allocation2_spill] sm:$0xff] }
 0x224   : > { %v2629_v18 = vpop.f32.mrf.mxu1  ;;  %v2790_v28 = vpop.f32.mrf.mxu0 }
 0x225   : > { %v6069_v31 = vadd.f32 %v2629_v18, %v2341_v42  ;;  %v6072_v26 = vadd.f32 %v2790_v28, %v5782_v59  ;;  %v2349_v42 = vadd.f32 %v6037_v16, %v6525_v34 }
 0x226   : > { %v2631_v58 = vpop.f32.mrf.mxu1  ;;  %v2792_v5 = vpop.f32.mrf.mxu0 }
 0x227   : > { %6522 = vst [vmem:[#allocation30_spill] sm:$0xff] %v6069_v31  ;;  %v6527_v58 = vld [vmem:[#allocation11_spill] sm:$0xff]  ;;  %v6531_v31 = vld [vmem:[#allocation4_spill] sm:$0xff] }
 0x228   : > { %v2632_v17 = vpop.f32.mrf.mxu1  ;;  %v2793_v44 = vpop.f32.mrf.mxu0 }
 0x229   : > { %v6076_v47 = vadd.f32 %v2632_v17, %v2344_v46  ;;  %v6079_v62 = vadd.f32 %v2793_v44, %v6524_v12  ;;  %v2352_v46 = vadd.f32 %v6037_v16, %v6528_v29 }
 0x22a   : > { %v2634_v3 = vpop.f32.mrf.mxu1  ;;  %v2795_v54 = vpop.f32.mrf.mxu0 }
 0x22b   : > { %6523 = vst [vmem:[#allocation31_spill] sm:$0xff] %v6076_v47  ;;  %v6530_v3 = vld [vmem:[#allocation12_spill] sm:$0xff] }
 0x22c   : > { %v2637_v18 = vpop.f32.mrf.mxu1  ;;  %v2798_v59 = vpop.f32.mrf.mxu0 }
 0x22d   : > { %v6083_v28 = vadd.f32 %v2637_v18, %v2349_v42  ;;  %v6086_v5 = vadd.f32 %v2798_v59, %v6527_v58  ;;  %v2357_v42 = vadd.f32 %v6037_v16, %v6531_v31 }
 0x22e   : > { %v2639_v7 = vpop.f32.mrf.mxu1  ;;  %v2800_v30 = vpop.f32.mrf.mxu0 }
 0x22f   : > { %6526 = vst [vmem:[#allocation10_spill] sm:$0xff] %v6083_v28  ;;  %v6533_v30 = vld [vmem:[#allocation13_spill] sm:$0xff] }
 0x230   : > { %v2640_v17 = vpop.f32.mrf.mxu1  ;;  %v2801_v44 = vpop.f32.mrf.mxu0 }
 0x231   : > { %v6090_v12 = vadd.f32 %v2640_v17, %v2352_v46  ;;  %v6093_v54 = vadd.f32 %v2801_v44, %v6530_v3  ;;  %v2360_v46 = vadd.f32 %v6037_v16, %v6534_v11 }
 0x232   : > { %v2642_v34 = vpop.f32.mrf.mxu1  ;;  %v2803_v47 = vpop.f32.mrf.mxu0 }
 0x233   : > { %6529 = vst [vmem:[#allocation2_spill] sm:$0xff] %v6090_v12  ;;  %v6536_v47 = vld [vmem:[#allocation14_spill] sm:$0xff] }
 0x234   : > { %v2645_v18 = vpop.f32.mrf.mxu1  ;;  %v2806_v59 = vpop.f32.mrf.mxu0 }
 0x235   : > { %v6097_v58 = vadd.f32 %v2645_v18, %v2357_v42  ;;  %v6100_v7 = vadd.f32 %v2806_v59, %v6533_v30  ;;  %v2365_v42 = vadd.f32 %v6037_v16, %v6537_v6 }
 0x236   : > { %v2647_v29 = vpop.f32.mrf.mxu1  ;;  %v2808_v28 = vpop.f32.mrf.mxu0 }
 0x237   : > { %6532 = vst [vmem:[#allocation11_spill] sm:$0xff] %v6097_v58  ;;  %v6539_v28 = vld [vmem:[#allocation15_spill] sm:$0xff] }
 0x238   : > { %v2648_v17 = vpop.f32.mrf.mxu1  ;;  %v2809_v44 = vpop.f32.mrf.mxu0 }
 0x239   : > { %v6104_v3 = vadd.f32 %v2648_v17, %v2360_v46  ;;  %v6107_v34 = vadd.f32 %v2809_v44, %v6536_v47  ;;  %v2368_v46 = vadd.f32 %v6037_v16, %v6540_v52 }
 0x23a   : > { %v2650_v31 = vpop.f32.mrf.mxu1  ;;  %v2811_v12 = vpop.f32.mrf.mxu0 }
 0x23b   : > { %6535 = vst [vmem:[#allocation3_spill] sm:$0xff] %v6104_v3  ;;  %v6542_v12 = vld [vmem:[#allocation16_spill] sm:$0xff] }
 0x23c   : > { %v2653_v18 = vpop.f32.mrf.mxu1  ;;  %v2814_v59 = vpop.f32.mrf.mxu0 }
 0x23d   : > { %v6111_v30 = vadd.f32 %v2653_v18, %v2365_v42  ;;  %v6114_v29 = vadd.f32 %v2814_v59, %v6539_v28  ;;  %v3311_v42 = vlaneseq  ;;  %v6543_v18 = vld [vmem:[#allocation8_spill] sm:$0xff] }
 0x23e   : > { %v2655_v11 = vpop.f32.mrf.mxu1  ;;  %v2816_v58 = vpop.f32.mrf.mxu0  ;;  %v2373_v59 = vadd.f32 %v6037_v16, %v6543_v18 }
 0x23f   : > { %6538 = vst [vmem:[#allocation12_spill] sm:$0xff] %v6111_v30 }
 0x240   : > { %v2656_v17 = vpop.f32.mrf.mxu1  ;;  %v2817_v44 = vpop.f32.mrf.mxu0 }
 0x241   : > { %v6118_v47 = vadd.f32 %v2656_v17, %v2368_v46  ;;  %v6121_v31 = vadd.f32 %v2817_v44, %v6542_v12  ;;  %v6130_v17 = vshrl.u32 %v3311_v42, 7 }
 0x242   : > { %v2658_v6 = vpop.f32.mrf.mxu1  ;;  %v2819_v3 = vpop.f32.mrf.mxu0 }
 0x243   : > { %6541 = vst [vmem:[#allocation4_spill] sm:$0xff] %v6118_v47  ;;  %v6545_v47 = vld [vmem:[#allocation9_spill] sm:$0xff] }
 0x244   : > { %v2661_v28 = vpop.f32.mrf.mxu1  ;;  %v2822_v11 = vpop.f32.mrf.mxu0  ;;  %v2376_v44 = vadd.f32 %v6037_v16, %v6545_v47 }
 0x245   : > { %v6125_v58 = vadd.f32 %v2661_v28, %v2373_v59  ;;  %v6128_v52 = vadd.f32 %v2822_v11, %v5854_v13  ;;  %v3314_v28 = vadd.s32 16, %v6130_v17  ;;  %v3315_v13 = vadd.s32 24, %v6130_v17 }
 0x246   : > { %v2663_v30 = vpop.f32.mrf.mxu1  ;;  %v2824_v46 = vpop.f32.mrf.mxu0 }
 0x247   : > { %6544 = vst [vmem:[#allocation13_spill] sm:$0xff] %v6125_v58  ;;  %v6142_v30 = vstv %s4265_s11  ;;  %v3313_v46 = vadd.s32 8, %v6130_v17 }
 0x248   : > { %v2664_v12 = vpop.f32.mrf.mxu1  ;;  %v6134_v3 = vpop.f32.mrf.mxu0  ;;  %v3377_v58 = vadd.s32 %v6142_v30, %v6130_v17 }
 0x249   : > { %v6138_v6 = vadd.f32 %v2664_v12, %v2376_v44  ;;  %v3379_v44 = vadd.s32 %v6142_v30, %v3314_v28  ;;  %v3378_v19 = vadd.s32 %v6142_v30, %v3313_v46 }
 0x24a   : > { %v2666_v18 = vpop.f32.mrf.mxu1  ;;  %v2827_v59 = vpop.f32.mrf.mxu0  ;;  %vm3441_vm3 = vcmp.lt.s32.totalorder %v3377_v58, 1096 }
 0x24b   : > { %6546 = vst [vmem:[#allocation5_spill] sm:$0xff] %v6138_v6  ;;  %v3380_v59 = vadd.s32 %v6142_v30, %v3315_v13  ;;  %vm3443_vm1 = vcmp.lt.s32.totalorder %v3379_v44, 1096  ;;  %vm3442_vm4 = vcmp.lt.s32.totalorder %v3378_v19, 1096 }
 0x24c   : > { %v2830_v42 = vpop.f32.mrf.mxu0  ;;  %v4639_v11 = vpop.f32.mrf.mxu1 }
 0x24d   : > { %v6146_v16 = vadd.f32 %v2830_v42, %v5870_v57  ;;  %v3000_v47 = vadd.f32 %v4639_v11, %v5893_v37  ;;  %vm3444_vm2 = vcmp.lt.s32.totalorder %v3380_v59, 1096  ;;  %v3319_v42 = vadd.s32 56, %v6130_v17 }
 0x24e   : > { %v2832_v12 = vpop.f32.mrf.mxu0  ;;  %v2991_v18 = vpop.f32.mrf.mxu1 }
 0x24f   : > { %v2992_v6 = vadd.f32 %v2991_v18, %v5873_v49  ;;  %v3248_v8 = vmax.f32 %v3000_v47, 0.0  ;;  %v3318_v49 = vadd.s32 48, %v6130_v17  ;;  %v3384_v44 = vadd.s32 %v6142_v30, %v3319_v42 }
 0x250   : > { %v2833_v35 = vpop.f32.mrf.mxu0  ;;  %v4640_v48 = vpop.f32.mrf.mxu1  ;;  %v3322_v42 = vadd.s32 80, %v6130_v17 }
 0x251   : > { %v6156_v57 = vadd.f32 %v2833_v35, %v5880_v15  ;;  %v3003_v37 = vadd.f32 %v4640_v48, %v5903_v9  ;;  %v3246_v11 = vmax.f32 %v2992_v6, 0.0  ;;  %v3316_v9 = vadd.s32 32, %v6130_v17 }
 0x252   : > { %v2835_v28 = vpop.f32.mrf.mxu0  ;;  %v2994_v13 = vpop.f32.mrf.mxu1  ;;  %v3317_v48 = vadd.s32 40, %v6130_v17  ;;  %v3507_v35 = vsel %vm3443_vm1, %v3248_v8, 0.0  ;;  %vm3448_vm6 = vcmp.lt.s32.totalorder %v3384_v44, 1096 }
 0x253   : > { %v3249_v12 = vmax.f32 %v3003_v37, 0.0  ;;  %v2995_v18 = vadd.f32 %v2994_v13, %v5883_v55  ;;  %v3383_v28 = vadd.s32 %v6142_v30, %v3318_v49  ;;  %v3505_v8 = vsel %vm3441_vm3, %v3246_v11, 0.0 }
 0x254   : > { %v6163_v46 = vpop.f32.mrf.mxu0  ;;  %v4643_v15 = vpop.f32.mrf.mxu1 }
 0x255   : > { %v3508_v6 = vsel %vm3444_vm2, %v3249_v12, 0.0  ;;  %v3247_v55 = vmax.f32 %v2995_v18, 0.0  ;;  %v3016_v47 = vadd.f32 %v4643_v15, %v5933_v36  ;;  %v3381_v12 = vadd.s32 %v6142_v30, %v3316_v9 }
 0x256   : > { %v4404_v37 = vpack.c.bf16 %v3508_v6, %v3507_v35  ;;  %v2840_v13 = vpop.f32.mrf.mxu0  ;;  %v3007_v63 = vpop.f32.mrf.mxu1  ;;  %v3382_v15 = vadd.s32 %v6142_v30, %v3317_v48  ;;  %vm3447_vm5 = vcmp.lt.s32.totalorder %v3383_v28, 1096  ;;  %v3321_v6 = vadd.s32 72, %v6130_v17 }
 0x257   : > { %v3506_v22 = vsel %vm3442_vm4, %v3247_v55, 0.0  ;;  %v3008_v51 = vadd.f32 %v3007_v63, %v5913_v0  ;;  %v3252_v49 = vmax.f32 %v3016_v47, 0.0  ;;  %v3323_v0 = vadd.s32 88, %v6130_v17 }
 0x258   : > { %4556 = vst [vmem:[%s6171_s15 + $0x8] sm:$0xff] %v4404_v37   ;;  %v4399_v59 = vpack.c.bf16 %v3506_v22, %v3505_v8  ;;  %v6182_v18 = vpop.f32.mrf.mxu0  ;;  %v4644_v36 = vpop.f32.mrf.mxu1  ;;  %vm3445_vm7 = vcmp.lt.s32.totalorder %v3381_v12, 1096  ;;  %vm3446_vm8 = vcmp.lt.s32.totalorder %v3382_v15, 1096 }
 0x259   : > { %v3019_v35 = vadd.f32 %v4644_v36, %v5943_v61  ;;  %v3250_v22 = vmax.f32 %v3008_v51, 0.0  ;;  %v3320_v61 = vadd.s32 64, %v6130_v17  ;;  %v3511_v55 = vsel %vm3447_vm5, %v3252_v49, 0.0 }
 0x25a   : > { %4400 = vst [vmem:[%s6171_s15] sm:$0xff] %v4399_v59   ;;  %v2843_v58 = vpop.f32.mrf.mxu0  ;;  %v3010_v19 = vpop.f32.mrf.mxu1  ;;  %v3387_v51 = vadd.s32 %v6142_v30, %v3322_v42  ;;  %v3388_v8 = vadd.s32 %v6142_v30, %v3323_v0 }
 0x25b   : > { %v3253_v63 = vmax.f32 %v3019_v35, 0.0  ;;  %v3011_v11 = vadd.f32 %v3010_v19, %v5923_v25  ;;  %v3509_v59 = vsel %vm3445_vm7, %v3250_v22, 0.0  ;;  %v3385_v49 = vadd.s32 %v6142_v30, %v3320_v61 }
 0x25c   : > { %v6190_v9 = vpop.f32.mrf.mxu0  ;;  %v4647_v48 = vpop.f32.mrf.mxu1  ;;  %vm3451_vm9 = vcmp.lt.s32.totalorder %v3387_v51, 1096  ;;  %vm3452_vm10 = vcmp.lt.s32.totalorder %v3388_v8, 1096 }
 0x25d   : > { %v3512_v47 = vsel %vm3448_vm6, %v3253_v63, 0.0  ;;  %v3251_v37 = vmax.f32 %v3011_v11, 0.0  ;;  %v3032_v28 = vadd.f32 %v4647_v48, %v5973_v40  ;;  %v3386_v40 = vadd.s32 %v6142_v30, %v3321_v6 }
 0x25e   : > { %v4414_v13 = vpack.c.bf16 %v3512_v47, %v3511_v55  ;;  %v2848_v25 = vpop.f32.mrf.mxu0  ;;  %v3023_v44 = vpop.f32.mrf.mxu1  ;;  %v3326_v63 = vadd.s32 112, %v6130_v17  ;;  %vm3449_vm11 = vcmp.lt.s32.totalorder %v3385_v49, 1096  ;;  %v3325_v47 = vadd.s32 104, %v6130_v17 }
 0x25f   : > { %v3510_v12 = vsel %vm3446_vm8, %v3251_v37, 0.0  ;;  %v3024_v36 = vadd.f32 %v3023_v44, %v5953_v10  ;;  %v3256_v19 = vmax.f32 %v3032_v28, 0.0  ;;  %v3327_v10 = vadd.s32 120, %v6130_v17 }
 0x260   : > { %4558 = vst [vmem:[%s6171_s15 + $0x18] sm:$0xff] %v4414_v13   ;;  %v4409_v15 = vpack.c.bf16 %v3510_v12, %v3509_v59  ;;  %v6200_v35 = vpop.f32.mrf.mxu0  ;;  %v4648_v58 = vpop.f32.mrf.mxu1  ;;  %vm3450_vm12 = vcmp.lt.s32.totalorder %v3386_v40, 1096  ;;  %v3391_v44 = vadd.s32 %v6142_v30, %v3326_v63 }
 0x261   : > { %v3035_v42 = vadd.f32 %v4648_v58, %v5983_v32  ;;  %v3254_v11 = vmax.f32 %v3024_v36, 0.0  ;;  %v3324_v32 = vadd.s32 96, %v6130_v17  ;;  %v3515_v37 = vsel %vm3451_vm9, %v3256_v19, 0.0 }
 0x262   : > { %4557 = vst [vmem:[%s6171_s15 + $0x10] sm:$0xff] %v4409_v15   ;;  %v2851_v0 = vpop.f32.mrf.mxu0  ;;  %v3026_v22 = vpop.f32.mrf.mxu1  ;;  %v3392_v59 = vadd.s32 %v6142_v30, %v3327_v10  ;;  %vm3455_vm13 = vcmp.lt.s32.totalorder %v3391_v44, 1096  ;;  %v3330_v10 = vadd.s32 144, %v6130_v17 }
 0x263   : > { %v3257_v48 = vmax.f32 %v3035_v42, 0.0  ;;  %v3027_v61 = vadd.f32 %v3026_v22, %v5963_v60  ;;  %v3513_v12 = vsel %vm3449_vm11, %v3254_v11, 0.0  ;;  %v3389_v58 = vadd.s32 %v6142_v30, %v3324_v32 }
 0x264   : > { %v6208_v55 = vpop.f32.mrf.mxu0  ;;  %v4651_v6 = vpop.f32.mrf.mxu1  ;;  %vm3456_vm14 = vcmp.lt.s32.totalorder %v3392_v59, 1096  ;;  %v3395_v44 = vadd.s32 %v6142_v30, %v3330_v10 }
 0x265   : > { %v3516_v28 = vsel %vm3452_vm10, %v3257_v48, 0.0  ;;  %v3255_v13 = vmax.f32 %v3027_v61, 0.0  ;;  %v3048_v51 = vadd.f32 %v4651_v6, %v6011_v23  ;;  %v3390_v23 = vadd.s32 %v6142_v30, %v3325_v47 }
 0x266   : > { %v4424_v25 = vpack.c.bf16 %v3516_v28, %v3515_v37  ;;  %v2856_v60 = vpop.f32.mrf.mxu0  ;;  %v3039_v8 = vpop.f32.mrf.mxu1  ;;  %vm3453_vm15 = vcmp.lt.s32.totalorder %v3389_v58, 1096  ;;  %v3329_v47 = vadd.s32 136, %v6130_v17  ;;  %vm3459_vm1 = vcmp.lt.s32.totalorder %v3395_v44, 1096 }
 0x267   : > { %v3514_v36 = vsel %vm3450_vm12, %v3255_v13, 0.0  ;;  %v3040_v15 = vadd.f32 %v3039_v8, %v5993_v50  ;;  %v3260_v42 = vmax.f32 %v3048_v51, 0.0  ;;  %v3331_v50 = vadd.s32 152, %v6130_v17 }
 0x268   : > { %4560 = vst [vmem:[%s6171_s15 + $0x28] sm:$0xff] %v4424_v25   ;;  %v4419_v49 = vpack.c.bf16 %v3514_v36, %v3513_v12  ;;  %v6218_v40 = vpop.f32.mrf.mxu0  ;;  %v4652_v19 = vpop.f32.mrf.mxu1  ;;  %vm3454_vm0 = vcmp.lt.s32.totalorder %v3390_v23, 1096 }
 0x269   : > { %v3051_v0 = vadd.f32 %v4652_v19, %v6018_v27  ;;  %v3258_v11 = vmax.f32 %v3040_v15, 0.0  ;;  %v3328_v27 = vadd.s32 128, %v6130_v17  ;;  %v3519_v37 = vsel %vm3455_vm13, %v3260_v42, 0.0 }
 0x26a   : > { %4559 = vst [vmem:[%s6171_s15 + $0x20] sm:$0xff] %v4419_v49   ;;  %v2859_v22 = vpop.f32.mrf.mxu0  ;;  %v3042_v63 = vpop.f32.mrf.mxu1  ;;  %v3396_v8 = vadd.s32 %v6142_v30, %v3331_v50 }
 0x26b   : > { %v3261_v48 = vmax.f32 %v3051_v0, 0.0  ;;  %v3043_v61 = vadd.f32 %v3042_v63, %v6003_v20  ;;  %v3517_v59 = vsel %vm3453_vm15, %v3258_v11, 0.0  ;;  %v3393_v49 = vadd.s32 %v6142_v30, %v3328_v27 }
 0x26c   : > { %v6226_v6 = vpop.f32.mrf.mxu0  ;;  %v4655_v32 = vpop.f32.mrf.mxu1  ;;  %vm3460_vm2 = vcmp.lt.s32.totalorder %v3396_v8, 1096  ;;  %v3334_v63 = vadd.s32 176, %v6130_v17 }
 0x26d   : > { %v3520_v28 = vsel %vm3456_vm14, %v3261_v48, 0.0  ;;  %v3259_v13 = vmax.f32 %v3043_v61, 0.0  ;;  %v3064_v51 = vadd.f32 %v4655_v32, %v6044_v4  ;;  %v3394_v4 = vadd.s32 %v6142_v30, %v3329_v47 }
 0x26e   : > { %v4434_v25 = vpack.c.bf16 %v3520_v28, %v3519_v37  ;;  %v2864_v20 = vpop.f32.mrf.mxu0  ;;  %v3055_v60 = vpop.f32.mrf.mxu1  ;;  %vm3457_vm3 = vcmp.lt.s32.totalorder %v3393_v49, 1096  ;;  %v3333_v32 = vadd.s32 168, %v6130_v17 }
 0x26f   : > { %v3518_v12 = vsel %vm3454_vm0, %v3259_v13, 0.0  ;;  %v3056_v36 = vadd.f32 %v3055_v60, %v6025_v2  ;;  %v3264_v23 = vmax.f32 %v3064_v51, 0.0  ;;  %v3335_v2 = vadd.s32 184, %v6130_v17 }
 0x270   : > { %4562 = vst [vmem:[%s6171_s15 + $0x38] sm:$0xff] %v4434_v25   ;;  %v4429_v15 = vpack.c.bf16 %v3518_v12, %v3517_v59  ;;  %v6236_v58 = vpop.f32.mrf.mxu0  ;;  %v4656_v19 = vpop.f32.mrf.mxu1  ;;  %vm3458_vm4 = vcmp.lt.s32.totalorder %v3394_v4, 1096  ;;  %v3399_v51 = vadd.s32 %v6142_v30, %v3334_v63 }
 0x271   : > { %v3067_v42 = vadd.f32 %v4656_v19, %v6051_v33  ;;  %v3262_v10 = vmax.f32 %v3056_v36, 0.0  ;;  %v3332_v33 = vadd.s32 160, %v6130_v17  ;;  %v3523_v27 = vsel %vm3459_vm1, %v3264_v23, 0.0 }
 0x272   : > { %4561 = vst [vmem:[%s6171_s15 + $0x30] sm:$0xff] %v4429_v15   ;;  %v2867_v0 = vpop.f32.mrf.mxu0  ;;  %v3058_v22 = vpop.f32.mrf.mxu1  ;;  %v3400_v44 = vadd.s32 %v6142_v30, %v3335_v2  ;;  %vm3463_vm5 = vcmp.lt.s32.totalorder %v3399_v51, 1096  ;;  %v3336_v2 = vadd.s32 192, %v6130_v17 }
 0x273   : > { %v3265_v50 = vmax.f32 %v3067_v42, 0.0  ;;  %v3059_v11 = vadd.f32 %v3058_v22, %v6032_v53  ;;  %v3521_v20 = vsel %vm3457_vm3, %v3262_v10, 0.0  ;;  %v3397_v12 = vadd.s32 %v6142_v30, %v3332_v33 }
 0x274   : > { %v6244_v48 = vpop.f32.mrf.mxu0  ;;  %v4659_v61 = vpop.f32.mrf.mxu1  ;;  %vm3464_vm6 = vcmp.lt.s32.totalorder %v3400_v44, 1096  ;;  %v3338_v42 = vadd.s32 208, %v6130_v17 }
 0x275   : > { %v3524_v47 = vsel %vm3460_vm2, %v3265_v50, 0.0  ;;  %v3263_v37 = vmax.f32 %v3059_v11, 0.0  ;;  %v3080_v28 = vadd.f32 %v4659_v61, %v6072_v26  ;;  %v3398_v26 = vadd.s32 %v6142_v30, %v3333_v32 }
 0x276   : > { %v4444_v13 = vpack.c.bf16 %v3524_v47, %v3523_v27  ;;  %v2872_v53 = vpop.f32.mrf.mxu0  ;;  %v3071_v25 = vpop.f32.mrf.mxu1  ;;  %vm3461_vm7 = vcmp.lt.s32.totalorder %v3397_v12, 1096  ;;  %v3337_v50 = vadd.s32 200, %v6130_v17  ;;  %v3403_v47 = vadd.s32 %v6142_v30, %v3338_v42 }
 0x277   : > { %v3522_v60 = vsel %vm3458_vm4, %v3263_v37, 0.0  ;;  %v3072_v8 = vadd.f32 %v3071_v25, %v6058_v24  ;;  %v3268_v49 = vmax.f32 %v3080_v28, 0.0  ;;  %v3339_v24 = vadd.s32 216, %v6130_v17 }
 0x278   : > { %4564 = vst [vmem:[%s6171_s15 + $0x48] sm:$0xff] %v4444_v13   ;;  %v4439_v59 = vpack.c.bf16 %v3522_v60, %v3521_v20  ;;  %v6254_v36 = vpop.f32.mrf.mxu0  ;;  %v4660_v15 = vpop.f32.mrf.mxu1  ;;  %vm3462_vm8 = vcmp.lt.s32.totalorder %v3398_v26, 1096  ;;  %v3401_v25 = vadd.s32 %v6142_v30, %v3336_v2  ;;  %vm3467_vm9 = vcmp.lt.s32.totalorder %v3403_v47, 1096 }
 0x279   : > { %v3083_v19 = vadd.f32 %v4660_v15, %v6079_v62  ;;  %v3266_v0 = vmax.f32 %v3072_v8, 0.0  ;;  %v3527_v11 = vsel %vm3463_vm5, %v3268_v49, 0.0  ;;  %v3404_v28 = vadd.s32 %v6142_v30, %v3339_v24 }
 0x27a   : > { %4563 = vst [vmem:[%s6171_s15 + $0x40] sm:$0xff] %v4439_v59   ;;  %v2875_v4 = vpop.f32.mrf.mxu0  ;;  %v3074_v23 = vpop.f32.mrf.mxu1  ;;  %v3342_v8 = vadd.s32 240, %v6130_v17  ;;  %vm3465_vm11 = vcmp.lt.s32.totalorder %v3401_v25, 1096 }
 0x27b   : > { %v3269_v22 = vmax.f32 %v3083_v19, 0.0  ;;  %v3075_v63 = vadd.f32 %v3074_v23, %v6065_v39  ;;  %v3525_v13 = vsel %vm3461_vm7, %v3266_v0, 0.0  ;;  %vm3468_vm10 = vcmp.lt.s32.totalorder %v3404_v28, 1096 }
 0x27c   : > { %v6263_v10 = vpop.f32.mrf.mxu0  ;;  %v4663_v62 = vpop.f32.mrf.mxu1  ;;  %v3407_v24 = vadd.s32 %v6142_v30, %v3342_v8  ;;  %v3341_v0 = vadd.s32 232, %v6130_v17  ;;  %v3345_v8 = vadd.s32 264, %v6130_v17 }
 0x27d   : > { %v3528_v61 = vsel %vm3464_vm6, %v3269_v22, 0.0  ;;  %v3267_v33 = vmax.f32 %v3075_v63, 0.0  ;;  %v3096_v32 = vadd.f32 %v4663_v62, %v6100_v7  ;;  %v3402_v7 = vadd.s32 %v6142_v30, %v3337_v50 }
 0x27e   : > { %v4454_v27 = vpack.c.bf16 %v3528_v61, %v3527_v11  ;;  %v2880_v39 = vpop.f32.mrf.mxu0  ;;  %v3087_v37 = vpop.f32.mrf.mxu1  ;;  %vm3471_vm13 = vcmp.lt.s32.totalorder %v3407_v24, 1096 }
 0x27f   : > { %v3526_v51 = vsel %vm3462_vm8, %v3267_v33, 0.0  ;;  %v3088_v53 = vadd.f32 %v3087_v37, %v6086_v5  ;;  %v3272_v59 = vmax.f32 %v3096_v32, 0.0  ;;  %v3343_v5 = vadd.s32 248, %v6130_v17  ;;  %v6547_v33 = vld [vmem:[#allocation17_spill] sm:$0xff] }
 0x280   : > { %4566 = vst [vmem:[%s6171_s15 + $0x58] sm:$0xff] %v4454_v27   ;;  %v4449_v44 = vpack.c.bf16 %v3526_v51, %v3525_v13  ;;  %v6272_v20 = vpop.f32.mrf.mxu0  ;;  %v4664_v60 = vpop.f32.mrf.mxu1  ;;  %vm3466_vm12 = vcmp.lt.s32.totalorder %v3402_v7, 1096  ;;  %v2826_v32 = vadd.f32 %v6134_v3, %v6547_v33  ;;  %v3406_v51 = vadd.s32 %v6142_v30, %v3341_v0 }
 0x281   : > { %v3099_v12 = vadd.f32 %v4664_v60, %v6107_v34  ;;  %v3270_v49 = vmax.f32 %v3088_v53, 0.0  ;;  %v3340_v34 = vadd.s32 224, %v6130_v17  ;;  %v3531_v22 = vsel %vm3467_vm9, %v3272_v59, 0.0 }
 0x282   : > { %4565 = vst [vmem:[%s6171_s15 + $0x50] sm:$0xff] %v4449_v44   ;;  %v2883_v15 = vpop.f32.mrf.mxu0  ;;  %v3090_v26 = vpop.f32.mrf.mxu1  ;;  %v3346_v53 = vadd.s32 272, %v6130_v17  ;;  %v3347_v7 = vadd.s32 280, %v6130_v17  ;;  %v2839_v59 = vadd.f32 %v6163_v46, %v5890_v1  ;;  %vm3470_vm0 = vcmp.lt.s32.totalorder %v3406_v51, 1096 }
 0x283   : > { %v3273_v19 = vmax.f32 %v3099_v12, 0.0  ;;  %v3091_v4 = vadd.f32 %v3090_v26, %v6093_v54  ;;  %v3408_v54 = vadd.s32 %v6142_v30, %v3343_v5  ;;  %v3529_v27 = vsel %vm3465_vm11, %v3270_v49, 0.0 }
 0x284   : > { %v6280_v23 = vpop.f32.mrf.mxu0  ;;  %v4667_v42 = vpop.f32.mrf.mxu1  ;;  %v3405_v28 = vadd.s32 %v6142_v30, %v3340_v34  ;;  %v2847_v51 = vadd.f32 %v6190_v9, %v5910_v14  ;;  %v2858_v9 = vadd.f32 %v6218_v40, %v5940_v38 }
 0x285   : > { %v3532_v63 = vsel %vm3468_vm10, %v3273_v19, 0.0  ;;  %v3271_v2 = vmax.f32 %v3091_v4, 0.0  ;;  %v3112_v62 = vadd.f32 %v4667_v42, %v6128_v52  ;;  %vm3472_vm14 = vcmp.lt.s32.totalorder %v3408_v54, 1096 }
 0x286   : > { %v4464_v50 = vpack.c.bf16 %v3532_v63, %v3531_v22  ;;  %v2888_v11 = vpop.f32.mrf.mxu0  ;;  %v3103_v61 = vpop.f32.mrf.mxu1  ;;  %vm3469_vm15 = vcmp.lt.s32.totalorder %v3405_v28, 1096  ;;  %v3411_v19 = vadd.s32 %v6142_v30, %v3346_v53  ;;  %v3412_v63 = vadd.s32 %v6142_v30, %v3347_v7 }
 0x287   : > { %v3530_v47 = vsel %vm3466_vm12, %v3271_v2, 0.0  ;;  %v3104_v39 = vadd.f32 %v3103_v61, %v6114_v29  ;;  %v3276_v44 = vmax.f32 %v3112_v62, 0.0  ;;  %v3344_v29 = vadd.s32 256, %v6130_v17 }
 0x288   : > { %4568 = vst [vmem:[%s6171_s15 + $0x68] sm:$0xff] %v4464_v50   ;;  %v4459_v37 = vpack.c.bf16 %v3530_v47, %v3529_v27  ;;  %v6294_v52 = vpop.f32.mrf.mxu0  ;;  %v4668_v13 = vpop.f32.mrf.mxu1  ;;  %v3410_v2 = vadd.s32 %v6142_v30, %v3345_v8  ;;  %v2842_v62 = vadd.f32 %v6182_v18, %v5900_v56  ;;  %vm3475_vm1 = vcmp.lt.s32.totalorder %v3411_v19, 1096 }
 0x289   : > { %v3115_v3 = vadd.f32 %v4668_v13, %v2826_v32  ;;  %v3274_v12 = vmax.f32 %v3104_v39, 0.0  ;;  %v3535_v4 = vsel %vm3471_vm13, %v3276_v44, 0.0  ;;  %v3350_v32 = vadd.s32 304, %v6130_v17 }
 0x28a   : > { %4567 = vst [vmem:[%s6171_s15 + $0x60] sm:$0xff] %v4459_v37   ;;  %v2891_v25 = vpop.f32.mrf.mxu0  ;;  %v3106_v60 = vpop.f32.mrf.mxu1  ;;  %vm3476_vm3 = vcmp.lt.s32.totalorder %v3412_v63, 1096  ;;  %vm3474_vm4 = vcmp.lt.s32.totalorder %v3410_v2, 1096  ;;  %v3351_v39 = vadd.s32 312, %v6130_v17  ;;  %v3355_v63 = vadd.s32 344, %v6130_v17 }
 0x28b   : > { %v3277_v15 = vmax.f32 %v3115_v3, 0.0  ;;  %v3107_v26 = vadd.f32 %v3106_v60, %v6121_v31  ;;  %v3409_v31 = vadd.s32 %v6142_v30, %v3344_v29  ;;  %v3533_v24 = vsel %vm3469_vm15, %v3274_v12, 0.0 }
 0x28c   : > { %v6305_v5 = vpop.f32.mrf.mxu0  ;;  %v4671_v49 = vpop.f32.mrf.mxu1  ;;  %v3415_v3 = vadd.s32 %v6142_v30, %v3350_v32  ;;  %v3348_v25 = vadd.s32 288, %v6130_v17  ;;  %v3349_v60 = vadd.s32 296, %v6130_v17  ;;  %v3416_v14 = vadd.s32 %v6142_v30, %v3351_v39 }
 0x28d   : > { %v3536_v42 = vsel %vm3472_vm14, %v3277_v15, 0.0  ;;  %v3275_v34 = vmax.f32 %v3107_v26, 0.0  ;;  %v3128_v0 = vadd.f32 %v4671_v49, %v2839_v59  ;;  %vm3473_vm2 = vcmp.lt.s32.totalorder %v3409_v31, 1096 }
 0x28e   : > { %v4474_v22 = vpack.c.bf16 %v3536_v42, %v3535_v4  ;;  %v2896_v1 = vpop.f32.mrf.mxu0  ;;  %v3119_v46 = vpop.f32.mrf.mxu1  ;;  %v3413_v19 = vadd.s32 %v6142_v30, %v3348_v25  ;;  %vm3479_vm5 = vcmp.lt.s32.totalorder %v3415_v3, 1096  ;;  %vm3480_vm6 = vcmp.lt.s32.totalorder %v3416_v14, 1096 }
 0x28f   : > { %v3534_v50 = vsel %vm3470_vm0, %v3275_v34, 0.0  ;;  %v3120_v11 = vadd.f32 %v3119_v46, %v6146_v16  ;;  %v3280_v27 = vmax.f32 %v3128_v0, 0.0  ;;  %v2855_v16 = vadd.f32 %v6208_v55, %v5930_v21 }
 0x290   : > { %4570 = vst [vmem:[%s6171_s15 + $0x78] sm:$0xff] %v4474_v22   ;;  %v4469_v61 = vpack.c.bf16 %v3534_v50, %v3533_v24  ;;  %v6319_v54 = vpop.f32.mrf.mxu0  ;;  %v4672_v33 = vpop.f32.mrf.mxu1  ;;  %v3414_v34 = vadd.s32 %v6142_v30, %v3349_v60  ;;  %v3354_v0 = vadd.s32 336, %v6130_v17  ;;  %v2850_v22 = vadd.f32 %v6200_v35, %v5920_v41 }
 0x291   : > { %v3131_v47 = vadd.f32 %v4672_v33, %v2842_v62  ;;  %v3278_v37 = vmax.f32 %v3120_v11, 0.0  ;;  %v3539_v29 = vsel %vm3475_vm1, %v3280_v27, 0.0  ;;  %v3352_v31 = vadd.s32 320, %v6130_v17 }
 0x292   : > { %4569 = vst [vmem:[%s6171_s15 + $0x70] sm:$0xff] %v4469_v61   ;;  %v2899_v56 = vpop.f32.mrf.mxu0  ;;  %v3122_v18 = vpop.f32.mrf.mxu1  ;;  %v3353_v2 = vadd.s32 328, %v6130_v17  ;;  %v2871_v62 = vadd.f32 %v6244_v48, %v5970_v43  ;;  %v2863_v41 = vadd.f32 %v6226_v6, %v5950_v45  ;;  %vm3477_vm7 = vcmp.lt.s32.totalorder %v3413_v19, 1096 }
 0x293   : > { %v3281_v28 = vmax.f32 %v3131_v47, 0.0  ;;  %v3123_v13 = vadd.f32 %v3122_v18, %v6156_v57  ;;  %v3537_v12 = vsel %vm3473_vm2, %v3278_v37, 0.0  ;;  %vm3478_vm8 = vcmp.lt.s32.totalorder %v3414_v34, 1096 }
 0x294   : > { %v6329_v53 = vpop.f32.mrf.mxu0  ;;  %v4675_v44 = vpop.f32.mrf.mxu1  ;;  %v3419_v33 = vadd.s32 %v6142_v30, %v3354_v0  ;;  %v3417_v39 = vadd.s32 %v6142_v30, %v3352_v31  ;;  %v3420_v45 = vadd.s32 %v6142_v30, %v3355_v63  ;;  %v3418_v6 = vadd.s32 %v6142_v30, %v3353_v2  ;;  %v6552_v63 = vld [vmem:[#allocation23_spill] sm:$0xff] }
 0x295   : > { %v3540_v21 = vsel %vm3476_vm3, %v3281_v28, 0.0  ;;  %v3279_v55 = vmax.f32 %v3123_v13, 0.0  ;;  %v3144_v7 = vadd.f32 %v4675_v44, %v2855_v16  ;;  %v6548_v16 = vld [vmem:[#allocation19_spill] sm:$0xff]  ;;  %v3358_v60 = vadd.s32 368, %v6130_v17 }
 0x296   : > { %v4484_v57 = vpack.c.bf16 %v3540_v21, %v3539_v29  ;;  %v2904_v8 = vpop.f32.mrf.mxu0  ;;  %v3135_v59 = vpop.f32.mrf.mxu1  ;;  %v2874_v37 = vadd.f32 %v6254_v36, %v6548_v16  ;;  %v6549_v29 = vld [vmem:[#allocation18_spill] sm:$0xff]  ;;  %vm3483_vm9 = vcmp.lt.s32.totalorder %v3419_v33, 1096  ;;  %vm3481_vm10 = vcmp.lt.s32.totalorder %v3417_v39, 1096 }
 0x297   : > { %v3538_v15 = vsel %vm3474_vm4, %v3279_v55, 0.0  ;;  %v3136_v26 = vadd.f32 %v3135_v59, %v2847_v51  ;;  %v3284_v38 = vmax.f32 %v3144_v7, 0.0  ;;  %v2866_v21 = vadd.f32 %v6236_v58, %v6549_v29  ;;  %v6550_v59 = vld [vmem:[#allocation22_spill] sm:$0xff] }
 0x298   : > { %4572 = vst [vmem:[%s6171_s15 + $0x88] sm:$0xff] %v4484_v57   ;;  %v4479_v49 = vpack.c.bf16 %v3538_v15, %v3537_v12  ;;  %v6343_v4 = vpop.f32.mrf.mxu0  ;;  %v4676_v42 = vpop.f32.mrf.mxu1  ;;  %vm3484_vm11 = vcmp.lt.s32.totalorder %v3420_v45, 1096  ;;  %vm3482_vm12 = vcmp.lt.s32.totalorder %v3418_v6, 1096  ;;  %v3359_v8 = vadd.s32 376, %v6130_v17  ;;  %v6554_v16 = vld [vmem:[#allocation26_spill] sm:$0xff] }
 0x299   : > { %v3147_v40 = vadd.f32 %v4676_v42, %v2858_v9  ;;  %v3282_v24 = vmax.f32 %v3136_v26, 0.0  ;;  %v3543_v32 = vsel %vm3479_vm5, %v3284_v38, 0.0  ;;  %v2887_v14 = vadd.f32 %v6280_v23, %v6550_v59  ;;  %v6551_v26 = vld [vmem:[#allocation20_spill] sm:$0xff] }
 0x29a   : > { %4571 = vst [vmem:[%s6171_s15 + $0x80] sm:$0xff] %v4479_v49   ;;  %v2907_v1 = vpop.f32.mrf.mxu0  ;;  %v3138_v46 = vpop.f32.mrf.mxu1  ;;  %v2879_v58 = vadd.f32 %v6263_v10, %v6551_v26  ;;  %v3423_v42 = vadd.s32 %v6142_v30, %v3358_v60  ;;  %v3356_v34 = vadd.s32 352, %v6130_v17  ;;  %v3357_v0 = vadd.s32 360, %v6130_v17 }
 0x29b   : > { %v3285_v50 = vmax.f32 %v3147_v40, 0.0  ;;  %v3139_v11 = vadd.f32 %v3138_v46, %v2850_v22  ;;  %v3541_v28 = vsel %vm3477_vm7, %v3282_v24, 0.0  ;;  %v3424_v10 = vadd.s32 %v6142_v30, %v3359_v8 }
 0x29c   : > { %v6357_v35 = vpop.f32.mrf.mxu0  ;;  %v4679_v61 = vpop.f32.mrf.mxu1  ;;  %v2890_v2 = vadd.f32 %v6294_v52, %v6552_v63  ;;  %vm3487_vm13 = vcmp.lt.s32.totalorder %v3423_v42, 1096  ;;  %v3360_v39 = vadd.s32 384, %v6130_v17  ;;  %v3363_v45 = vadd.s32 408, %v6130_v17 }
 0x29d   : > { %v3544_v27 = vsel %vm3480_vm6, %v3285_v50, 0.0  ;;  %v3283_v47 = vmax.f32 %v3139_v11, 0.0  ;;  %v3160_v43 = vadd.f32 %v4679_v61, %v2871_v62  ;;  %vm3488_vm14 = vcmp.lt.s32.totalorder %v3424_v10, 1096 }
 0x29e   : > { %v4494_v48 = vpack.c.bf16 %v3544_v27, %v3543_v32  ;;  %v2912_v56 = vpop.f32.mrf.mxu0  ;;  %v3151_v18 = vpop.f32.mrf.mxu1  ;;  %v3422_v32 = vadd.s32 %v6142_v30, %v3357_v0  ;;  %v3362_v27 = vadd.s32 400, %v6130_v17  ;;  %v3361_v6 = vadd.s32 392, %v6130_v17 }
 0x29f   : > { %v3542_v13 = vsel %vm3478_vm8, %v3283_v47, 0.0  ;;  %v3152_v51 = vadd.f32 %v3151_v18, %v2863_v41  ;;  %v3288_v55 = vmax.f32 %v3160_v43, 0.0  ;;  %v3421_v41 = vadd.s32 %v6142_v30, %v3356_v34  ;;  %v6553_v47 = vld [vmem:[#allocation21_spill] sm:$0xff] }
 0x2a0   : > { %4574 = vst [vmem:[%s6171_s15 + $0x98] sm:$0xff] %v4494_v48   ;;  %v4489_v44 = vpack.c.bf16 %v3542_v13, %v3541_v28  ;;  %v6370_v3 = vpop.f32.mrf.mxu0  ;;  %v4680_v25 = vpop.f32.mrf.mxu1  ;;  %v2882_v43 = vadd.f32 %v6272_v20, %v6553_v47  ;;  %v6555_v20 = vld [vmem:[#allocation24_spill] sm:$0xff]  ;;  %vm3486_vm0 = vcmp.lt.s32.totalorder %v3422_v32, 1096  ;;  %v3427_v29 = vadd.s32 %v6142_v30, %v3362_v27 }
 0x2a1   : > { %v3163_v7 = vadd.f32 %v4680_v25, %v2874_v37  ;;  %v3286_v9 = vmax.f32 %v3152_v51, 0.0  ;;  %v3547_v22 = vsel %vm3483_vm9, %v3288_v55, 0.0  ;;  %v2903_v37 = vadd.f32 %v6329_v53, %v6554_v16 }
 0x2a2   : > { %4573 = vst [vmem:[%s6171_s15 + $0x90] sm:$0xff] %v4489_v44   ;;  %v2915_v36 = vpop.f32.mrf.mxu0  ;;  %v3154_v57 = vpop.f32.mrf.mxu1  ;;  %v2895_v44 = vadd.f32 %v6305_v5, %v6555_v20  ;;  %vm3485_vm15 = vcmp.lt.s32.totalorder %v3421_v41, 1096  ;;  %v3425_v59 = vadd.s32 %v6142_v30, %v3360_v39  ;;  %v3428_v5 = vadd.s32 %v6142_v30, %v3363_v45 }
 0x2a3   : > { %v3289_v12 = vmax.f32 %v3163_v7, 0.0  ;;  %v3155_v15 = vadd.f32 %v3154_v57, %v2866_v21  ;;  %v3545_v62 = vsel %vm3481_vm10, %v3286_v9, 0.0  ;;  %v6556_v9 = vld [vmem:[#allocation27_spill] sm:$0xff]  ;;  %v3366_v0 = vadd.s32 432, %v6130_v17 }
 0x2a4   : > { %v6381_v49 = vpop.f32.mrf.mxu0  ;;  %v4683_v19 = vpop.f32.mrf.mxu1  ;;  %vm3491_vm1 = vcmp.lt.s32.totalorder %v3427_v29, 1096  ;;  %vm3489_vm2 = vcmp.lt.s32.totalorder %v3425_v59, 1096  ;;  %vm3492_vm3 = vcmp.lt.s32.totalorder %v3428_v5, 1096  ;;  %v3365_v32 = vadd.s32 424, %v6130_v17 }
 0x2a5   : > { %v3548_v23 = vsel %vm3484_vm11, %v3289_v12, 0.0  ;;  %v3287_v38 = vmax.f32 %v3155_v15, 0.0  ;;  %v3176_v40 = vadd.f32 %v4683_v19, %v2887_v14  ;;  %v3426_v14 = vadd.s32 %v6142_v30, %v3361_v6 }
 0x2a6   : > { %v4504_v1 = vpack.c.bf16 %v3548_v23, %v3547_v22  ;;  %v2920_v46 = vpop.f32.mrf.mxu0  ;;  %v3167_v31 = vpop.f32.mrf.mxu1  ;;  %v2906_v12 = vadd.f32 %v6343_v4, %v6556_v9  ;;  %v6557_v22 = vld [vmem:[#allocation25_spill] sm:$0xff]  ;;  %v3431_v41 = vadd.s32 %v6142_v30, %v3366_v0  ;;  %v3430_v20 = vadd.s32 %v6142_v30, %v3365_v32 }
 0x2a7   : > { %v3546_v24 = vsel %vm3482_vm12, %v3287_v38, 0.0  ;;  %v3168_v50 = vadd.f32 %v3167_v31, %v2879_v58  ;;  %v3292_v52 = vmax.f32 %v3176_v40, 0.0  ;;  %v2898_v23 = vadd.f32 %v6319_v54, %v6557_v22  ;;  %v6558_v31 = vld [vmem:[#allocation30_spill] sm:$0xff] }
 0x2a8   : > { %4576 = vst [vmem:[%s6171_s15 + $0xa8] sm:$0xff] %v4504_v1   ;;  %v4499_v11 = vpack.c.bf16 %v3546_v24, %v3545_v62  ;;  %v6395_v61 = vpop.f32.mrf.mxu0  ;;  %v4684_v33 = vpop.f32.mrf.mxu1  ;;  %vm3490_vm4 = vcmp.lt.s32.totalorder %v3426_v14, 1096  ;;  %v3367_v46 = vadd.s32 440, %v6130_v17  ;;  %v2919_v10 = vadd.f32 %v6381_v49, %v6558_v31  ;;  %v6559_v24 = vld [vmem:[#allocation28_spill] sm:$0xff]  ;;  %v6564_v31 = vld [vmem:[#allocation3_spill] sm:$0xff] }
 0x2a9   : > { %v3179_v48 = vadd.f32 %v4684_v33, %v2890_v2  ;;  %v3290_v28 = vmax.f32 %v3168_v50, 0.0  ;;  %v3551_v21 = vsel %vm3487_vm13, %v3292_v52, 0.0  ;;  %v2911_v54 = vadd.f32 %v6357_v35, %v6559_v24 }
 0x2aa   : > { %4575 = vst [vmem:[%s6171_s15 + $0xa0] sm:$0xff] %v4499_v11   ;;  %v2923_v56 = vpop.f32.mrf.mxu0  ;;  %v3170_v18 = vpop.f32.mrf.mxu1  ;;  %v3364_v33 = vadd.s32 416, %v6130_v17  ;;  %v3432_v35 = vadd.s32 %v6142_v30, %v3367_v46  ;;  %vm3495_vm5 = vcmp.lt.s32.totalorder %v3431_v41, 1096  ;;  %vm3494_vm8 = vcmp.lt.s32.totalorder %v3430_v20, 1096 }
 0x2ab   : > { %v3293_v13 = vmax.f32 %v3179_v48, 0.0  ;;  %v3171_v51 = vadd.f32 %v3170_v18, %v2882_v43  ;;  %v3549_v15 = vsel %vm3485_vm15, %v3290_v28, 0.0  ;;  %v6560_v18 = vld [vmem:[#allocation31_spill] sm:$0xff] }
 0x2ac   : > { %v6409_v25 = vpop.f32.mrf.mxu0  ;;  %v4687_v60 = vpop.f32.mrf.mxu1  ;;  %v2922_v39 = vadd.f32 %v6395_v61, %v6560_v18  ;;  %v3429_v28 = vadd.s32 %v6142_v30, %v3364_v33  ;;  %vm3496_vm6 = vcmp.lt.s32.totalorder %v3432_v35, 1096 }
 0x2ad   : > { %v3552_v55 = vsel %vm3488_vm14, %v3293_v13, 0.0  ;;  %v3291_v7 = vmax.f32 %v3171_v51, 0.0  ;;  %v3192_v53 = vadd.f32 %v4687_v60, %v2903_v37  ;;  %v6561_v60 = vld [vmem:[#allocation29_spill] sm:$0xff] }
 0x2ae   : > { %v4514_v36 = vpack.c.bf16 %v3552_v55, %v3551_v21  ;;  %v2928_v57 = vpop.f32.mrf.mxu0  ;;  %v3183_v8 = vpop.f32.mrf.mxu1  ;;  %v2914_v29 = vadd.f32 %v6370_v3, %v6561_v60  ;;  %vm3493_vm7 = vcmp.lt.s32.totalorder %v3429_v28, 1096  ;;  %v6567_v28 = vld [vmem:[#allocation13_spill] sm:$0xff] }
 0x2af   : > { %v3550_v26 = vsel %vm3486_vm0, %v3291_v7, 0.0  ;;  %v3184_v58 = vadd.f32 %v3183_v8, %v2895_v44  ;;  %v3296_v38 = vmax.f32 %v3192_v53, 0.0  ;;  %v3370_v44 = vadd.s32 464, %v6130_v17  ;;  %v6562_v8 = vld [vmem:[#allocation11_spill] sm:$0xff] }
 0x2b0   : > { %4578 = vst [vmem:[%s6171_s15 + $0xb8] sm:$0xff] %v4514_v36   ;;  %v4509_v19 = vpack.c.bf16 %v3550_v26, %v3549_v15  ;;  %v6422_v42 = vpop.f32.mrf.mxu0  ;;  %v4688_v34 = vpop.f32.mrf.mxu1  ;;  %v3368_v53 = vadd.s32 448, %v6130_v17  ;;  %v3371_v36 = vadd.s32 472, %v6130_v17  ;;  %v3369_v57 = vadd.s32 456, %v6130_v17 }
 0x2b1   : > { %v3195_v40 = vadd.f32 %v4688_v34, %v2906_v12  ;;  %v3294_v63 = vmax.f32 %v3184_v58, 0.0  ;;  %v3555_v27 = vsel %vm3491_vm1, %v3296_v38, 0.0  ;;  %v6563_v12 = vld [vmem:[#allocation10_spill] sm:$0xff]  ;;  %v3435_v58 = vadd.s32 %v6142_v30, %v3370_v44 }
 0x2b2   : > { %4577 = vst [vmem:[%s6171_s15 + $0xb0] sm:$0xff] %v4509_v19   ;;  %v2931_v4 = vpop.f32.mrf.mxu0  ;;  %v3186_v1 = vpop.f32.mrf.mxu1  ;;  %v2927_v3 = vadd.f32 %v6409_v25, %v6563_v12  ;;  %v3436_v25 = vadd.s32 %v6142_v30, %v3371_v36 }
 0x2b3   : > { %v3297_v2 = vmax.f32 %v3195_v40, 0.0  ;;  %v3187_v62 = vadd.f32 %v3186_v1, %v2898_v23  ;;  %v3553_v45 = vsel %vm3489_vm2, %v3294_v63, 0.0  ;;  %v3433_v4 = vadd.s32 %v6142_v30, %v3368_v53 }
 0x2b4   : > { %v2934_v50 = vpop.f32.mrf.mxu0  ;;  %v4691_v11 = vpop.f32.mrf.mxu1  ;;  %v3434_v1 = vadd.s32 %v6142_v30, %v3369_v57  ;;  %vm3499_vm9 = vcmp.lt.s32.totalorder %v3435_v58, 1096  ;;  %vm3500_vm11 = vcmp.lt.s32.totalorder %v3436_v25, 1096 }
 0x2b5   : > { %v3556_v47 = vsel %vm3492_vm3, %v3297_v2, 0.0  ;;  %v3295_v49 = vmax.f32 %v3187_v62, 0.0  ;;  %v3208_v43 = vadd.f32 %v4691_v11, %v2919_v10  ;;  %v2935_v59 = vadd.f32 %v2934_v50, %v6562_v8  ;;  %v6565_v50 = vld [vmem:[#allocation2_spill] sm:$0xff] }
 0x2b6   : > { %v4524_v52 = vpack.c.bf16 %v3556_v47, %v3555_v27  ;;  %v2936_v48 = vpop.f32.mrf.mxu0  ;;  %v3199_v56 = vpop.f32.mrf.mxu1  ;;  %v2930_v11 = vadd.f32 %v6422_v42, %v6565_v50  ;;  %vm3497_vm10 = vcmp.lt.s32.totalorder %v3433_v4, 1096  ;;  %v3374_v47 = vadd.s32 496, %v6130_v17 }
 0x2b7   : > { %v3554_v6 = vsel %vm3490_vm4, %v3295_v49, 0.0  ;;  %v3200_v16 = vadd.f32 %v3199_v56, %v2911_v54  ;;  %v3300_v21 = vmax.f32 %v3208_v43, 0.0  ;;  %vm3498_vm12 = vcmp.lt.s32.totalorder %v3434_v1, 1096  ;;  %v6566_v48 = vld [vmem:[#allocation12_spill] sm:$0xff] }
 0x2b8   : > { %4580 = vst [vmem:[%s6171_s15 + $0xc8] sm:$0xff] %v4524_v52   ;;  %v4519_v37 = vpack.c.bf16 %v3554_v6, %v3553_v45  ;;  %v2937_v13 = vpop.f32.mrf.mxu0  ;;  %v4692_v51 = vpop.f32.mrf.mxu1  ;;  %v3372_v42 = vadd.s32 480, %v6130_v17  ;;  %v3373_v45 = vadd.s32 488, %v6130_v17  ;;  %v3439_v20 = vadd.s32 %v6142_v30, %v3374_v47 }
 0x2b9   : > { %v3211_v61 = vadd.f32 %v4692_v51, %v2922_v39  ;;  %v3298_v5 = vmax.f32 %v3200_v16, 0.0  ;;  %v3559_v19 = vsel %vm3495_vm5, %v3300_v21, 0.0  ;;  %v2938_v10 = vadd.f32 %v2937_v13, %v6564_v31 }
 0x2ba   : > { %4579 = vst [vmem:[%s6171_s15 + $0xc0] sm:$0xff] %v4519_v37   ;;  %v2939_v55 = vpop.f32.mrf.mxu0  ;;  %v3202_v7 = vpop.f32.mrf.mxu1  ;;  %v3375_v39 = vadd.s32 504, %v6130_v17  ;;  %v3438_v8 = vadd.s32 %v6142_v30, %v3373_v45  ;;  %vm3503_vm13 = vcmp.lt.s32.totalorder %v3439_v20, 1096 }
 0x2bb   : > { %v3301_v14 = vmax.f32 %v3211_v61, 0.0  ;;  %v3203_v9 = vadd.f32 %v3202_v7, %v2914_v29  ;;  %v3557_v46 = vsel %vm3493_vm7, %v3298_v5, 0.0  ;;  %v3437_v7 = vadd.s32 %v6142_v30, %v3372_v42 }
 0x2bc   : > { %v2942_v15 = vpop.f32.mrf.mxu0  ;;  %v4695_v26 = vpop.f32.mrf.mxu1  ;;  %v3440_v57 = vadd.s32 %v6142_v30, %v3375_v39  ;;  %vm3502_vm0 = vcmp.lt.s32.totalorder %v3438_v8, 1096 }
 0x2bd   : > { %v3560_v34 = vsel %vm3496_vm6, %v3301_v14, 0.0  ;;  %v3299_v0 = vmax.f32 %v3203_v9, 0.0  ;;  %v3224_v22 = vadd.f32 %v4695_v26, %v2935_v59  ;;  %v2943_v56 = vadd.f32 %v2942_v15, %v6566_v48  ;;  %v6568_v59 = vld [vmem:[#allocation4_spill] sm:$0xff]  ;;  %v6569_v14 = vld [vmem:[#allocation5_spill] sm:$0xff] }
 0x2be   : > { %v4534_v23 = vpack.c.bf16 %v3560_v34, %v3559_v19  ;;  %v2944_v38 = vpop.f32.mrf.mxu0  ;;  %v3215_v40 = vpop.f32.mrf.mxu1  ;;  %vm3501_vm14 = vcmp.lt.s32.totalorder %v3437_v7, 1096  ;;  %vm3504_vm15 = vcmp.lt.s32.totalorder %v3440_v57, 1096 }
 0x2bf   : > { %v3558_v63 = vsel %vm3494_vm8, %v3299_v0, 0.0  ;;  %v3216_v2 = vadd.f32 %v3215_v40, %v2927_v3  ;;  %v3304_v41 = vmax.f32 %v3224_v22, 0.0 }
 0x2c0   : > { %4582 = vst [vmem:[%s6171_s15 + $0xd8] sm:$0xff] %v4534_v23   ;;  %v4529_v62 = vpack.c.bf16 %v3558_v63, %v3557_v46  ;;  %v2945_v24 = vpop.f32.mrf.mxu0  ;;  %v4696_v54 = vpop.f32.mrf.mxu1 }
 0x2c1   : > { %v3227_v33 = vadd.f32 %v4696_v54, %v2938_v10  ;;  %v3302_v49 = vmax.f32 %v3216_v2, 0.0  ;;  %v3563_v6 = vsel %vm3499_vm9, %v3304_v41, 0.0  ;;  %v2946_v5 = vadd.f32 %v2945_v24, %v6568_v59 }
 0x2c2   : > { %4581 = vst [vmem:[%s6171_s15 + $0xd0] sm:$0xff] %v4529_v62   ;;  %v2947_v32 = vpop.f32.mrf.mxu0  ;;  %v3218_v27 = vpop.f32.mrf.mxu1 }
 0x2c3   : > { %v3305_v43 = vmax.f32 %v3227_v33, 0.0  ;;  %v3219_v52 = vadd.f32 %v3218_v27, %v2930_v11  ;;  %v3561_v29 = vsel %vm3497_vm10, %v3302_v49, 0.0 }
 0x2c4   : > { %v2950_v35 = vpop.f32.mrf.mxu0  ;;  %v4699_v18 = vpop.f32.mrf.mxu1 }
 0x2c5   : > { %v3564_v16 = vsel %vm3500_vm11, %v3305_v43, 0.0  ;;  %v3303_v37 = vmax.f32 %v3219_v52, 0.0  ;;  %v2951_v13 = vadd.f32 %v2950_v35, %v6567_v28 }
 0x2c6   : > { %v4544_v51 = vpack.c.bf16 %v3564_v16, %v3563_v6  ;;  %v2952_v44 = vpop.f32.mrf.mxu0  ;;  %v3231_v60 = vpop.f32.mrf.mxu1 }
 0x2c7   : > { %v3562_v21 = vsel %vm3498_vm12, %v3303_v37, 0.0  ;;  %v3240_v61 = vadd.f32 %v4699_v18, %v2951_v13  ;;  %v3232_v55 = vadd.f32 %v3231_v60, %v2943_v56 }
 0x2c8   : > { %4584 = vst [vmem:[%s6171_s15 + $0xe8] sm:$0xff] %v4544_v51   ;;  %v4539_v17 = vpack.c.bf16 %v3562_v21, %v3561_v29  ;;  %v2953_v53 = vpop.f32.mrf.mxu0  ;;  %v4700_v36 = vpop.f32.mrf.mxu1 }
 0x2c9   : > { %v2954_v9 = vadd.f32 %v2953_v53, %v6569_v14  ;;  %v3308_v15 = vmax.f32 %v3240_v61, 0.0  ;;  %v3306_v26 = vmax.f32 %v3232_v55, 0.0 }
 0x2ca   : > { %4583 = vst [vmem:[%s6171_s15 + $0xe0] sm:$0xff] %v4539_v17   ;;  %v2955_v12 = vpop.f32.mrf.mxu0  ;;  %v3234_v3 = vpop.f32.mrf.mxu1 }
 0x2cb   : > { %v3243_v58 = vadd.f32 %v4700_v36, %v2954_v9  ;;  %v3235_v19 = vadd.f32 %v3234_v3, %v2946_v5  ;;  %v3567_v30 = vsel %vm3503_vm13, %v3308_v15, 0.0  ;;  %v3565_v22 = vsel %vm3501_vm14, %v3306_v26, 0.0 }
 0x2cd   : > { %v3309_v34 = vmax.f32 %v3243_v58, 0.0  ;;  %v3307_v0 = vmax.f32 %v3235_v19, 0.0 }
 0x2cf   : > { %v3568_v23 = vsel %vm3504_vm15, %v3309_v34, 0.0  ;;  %v3566_v38 = vsel %vm3502_vm0, %v3307_v0, 0.0 }
 0x2d0   : > { %v4554_v40 = vpack.c.bf16 %v3568_v23, %v3567_v30  ;;  %v4549_v4 = vpack.c.bf16 %v3566_v38, %v3565_v22 }
 0x2d2   : > { %4586 = vst [vmem:[%s6171_s15 + $0xf8] sm:$0xff] %v4554_v40   ;;  %4585 = vst [vmem:[%s6171_s15 + $0xf0] sm:$0xff] %v4549_v4  }
 0x2d3 PF: > { %s13_s12 = sadd.s32 1, %s5124_s12  }
 0x2d4   : > { %p10_p4 = scmp.ge.s32.totalorder %s13_s12, 5  }
 0x2d6   :  { %12 = sbr.rel (!%p10_p4) target bundleno = 1 (0x1), region = 62 }

// kernel: sparse_encoder_forward.17
= control target key start
LH: loop header
LB: loop body
LE: loop exit
PB: predicated region body
PF: predicated region fallthrough
CT: control target
= control target key end

     0   :  { %vm1142_vm0 = vcmask 785408   ;;  %s4019_s1 = inlined_call_operand.vmem [shape: bf16[864,128], index: 1, kind: input, shape index: {}]   ;;  %s4020_s0 = inlined_call_operand.vmem [shape: bf16[256,864], index: 0, kind: input, shape index: {}]   ;;  %s4021_s2 = inlined_call_operand.vmem [shape: f32[1,128], index: 2, kind: input, shape index: {}]   ;;  %s4022_s3 = inlined_call_operand.vmem [shape: bf16[256,128], index: 3, kind: output, shape index: {}]  }
   0x1   :  { %v2907_v0 = vld [vmem:[%s4019_s1 + $0x78] sm:$0xff]   ;;  %v2909_v2 = vld [vmem:[%s4019_s1 + $0x70] sm:$0xff]   ;;  %v2911_v4 = vld [vmem:[%s4019_s1 + $0x68] sm:$0xff]  }
   0x2   :  { %v2908_v1 = vld [vmem:[%s4019_s1 + $0x38] sm:$0xff]   ;;  %2488 = vmatprep.subr.bf16.mxu0 %v2907_v0  ;;  %2890 = vmatprep.subr.bf16.mxu1 %v2907_v0  ;;  %v2910_v3 = vld [vmem:[%s4019_s1 + $0x30] sm:$0xff]   ;;  %v2912_v5 = vld [vmem:[%s4019_s1 + $0x28] sm:$0xff]  }
   0x3   :  { %2489 = vmatpush3.bf16.msra.mxu0 %v2908_v1  ;;  %2898 = vmatpush3.bf16.msra.mxu1 %v2908_v1  ;;  %v2913_v6 = vld [vmem:[%s4019_s1 + $0x60] sm:$0xff]   ;;  %v2915_v8 = vld [vmem:[%s4019_s1 + $0x58] sm:$0xff]   ;;  %v2917_v10 = vld [vmem:[%s4019_s1 + $0x50] sm:$0xff]  }
   0x4   :  { %2490 = vmatprep.subr.bf16.mxu0 %v2909_v2  ;;  %2891 = vmatprep.subr.bf16.mxu1 %v2909_v2  ;;  %v2914_v7 = vld [vmem:[%s4019_s1 + $0x20] sm:$0xff]   ;;  %v2916_v9 = vld [vmem:[%s4019_s1 + $0x18] sm:$0xff]   ;;  %v2918_v13 = vld [vmem:[%s4019_s1 + $0x10] sm:$0xff]  }
   0x5   :  { %v2925_v11 = vld [vmem:[%s4020_s0 + $0x4] ss:$28 sps:$4 sm:$0xff]   ;;  %v2919_v14 = vld [vmem:[%s4019_s1 + $0x48] sm:$0xff]   ;;  %v2929_v18 = vld [vmem:[%s4019_s1 + $0xf8] sm:$0xff]  }
   0x6   :  { %v2928_v12 = vld [vmem:[%s4020_s0 + $0x2a4] ss:$28 sps:$4 sm:$0xff]   ;;  %1223 = vmatprep.mubr.bf16.mxu0 %v2925_v11  ;;  %v2920_v15 = vld [vmem:[%s4019_s1 + $0x8] sm:$0xff]   ;;  %v2930_v21 = vld [vmem:[%s4019_s1 + $0x178] sm:$0xff]  }
   0x7   :  { %2491 = vmatpush3.bf16.msra.mxu0 %v2910_v3  ;;  %2899 = vmatpush3.bf16.msra.mxu1 %v2910_v3  ;;  %v2921_v16 = vld [vmem:[%s4019_s1 + $0x40] sm:$0xff]   ;;  %v2931_v22 = vld [vmem:[%s4019_s1 + $0xb8] sm:$0xff]   ;;  %v2933_v24 = vld [vmem:[%s4019_s1 + $0xf0] sm:$0xff]  }
   0x8   :  { %2492 = vmatprep.subr.bf16.mxu0 %v2911_v4  ;;  %2892 = vmatprep.subr.bf16.mxu1 %v2911_v4  ;;  %v2922_v17 = vld [vmem:[%s4019_s1] sm:$0xff]   ;;  %v2932_v23 = vld [vmem:[%s4019_s1 + $0x138] sm:$0xff]   ;;  %v2944_v27 = vld [vmem:[%s4019_s1 + $0x170] sm:$0xff]  }
   0x9   :  { %1319 = vmatprep.mubr.bf16.mxu1 %v2928_v12  ;;  %v2923_v19 = vld [vmem:[%s4020_s0] ss:$28 sps:$4 sm:$0xff]   ;;  %v2934_v28 = vld [vmem:[%s4019_s1 + $0xb0] sm:$0xff]   ;;  %v2941_v32 = vld [vmem:[%s4019_s1 + $0xe8] sm:$0xff]  }
   0xa   :  { %v2926_v20 = vld [vmem:[%s4020_s0 + $0x2a0] ss:$28 sps:$4 sm:$0xff]   ;;  %v2946_v29 = vld [vmem:[%s4019_s1 + $0x130] sm:$0xff]   ;;  %v2942_v33 = vld [vmem:[%s4019_s1 + $0xa8] sm:$0xff]  }
   0xb   :  { %2493 = vmatpush3.bf16.msra.mxu0 %v2912_v5  ;;  %2900 = vmatpush3.bf16.msra.mxu1 %v2912_v5  ;;  %v2935_v25 = vld [vmem:[%s4020_s0 + $0x3c] ss:$28 sps:$4 sm:$0xff]   ;;  %v2943_v34 = vld [vmem:[%s4019_s1 + $0xe0] sm:$0xff]   ;;  %v2947_v35 = vld [vmem:[%s4020_s0 + $0x74] ss:$28 sps:$4 sm:$0xff]  }
   0xc   :  { %2494 = vmatprep.subr.bf16.mxu0 %v2913_v6  ;;  %2893 = vmatprep.subr.bf16.mxu1 %v2913_v6  ;;  %v2937_v26 = vld [vmem:[%s4020_s0 + $0x2dc] ss:$28 sps:$4 sm:$0xff]   ;;  %v2949_v36 = vld [vmem:[%s4020_s0 + $0x314] ss:$28 sps:$4 sm:$0xff]   ;;  %v2945_v37 = vld [vmem:[%s4019_s1 + $0xa0] sm:$0xff]  }
   0xd   :  { %v2939_v30 = vld [vmem:[%s4020_s0 + $0x38] ss:$28 sps:$4 sm:$0xff]   ;;  %v2951_v39 = vld [vmem:[%s4020_s0 + $0x70] ss:$28 sps:$4 sm:$0xff]   ;;  %v2961_v48 = vld [vmem:[%s4020_s0 + $0xa8] ss:$28 sps:$4 sm:$0xff]  }
   0xe   :  { %v2940_v31 = vld [vmem:[%s4020_s0 + $0x2d8] ss:$28 sps:$4 sm:$0xff]   ;;  %v2952_v40 = vld [vmem:[%s4020_s0 + $0x310] ss:$28 sps:$4 sm:$0xff]   ;;  %v2962_v49 = vld [vmem:[%s4020_s0 + $0x348] ss:$28 sps:$4 sm:$0xff]  }
   0xf   :  { %2495 = vmatpush3.bf16.msra.mxu0 %v2914_v7  ;;  %2901 = vmatpush3.bf16.msra.mxu1 %v2914_v7  ;;  %v2953_v38 = vld [vmem:[%s4019_s1 + $0xd8] sm:$0xff]   ;;  %v2964_v41 = vld [vmem:[%s4019_s1 + $0x168] sm:$0xff]   ;;  %v2955_v43 = vld [vmem:[%s4019_s1 + $0xd0] sm:$0xff]  }
  0x10   :  { %2496 = vmatprep.subr.bf16.mxu0 %v2915_v8  ;;  %2894 = vmatprep.subr.bf16.mxu1 %v2915_v8  ;;  %v2954_v42 = vld [vmem:[%s4019_s1 + $0x98] sm:$0xff]   ;;  %v2966_v44 = vld [vmem:[%s4019_s1 + $0x128] sm:$0xff]   ;;  %v2956_v47 = vld [vmem:[%s4019_s1 + $0x90] sm:$0xff]  }
  0x11   :  { %v2957_v45 = vld [vmem:[%s4020_s0 + $0xac] ss:$28 sps:$4 sm:$0xff]   ;;  %v2976_v52 = vld [vmem:[%s4019_s1 + $0x160] sm:$0xff]   ;;  %v2990_v60 = vld [vmem:[%s4019_s1 + $0x158] sm:$0xff]  }
  0x12   :  { %v2959_v46 = vld [vmem:[%s4020_s0 + $0x34c] ss:$28 sps:$4 sm:$0xff]   ;;  %v2977_v53 = vld [vmem:[%s4019_s1 + $0x120] sm:$0xff]   ;;  %v2991_v61 = vld [vmem:[%s4019_s1 + $0x118] sm:$0xff]  }
  0x13   :  { %2497 = vmatpush3.bf16.msra.mxu0 %v2916_v9  ;;  %2902 = vmatpush3.bf16.msra.mxu1 %v2916_v9  ;;  %v2963_v50 = vld [vmem:[%s4019_s1 + $0xc8] sm:$0xff]   ;;  %v2969_v54 = vld [vmem:[%s4020_s0 + $0xe4] ss:$28 sps:$4 sm:$0xff]   ;;  %v2978_v63 = vld [vmem:[%s4020_s0 + $0x11c] ss:$28 sps:$4 sm:$0xff]  }
  0x14   :  { %2498 = vmatprep.subr.bf16.mxu0 %v2917_v10  ;;  %2895 = vmatprep.subr.bf16.mxu1 %v2917_v10  ;;  %v2965_v51 = vld [vmem:[%s4019_s1 + $0x88] sm:$0xff]   ;;  %v2967_v55 = vld [vmem:[%s4019_s1 + $0xc0] sm:$0xff]   ;;  %v2999_v2 = vld [vmem:[%s4019_s1 + $0x150] sm:$0xff]  }
  0x15   :  { %v2973_v56 = vld [vmem:[%s4020_s0 + $0xc] ss:$28 sps:$4 sm:$0xff]   ;;  %v2968_v57 = vld [vmem:[%s4019_s1 + $0x80] sm:$0xff]   ;;  %v3000_v3 = vld [vmem:[%s4019_s1 + $0x110] sm:$0xff]  }
  0x16   :  { %v2975_v58 = vld [vmem:[%s4019_s1 + $0x1a8] sm:$0xff]   ;;  %v2974_v62 = vld [vmem:[%s4020_s0 + $0xe0] ss:$28 sps:$4 sm:$0xff]   ;;  %v2982_v4 = vld [vmem:[%s4020_s0 + $0x118] ss:$28 sps:$4 sm:$0xff]  }
  0x17   :  { %2499 = vmatpush3.bf16.msra.mxu0 %v2918_v13  ;;  %2903 = vmatpush3.bf16.msra.mxu1 %v2918_v13  ;;  %v2971_v59 = vld [vmem:[%s4020_s0 + $0x8] ss:$28 sps:$4 sm:$0xff]   ;;  %v2983_v5 = vld [vmem:[%s4020_s0 + $0x40] ss:$28 sps:$4 sm:$0xff]   ;;  %v2984_v6 = vld [vmem:[%s4020_s0 + $0x154] ss:$28 sps:$4 sm:$0xff]  }
  0x18   :  { %2500 = vmatprep.subr.bf16.mxu0 %v2919_v14  ;;  %2896 = vmatprep.subr.bf16.mxu1 %v2919_v14  ;;  %v2980_v0 = vld [vmem:[%s4020_s0 + $0x44] ss:$28 sps:$4 sm:$0xff]   ;;  %v2986_v7 = vld [vmem:[%s4020_s0 + $0x7c] ss:$28 sps:$4 sm:$0xff]   ;;  %v3013_v8 = vld [vmem:[%s4019_s1 + $0x148] sm:$0xff]  }
  0x19   :  { %v2992_v1 = vld [vmem:[%s4019_s1 + $0x1a0] sm:$0xff]   ;;  %v3014_v9 = vld [vmem:[%s4019_s1 + $0x108] sm:$0xff]   ;;  %v3015_v10 = vld [vmem:[%s4019_s1 + $0x198] sm:$0xff]  }
  0x1a   :  { %v2988_v11 = vld [vmem:[%s4020_s0 + $0x150] ss:$28 sps:$4 sm:$0xff]   ;;  %v2989_v12 = vld [vmem:[%s4020_s0 + $0x78] ss:$28 sps:$4 sm:$0xff]  }
  0x1b   :  { %2501 = vmatpush3.bf16.msra.mxu0 %v2920_v15  ;;  %2904 = vmatpush3.bf16.msra.mxu1 %v2920_v15  ;;  %v2993_v13 = vld [vmem:[%s4020_s0 + $0x18c] ss:$28 sps:$4 sm:$0xff]   ;;  %v2995_v14 = vld [vmem:[%s4020_s0 + $0xb4] ss:$28 sps:$4 sm:$0xff]   ;;  %v3022_v15 = vld [vmem:[%s4019_s1 + $0x140] sm:$0xff]  }
  0x1c   :  { %2502 = vmatprep.subr.bf16.mxu0 %v2921_v16  ;;  %2897 = vmatprep.subr.bf16.mxu1 %v2921_v16  ;;  %v3023_v16 = vld [vmem:[%s4019_s1 + $0x100] sm:$0xff]  }
  0x1f   :  { %2503 = vmatpush3.bf16.msra.mxu0 %v2922_v17  ;;  %2905 = vmatpush3.bf16.msra.mxu1 %v2922_v17  ;;  %v2997_v17 = vld [vmem:[%s4020_s0 + $0x188] ss:$28 sps:$4 sm:$0xff]  }
  0x20   :  { %2600 = vmatprep.subr.bf16.mxu1 %v2929_v18  ;;  %2712 = vmatprep.subr.bf16.mxu0 %v2930_v21  ;;  %v2998_v18 = vld [vmem:[%s4020_s0 + $0xb0] ss:$28 sps:$4 sm:$0xff]  }
  0x21   :  { %v3003_v21 = vld [vmem:[%s4020_s0 + $0xec] ss:$28 sps:$4 sm:$0xff]  }
  0x22   :  { %1224 = vmatmul.mubr.bf16.vlgmr.msra.gmra.mxu0 %v2923_v19  ;;  %1320 = vmatmul.mubr.bf16.vlgmr.msra.gmra.mxu1 %v2926_v20  ;;  %v3001_v19 = vld [vmem:[%s4020_s0 + $0x1c4] ss:$28 sps:$4 sm:$0xff]   ;;  %v3036_v20 = vld [vmem:[%s4019_s1 + $0x190] sm:$0xff]  }
  0x23   :  { %2601 = vmatpush3.bf16.msra.mxu1 %v2931_v22  ;;  %2713 = vmatpush3.bf16.msra.mxu0 %v2932_v23  ;;  %v3049_v22 = vld [vmem:[%s4019_s1 + $0x188] sm:$0xff]   ;;  %v3005_v23 = vld [vmem:[%s4020_s0 + $0x1c0] ss:$28 sps:$4 sm:$0xff]  }
  0x24   :  { %2602 = vmatprep.subr.bf16.mxu1 %v2933_v24  ;;  %1231 = vmatprep.mubr.bf16.mxu0 %v2935_v25  ;;  %v3006_v24 = vld [vmem:[%s4020_s0 + $0xe8] ss:$28 sps:$4 sm:$0xff]   ;;  %v3007_v25 = vld [vmem:[%s4020_s0 + $0x1fc] ss:$28 sps:$4 sm:$0xff]  }
  0x25   :  { %1327 = vmatprep.mubr.bf16.mxu1 %v2937_v26  ;;  %2714 = vmatprep.subr.bf16.mxu0 %v2944_v27  ;;  %v3009_v26 = vld [vmem:[%s4020_s0 + $0x124] ss:$28 sps:$4 sm:$0xff]   ;;  %v3011_v27 = vld [vmem:[%s4020_s0 + $0x1f8] ss:$28 sps:$4 sm:$0xff]  }
  0x27   :  { %2603 = vmatpush3.bf16.msra.mxu1 %v2934_v28  ;;  %2715 = vmatpush3.bf16.msra.mxu0 %v2946_v29  ;;  %v3012_v28 = vld [vmem:[%s4020_s0 + $0x120] ss:$28 sps:$4 sm:$0xff]  }
  0x28   :  { %2604 = vmatprep.subr.bf16.mxu1 %v2941_v32  ;;  %2716 = vmatprep.subr.bf16.mxu0 %v2964_v41  ;;  %v3068_v29 = vld [vmem:[%s4019_s1 + $0x180] sm:$0xff]   ;;  %v3020_v32 = vld [vmem:[%s4020_s0 + $0x230] ss:$28 sps:$4 sm:$0xff]  }
  0x29   :  { %v3035_v41 = vld [vmem:[%s4020_s0 + $0x1c8] ss:$28 sps:$4 sm:$0xff]  }
  0x2a   :  { %1232 = vmatmul.mubr.bf16.gmra.mxu0 %v2939_v30  ;;  %1328 = vmatmul.mubr.bf16.gmra.mxu1 %v2940_v31  ;;  %v3016_v30 = vld [vmem:[%s4020_s0 + $0x234] ss:$28 sps:$4 sm:$0xff]   ;;  %v3018_v31 = vld [vmem:[%s4020_s0 + $0x15c] ss:$28 sps:$4 sm:$0xff]  }
  0x2b   :  { %2605 = vmatpush3.bf16.msra.mxu1 %v2942_v33  ;;  %1239 = vmatprep.mubr.bf16.mxu0 %v2947_v35  ;;  %v3021_v33 = vld [vmem:[%s4020_s0 + $0x158] ss:$28 sps:$4 sm:$0xff]  }
  0x2c   :  { %2606 = vmatprep.subr.bf16.mxu1 %v2943_v34  ;;  %1335 = vmatprep.mubr.bf16.mxu1 %v2949_v36  ;;  %v3024_v34 = vld [vmem:[%s4020_s0 + $0x26c] ss:$28 sps:$4 sm:$0xff]   ;;  %v3026_v35 = vld [vmem:[%s4020_s0 + $0x194] ss:$28 sps:$4 sm:$0xff]  }
  0x2d   :  { %2717 = vmatpush3.bf16.msra.mxu0 %v2966_v44  ;;  %v3028_v36 = vld [vmem:[%s4020_s0 + $0x268] ss:$28 sps:$4 sm:$0xff]   ;;  %v3041_v44 = vld [vmem:[%s4020_s0 + $0x200] ss:$28 sps:$4 sm:$0xff]  }
  0x2e   :  { %2718 = vmatprep.subr.bf16.mxu0 %v2976_v52  ;;  %v3054_v52 = vld [vmem:[%s4020_s0 + $0x270] ss:$28 sps:$4 sm:$0xff]  }
  0x2f   :  { %2607 = vmatpush3.bf16.msra.mxu1 %v2945_v37  ;;  %v3029_v37 = vld [vmem:[%s4020_s0 + $0x190] ss:$28 sps:$4 sm:$0xff]  }
  0x30   :  { %2608 = vmatprep.subr.bf16.mxu1 %v2953_v38  ;;  %v3030_v38 = vld [vmem:[%s4020_s0 + $0x1cc] ss:$28 sps:$4 sm:$0xff]  }
  0x31   :  { %2719 = vmatpush3.bf16.msra.mxu0 %v2977_v53  ;;  %v3055_v53 = vld [vmem:[%s4020_s0 + $0xb8] ss:$28 sps:$4 sm:$0xff]  }
  0x32   :  { %1240 = vmatmul.mubr.bf16.gmra.mxu0 %v2951_v39  ;;  %1336 = vmatmul.mubr.bf16.gmra.mxu1 %v2952_v40  ;;  %v3034_v39 = vld [vmem:[%s4020_s0 + $0x14] ss:$28 sps:$4 sm:$0xff]  }
  0x33   :  { %2609 = vmatpush3.bf16.msra.mxu1 %v2954_v42  ;;  %1247 = vmatprep.mubr.bf16.mxu0 %v2957_v45  ;;  %v3032_v40 = vld [vmem:[%s4020_s0 + $0x10] ss:$28 sps:$4 sm:$0xff]   ;;  %v3037_v42 = vld [vmem:[%s4020_s0 + $0x204] ss:$28 sps:$4 sm:$0xff]  }
  0x34   :  { %2610 = vmatprep.subr.bf16.mxu1 %v2955_v43  ;;  %1343 = vmatprep.mubr.bf16.mxu1 %v2959_v46  ;;  %v3039_v43 = vld [vmem:[%s4020_s0 + $0x4c] ss:$28 sps:$4 sm:$0xff]   ;;  %v3043_v46 = vld [vmem:[%s4020_s0 + $0x23c] ss:$28 sps:$4 sm:$0xff]  }
  0x35   :  { %2720 = vmatprep.subr.bf16.mxu0 %v2990_v60  ;;  %v3042_v45 = vld [vmem:[%s4020_s0 + $0x48] ss:$28 sps:$4 sm:$0xff]   ;;  %v3066_v60 = vld [vmem:[%s4020_s0 + $0x2e0] ss:$28 sps:$4 sm:$0xff]  }
  0x36   :  { %2721 = vmatpush3.bf16.msra.mxu0 %v2991_v61  ;;  %v3067_v61 = vld [vmem:[%s4020_s0 + $0x128] ss:$28 sps:$4 sm:$0xff]  }
  0x37   :  { %2611 = vmatpush3.bf16.msra.mxu1 %v2956_v47  ;;  %2722 = vmatprep.subr.bf16.mxu0 %v2999_v2  ;;  %v3045_v47 = vld [vmem:[%s4020_s0 + $0x84] ss:$28 sps:$4 sm:$0xff]   ;;  %v3075_v2 = vld [vmem:[%s4020_s0 + $0x354] ss:$28 sps:$4 sm:$0xff]  }
  0x38   :  { %2612 = vmatprep.subr.bf16.mxu1 %v2963_v50  ;;  %v3050_v50 = vld [vmem:[%s4020_s0 + $0x274] ss:$28 sps:$4 sm:$0xff]  }
  0x3a   :  { %1248 = vmatmul.mubr.bf16.gmra.mxu0 %v2961_v48  ;;  %1344 = vmatmul.mubr.bf16.gmra.mxu1 %v2962_v49  ;;  %v3047_v48 = vld [vmem:[%s4020_s0 + $0x238] ss:$28 sps:$4 sm:$0xff]   ;;  %v3048_v49 = vld [vmem:[%s4020_s0 + $0x80] ss:$28 sps:$4 sm:$0xff]  }
  0x3b   :  { %2613 = vmatpush3.bf16.msra.mxu1 %v2965_v51  ;;  %1255 = vmatprep.mubr.bf16.mxu0 %v2969_v54  ;;  %v3052_v51 = vld [vmem:[%s4020_s0 + $0xbc] ss:$28 sps:$4 sm:$0xff]   ;;  %v3056_v54 = vld [vmem:[%s4020_s0 + $0x2ac] ss:$28 sps:$4 sm:$0xff]  }
  0x3c   :  { %2614 = vmatprep.subr.bf16.mxu1 %v2967_v55  ;;  %1384 = vmatprep.mubr.bf16.mxu1 %v2973_v56  ;;  %v3058_v55 = vld [vmem:[%s4020_s0 + $0xf4] ss:$28 sps:$4 sm:$0xff]   ;;  %v3060_v56 = vld [vmem:[%s4020_s0 + $0x2a8] ss:$28 sps:$4 sm:$0xff]  }
  0x3d   :  { %2723 = vmatpush3.bf16.msra.mxu0 %v3000_v3  ;;  %v3077_v3 = vld [vmem:[%s4020_s0 + $0x19c] ss:$28 sps:$4 sm:$0xff]  }
  0x3e   :  { %2724 = vmatprep.subr.bf16.mxu0 %v3013_v8  ;;  %v3084_v8 = vld [vmem:[%s4020_s0 + $0x1d0] ss:$28 sps:$4 sm:$0xff]  }
  0x3f   :  { %2615 = vmatpush3.bf16.msra.mxu1 %v2968_v57  ;;  %v3061_v57 = vld [vmem:[%s4020_s0 + $0xf0] ss:$28 sps:$4 sm:$0xff]  }
  0x40   :  { %2846 = vmatprep.subr.bf16.mxu1 %v2975_v58 }
  0x41   :  { %2725 = vmatpush3.bf16.msra.mxu0 %v3014_v9  ;;  %v3085_v9 = vld [vmem:[%s4020_s0 + $0x50] ss:$28 sps:$4 sm:$0xff]  }
  0x42   :  { %1256 = vmatmul.mubr.bf16.gmra.mxu0 %v2974_v62  ;;  %1385 = vmatmul.mubr.bf16.vlgmr.msra.gmra.mxu1 %v2971_v59  ;;  %v3064_v59 = vld [vmem:[%s4020_s0 + $0x12c] ss:$28 sps:$4 sm:$0xff]   ;;  %v3069_v62 = vld [vmem:[%s4020_s0 + $0x31c] ss:$28 sps:$4 sm:$0xff]  }
  0x43   :  { %2847 = vmatpush3.bf16.msra.mxu1 %v2975_v58  ;;  %1263 = vmatprep.mubr.bf16.mxu0 %v2978_v63  ;;  %v3062_v58 = vld [vmem:[%s4020_s0 + $0x2e4] ss:$28 sps:$4 sm:$0xff]  }
  0x44   :  { %1392 = vmatprep.mubr.bf16.mxu1 %v2980_v0  ;;  %2848 = vmatprep.subr.bf16.mxu1 %v2992_v1  ;;  %v3071_v63 = vld [vmem:[%s4020_s0 + $0x164] ss:$28 sps:$4 sm:$0xff]   ;;  %v3073_v0 = vld [vmem:[%s4020_s0 + $0x318] ss:$28 sps:$4 sm:$0xff]  }
  0x45   :  { %2726 = vmatprep.subr.bf16.mxu0 %v3022_v15  ;;  %v3093_v15 = vld [vmem:[%s4020_s0 + $0xf8] ss:$28 sps:$4 sm:$0xff]  }
  0x46   :  { %2727 = vmatpush3.bf16.msra.mxu0 %v3023_v16  ;;  %v3094_v16 = vld [vmem:[%s4020_s0 + $0x240] ss:$28 sps:$4 sm:$0xff]  }
  0x47   :  { %2849 = vmatpush3.bf16.msra.mxu1 %v2992_v1  ;;  %v3074_v1 = vld [vmem:[%s4020_s0 + $0x160] ss:$28 sps:$4 sm:$0xff]  }
  0x48   :  { %2850 = vmatprep.subr.bf16.mxu1 %v3015_v10 }
  0x4a   :  { %1264 = vmatmul.mubr.bf16.gmra.mxu0 %v2982_v4  ;;  %1393 = vmatmul.mubr.bf16.gmra.mxu1 %v2983_v5  ;;  %v3079_v4 = vld [vmem:[%s4020_s0 + $0x350] ss:$28 sps:$4 sm:$0xff]   ;;  %v3080_v5 = vld [vmem:[%s4020_s0 + $0x198] ss:$28 sps:$4 sm:$0xff]  }
  0x4b   :  { %1271 = vmatprep.mubr.bf16.mxu0 %v2984_v6  ;;  %1400 = vmatprep.mubr.bf16.mxu1 %v2986_v7  ;;  %v3081_v6 = vld [vmem:[%s4020_s0 + $0x1d4] ss:$28 sps:$4 sm:$0xff]  }
  0x4c   :  { %2851 = vmatpush3.bf16.msra.mxu1 %v3015_v10  ;;  %v3083_v7 = vld [vmem:[%s4020_s0 + $0x18] ss:$28 sps:$4 sm:$0xff]   ;;  %v3086_v10 = vld [vmem:[%s4020_s0 + $0x20c] ss:$28 sps:$4 sm:$0xff]  }
  0x4d   :  { %2852 = vmatprep.subr.bf16.mxu1 %v3036_v20 }
  0x50   :  { %2853 = vmatpush3.bf16.msra.mxu1 %v3036_v20  ;;  %v3099_v20 = vld [vmem:[%s4020_s0 + $0x278] ss:$28 sps:$4 sm:$0xff]  }
  0x51   :  { %2854 = vmatprep.subr.bf16.mxu1 %v3049_v22 }
  0x52   :  { %1272 = vmatmul.mubr.bf16.gmra.mxu0 %v2988_v11  ;;  %1401 = vmatmul.mubr.bf16.gmra.mxu1 %v2989_v12  ;;  %v3088_v11 = vld [vmem:[%s4020_s0 + $0x88] ss:$28 sps:$4 sm:$0xff]  }
  0x53   :  { %1279 = vmatprep.mubr.bf16.mxu0 %v2993_v13  ;;  %1408 = vmatprep.mubr.bf16.mxu1 %v2995_v14  ;;  %v3089_v12 = vld [vmem:[%s4020_s0 + $0x208] ss:$28 sps:$4 sm:$0xff]   ;;  %v3090_v13 = vld [vmem:[%s4020_s0 + $0xc0] ss:$28 sps:$4 sm:$0xff]  }
  0x54   :  { %2855 = vmatpush3.bf16.msra.mxu1 %v3049_v22  ;;  %v3091_v14 = vld [vmem:[%s4020_s0 + $0x244] ss:$28 sps:$4 sm:$0xff]   ;;  %v3101_v22 = vld [vmem:[%s4020_s0 + $0x2b4] ss:$28 sps:$4 sm:$0xff]  }
  0x55   :  { %2856 = vmatprep.subr.bf16.mxu1 %v3068_v29 }
  0x58   :  { %2857 = vmatpush3.bf16.msra.mxu1 %v3068_v29 }
  0x5a   :  { %1280 = vmatmul.mubr.bf16.gmra.mxu0 %v2997_v17  ;;  %1409 = vmatmul.mubr.bf16.gmra.mxu1 %v2998_v18  ;;  %v3095_v17 = vld [vmem:[%s4020_s0 + $0x130] ss:$28 sps:$4 sm:$0xff]   ;;  %v3096_v18 = vld [vmem:[%s4020_s0 + $0x27c] ss:$28 sps:$4 sm:$0xff]  }
  0x5b   :  { %1287 = vmatprep.mubr.bf16.mxu0 %v3001_v19  ;;  %1416 = vmatprep.mubr.bf16.mxu1 %v3003_v21  ;;  %v3098_v19 = vld [vmem:[%s4020_s0 + $0x168] ss:$28 sps:$4 sm:$0xff]   ;;  %v3100_v21 = vld [vmem:[%s4020_s0 + $0x1a0] ss:$28 sps:$4 sm:$0xff]  }
  0x62   :  { %1288 = vmatmul.mubr.bf16.gmra.mxu0 %v3005_v23  ;;  %1417 = vmatmul.mubr.bf16.gmra.mxu1 %v3006_v24  ;;  %v3103_v23 = vld [vmem:[%s4020_s0 + $0x1d8] ss:$28 sps:$4 sm:$0xff]   ;;  %v3104_v24 = vld [vmem:[%s4020_s0 + $0x2b0] ss:$28 sps:$4 sm:$0xff]  }
  0x63   :  { %1295 = vmatprep.mubr.bf16.mxu0 %v3007_v25  ;;  %1424 = vmatprep.mubr.bf16.mxu1 %v3009_v26  ;;  %v3105_v25 = vld [vmem:[%s4020_s0 + $0x210] ss:$28 sps:$4 sm:$0xff]  }
  0x64   :  { %v3106_v26 = vld [vmem:[%s4020_s0 + $0x2ec] ss:$28 sps:$4 sm:$0xff]  }
  0x6a   :  { %1296 = vmatmul.mubr.bf16.gmra.mxu0 %v3011_v27  ;;  %1425 = vmatmul.mubr.bf16.gmra.mxu1 %v3012_v28  ;;  %v3108_v27 = vld [vmem:[%s4020_s0 + $0x248] ss:$28 sps:$4 sm:$0xff]  }
  0x6b   :  { %1303 = vmatprep.mubr.bf16.mxu0 %v3016_v30  ;;  %1432 = vmatprep.mubr.bf16.mxu1 %v3018_v31 }
  0x72   :  { %1304 = vmatmul.mubr.bf16.gmra.mxu0 %v3020_v32  ;;  %1433 = vmatmul.mubr.bf16.gmra.mxu1 %v3021_v33 }
  0x73   :  { %1311 = vmatprep.mubr.bf16.mxu0 %v3024_v34  ;;  %1440 = vmatprep.mubr.bf16.mxu1 %v3026_v35 }
  0x7a   :  { %1312 = vmatmul.mubr.bf16.gmra.mxu0 %v3028_v36  ;;  %1441 = vmatmul.mubr.bf16.gmra.mxu1 %v3029_v37  ;;  %v3109_v36 = vld [vmem:[%s4020_s0 + $0x2e8] ss:$28 sps:$4 sm:$0xff]   ;;  %v3110_v37 = vld [vmem:[%s4020_s0 + $0x280] ss:$28 sps:$4 sm:$0xff]  }
  0x7b   :  { %1448 = vmatprep.mubr.bf16.mxu1 %v3030_v38  ;;  %1545 = vmatprep.mubr.bf16.mxu0 %v3034_v39  ;;  %v3111_v38 = vld [vmem:[%s4020_s0 + $0x324] ss:$28 sps:$4 sm:$0xff]   ;;  %v3113_v39 = vld [vmem:[%s4020_s0 + $0x2b8] ss:$28 sps:$4 sm:$0xff]  }
  0x82   :  { %1449 = vmatmul.mubr.bf16.gmra.mxu1 %v3035_v41  ;;  %1546 = vmatmul.mubr.bf16.vlgmr.msra.gmra.mxu0 %v3032_v40 }
  0x83   :  { %1456 = vmatprep.mubr.bf16.mxu1 %v3037_v42  ;;  %1553 = vmatprep.mubr.bf16.mxu0 %v3039_v43 }
  0x8a   :  { %1457 = vmatmul.mubr.bf16.gmra.mxu1 %v3041_v44  ;;  %1554 = vmatmul.mubr.bf16.gmra.mxu0 %v3042_v45 }
  0x8b   :  { %1464 = vmatprep.mubr.bf16.mxu1 %v3043_v46  ;;  %1561 = vmatprep.mubr.bf16.mxu0 %v3045_v47 }
  0x92   :  { %1465 = vmatmul.mubr.bf16.gmra.mxu1 %v3047_v48  ;;  %1562 = vmatmul.mubr.bf16.gmra.mxu0 %v3048_v49 }
  0x93   :  { %1472 = vmatprep.mubr.bf16.mxu1 %v3050_v50  ;;  %1569 = vmatprep.mubr.bf16.mxu0 %v3052_v51 }
  0x9a   :  { %1473 = vmatmul.mubr.bf16.gmra.mxu1 %v3054_v52  ;;  %1570 = vmatmul.mubr.bf16.gmra.mxu0 %v3055_v53  ;;  %v3114_v52 = vld [vmem:[%s4020_s0 + $0x320] ss:$28 sps:$4 sm:$0xff]   ;;  %v3115_v53 = vld [vmem:[%s4020_s0 + $0x2f0] ss:$28 sps:$4 sm:$0xff]  }
  0x9b   :  { %1480 = vmatprep.mubr.bf16.mxu1 %v3056_v54  ;;  %1577 = vmatprep.mubr.bf16.mxu0 %v3058_v55  ;;  %v3116_v54 = vld [vmem:[%s4020_s0 + $0x35c] ss:$28 sps:$4 sm:$0xff]   ;;  %v3118_v55 = vld [vmem:[%s4020_s0 + $0x328] ss:$28 sps:$4 sm:$0xff]  }
  0xa2   :  { %1481 = vmatmul.mubr.bf16.gmra.mxu1 %v3060_v56  ;;  %1578 = vmatmul.mubr.bf16.gmra.mxu0 %v3061_v57 }
  0xa3   :  { %1488 = vmatprep.mubr.bf16.mxu1 %v3062_v58  ;;  %1585 = vmatprep.mubr.bf16.mxu0 %v3064_v59 }
  0xaa   :  { %1489 = vmatmul.mubr.bf16.gmra.mxu1 %v3066_v60  ;;  %1586 = vmatmul.mubr.bf16.gmra.mxu0 %v3067_v61 }
  0xab   :  { %1496 = vmatprep.mubr.bf16.mxu1 %v3069_v62  ;;  %1593 = vmatprep.mubr.bf16.mxu0 %v3071_v63 }
  0xb2   :  { %1497 = vmatmul.mubr.bf16.gmra.mxu1 %v3073_v0  ;;  %1594 = vmatmul.mubr.bf16.gmra.mxu0 %v3074_v1 }
  0xb3   :  { %1504 = vmatprep.mubr.bf16.mxu1 %v3075_v2  ;;  %1601 = vmatprep.mubr.bf16.mxu0 %v3077_v3  ;;  %v3119_v3 = vld [vmem:[%s4020_s0 + $0x358] ss:$28 sps:$4 sm:$0xff]  }
  0xba   :  { %1505 = vmatmul.mubr.bf16.gmra.mxu1 %v3079_v4  ;;  %1602 = vmatmul.mubr.bf16.gmra.mxu0 %v3080_v5  ;;  %v3120_v4 = vld [vmem:[%s4020_s0 + $0x360] ss:$28 sps:$4 sm:$0xff]  }
  0xbb   :  { %1609 = vmatprep.mubr.bf16.mxu0 %v3081_v6  ;;  %2858 = vmatprep.mubr.msk.bf16.mxu1 %vm1142_vm0, %v3083_v7 }
  0xc2   :  { %1610 = vmatmul.mubr.bf16.gmra.mxu0 %v3084_v8  ;;  %2859 = vmatmul.mubr.msk.bf16.vlgmr.msra.gmra.mxu1 %vm1142_vm0, %v3085_v9 }
  0xc3   :  { %1617 = vmatprep.mubr.bf16.mxu0 %v3086_v10  ;;  %2862 = vmatprep.mubr.msk.bf16.mxu1 %vm1142_vm0, %v3088_v11 }
  0xca   :  { %1618 = vmatmul.mubr.bf16.gmra.mxu0 %v3089_v12  ;;  %2863 = vmatmul.mubr.msk.bf16.gmra.mxu1 %vm1142_vm0, %v3090_v13 }
  0xcb   :  { %1625 = vmatprep.mubr.bf16.mxu0 %v3091_v14  ;;  %2866 = vmatprep.mubr.msk.bf16.mxu1 %vm1142_vm0, %v3093_v15 }
  0xd2   :  { %1626 = vmatmul.mubr.bf16.gmra.mxu0 %v3094_v16  ;;  %2867 = vmatmul.mubr.msk.bf16.gmra.mxu1 %vm1142_vm0, %v3095_v17 }
  0xd3   :  { %1633 = vmatprep.mubr.bf16.mxu0 %v3096_v18  ;;  %2870 = vmatprep.mubr.msk.bf16.mxu1 %vm1142_vm0, %v3098_v19  ;;  %v3683_v18 = vld [vmem:[%s4021_s2] ss:$0 sm:$0xff] }
  0xda   :  { %1634 = vmatmul.mubr.bf16.gmra.mxu0 %v3099_v20  ;;  %2871 = vmatmul.mubr.msk.bf16.gmra.mxu1 %vm1142_vm0, %v3100_v21 }
  0xdb   :  { %1641 = vmatprep.mubr.bf16.mxu0 %v3101_v22  ;;  %2874 = vmatprep.mubr.msk.bf16.mxu1 %vm1142_vm0, %v3103_v23 }
  0xe2   :  { %v2504_v28 = vpop.f32.mrf.mxu0  ;;  %v2576_v29 = vpop.f32.mrf.mxu1  ;;  %1642 = vmatmul.mubr.bf16.gmra.mxu0 %v3104_v24  ;;  %2875 = vmatmul.mubr.msk.bf16.gmra.mxu1 %vm1142_vm0, %v3105_v25 }
  0xe3   :  { %1649 = vmatprep.mubr.bf16.mxu0 %v3106_v26  ;;  %2878 = vmatprep.mubr.msk.bf16.mxu1 %vm1142_vm0, %v3108_v27 }
  0xe4   :  { %v2505_v30 = vpop.f32.mrf.mxu0  ;;  %v2577_v31 = vpop.f32.mrf.mxu1 }
  0xe5   :  { %v3621_v32 = vadd.f32 %v2505_v30, %v2504_v28  ;;  %v3623_v33 = vadd.f32 %v2577_v31, %v2576_v29 }
  0xe6   :  { %v2507_v34 = vpop.f32.mrf.mxu0  ;;  %v2579_v35 = vpop.f32.mrf.mxu1 }
  0xe7   :  { %v1226_v23 = vadd.f32 %v3621_v32, %v3683_v18 }
  0xe8   :  { %v2508_v40 = vpop.f32.mrf.mxu0  ;;  %v2580_v41 = vpop.f32.mrf.mxu1 }
  0xe9   :  { %v3637_v42 = vadd.f32 %v2508_v40, %v2507_v34  ;;  %v3639_v43 = vadd.f32 %v2580_v41, %v2579_v35 }
  0xea   :  { %v2510_v44 = vpop.f32.mrf.mxu0  ;;  %v2582_v45 = vpop.f32.mrf.mxu1  ;;  %1650 = vmatmul.mubr.bf16.gmra.mxu0 %v3109_v36  ;;  %2879 = vmatmul.mubr.msk.bf16.gmra.mxu1 %vm1142_vm0, %v3110_v37 }
  0xeb   :  { %1657 = vmatprep.mubr.bf16.mxu0 %v3111_v38  ;;  %2882 = vmatprep.mubr.msk.bf16.mxu1 %vm1142_vm0, %v3113_v39  ;;  %v1229_v31 = vadd.f32 %v3637_v42, %v3683_v18  ;;  %v3121_v38 = vmov 0.0|0.0  }
  0xec   :  { %v2511_v46 = vpop.f32.mrf.mxu0  ;;  %v2583_v47 = vpop.f32.mrf.mxu1  ;;  %v2373_v39 = vcombine.low %v3121_v38, %v3121_v38  ;;  %v2374_v32 = vcombine.high %v3121_v38, %v3121_v38 }
  0xed   :  { %v3643_v48 = vadd.f32 %v2511_v46, %v2510_v44  ;;  %v3645_v49 = vadd.f32 %v2583_v47, %v2582_v45 }
  0xee   :  { %v2513_v50 = vpop.f32.mrf.mxu0  ;;  %v2585_v51 = vpop.f32.mrf.mxu1  ;;  %2154 = vst [vmem:[%s4022_s3 + $0x70] sm:$0xf] %v2373_v39  ;;  %2155 = vst [vmem:[%s4022_s3 + $0x74] sm:$0xf] %v2374_v32 }
  0xef   :  { %2156 = vst [vmem:[%s4022_s3 + $0x78] sm:$0xf] %v2373_v39  ;;  %2157 = vst [vmem:[%s4022_s3 + $0x7c] sm:$0xf] %v2374_v32  ;;  %v1234_v42 = vadd.f32 %v3643_v48, %v3683_v18 }
  0xf0   :  { %v2514_v56 = vpop.f32.mrf.mxu0  ;;  %v2586_v57 = vpop.f32.mrf.mxu1 }
  0xf1   :  { %v3659_v58 = vadd.f32 %v2514_v56, %v2513_v50  ;;  %v3661_v59 = vadd.f32 %v2586_v57, %v2585_v51 }
  0xf2   :  { %v2516_v60 = vpop.f32.mrf.mxu0  ;;  %v2588_v61 = vpop.f32.mrf.mxu1  ;;  %1658 = vmatmul.mubr.bf16.gmra.mxu0 %v3114_v52  ;;  %2883 = vmatmul.mubr.msk.bf16.gmra.mxu1 %vm1142_vm0, %v3115_v53 }
  0xf3   :  { %1665 = vmatprep.mubr.bf16.mxu0 %v3116_v54  ;;  %2886 = vmatprep.mubr.msk.bf16.mxu1 %vm1142_vm0, %v3118_v55  ;;  %v1237_v54 = vadd.f32 %v3659_v58, %v3683_v18 }
  0xf4   :  { %v2517_v62 = vpop.f32.mrf.mxu0  ;;  %v2589_v63 = vpop.f32.mrf.mxu1 }
  0xf5   :  { %v3665_v0 = vadd.f32 %v2517_v62, %v2516_v60 }
  0xf6   :  { %v2519_v1 = vpop.f32.mrf.mxu0  ;;  %v2591_v2 = vpop.f32.mrf.mxu1 }
  0xf7   :  { %v1242_v63 = vadd.f32 %v3665_v0, %v3683_v18 }
  0xf8   :  { %v2520_v5 = vpop.f32.mrf.mxu0  ;;  %v2592_v6 = vpop.f32.mrf.mxu1 }
  0xf9   :  { %v3673_v7 = vadd.f32 %v2520_v5, %v2519_v1 }
  0xfa   :  { %v2522_v8 = vpop.f32.mrf.mxu0  ;;  %v2594_v9 = vpop.f32.mrf.mxu1  ;;  %1666 = vmatmul.mubr.bf16.gmra.mxu0 %v3119_v3  ;;  %2887 = vmatmul.mubr.msk.bf16.gmra.mxu1 %vm1142_vm0, %v3120_v4 }
  0xfc   :  { %v2523_v10 = vpop.f32.mrf.mxu0  ;;  %v2595_v11 = vpop.f32.mrf.mxu1 }
  0xfd   :  { %v3676_v12 = vadd.f32 %v2523_v10, %v2522_v8  ;;  %v1245_v8 = vadd.f32 %v3673_v7, %v3683_v18 }
  0xfe   :  { %v2525_v13 = vpop.f32.mrf.mxu0  ;;  %v2597_v14 = vpop.f32.mrf.mxu1 }
 0x100   :  { %v2526_v15 = vpop.f32.mrf.mxu0  ;;  %v2598_v16 = vpop.f32.mrf.mxu1 }
 0x101   :  { %v3678_v17 = vadd.f32 %v2526_v15, %v2525_v13  ;;  %v1250_v16 = vadd.f32 %v3676_v12, %v3683_v18 }
 0x102   :  { %v2528_v19 = vpop.f32.mrf.mxu0  ;;  %v2616_v20 = vpop.f32.mrf.mxu1 }
 0x104   :  { %v2529_v21 = vpop.f32.mrf.mxu0  ;;  %v2617_v22 = vpop.f32.mrf.mxu1 }
 0x105   :  { %v3687_v24 = vadd.f32 %v2529_v21, %v2528_v19  ;;  %v2618_v25 = vadd.f32 %v2617_v22, %v2616_v20 }
 0x106   :  { %v2531_v26 = vpop.f32.mrf.mxu0  ;;  %v2619_v27 = vpop.f32.mrf.mxu1 }
 0x107   :  { %v3689_v28 = vadd.f32 %v2618_v25, %v1226_v23 }
 0x108   :  { %v2532_v29 = vpop.f32.mrf.mxu0  ;;  %v2620_v30 = vpop.f32.mrf.mxu1 }
 0x109   :  { %v3693_v34 = vadd.f32 %v2532_v29, %v2531_v26  ;;  %v2621_v35 = vadd.f32 %v2620_v30, %v2619_v27  ;;  %v1253_v26 = vadd.f32 %v3678_v17, %v3683_v18 }
 0x10a   :  { %v2534_v36 = vpop.f32.mrf.mxu0  ;;  %v2622_v37 = vpop.f32.mrf.mxu1 }
 0x10b   :  { %v3695_v40 = vadd.f32 %v2621_v35, %v1229_v31 }
 0x10c   :  { %v2535_v41 = vpop.f32.mrf.mxu0  ;;  %v2623_v44 = vpop.f32.mrf.mxu1 }
 0x10d   :  { %v3711_v45 = vadd.f32 %v2535_v41, %v2534_v36  ;;  %v2624_v46 = vadd.f32 %v2623_v44, %v2622_v37  ;;  %v1258_v37 = vadd.f32 %v3687_v24, %v3683_v18 }
 0x10e   :  { %v2537_v47 = vpop.f32.mrf.mxu0  ;;  %v2625_v50 = vpop.f32.mrf.mxu1 }
 0x10f   :  { %v3713_v51 = vadd.f32 %v2624_v46, %v1234_v42  ;;  %v1261_v46 = vadd.f32 %v3693_v34, %v3683_v18 }
 0x110   :  { %v2538_v52 = vpop.f32.mrf.mxu0  ;;  %v2626_v53 = vpop.f32.mrf.mxu1 }
 0x111   :  { %v3717_v55 = vadd.f32 %v2538_v52, %v2537_v47  ;;  %v2627_v56 = vadd.f32 %v2626_v53, %v2625_v50 }
 0x112   :  { %v2540_v57 = vpop.f32.mrf.mxu0  ;;  %v2628_v60 = vpop.f32.mrf.mxu1 }
 0x113   :  { %v3719_v61 = vadd.f32 %v2627_v56, %v1237_v54 }
 0x114   :  { %v2541_v48 = vpop.f32.mrf.mxu0  ;;  %v2629_v62 = vpop.f32.mrf.mxu1 }
 0x115   :  { %v3723_v1 = vadd.f32 %v2541_v48, %v2540_v57  ;;  %v2630_v2 = vadd.f32 %v2629_v62, %v2628_v60  ;;  %v1266_v57 = vadd.f32 %v3711_v45, %v3683_v18 }
 0x116   :  { %v2543_v3 = vpop.f32.mrf.mxu0  ;;  %v2631_v4 = vpop.f32.mrf.mxu1 }
 0x117   :  { %v3725_v5 = vadd.f32 %v2630_v2, %v1242_v63 }
 0x118   :  { %v2544_v58 = vpop.f32.mrf.mxu0  ;;  %v2632_v6 = vpop.f32.mrf.mxu1 }
 0x119   :  { %v3729_v9 = vadd.f32 %v2544_v58, %v2543_v3  ;;  %v2633_v10 = vadd.f32 %v2632_v6, %v2631_v4  ;;  %v1269_v4 = vadd.f32 %v3717_v55, %v3683_v18 }
 0x11a   :  { %v2546_v11 = vpop.f32.mrf.mxu0  ;;  %v2634_v13 = vpop.f32.mrf.mxu1 }
 0x11b   :  { %v3731_v14 = vadd.f32 %v2633_v10, %v1245_v8  ;;  %v1277_v55 = vadd.f32 %v3729_v9, %v3683_v18 }
 0x11c   :  { %v2547_v0 = vpop.f32.mrf.mxu0  ;;  %v2635_v15 = vpop.f32.mrf.mxu1 }
 0x11d   :  { %v3735_v19 = vadd.f32 %v2547_v0, %v2546_v11  ;;  %v2636_v20 = vadd.f32 %v2635_v15, %v2634_v13  ;;  %v1274_v0 = vadd.f32 %v3723_v1, %v3683_v18 }
 0x11e   :  { %v2549_v21 = vpop.f32.mrf.mxu0  ;;  %v2637_v22 = vpop.f32.mrf.mxu1 }
 0x11f   :  { %v3737_v23 = vadd.f32 %v2636_v20, %v1250_v16  ;;  %v1282_v1 = vadd.f32 %v3735_v19, %v3683_v18 }
 0x120   :  { %v2550_v7 = vpop.f32.mrf.mxu0  ;;  %v2638_v25 = vpop.f32.mrf.mxu1 }
 0x121   :  { %v3741_v27 = vadd.f32 %v2550_v7, %v2549_v21  ;;  %v2639_v29 = vadd.f32 %v2638_v25, %v2637_v22 }
 0x122   :  { %v2552_v30 = vpop.f32.mrf.mxu0  ;;  %v2640_v31 = vpop.f32.mrf.mxu1 }
 0x123   :  { %v3743_v35 = vadd.f32 %v2639_v29, %v1253_v26  ;;  %v1285_v9 = vadd.f32 %v3741_v27, %v3683_v18 }
 0x124   :  { %v2553_v12 = vpop.f32.mrf.mxu0  ;;  %v2641_v36 = vpop.f32.mrf.mxu1 }
 0x125   :  { %v3747_v38 = vadd.f32 %v2553_v12, %v2552_v30  ;;  %v2642_v39 = vadd.f32 %v2641_v36, %v2640_v31 }
 0x126   :  { %v2555_v32 = vpop.f32.mrf.mxu0  ;;  %v2643_v41 = vpop.f32.mrf.mxu1 }
 0x127   :  { %v3749_v44 = vadd.f32 %v2642_v39, %v1258_v37  ;;  %v1290_v19 = vadd.f32 %v3747_v38, %v3683_v18 }
 0x128   :  { %v2556_v17 = vpop.f32.mrf.mxu0  ;;  %v2644_v42 = vpop.f32.mrf.mxu1 }
 0x129   :  { %v3753_v47 = vadd.f32 %v2556_v17, %v2555_v32  ;;  %v2645_v50 = vadd.f32 %v2644_v42, %v2643_v41 }
 0x12a   :  { %v2558_v52 = vpop.f32.mrf.mxu0  ;;  %v2646_v53 = vpop.f32.mrf.mxu1 }
 0x12b   :  { %v3755_v54 = vadd.f32 %v2645_v50, %v1261_v46 }
 0x12c   :  { %v2559_v24 = vpop.f32.mrf.mxu0  ;;  %v2647_v56 = vpop.f32.mrf.mxu1 }
 0x12d   :  { %v3759_v60 = vadd.f32 %v2559_v24, %v2558_v52  ;;  %v2648_v48 = vadd.f32 %v2647_v56, %v2646_v53 }
 0x12e   :  { %v2561_v62 = vpop.f32.mrf.mxu0  ;;  %v2649_v63 = vpop.f32.mrf.mxu1 }
 0x12f   :  { %v3761_v2 = vadd.f32 %v2648_v48, %v1266_v57 }
 0x130   :  { %v2562_v34 = vpop.f32.mrf.mxu0  ;;  %v2650_v3 = vpop.f32.mrf.mxu1 }
 0x131   :  { %v2563_v58 = vadd.f32 %v2562_v34, %v2561_v62  ;;  %v2651_v6 = vadd.f32 %v2650_v3, %v2649_v63 }
 0x132   :  { %v2564_v8 = vpop.f32.mrf.mxu0  ;;  %v2652_v10 = vpop.f32.mrf.mxu1 }
 0x133   :  { %v3765_v11 = vadd.f32 %v2651_v6, %v1269_v4 }
 0x134   :  { %v2565_v13 = vpop.f32.mrf.mxu0  ;;  %v2653_v45 = vpop.f32.mrf.mxu1 }
 0x135   :  { %v2566_v15 = vadd.f32 %v2565_v13, %v2564_v8  ;;  %v2654_v16 = vadd.f32 %v2653_v45, %v2652_v10  ;;  %v1293_v13 = vadd.f32 %v3753_v47, %v3683_v18 }
 0x136   :  { %v2567_v20 = vpop.f32.mrf.mxu0  ;;  %v2655_v21 = vpop.f32.mrf.mxu1 }
 0x137   :  { %v3769_v22 = vadd.f32 %v2654_v16, %v1274_v0 }
 0x138   :  { %v2568_v7 = vpop.f32.mrf.mxu0  ;;  %v2656_v25 = vpop.f32.mrf.mxu1 }
 0x139   :  { %v2569_v26 = vadd.f32 %v2568_v7, %v2567_v20  ;;  %v2657_v29 = vadd.f32 %v2656_v25, %v2655_v21  ;;  %v1298_v7 = vadd.f32 %v3759_v60, %v3683_v18  ;;  %v1306_v60 = vadd.f32 %v2566_v15, %v3683_v18 }
 0x13a   :  { %v2570_v30 = vpop.f32.mrf.mxu0  ;;  %v2658_v31 = vpop.f32.mrf.mxu1 }
 0x13b   :  { %v3773_v12 = vadd.f32 %v2657_v29, %v1277_v55 }
 0x13c   :  { %v2571_v36 = vpop.f32.mrf.mxu0  ;;  %v2659_v37 = vpop.f32.mrf.mxu1 }
 0x13d   :  { %v2572_v39 = vadd.f32 %v2571_v36, %v2570_v30  ;;  %v2660_v32 = vadd.f32 %v2659_v37, %v2658_v31  ;;  %v1301_v31 = vadd.f32 %v2563_v58, %v3683_v18  ;;  %v1309_v58 = vadd.f32 %v2569_v26, %v3683_v18 }
 0x13e   :  { %v2573_v41 = vpop.f32.mrf.mxu0  ;;  %v2661_v17 = vpop.f32.mrf.mxu1 }
 0x13f   :  { %v3777_v42 = vadd.f32 %v2660_v32, %v1282_v1  ;;  %v1314_v15 = vadd.f32 %v2572_v39, %v3683_v18  ;;  %v1322_v39 = vadd.f32 %v3623_v33, %v3683_v18 }
 0x140   :  { %v2574_v46 = vpop.f32.mrf.mxu0  ;;  %v2662_v50 = vpop.f32.mrf.mxu1 }
 0x141   :  { %v2575_v52 = vadd.f32 %v2574_v46, %v2573_v41  ;;  %v2663_v53 = vadd.f32 %v2662_v50, %v2661_v17 }
 0x142   :  { %v2664_v24 = vpop.f32.mrf.mxu1  ;;  %v2728_v56 = vpop.f32.mrf.mxu0 }
 0x143   :  { %v3781_v57 = vadd.f32 %v2663_v53, %v1285_v9  ;;  %v1317_v26 = vadd.f32 %v2575_v52, %v3683_v18 }
 0x144   :  { %v2665_v48 = vpop.f32.mrf.mxu1  ;;  %v2729_v62 = vpop.f32.mrf.mxu0 }
 0x145   :  { %v2666_v63 = vadd.f32 %v2665_v48, %v2664_v24  ;;  %v2730_v34 = vadd.f32 %v2729_v62, %v2728_v56 }
 0x146   :  { %v2667_v3 = vpop.f32.mrf.mxu1  ;;  %v3785_v4 = vpop.f32.mrf.mxu0 }
 0x147   :  { %v3787_v6 = vadd.f32 %v2666_v63, %v1290_v19  ;;  %v3790_v27 = vadd.f32 %v2730_v34, %v3689_v28 }
 0x148   :  { %v2668_v8 = vpop.f32.mrf.mxu1  ;;  %v3792_v10 = vpop.f32.mrf.mxu0 }
 0x149   :  { %v2669_v45 = vadd.f32 %v2668_v8, %v2667_v3 }
 0x14a   :  { %v2670_v0 = vpop.f32.mrf.mxu1  ;;  %v3796_v16 = vpop.f32.mrf.mxu0 }
 0x14b   :  { %v3798_v38 = vadd.f32 %v2669_v45, %v1293_v13 }
 0x14c   :  { %v2671_v20 = vpop.f32.mrf.mxu1  ;;  %v3800_v21 = vpop.f32.mrf.mxu0 }
 0x14d   :  { %v2672_v28 = vadd.f32 %v2671_v20, %v2670_v0 }
 0x14e   :  { %v2673_v25 = vpop.f32.mrf.mxu1  ;;  %v3804_v55 = vpop.f32.mrf.mxu0 }
 0x14f   :  { %v3806_v29 = vadd.f32 %v2672_v28, %v1298_v7 }
 0x150   :  { %v2674_v30 = vpop.f32.mrf.mxu1  ;;  %v3808_v47 = vpop.f32.mrf.mxu0 }
 0x151   :  { %v2675_v36 = vadd.f32 %v2674_v30, %v2673_v25 }
 0x152   :  { %v2676_v37 = vpop.f32.mrf.mxu1  ;;  %v3811_v1 = vpop.f32.mrf.mxu0 }
 0x153   :  { %v3813_v32 = vadd.f32 %v2675_v36, %v1301_v31 }
 0x154   :  { %v2677_v41 = vpop.f32.mrf.mxu1  ;;  %v3815_v17 = vpop.f32.mrf.mxu0 }
 0x155   :  { %v2678_v46 = vadd.f32 %v2677_v41, %v2676_v37 }
 0x156   :  { %v2679_v50 = vpop.f32.mrf.mxu1  ;;  %v3818_v9 = vpop.f32.mrf.mxu0 }
 0x157   :  { %v3820_v53 = vadd.f32 %v2678_v46, %v1306_v60 }
 0x158   :  { %v2680_v24 = vpop.f32.mrf.mxu1  ;;  %v3822_v56 = vpop.f32.mrf.mxu0 }
 0x159   :  { %v2681_v48 = vadd.f32 %v2680_v24, %v2679_v50 }
 0x15a   :  { %v2682_v62 = vpop.f32.mrf.mxu1  ;;  %v3825_v19 = vpop.f32.mrf.mxu0 }
 0x15b   :  { %v3827_v63 = vadd.f32 %v2681_v48, %v1309_v58  ;;  %v1325_v58 = vadd.f32 %v3639_v43, %v3683_v18 }
 0x15c   :  { %v2683_v34 = vpop.f32.mrf.mxu1  ;;  %v3829_v3 = vpop.f32.mrf.mxu0 }
 0x15d   :  { %4023 = vst [vmem:[#allocation2_spill] sm:$0xff] %v3827_v63  ;;  %v2684_v8 = vadd.f32 %v2683_v34, %v2682_v62 }
 0x15e   :  { %v2685_v13 = vpop.f32.mrf.mxu1  ;;  %v3832_v45 = vpop.f32.mrf.mxu0 }
 0x15f   :  { %v3834_v0 = vadd.f32 %v2684_v8, %v1314_v15 }
 0x160   :  { %v2686_v20 = vpop.f32.mrf.mxu1  ;;  %v3836_v7 = vpop.f32.mrf.mxu0 }
 0x161   :  { %v2687_v28 = vadd.f32 %v2686_v20, %v2685_v13  ;;  %v1330_v13 = vadd.f32 %v3645_v49, %v3683_v18 }
 0x162   :  { %v2688_v25 = vpop.f32.mrf.mxu1  ;;  %v3839_v30 = vpop.f32.mrf.mxu0 }
 0x163   :  { %v3841_v31 = vadd.f32 %v2687_v28, %v1317_v26 }
 0x164   :  { %v2689_v36 = vpop.f32.mrf.mxu1  ;;  %v3843_v37 = vpop.f32.mrf.mxu0 }
 0x165   :  { %4024 = vst [vmem:[#allocation3_spill] sm:$0xff] %v3841_v31  ;;  %v2690_v41 = vadd.f32 %v2689_v36, %v2688_v25 }
 0x166   :  { %v2691_v60 = vpop.f32.mrf.mxu1  ;;  %v3847_v46 = vpop.f32.mrf.mxu0 }
 0x167   :  { %v3849_v50 = vadd.f32 %v2690_v41, %v1322_v39  ;;  %v1333_v39 = vadd.f32 %v3661_v59, %v3683_v18 }
 0x168   :  { %v2692_v24 = vpop.f32.mrf.mxu1  ;;  %v3851_v52 = vpop.f32.mrf.mxu0 }
 0x169   :  { %4025 = vst [vmem:[#allocation4_spill] sm:$0xff] %v3849_v50  ;;  %v2693_v48 = vadd.f32 %v2692_v24, %v2691_v60 }
 0x16a   :  { %v2694_v62 = vpop.f32.mrf.mxu1  ;;  %v3855_v34 = vpop.f32.mrf.mxu0 }
 0x16b   :  { %v3857_v15 = vadd.f32 %v2693_v48, %v1325_v58 }
 0x16c   :  { %v2695_v8 = vpop.f32.mrf.mxu1  ;;  %v3859_v33 = vpop.f32.mrf.mxu0 }
 0x16d   :  { %4026 = vst [vmem:[#allocation5_spill] sm:$0xff] %v3857_v15  ;;  %v2696_v20 = vadd.f32 %v2695_v8, %v2694_v62 }
 0x16e   :  { %v2697_v26 = vpop.f32.mrf.mxu1  ;;  %v3863_v28 = vpop.f32.mrf.mxu0 }
 0x16f   :  { %v3865_v25 = vadd.f32 %v2696_v20, %v1330_v13 }
 0x170   :  { %v2698_v36 = vpop.f32.mrf.mxu1  ;;  %v3867_v43 = vpop.f32.mrf.mxu0 }
 0x171   :  { %4027 = vst [vmem:[#allocation6_spill] sm:$0xff] %v3865_v25  ;;  %v2699_v41 = vadd.f32 %v2698_v36, %v2697_v26  ;;  %v2736_v36 = vadd.f32 %v3800_v21, %v3796_v16 }
 0x172   :  { %v2700_v60 = vpop.f32.mrf.mxu1  ;;  %v3871_v24 = vpop.f32.mrf.mxu0 }
 0x173   :  { %v3873_v58 = vadd.f32 %v2699_v41, %v1333_v39  ;;  %v2739_v60 = vadd.f32 %v3808_v47, %v3804_v55  ;;  %v2748_v55 = vadd.f32 %v3829_v3, %v3825_v19  ;;  %v2745_v19 = vadd.f32 %v3822_v56, %v3818_v9 }
 0x174   :  { %v2701_v48 = vpop.f32.mrf.mxu1  ;;  %v3875_v49 = vpop.f32.mrf.mxu0 }
 0x175   :  { %4028 = vst [vmem:[#allocation7_spill] sm:$0xff] %v3873_v58  ;;  %v1559_v16 = vadd.f32 %v2739_v60, %v3719_v61  ;;  %v2751_v61 = vadd.f32 %v3836_v7, %v3832_v45 }
 0x176   :  { %v2703_v62 = vpop.f32.mrf.mxu1  ;;  %v3877_v8 = vpop.f32.mrf.mxu0 }
 0x177   :  { %v1556_v62 = vadd.f32 %v2736_v36, %v3713_v51  ;;  %v2742_v51 = vadd.f32 %v3815_v17, %v3811_v1  ;;  %v1572_v1 = vadd.f32 %v2748_v55, %v3737_v23  ;;  %v1575_v9 = vadd.f32 %v2751_v61, %v3743_v35 }
 0x178   :  { %v2704_v13 = vpop.f32.mrf.mxu1  ;;  %v3879_v20 = vpop.f32.mrf.mxu0  ;;  %v2754_v55 = vadd.f32 %v3843_v37, %v3839_v30  ;;  %v2763_v35 = vadd.f32 %v3867_v43, %v3863_v28 }
 0x179   :  { %v1564_v7 = vadd.f32 %v2742_v51, %v3725_v5 }
 0x17a   :  { %v2706_v15 = vpop.f32.mrf.mxu1  ;;  %v3881_v50 = vpop.f32.mrf.mxu0 }
 0x17c   :  { %v2707_v25 = vpop.f32.mrf.mxu1  ;;  %v3883_v59 = vpop.f32.mrf.mxu0 }
 0x17d   :  { %v2733_v25 = vadd.f32 %v3792_v10, %v3785_v4 }
 0x17e   :  { %v2709_v18 = vpop.f32.mrf.mxu1  ;;  %v3885_v26 = vpop.f32.mrf.mxu0 }
 0x17f   :  { %v1551_v31 = vadd.f32 %v2733_v25, %v3695_v40 }
 0x180   :  { %v2710_v39 = vpop.f32.mrf.mxu1  ;;  %v3889_v41 = vpop.f32.mrf.mxu0 }
 0x182   :  { %v3893_v48 = vpop.f32.mrf.mxu0  ;;  %v2860_v15 = vpop.f32.mrf.mxu1 }
 0x183   :  { %v1717_v58 = vadd.f32 %v2860_v15, %v1556_v62 }
 0x184   :  { %v3898_v13 = vpop.f32.mrf.mxu0  ;;  %v1708_v18 = vpop.f32.mrf.mxu1 }
 0x185   :  { %v1709_v47 = vadd.f32 %v1708_v18, %v3790_v27  ;;  %v1837_v36 = vmax.f32 %v1717_v58, 0.0  ;;  %v2760_v58 = vadd.f32 %v3859_v33, %v3855_v34  ;;  %v2757_v34 = vadd.f32 %v3851_v52, %v3847_v46 }
 0x186   :  { %v3901_v21 = vpop.f32.mrf.mxu0  ;;  %v2861_v39 = vpop.f32.mrf.mxu1  ;;  %v1591_v46 = vadd.f32 %v2763_v35, %v3765_v11  ;;  %v2775_v11 = vadd.f32 %v3889_v41, %v3885_v26 }
 0x187   :  { %v1720_v63 = vadd.f32 %v2861_v39, %v1559_v16  ;;  %v1835_v62 = vmax.f32 %v1709_v47, 0.0  ;;  %v1567_v39 = vadd.f32 %v2745_v19, %v3731_v14  ;;  %v1588_v19 = vadd.f32 %v2760_v58, %v3761_v2 }
 0x188   :  { %v3909_v4 = vpop.f32.mrf.mxu0  ;;  %v1711_v10 = vpop.f32.mrf.mxu1 }
 0x189   :  { %v1838_v60 = vmax.f32 %v1720_v63, 0.0  ;;  %v1712_v15 = vadd.f32 %v1711_v10, %v1551_v31 }
 0x18a   :  { %v3915_v3 = vpop.f32.mrf.mxu0  ;;  %v2864_v27 = vpop.f32.mrf.mxu1 }
 0x18b   :  { %v2413_v40 = vpack.c.bf16 %v1838_v60, %v1837_v36  ;;  %v1836_v25 = vmax.f32 %v1712_v15, 0.0  ;;  %v1733_v45 = vadd.f32 %v2864_v27, %v1572_v1  ;;  %v1580_v27 = vadd.f32 %v2754_v55, %v3749_v44 }
 0x18c   :  { %v3918_v17 = vpop.f32.mrf.mxu0  ;;  %v1724_v18 = vpop.f32.mrf.mxu1  ;;  %v1583_v1 = vadd.f32 %v2757_v34, %v3755_v54  ;;  %v1607_v55 = vadd.f32 %v2775_v11, %v3781_v57 }
 0x18d   :  { %2475 = vst [vmem:[%s4022_s3 + $0x8] sm:$0xff] %v2413_v40   ;;  %v2408_v63 = vpack.c.bf16 %v1836_v25, %v1835_v62  ;;  %v1725_v23 = vadd.f32 %v1724_v18, %v1564_v7  ;;  %v1841_v51 = vmax.f32 %v1733_v45, 0.0  ;;  %v2772_v40 = vadd.f32 %v3883_v59, %v3881_v50 }
 0x18e   :  { %v3925_v56 = vpop.f32.mrf.mxu0  ;;  %v2865_v31 = vpop.f32.mrf.mxu1  ;;  %v2766_v18 = vadd.f32 %v3875_v49, %v3871_v24  ;;  %v2769_v50 = vadd.f32 %v3879_v20, %v3877_v8 }
 0x18f   :  { %2409 = vst [vmem:[%s4022_s3] sm:$0xff] %v2408_v63   ;;  %v1736_v16 = vadd.f32 %v2865_v31, %v1575_v9  ;;  %v1839_v60 = vmax.f32 %v1725_v23, 0.0  ;;  %v1604_v54 = vadd.f32 %v2772_v40, %v3777_v42 }
 0x190   :  { %v2786_v5 = vpop.f32.mrf.mxu0  ;;  %v1727_v47 = vpop.f32.mrf.mxu1  ;;  %v1596_v41 = vadd.f32 %v2766_v18, %v3769_v22 }
 0x191   :  { %v1842_v10 = vmax.f32 %v1736_v16, 0.0  ;;  %v1728_v61 = vadd.f32 %v1727_v47, %v1567_v39  ;;  %v2784_v47 = vadd.f32 %v3918_v17, %v3915_v3  ;;  %v2787_v57 = vadd.f32 %v2786_v5, %v3925_v56 }
 0x192   :  { %v3939_v33 = vpop.f32.mrf.mxu0  ;;  %v2868_v36 = vpop.f32.mrf.mxu1  ;;  %v2781_v3 = vadd.f32 %v3909_v4, %v3901_v21 }
 0x193   :  { %v2423_v15 = vpack.c.bf16 %v1842_v10, %v1841_v51  ;;  %v1840_v14 = vmax.f32 %v1728_v61, 0.0  ;;  %v1749_v43 = vadd.f32 %v2868_v36, %v1588_v19  ;;  %v1599_v51 = vadd.f32 %v2769_v50, %v3773_v12 }
 0x194   :  { %v3942_v30 = vpop.f32.mrf.mxu0  ;;  %v1740_v37 = vpop.f32.mrf.mxu1  ;;  %v2778_v10 = vadd.f32 %v3898_v13, %v3893_v48  ;;  %v1620_v12 = vadd.f32 %v2784_v47, %v3806_v29  ;;  %v1623_v5 = vadd.f32 %v2787_v57, %v3813_v32  ;;  %v4031_v57 = vld [vmem:[#allocation6_spill] sm:$0xff] }
 0x195   :  { %2477 = vst [vmem:[%s4022_s3 + $0x18] sm:$0xff] %v2423_v15   ;;  %v2418_v28 = vpack.c.bf16 %v1840_v14, %v1839_v60  ;;  %v1741_v2 = vadd.f32 %v1740_v37, %v1580_v27  ;;  %v1845_v45 = vmax.f32 %v1749_v43, 0.0  ;;  %v2790_v40 = vadd.f32 %v3942_v30, %v3939_v33 }
 0x196   :  { %v3949_v52 = vpop.f32.mrf.mxu0  ;;  %v2869_v62 = vpop.f32.mrf.mxu1  ;;  %v1612_v56 = vadd.f32 %v2778_v10, %v3787_v6 }
 0x197   :  { %2476 = vst [vmem:[%s4022_s3 + $0x10] sm:$0xff] %v2418_v28   ;;  %v1752_v25 = vadd.f32 %v2869_v62, %v1591_v46  ;;  %v1843_v58 = vmax.f32 %v1741_v2, 0.0  ;;  %v1615_v62 = vadd.f32 %v2781_v3, %v3798_v38 }
 0x198   :  { %v2792_v44 = vpop.f32.mrf.mxu0  ;;  %v1743_v63 = vpop.f32.mrf.mxu1 }
 0x199   :  { %v1846_v7 = vmax.f32 %v1752_v25, 0.0  ;;  %v1744_v9 = vadd.f32 %v1743_v63, %v1583_v1  ;;  %v2793_v63 = vadd.f32 %v2792_v44, %v3949_v52 }
 0x19a   :  { %v2794_v59 = vpop.f32.mrf.mxu0  ;;  %v2872_v31 = vpop.f32.mrf.mxu1 }
 0x19b   :  { %v2433_v23 = vpack.c.bf16 %v1846_v7, %v1845_v45  ;;  %v1844_v16 = vmax.f32 %v1744_v9, 0.0  ;;  %v1765_v26 = vadd.f32 %v2872_v31, %v1604_v54 }
 0x19c   :  { %v2795_v39 = vpop.f32.mrf.mxu0  ;;  %v1756_v24 = vpop.f32.mrf.mxu1 }
 0x19d   :  { %2479 = vst [vmem:[%s4022_s3 + $0x28] sm:$0xff] %v2433_v23   ;;  %v2428_v49 = vpack.c.bf16 %v1844_v16, %v1843_v58  ;;  %v1757_v42 = vadd.f32 %v1756_v24, %v1596_v41  ;;  %v1849_v34 = vmax.f32 %v1765_v26, 0.0  ;;  %v2796_v27 = vadd.f32 %v2795_v39, %v2794_v59  ;;  %v4029_v23 = vld [vmem:[#allocation3_spill] sm:$0xff]  ;;  %v4030_v24 = vld [vmem:[#allocation2_spill] sm:$0xff] }
 0x19e   :  { %v2797_v8 = vpop.f32.mrf.mxu0  ;;  %v2873_v20 = vpop.f32.mrf.mxu1  ;;  %v1628_v58 = vadd.f32 %v2790_v40, %v3820_v53 }
 0x19f   :  { %2478 = vst [vmem:[%s4022_s3 + $0x20] sm:$0xff] %v2428_v49   ;;  %v1768_v35 = vadd.f32 %v2873_v20, %v1607_v55  ;;  %v1847_v14 = vmax.f32 %v1757_v42, 0.0  ;;  %v1636_v59 = vadd.f32 %v2796_v27, %v3834_v0  ;;  %v1631_v49 = vadd.f32 %v2793_v63, %v4030_v24 }
 0x1a0   :  { %v2798_v61 = vpop.f32.mrf.mxu0  ;;  %v1759_v22 = vpop.f32.mrf.mxu1 }
 0x1a1   :  { %v1850_v36 = vmax.f32 %v1768_v35, 0.0  ;;  %v1760_v60 = vadd.f32 %v1759_v22, %v1599_v51  ;;  %v2799_v1 = vadd.f32 %v2798_v61, %v2797_v8 }
 0x1a2   :  { %v2800_v17 = vpop.f32.mrf.mxu0  ;;  %v2876_v15 = vpop.f32.mrf.mxu1 }
 0x1a3   :  { %v2443_v19 = vpack.c.bf16 %v1850_v36, %v1849_v34  ;;  %v1848_v37 = vmax.f32 %v1760_v60, 0.0  ;;  %v1781_v13 = vadd.f32 %v2876_v15, %v1620_v12  ;;  %v1639_v16 = vadd.f32 %v2799_v1, %v4029_v23  ;;  %v4032_v15 = vld [vmem:[#allocation4_spill] sm:$0xff] }
 0x1a4   :  { %v2801_v28 = vpop.f32.mrf.mxu0  ;;  %v1772_v43 = vpop.f32.mrf.mxu1 }
 0x1a5   :  { %2481 = vst [vmem:[%s4022_s3 + $0x38] sm:$0xff] %v2443_v19   ;;  %v2438_v48 = vpack.c.bf16 %v1848_v37, %v1847_v14  ;;  %v1773_v29 = vadd.f32 %v1772_v43, %v1612_v56  ;;  %v1853_v6 = vmax.f32 %v1781_v13, 0.0  ;;  %v2802_v26 = vadd.f32 %v2801_v28, %v2800_v17  ;;  %v4033_v19 = vld [vmem:[#allocation7_spill] sm:$0xff]  ;;  %v4034_v13 = vld [vmem:[#allocation5_spill] sm:$0xff] }
 0x1a6   :  { %v2803_v21 = vpop.f32.mrf.mxu0  ;;  %v2877_v4 = vpop.f32.mrf.mxu1 }
 0x1a7   :  { %2480 = vst [vmem:[%s4022_s3 + $0x30] sm:$0xff] %v2438_v48   ;;  %v1784_v46 = vadd.f32 %v2877_v4, %v1623_v5  ;;  %v1851_v7 = vmax.f32 %v1773_v29, 0.0  ;;  %v1644_v14 = vadd.f32 %v2802_v26, %v4032_v15 }
 0x1a8   :  { %v2804_v2 = vpop.f32.mrf.mxu0  ;;  %v1775_v25 = vpop.f32.mrf.mxu1 }
 0x1a9   :  { %v1854_v18 = vmax.f32 %v1784_v46, 0.0  ;;  %v1776_v32 = vadd.f32 %v1775_v25, %v1615_v62  ;;  %v2805_v42 = vadd.f32 %v2804_v2, %v2803_v21 }
 0x1aa   :  { %v2806_v11 = vpop.f32.mrf.mxu0  ;;  %v2880_v45 = vpop.f32.mrf.mxu1 }
 0x1ab   :  { %v2453_v9 = vpack.c.bf16 %v1854_v18, %v1853_v6  ;;  %v1852_v50 = vmax.f32 %v1776_v32, 0.0  ;;  %v1797_v30 = vadd.f32 %v2880_v45, %v1636_v59  ;;  %v1647_v56 = vadd.f32 %v2805_v42, %v4034_v13 }
 0x1ac   :  { %v2807_v31 = vpop.f32.mrf.mxu0  ;;  %v1788_v38 = vpop.f32.mrf.mxu1 }
 0x1ad   :  { %2483 = vst [vmem:[%s4022_s3 + $0x48] sm:$0xff] %v2453_v9   ;;  %v2448_v33 = vpack.c.bf16 %v1852_v50, %v1851_v7  ;;  %v2808_v54 = vadd.f32 %v2807_v31, %v2806_v11  ;;  %v1789_v0 = vadd.f32 %v1788_v38, %v1628_v58  ;;  %v1857_v8 = vmax.f32 %v1797_v30, 0.0 }
 0x1ae   :  { %v2809_v52 = vpop.f32.mrf.mxu0  ;;  %v2881_v44 = vpop.f32.mrf.mxu1 }
 0x1af   :  { %2482 = vst [vmem:[%s4022_s3 + $0x40] sm:$0xff] %v2448_v33   ;;  %v1800_v39 = vadd.f32 %v2881_v44, %v1639_v16  ;;  %v1855_v10 = vmax.f32 %v1789_v0, 0.0  ;;  %v1652_v34 = vadd.f32 %v2808_v54, %v4031_v57 }
 0x1b0   :  { %v2810_v41 = vpop.f32.mrf.mxu0  ;;  %v1791_v55 = vpop.f32.mrf.mxu1 }
 0x1b1   :  { %v1858_v20 = vmax.f32 %v1800_v39, 0.0  ;;  %v2811_v47 = vadd.f32 %v2810_v41, %v2809_v52  ;;  %v1792_v53 = vadd.f32 %v1791_v55, %v1631_v49 }
 0x1b2   :  { %v2812_v35 = vpop.f32.mrf.mxu0  ;;  %v2884_v51 = vpop.f32.mrf.mxu1 }
 0x1b3   :  { %v2463_v61 = vpack.c.bf16 %v1858_v20, %v1857_v8  ;;  %v1856_v22 = vmax.f32 %v1792_v53, 0.0  ;;  %v1813_v17 = vadd.f32 %v2884_v51, %v1652_v34  ;;  %v1655_v37 = vadd.f32 %v2811_v47, %v4033_v19 }
 0x1b4   :  { %v2813_v36 = vpop.f32.mrf.mxu0  ;;  %v1804_v60 = vpop.f32.mrf.mxu1 }
 0x1b5   :  { %2485 = vst [vmem:[%s4022_s3 + $0x58] sm:$0xff] %v2463_v61   ;;  %v2458_v3 = vpack.c.bf16 %v1856_v22, %v1855_v10  ;;  %v1805_v43 = vadd.f32 %v1804_v60, %v1644_v14  ;;  %v1861_v4 = vmax.f32 %v1813_v17, 0.0 }
 0x1b6   :  { %v2815_v12 = vpop.f32.mrf.mxu0  ;;  %v2885_v28 = vpop.f32.mrf.mxu1 }
 0x1b7   :  { %2484 = vst [vmem:[%s4022_s3 + $0x50] sm:$0xff] %v2458_v3   ;;  %v1816_v48 = vadd.f32 %v2885_v28, %v1655_v37  ;;  %v1859_v40 = vmax.f32 %v1805_v43, 0.0 }
 0x1b8   :  { %v2816_v5 = vpop.f32.mrf.mxu0  ;;  %v1807_v21 = vpop.f32.mrf.mxu1 }
 0x1b9   :  { %v1862_v27 = vmax.f32 %v1816_v48, 0.0  ;;  %v1808_v29 = vadd.f32 %v1807_v21, %v1647_v56 }
 0x1ba   :  { %v2818_v46 = vpop.f32.mrf.mxu0  ;;  %v2888_v62 = vpop.f32.mrf.mxu1 }
 0x1bb   :  { %v2473_v2 = vpack.c.bf16 %v1862_v27, %v1861_v4  ;;  %v1860_v25 = vmax.f32 %v1808_v29, 0.0 }
 0x1bc   :  { %v2819_v1 = vpop.f32.mrf.mxu0  ;;  %v1820_v6 = vpop.f32.mrf.mxu1 }
 0x1bd   :  { %2487 = vst [vmem:[%s4022_s3 + $0x68] sm:$0xff] %v2473_v2   ;;  %v2468_v18 = vpack.c.bf16 %v1860_v25, %v1859_v40 }
 0x1be   :  { %v2821_v32 = vpop.f32.mrf.mxu0  ;;  %v2889_v63 = vpop.f32.mrf.mxu1 }
 0x1bf   :  { %2486 = vst [vmem:[%s4022_s3 + $0x60] sm:$0xff] %v2468_v18  }
 0x1c0   :  { %v2822_v11 = vpop.f32.mrf.mxu0  ;;  %v1823_v45 = vpop.f32.mrf.mxu1 }

// kernel: sparse_encoder_forward.18
= control target key start
LH: loop header
LB: loop body
LE: loop exit
PB: predicated region body
PF: predicated region fallthrough
CT: control target
= control target key end

     0   :  { %vm2214_vm0 = vcmask 523264   ;;  %s6728_s1 = inlined_call_operand.vmem [shape: bf16[1728,128], index: 1, kind: input, shape index: {}]   ;;  %s6729_s0 = inlined_call_operand.vmem [shape: bf16[256,1728], index: 0, kind: input, shape index: {}]   ;;  %s6730_s2 = inlined_call_operand.vmem [shape: f32[1,128], index: 2, kind: input, shape index: {}]   ;;  %s6731_s3 = inlined_call_operand.vmem [shape: bf16[256,128], index: 3, kind: output, shape index: {}]  }
   0x1   :  { %v4899_v0 = vld [vmem:[%s6728_s1 + $0x78] sm:$0xff]   ;;  %v4901_v2 = vld [vmem:[%s6728_s1 + $0x70] sm:$0xff]   ;;  %v4903_v4 = vld [vmem:[%s6728_s1 + $0x68] sm:$0xff]  }
   0x2   :  { %v4900_v1 = vld [vmem:[%s6728_s1 + $0x38] sm:$0xff]   ;;  %4209 = vmatprep.subr.bf16.mxu0 %v4899_v0  ;;  %4881 = vmatprep.subr.bf16.mxu1 %v4899_v0  ;;  %v4902_v3 = vld [vmem:[%s6728_s1 + $0x30] sm:$0xff]   ;;  %v4904_v5 = vld [vmem:[%s6728_s1 + $0x28] sm:$0xff]  }
   0x3   :  { %4210 = vmatpush3.bf16.msra.mxu0 %v4900_v1  ;;  %4889 = vmatpush3.bf16.msra.mxu1 %v4900_v1  ;;  %v4905_v6 = vld [vmem:[%s6728_s1 + $0x60] sm:$0xff]   ;;  %v4907_v8 = vld [vmem:[%s6728_s1 + $0x58] sm:$0xff]   ;;  %v4909_v10 = vld [vmem:[%s6728_s1 + $0x50] sm:$0xff]  }
   0x4   :  { %4211 = vmatprep.subr.bf16.mxu0 %v4901_v2  ;;  %4882 = vmatprep.subr.bf16.mxu1 %v4901_v2  ;;  %v4906_v7 = vld [vmem:[%s6728_s1 + $0x20] sm:$0xff]   ;;  %v4908_v9 = vld [vmem:[%s6728_s1 + $0x18] sm:$0xff]   ;;  %v4910_v13 = vld [vmem:[%s6728_s1 + $0x10] sm:$0xff]  }
   0x5   :  { %v4917_v11 = vld [vmem:[%s6729_s0 + $0x4] ss:$56 sps:$4 sm:$0xff]   ;;  %v4911_v14 = vld [vmem:[%s6728_s1 + $0x48] sm:$0xff]   ;;  %v4915_v19 = vld [vmem:[%s6729_s0] ss:$56 sps:$4 sm:$0xff]  }
   0x6   :  { %v4920_v12 = vld [vmem:[%s6729_s0 + $0x384] ss:$56 sps:$4 sm:$0xff]   ;;  %2295 = vmatprep.mubr.bf16.mxu0 %v4917_v11  ;;  %v4912_v15 = vld [vmem:[%s6728_s1 + $0x8] sm:$0xff]   ;;  %v4918_v20 = vld [vmem:[%s6729_s0 + $0x380] ss:$56 sps:$4 sm:$0xff]  }
   0x7   :  { %4212 = vmatpush3.bf16.msra.mxu0 %v4902_v3  ;;  %4890 = vmatpush3.bf16.msra.mxu1 %v4902_v3  ;;  %v4913_v16 = vld [vmem:[%s6728_s1 + $0x40] sm:$0xff]   ;;  %v4921_v18 = vld [vmem:[%s6728_s1 + $0xf8] sm:$0xff]   ;;  %v4925_v24 = vld [vmem:[%s6729_s0 + $0x74] ss:$56 sps:$4 sm:$0xff]  }
   0x8   :  { %4213 = vmatprep.subr.bf16.mxu0 %v4903_v4  ;;  %4883 = vmatprep.subr.bf16.mxu1 %v4903_v4  ;;  %v4914_v17 = vld [vmem:[%s6728_s1] sm:$0xff]   ;;  %v4922_v21 = vld [vmem:[%s6728_s1 + $0x178] sm:$0xff]   ;;  %v4927_v25 = vld [vmem:[%s6729_s0 + $0x3f4] ss:$56 sps:$4 sm:$0xff]  }
   0x9   :  { %2359 = vmatprep.mubr.bf16.mxu1 %v4920_v12  ;;  %v4923_v22 = vld [vmem:[%s6728_s1 + $0xb8] sm:$0xff]   ;;  %v4931_v26 = vld [vmem:[%s6728_s1 + $0xf0] sm:$0xff]   ;;  %v4941_v30 = vld [vmem:[%s6728_s1 + $0xe8] sm:$0xff]  }
   0xa   :  { %v4924_v23 = vld [vmem:[%s6728_s1 + $0x138] sm:$0xff]   ;;  %v4932_v27 = vld [vmem:[%s6728_s1 + $0x170] sm:$0xff]   ;;  %v4942_v33 = vld [vmem:[%s6728_s1 + $0x168] sm:$0xff]  }
   0xb   :  { %4214 = vmatpush3.bf16.msra.mxu0 %v4904_v5  ;;  %4891 = vmatpush3.bf16.msra.mxu1 %v4904_v5  ;;  %v4933_v28 = vld [vmem:[%s6728_s1 + $0xb0] sm:$0xff]   ;;  %v4935_v34 = vld [vmem:[%s6729_s0 + $0xe4] ss:$56 sps:$4 sm:$0xff]   ;;  %v4943_v36 = vld [vmem:[%s6728_s1 + $0xa8] sm:$0xff]  }
   0xc   :  { %4215 = vmatprep.subr.bf16.mxu0 %v4905_v6  ;;  %4884 = vmatprep.subr.bf16.mxu1 %v4905_v6  ;;  %v4934_v29 = vld [vmem:[%s6728_s1 + $0x130] sm:$0xff]   ;;  %v4937_v35 = vld [vmem:[%s6729_s0 + $0x464] ss:$56 sps:$4 sm:$0xff]   ;;  %v4944_v37 = vld [vmem:[%s6728_s1 + $0x128] sm:$0xff]  }
   0xd   :  { %v4929_v31 = vld [vmem:[%s6729_s0 + $0x70] ss:$56 sps:$4 sm:$0xff]   ;;  %v4951_v38 = vld [vmem:[%s6728_s1 + $0xe0] sm:$0xff]   ;;  %v4945_v44 = vld [vmem:[%s6729_s0 + $0x154] ss:$56 sps:$4 sm:$0xff]  }
   0xe   :  { %v4930_v32 = vld [vmem:[%s6729_s0 + $0x3f0] ss:$56 sps:$4 sm:$0xff]   ;;  %v4952_v39 = vld [vmem:[%s6728_s1 + $0x160] sm:$0xff]   ;;  %v4947_v45 = vld [vmem:[%s6729_s0 + $0x4d4] ss:$56 sps:$4 sm:$0xff]  }
   0xf   :  { %4216 = vmatpush3.bf16.msra.mxu0 %v4906_v7  ;;  %4892 = vmatpush3.bf16.msra.mxu1 %v4906_v7  ;;  %v4939_v40 = vld [vmem:[%s6729_s0 + $0xe0] ss:$56 sps:$4 sm:$0xff]   ;;  %v4949_v50 = vld [vmem:[%s6729_s0 + $0x150] ss:$56 sps:$4 sm:$0xff]   ;;  %v4955_v53 = vld [vmem:[%s6729_s0 + $0x1c4] ss:$56 sps:$4 sm:$0xff]  }
  0x10   :  { %4217 = vmatprep.subr.bf16.mxu0 %v4907_v8  ;;  %4885 = vmatprep.subr.bf16.mxu1 %v4907_v8  ;;  %v4940_v41 = vld [vmem:[%s6729_s0 + $0x460] ss:$56 sps:$4 sm:$0xff]   ;;  %v4950_v51 = vld [vmem:[%s6729_s0 + $0x4d0] ss:$56 sps:$4 sm:$0xff]   ;;  %v4957_v54 = vld [vmem:[%s6729_s0 + $0x544] ss:$56 sps:$4 sm:$0xff]  }
  0x11   :  { %v4953_v42 = vld [vmem:[%s6728_s1 + $0xa0] sm:$0xff]   ;;  %v4961_v46 = vld [vmem:[%s6728_s1 + $0xd8] sm:$0xff]   ;;  %v4971_v52 = vld [vmem:[%s6728_s1 + $0xd0] sm:$0xff]  }
  0x12   :  { %v4954_v43 = vld [vmem:[%s6728_s1 + $0x120] sm:$0xff]   ;;  %v4962_v47 = vld [vmem:[%s6728_s1 + $0x158] sm:$0xff]   ;;  %v4972_v55 = vld [vmem:[%s6728_s1 + $0x150] sm:$0xff]  }
  0x13   :  { %4218 = vmatpush3.bf16.msra.mxu0 %v4908_v9  ;;  %4893 = vmatpush3.bf16.msra.mxu1 %v4908_v9  ;;  %v4963_v48 = vld [vmem:[%s6728_s1 + $0x98] sm:$0xff]   ;;  %v4973_v56 = vld [vmem:[%s6728_s1 + $0x90] sm:$0xff]   ;;  %v4981_v58 = vld [vmem:[%s6728_s1 + $0xc8] sm:$0xff]  }
  0x14   :  { %4219 = vmatprep.subr.bf16.mxu0 %v4909_v10  ;;  %4886 = vmatprep.subr.bf16.mxu1 %v4909_v10  ;;  %v4964_v49 = vld [vmem:[%s6728_s1 + $0x118] sm:$0xff]   ;;  %v4974_v57 = vld [vmem:[%s6728_s1 + $0x110] sm:$0xff]   ;;  %v4982_v61 = vld [vmem:[%s6728_s1 + $0x148] sm:$0xff]  }
  0x15   :  { %v4959_v59 = vld [vmem:[%s6729_s0 + $0x1c0] ss:$56 sps:$4 sm:$0xff]   ;;  %v4965_v62 = vld [vmem:[%s6729_s0 + $0x234] ss:$56 sps:$4 sm:$0xff]   ;;  %v4969_v6 = vld [vmem:[%s6729_s0 + $0x230] ss:$56 sps:$4 sm:$0xff]  }
  0x16   :  { %v4960_v60 = vld [vmem:[%s6729_s0 + $0x540] ss:$56 sps:$4 sm:$0xff]   ;;  %v4983_v63 = vld [vmem:[%s6728_s1 + $0x88] sm:$0xff]   ;;  %v4975_v8 = vld [vmem:[%s6729_s0 + $0x2a4] ss:$56 sps:$4 sm:$0xff]  }
  0x17   :  { %4220 = vmatpush3.bf16.msra.mxu0 %v4910_v13  ;;  %4894 = vmatpush3.bf16.msra.mxu1 %v4910_v13  ;;  %v4984_v0 = vld [vmem:[%s6728_s1 + $0x108] sm:$0xff]   ;;  %v4991_v2 = vld [vmem:[%s6728_s1 + $0xc0] sm:$0xff]   ;;  %v5001_v10 = vld [vmem:[%s6728_s1 + $0x1f8] sm:$0xff]  }
  0x18   :  { %4221 = vmatprep.subr.bf16.mxu0 %v4911_v14  ;;  %4887 = vmatprep.subr.bf16.mxu1 %v4911_v14  ;;  %v4967_v1 = vld [vmem:[%s6729_s0 + $0x5b4] ss:$56 sps:$4 sm:$0xff]   ;;  %v4992_v3 = vld [vmem:[%s6728_s1 + $0x140] sm:$0xff]   ;;  %v4970_v7 = vld [vmem:[%s6729_s0 + $0x5b0] ss:$56 sps:$4 sm:$0xff]  }
  0x19   :  { %v4993_v4 = vld [vmem:[%s6728_s1 + $0x80] sm:$0xff]   ;;  %v5002_v11 = vld [vmem:[%s6728_s1 + $0x278] sm:$0xff]   ;;  %v4985_v14 = vld [vmem:[%s6729_s0 + $0x314] ss:$56 sps:$4 sm:$0xff]  }
  0x1a   :  { %v4994_v5 = vld [vmem:[%s6728_s1 + $0x100] sm:$0xff]  }
  0x1b   :  { %4222 = vmatpush3.bf16.msra.mxu0 %v4912_v15  ;;  %4895 = vmatpush3.bf16.msra.mxu1 %v4912_v15  ;;  %v4977_v9 = vld [vmem:[%s6729_s0 + $0x624] ss:$56 sps:$4 sm:$0xff]   ;;  %v4979_v12 = vld [vmem:[%s6729_s0 + $0x2a0] ss:$56 sps:$4 sm:$0xff]   ;;  %v4987_v15 = vld [vmem:[%s6729_s0 + $0x694] ss:$56 sps:$4 sm:$0xff]  }
  0x1c   :  { %4223 = vmatprep.subr.bf16.mxu0 %v4913_v16  ;;  %4888 = vmatprep.subr.bf16.mxu1 %v4913_v16  ;;  %v4980_v13 = vld [vmem:[%s6729_s0 + $0x620] ss:$56 sps:$4 sm:$0xff]   ;;  %v4989_v16 = vld [vmem:[%s6729_s0 + $0x310] ss:$56 sps:$4 sm:$0xff]  }
  0x1f   :  { %4224 = vmatpush3.bf16.msra.mxu0 %v4914_v17  ;;  %4896 = vmatpush3.bf16.msra.mxu1 %v4914_v17  ;;  %v4990_v17 = vld [vmem:[%s6729_s0 + $0x690] ss:$56 sps:$4 sm:$0xff]  }
  0x20   :  { %4321 = vmatprep.subr.bf16.mxu1 %v4921_v18  ;;  %4433 = vmatprep.subr.bf16.mxu0 %v4922_v21  ;;  %v4997_v18 = vld [vmem:[%s6729_s0 + $0xc] ss:$56 sps:$4 sm:$0xff]   ;;  %v4998_v21 = vld [vmem:[%s6729_s0 + $0x10] ss:$56 sps:$4 sm:$0xff]  }
  0x22   :  { %2296 = vmatmul.mubr.bf16.vlgmr.msra.gmra.mxu0 %v4915_v19  ;;  %2360 = vmatmul.mubr.bf16.vlgmr.msra.gmra.mxu1 %v4918_v20  ;;  %v5000_v19 = vld [vmem:[%s6729_s0 + $0x14] ss:$56 sps:$4 sm:$0xff]   ;;  %v4995_v20 = vld [vmem:[%s6729_s0 + $0x8] ss:$56 sps:$4 sm:$0xff]  }
  0x23   :  { %4322 = vmatpush3.bf16.msra.mxu1 %v4923_v22  ;;  %4434 = vmatpush3.bf16.msra.mxu0 %v4924_v23  ;;  %v5003_v22 = vld [vmem:[%s6728_s1 + $0x1b8] sm:$0xff]  }
  0x24   :  { %2303 = vmatprep.mubr.bf16.mxu0 %v4925_v24  ;;  %2367 = vmatprep.mubr.bf16.mxu1 %v4927_v25  ;;  %v5004_v23 = vld [vmem:[%s6728_s1 + $0x238] sm:$0xff]  }
  0x25   :  { %4323 = vmatprep.subr.bf16.mxu1 %v4931_v26  ;;  %4435 = vmatprep.subr.bf16.mxu0 %v4932_v27  ;;  %v5005_v24 = vld [vmem:[%s6729_s0 + $0x7c] ss:$56 sps:$4 sm:$0xff]  }
  0x26   :  { %v5007_v25 = vld [vmem:[%s6729_s0 + $0x84] ss:$56 sps:$4 sm:$0xff]   ;;  %v5017_v26 = vld [vmem:[%s6728_s1 + $0x1f0] sm:$0xff]  }
  0x27   :  { %4324 = vmatpush3.bf16.msra.mxu1 %v4933_v28  ;;  %4436 = vmatpush3.bf16.msra.mxu0 %v4934_v29  ;;  %v5018_v27 = vld [vmem:[%s6728_s1 + $0x270] sm:$0xff]  }
  0x28   :  { %4325 = vmatprep.subr.bf16.mxu1 %v4941_v30  ;;  %4437 = vmatprep.subr.bf16.mxu0 %v4942_v33  ;;  %v5019_v28 = vld [vmem:[%s6728_s1 + $0x1b0] sm:$0xff]   ;;  %v5033_v30 = vld [vmem:[%s6728_s1 + $0x1e8] sm:$0xff]  }
  0x29   :  { %v5020_v29 = vld [vmem:[%s6728_s1 + $0x230] sm:$0xff]   ;;  %v5034_v33 = vld [vmem:[%s6728_s1 + $0x268] sm:$0xff]  }
  0x2a   :  { %2304 = vmatmul.mubr.bf16.gmra.mxu0 %v4929_v31  ;;  %2368 = vmatmul.mubr.bf16.gmra.mxu1 %v4930_v32  ;;  %v5009_v31 = vld [vmem:[%s6729_s0 + $0x78] ss:$56 sps:$4 sm:$0xff]  }
  0x2b   :  { %2311 = vmatprep.mubr.bf16.mxu0 %v4935_v34  ;;  %2375 = vmatprep.mubr.bf16.mxu1 %v4937_v35  ;;  %v5010_v32 = vld [vmem:[%s6729_s0 + $0x80] ss:$56 sps:$4 sm:$0xff]   ;;  %v5011_v34 = vld [vmem:[%s6729_s0 + $0xec] ss:$56 sps:$4 sm:$0xff]  }
  0x2c   :  { %4326 = vmatpush3.bf16.msra.mxu1 %v4943_v36  ;;  %4438 = vmatpush3.bf16.msra.mxu0 %v4944_v37  ;;  %v5013_v35 = vld [vmem:[%s6729_s0 + $0xf4] ss:$56 sps:$4 sm:$0xff]  }
  0x2d   :  { %4327 = vmatprep.subr.bf16.mxu1 %v4951_v38  ;;  %4439 = vmatprep.subr.bf16.mxu0 %v4952_v39  ;;  %v5035_v36 = vld [vmem:[%s6728_s1 + $0x1a8] sm:$0xff]   ;;  %v5049_v38 = vld [vmem:[%s6728_s1 + $0x1e0] sm:$0xff]  }
  0x2e   :  { %v5036_v37 = vld [vmem:[%s6728_s1 + $0x228] sm:$0xff]   ;;  %v5050_v39 = vld [vmem:[%s6728_s1 + $0x260] sm:$0xff]  }
  0x30   :  { %4328 = vmatpush3.bf16.msra.mxu1 %v4953_v42  ;;  %4440 = vmatpush3.bf16.msra.mxu0 %v4954_v43  ;;  %v5051_v42 = vld [vmem:[%s6728_s1 + $0x1a0] sm:$0xff]  }
  0x31   :  { %4329 = vmatprep.subr.bf16.mxu1 %v4961_v46  ;;  %4441 = vmatprep.subr.bf16.mxu0 %v4962_v47  ;;  %v5052_v43 = vld [vmem:[%s6728_s1 + $0x220] sm:$0xff]   ;;  %v5065_v46 = vld [vmem:[%s6728_s1 + $0x1d8] sm:$0xff]  }
  0x32   :  { %2312 = vmatmul.mubr.bf16.gmra.mxu0 %v4939_v40  ;;  %2376 = vmatmul.mubr.bf16.gmra.mxu1 %v4940_v41  ;;  %v5015_v40 = vld [vmem:[%s6729_s0 + $0xe8] ss:$56 sps:$4 sm:$0xff]   ;;  %v5066_v47 = vld [vmem:[%s6728_s1 + $0x258] sm:$0xff]  }
  0x33   :  { %2319 = vmatprep.mubr.bf16.mxu0 %v4945_v44  ;;  %2383 = vmatprep.mubr.bf16.mxu1 %v4947_v45  ;;  %v5016_v41 = vld [vmem:[%s6729_s0 + $0xf0] ss:$56 sps:$4 sm:$0xff]   ;;  %v5021_v44 = vld [vmem:[%s6729_s0 + $0x15c] ss:$56 sps:$4 sm:$0xff]  }
  0x34   :  { %4330 = vmatpush3.bf16.msra.mxu1 %v4963_v48  ;;  %4442 = vmatpush3.bf16.msra.mxu0 %v4964_v49  ;;  %v5023_v45 = vld [vmem:[%s6729_s0 + $0x164] ss:$56 sps:$4 sm:$0xff]  }
  0x35   :  { %4331 = vmatprep.subr.bf16.mxu1 %v4971_v52  ;;  %4443 = vmatprep.subr.bf16.mxu0 %v4972_v55  ;;  %v5067_v48 = vld [vmem:[%s6728_s1 + $0x198] sm:$0xff]   ;;  %v5027_v52 = vld [vmem:[%s6729_s0 + $0x1cc] ss:$56 sps:$4 sm:$0xff]   ;;  %v5082_v55 = vld [vmem:[%s6728_s1 + $0x250] sm:$0xff]  }
  0x36   :  { %v5068_v49 = vld [vmem:[%s6728_s1 + $0x218] sm:$0xff]  }
  0x38   :  { %4332 = vmatpush3.bf16.msra.mxu1 %v4973_v56  ;;  %4444 = vmatpush3.bf16.msra.mxu0 %v4974_v57  ;;  %v5083_v56 = vld [vmem:[%s6728_s1 + $0x190] sm:$0xff]  }
  0x39   :  { %4333 = vmatprep.subr.bf16.mxu1 %v4981_v58  ;;  %4445 = vmatprep.subr.bf16.mxu0 %v4982_v61  ;;  %v5084_v57 = vld [vmem:[%s6728_s1 + $0x210] sm:$0xff]   ;;  %v5031_v58 = vld [vmem:[%s6729_s0 + $0x1c8] ss:$56 sps:$4 sm:$0xff]   ;;  %v5039_v61 = vld [vmem:[%s6729_s0 + $0x244] ss:$56 sps:$4 sm:$0xff]  }
  0x3a   :  { %2320 = vmatmul.mubr.bf16.gmra.mxu0 %v4949_v50  ;;  %2384 = vmatmul.mubr.bf16.gmra.mxu1 %v4950_v51  ;;  %v5025_v50 = vld [vmem:[%s6729_s0 + $0x158] ss:$56 sps:$4 sm:$0xff]  }
  0x3b   :  { %2327 = vmatprep.mubr.bf16.mxu0 %v4955_v53  ;;  %2391 = vmatprep.mubr.bf16.mxu1 %v4957_v54  ;;  %v5026_v51 = vld [vmem:[%s6729_s0 + $0x160] ss:$56 sps:$4 sm:$0xff]   ;;  %v5029_v53 = vld [vmem:[%s6729_s0 + $0x1d4] ss:$56 sps:$4 sm:$0xff]  }
  0x3c   :  { %4334 = vmatpush3.bf16.msra.mxu1 %v4983_v63  ;;  %4446 = vmatpush3.bf16.msra.mxu0 %v4984_v0  ;;  %v5081_v54 = vld [vmem:[%s6728_s1 + $0x1d0] sm:$0xff]   ;;  %v5098_v63 = vld [vmem:[%s6728_s1 + $0x248] sm:$0xff]  }
  0x3d   :  { %4335 = vmatprep.subr.bf16.mxu1 %v4991_v2  ;;  %4447 = vmatprep.subr.bf16.mxu0 %v4992_v3  ;;  %v5099_v0 = vld [vmem:[%s6728_s1 + $0x188] sm:$0xff]   ;;  %v5041_v2 = vld [vmem:[%s6729_s0 + $0x238] ss:$56 sps:$4 sm:$0xff]  }
  0x3e   :  { %v5042_v3 = vld [vmem:[%s6729_s0 + $0x240] ss:$56 sps:$4 sm:$0xff]  }
  0x40   :  { %4336 = vmatpush3.bf16.msra.mxu1 %v4993_v4  ;;  %4448 = vmatpush3.bf16.msra.mxu0 %v4994_v5  ;;  %v5043_v4 = vld [vmem:[%s6729_s0 + $0x2ac] ss:$56 sps:$4 sm:$0xff]  }
  0x41   :  { %4545 = vmatprep.subr.bf16.mxu1 %v5001_v10  ;;  %4657 = vmatprep.subr.bf16.mxu0 %v5002_v11  ;;  %v5045_v5 = vld [vmem:[%s6729_s0 + $0x2b4] ss:$56 sps:$4 sm:$0xff]   ;;  %v5116_v10 = vld [vmem:[%s6728_s1 + $0x200] sm:$0xff]   ;;  %v5048_v11 = vld [vmem:[%s6729_s0 + $0x2b0] ss:$56 sps:$4 sm:$0xff]  }
  0x42   :  { %2328 = vmatmul.mubr.bf16.gmra.mxu0 %v4959_v59  ;;  %2392 = vmatmul.mubr.bf16.gmra.mxu1 %v4960_v60  ;;  %v5032_v59 = vld [vmem:[%s6729_s0 + $0x1d0] ss:$56 sps:$4 sm:$0xff]   ;;  %v5037_v60 = vld [vmem:[%s6729_s0 + $0x23c] ss:$56 sps:$4 sm:$0xff]  }
  0x43   :  { %2335 = vmatprep.mubr.bf16.mxu0 %v4965_v62  ;;  %2399 = vmatprep.mubr.bf16.mxu1 %v4967_v1  ;;  %v5097_v62 = vld [vmem:[%s6728_s1 + $0x1c8] sm:$0xff]  }
  0x44   :  { %v5100_v1 = vld [vmem:[%s6728_s1 + $0x208] sm:$0xff]  }
  0x4a   :  { %2336 = vmatmul.mubr.bf16.gmra.mxu0 %v4969_v6  ;;  %2400 = vmatmul.mubr.bf16.gmra.mxu1 %v4970_v7  ;;  %v5113_v6 = vld [vmem:[%s6728_s1 + $0x1c0] sm:$0xff]  }
  0x4b   :  { %2343 = vmatprep.mubr.bf16.mxu0 %v4975_v8  ;;  %2407 = vmatprep.mubr.bf16.mxu1 %v4977_v9  ;;  %v5114_v7 = vld [vmem:[%s6728_s1 + $0x240] sm:$0xff]  }
  0x4c   :  { %v5047_v8 = vld [vmem:[%s6729_s0 + $0x2a8] ss:$56 sps:$4 sm:$0xff]  }
  0x4d   :  { %v5115_v9 = vld [vmem:[%s6728_s1 + $0x180] sm:$0xff]  }
  0x52   :  { %2344 = vmatmul.mubr.bf16.gmra.mxu0 %v4979_v12  ;;  %2408 = vmatmul.mubr.bf16.gmra.mxu1 %v4980_v13  ;;  %v5053_v12 = vld [vmem:[%s6729_s0 + $0x31c] ss:$56 sps:$4 sm:$0xff]  }
  0x53   :  { %2351 = vmatprep.mubr.bf16.mxu0 %v4985_v14  ;;  %2415 = vmatprep.mubr.bf16.mxu1 %v4987_v15  ;;  %v5055_v13 = vld [vmem:[%s6729_s0 + $0x324] ss:$56 sps:$4 sm:$0xff]   ;;  %v5343_v14 = vmov 0  }
  0x54   :  { %v5129_v15 = vld [vmem:[%s6728_s1 + $0x2f8] sm:$0xff]  }
  0x5a   :  { %2352 = vmatmul.mubr.bf16.gmra.mxu0 %v4989_v16  ;;  %2416 = vmatmul.mubr.bf16.gmra.mxu1 %v4990_v17  ;;  %v5057_v16 = vld [vmem:[%s6729_s0 + $0x318] ss:$56 sps:$4 sm:$0xff]  }
  0x5b   :  { %2456 = vmatprep.mubr.bf16.mxu1 %v4997_v18  ;;  %2617 = vmatprep.mubr.bf16.mxu0 %v5000_v19  ;;  %v5058_v17 = vld [vmem:[%s6729_s0 + $0x320] ss:$56 sps:$4 sm:$0xff]   ;;  %v5059_v18 = vld [vmem:[%s6729_s0 + $0x38c] ss:$56 sps:$4 sm:$0xff]  }
  0x5c   :  { %v5061_v19 = vld [vmem:[%s6729_s0 + $0x394] ss:$56 sps:$4 sm:$0xff]  }
  0x62   :  { %2457 = vmatmul.mubr.bf16.vlgmr.msra.gmra.mxu1 %v4995_v20  ;;  %2618 = vmatmul.mubr.bf16.vlgmr.msra.gmra.mxu0 %v4998_v21  ;;  %v5063_v20 = vld [vmem:[%s6729_s0 + $0x388] ss:$56 sps:$4 sm:$0xff]  }
  0x63   :  { %4546 = vmatpush3.bf16.msra.mxu1 %v5003_v22  ;;  %4658 = vmatpush3.bf16.msra.mxu0 %v5004_v23  ;;  %v5064_v21 = vld [vmem:[%s6729_s0 + $0x390] ss:$56 sps:$4 sm:$0xff]   ;;  %v5069_v22 = vld [vmem:[%s6729_s0 + $0x3fc] ss:$56 sps:$4 sm:$0xff]  }
  0x64   :  { %2464 = vmatprep.mubr.bf16.mxu1 %v5005_v24  ;;  %2625 = vmatprep.mubr.bf16.mxu0 %v5007_v25  ;;  %v5071_v23 = vld [vmem:[%s6729_s0 + $0x404] ss:$56 sps:$4 sm:$0xff]   ;;  %v5073_v24 = vld [vmem:[%s6729_s0 + $0x3f8] ss:$56 sps:$4 sm:$0xff]  }
  0x65   :  { %4547 = vmatprep.subr.bf16.mxu1 %v5017_v26  ;;  %4659 = vmatprep.subr.bf16.mxu0 %v5018_v27  ;;  %v5074_v25 = vld [vmem:[%s6729_s0 + $0x400] ss:$56 sps:$4 sm:$0xff]   ;;  %v5075_v26 = vld [vmem:[%s6729_s0 + $0x46c] ss:$56 sps:$4 sm:$0xff]  }
  0x66   :  { %v5077_v27 = vld [vmem:[%s6729_s0 + $0x474] ss:$56 sps:$4 sm:$0xff]  }
  0x67   :  { %4548 = vmatpush3.bf16.msra.mxu1 %v5019_v28  ;;  %4660 = vmatpush3.bf16.msra.mxu0 %v5020_v29  ;;  %v5079_v28 = vld [vmem:[%s6729_s0 + $0x468] ss:$56 sps:$4 sm:$0xff]  }
  0x68   :  { %4549 = vmatprep.subr.bf16.mxu1 %v5033_v30  ;;  %4661 = vmatprep.subr.bf16.mxu0 %v5034_v33  ;;  %v5080_v29 = vld [vmem:[%s6729_s0 + $0x470] ss:$56 sps:$4 sm:$0xff]   ;;  %v5085_v30 = vld [vmem:[%s6729_s0 + $0x4dc] ss:$56 sps:$4 sm:$0xff]   ;;  %v5090_v33 = vld [vmem:[%s6729_s0 + $0x4e0] ss:$56 sps:$4 sm:$0xff]  }
  0x6a   :  { %2465 = vmatmul.mubr.bf16.gmra.mxu1 %v5009_v31  ;;  %2626 = vmatmul.mubr.bf16.gmra.mxu0 %v5010_v32  ;;  %v5087_v31 = vld [vmem:[%s6729_s0 + $0x4e4] ss:$56 sps:$4 sm:$0xff]   ;;  %v5089_v32 = vld [vmem:[%s6729_s0 + $0x4d8] ss:$56 sps:$4 sm:$0xff]  }
  0x6b   :  { %2472 = vmatprep.mubr.bf16.mxu1 %v5011_v34  ;;  %2633 = vmatprep.mubr.bf16.mxu0 %v5013_v35  ;;  %v5091_v34 = vld [vmem:[%s6729_s0 + $0x54c] ss:$56 sps:$4 sm:$0xff]  }
  0x6c   :  { %4550 = vmatpush3.bf16.msra.mxu1 %v5035_v36  ;;  %4662 = vmatpush3.bf16.msra.mxu0 %v5036_v37  ;;  %v5093_v35 = vld [vmem:[%s6729_s0 + $0x554] ss:$56 sps:$4 sm:$0xff]   ;;  %v5095_v36 = vld [vmem:[%s6729_s0 + $0x548] ss:$56 sps:$4 sm:$0xff]  }
  0x6d   :  { %4551 = vmatprep.subr.bf16.mxu1 %v5049_v38  ;;  %4663 = vmatprep.subr.bf16.mxu0 %v5050_v39  ;;  %v5096_v37 = vld [vmem:[%s6729_s0 + $0x550] ss:$56 sps:$4 sm:$0xff]   ;;  %v5101_v38 = vld [vmem:[%s6729_s0 + $0x5bc] ss:$56 sps:$4 sm:$0xff]  }
  0x6e   :  { %v5103_v39 = vld [vmem:[%s6729_s0 + $0x5c4] ss:$56 sps:$4 sm:$0xff]  }
  0x70   :  { %4552 = vmatpush3.bf16.msra.mxu1 %v5051_v42  ;;  %4664 = vmatpush3.bf16.msra.mxu0 %v5052_v43  ;;  %v5107_v42 = vld [vmem:[%s6729_s0 + $0x62c] ss:$56 sps:$4 sm:$0xff]  }
  0x71   :  { %4553 = vmatprep.subr.bf16.mxu1 %v5065_v46  ;;  %4665 = vmatprep.subr.bf16.mxu0 %v5066_v47  ;;  %v5109_v43 = vld [vmem:[%s6729_s0 + $0x634] ss:$56 sps:$4 sm:$0xff]   ;;  %v5119_v47 = vld [vmem:[%s6729_s0 + $0x6a4] ss:$56 sps:$4 sm:$0xff]  }
  0x72   :  { %2473 = vmatmul.mubr.bf16.gmra.mxu1 %v5015_v40  ;;  %2634 = vmatmul.mubr.bf16.gmra.mxu0 %v5016_v41  ;;  %v5105_v40 = vld [vmem:[%s6729_s0 + $0x5b8] ss:$56 sps:$4 sm:$0xff]   ;;  %v5117_v46 = vld [vmem:[%s6729_s0 + $0x69c] ss:$56 sps:$4 sm:$0xff]  }
  0x73   :  { %2480 = vmatprep.mubr.bf16.mxu1 %v5021_v44  ;;  %2641 = vmatprep.mubr.bf16.mxu0 %v5023_v45  ;;  %v5106_v41 = vld [vmem:[%s6729_s0 + $0x5c0] ss:$56 sps:$4 sm:$0xff]   ;;  %v5112_v45 = vld [vmem:[%s6729_s0 + $0x630] ss:$56 sps:$4 sm:$0xff]  }
  0x74   :  { %4554 = vmatpush3.bf16.msra.mxu1 %v5067_v48  ;;  %4666 = vmatpush3.bf16.msra.mxu0 %v5068_v49  ;;  %v5111_v44 = vld [vmem:[%s6729_s0 + $0x628] ss:$56 sps:$4 sm:$0xff]   ;;  %v5121_v48 = vld [vmem:[%s6729_s0 + $0x698] ss:$56 sps:$4 sm:$0xff]  }
  0x75   :  { %4555 = vmatprep.subr.bf16.mxu1 %v5081_v54  ;;  %4667 = vmatprep.subr.bf16.mxu0 %v5082_v55  ;;  %v5122_v49 = vld [vmem:[%s6729_s0 + $0x6a0] ss:$56 sps:$4 sm:$0xff]  }
  0x76   :  { %v5130_v54 = vld [vmem:[%s6728_s1 + $0x2b8] sm:$0xff]  }
  0x77   :  { %v5131_v55 = vld [vmem:[%s6728_s1 + $0x338] sm:$0xff]  }
  0x78   :  { %4556 = vmatpush3.bf16.msra.mxu1 %v5083_v56  ;;  %4668 = vmatpush3.bf16.msra.mxu0 %v5084_v57  ;;  %v5132_v56 = vld [vmem:[%s6729_s0 + $0x8c] ss:$56 sps:$4 sm:$0xff]  }
  0x79   :  { %4557 = vmatprep.subr.bf16.mxu1 %v5097_v62  ;;  %4669 = vmatprep.subr.bf16.mxu0 %v5098_v63  ;;  %v5134_v57 = vld [vmem:[%s6729_s0 + $0x94] ss:$56 sps:$4 sm:$0xff]   ;;  %v5933_v63 = vld [vmem:[%s6730_s2] ss:$0 sm:$0xff] }
  0x7a   :  { %2481 = vmatmul.mubr.bf16.gmra.mxu1 %v5025_v50  ;;  %2642 = vmatmul.mubr.bf16.gmra.mxu0 %v5026_v51  ;;  %v5125_v50 = vld [vmem:[%s6729_s0 + $0x1c] ss:$56 sps:$4 sm:$0xff]  }
  0x7b   :  { %2488 = vmatprep.mubr.bf16.mxu1 %v5027_v52  ;;  %2649 = vmatprep.mubr.bf16.mxu0 %v5029_v53  ;;  %v5128_v51 = vld [vmem:[%s6729_s0 + $0x24] ss:$56 sps:$4 sm:$0xff]   ;;  %v5123_v52 = vld [vmem:[%s6729_s0 + $0x18] ss:$56 sps:$4 sm:$0xff]  }
  0x7c   :  { %4558 = vmatpush3.bf16.msra.mxu1 %v5099_v0  ;;  %4670 = vmatpush3.bf16.msra.mxu0 %v5100_v1  ;;  %v5126_v53 = vld [vmem:[%s6729_s0 + $0x20] ss:$56 sps:$4 sm:$0xff]   ;;  %v5160_v0 = vld [vmem:[%s6728_s1 + $0x2e8] sm:$0xff]  }
  0x7d   :  { %4559 = vmatprep.subr.bf16.mxu1 %v5113_v6  ;;  %4671 = vmatprep.subr.bf16.mxu0 %v5114_v7  ;;  %v5139_v7 = vld [vmem:[%s6729_s0 + $0xfc] ss:$56 sps:$4 sm:$0xff]  }
  0x80   :  { %4560 = vmatpush3.bf16.msra.mxu1 %v5115_v9  ;;  %4672 = vmatpush3.bf16.msra.mxu0 %v5116_v10 }
  0x81   :  { %3229 = vmatprep.subr.bf16.mxu0 %v5343_v14  ;;  %4769 = vmatprep.subr.bf16.mxu1 %v5129_v15 }
  0x82   :  { %2489 = vmatmul.mubr.bf16.gmra.mxu1 %v5031_v58  ;;  %2650 = vmatmul.mubr.bf16.gmra.mxu0 %v5032_v59  ;;  %v5145_v58 = vld [vmem:[%s6728_s1 + $0x2f0] sm:$0xff]  }
  0x83   :  { %2496 = vmatprep.mubr.bf16.mxu1 %v5037_v60  ;;  %2657 = vmatprep.mubr.bf16.mxu0 %v5039_v61  ;;  %v5138_v59 = vld [vmem:[%s6728_s1 + $0x330] sm:$0xff]  }
  0x84   :  { %v5146_v60 = vld [vmem:[%s6728_s1 + $0x2b0] sm:$0xff]  }
  0x8a   :  { %2497 = vmatmul.mubr.bf16.gmra.mxu1 %v5041_v2  ;;  %2658 = vmatmul.mubr.bf16.gmra.mxu0 %v5042_v3  ;;  %v5136_v3 = vld [vmem:[%s6729_s0 + $0x88] ss:$56 sps:$4 sm:$0xff]  }
  0x8b   :  { %2504 = vmatprep.mubr.bf16.mxu1 %v5043_v4  ;;  %2665 = vmatprep.mubr.bf16.mxu0 %v5045_v5  ;;  %v5137_v4 = vld [vmem:[%s6729_s0 + $0x90] ss:$56 sps:$4 sm:$0xff]  }
  0x92   :  { %2505 = vmatmul.mubr.bf16.gmra.mxu1 %v5047_v8  ;;  %2666 = vmatmul.mubr.bf16.gmra.mxu0 %v5048_v11  ;;  %v5141_v11 = vld [vmem:[%s6729_s0 + $0x104] ss:$56 sps:$4 sm:$0xff]  }
  0x93   :  { %2512 = vmatprep.mubr.bf16.mxu1 %v5053_v12  ;;  %2673 = vmatprep.mubr.bf16.mxu0 %v5055_v13  ;;  %v5151_v12 = vld [vmem:[%s6728_s1 + $0x328] sm:$0xff]  }
  0x9a   :  { %2513 = vmatmul.mubr.bf16.gmra.mxu1 %v5057_v16  ;;  %2674 = vmatmul.mubr.bf16.gmra.mxu0 %v5058_v17  ;;  %v5161_v16 = vld [vmem:[%s6728_s1 + $0x2a8] sm:$0xff]   ;;  %v5176_v17 = vld [vmem:[%s6728_s1 + $0x2e0] sm:$0xff]  }
  0x9b   :  { %2520 = vmatprep.mubr.bf16.mxu1 %v5059_v18  ;;  %2681 = vmatprep.mubr.bf16.mxu0 %v5061_v19 }
  0xa2   :  { %2521 = vmatmul.mubr.bf16.gmra.mxu1 %v5063_v20  ;;  %2682 = vmatmul.mubr.bf16.gmra.mxu0 %v5064_v21 }
  0xa3   :  { %2528 = vmatprep.mubr.bf16.mxu1 %v5069_v22  ;;  %2689 = vmatprep.mubr.bf16.mxu0 %v5071_v23  ;;  %v5162_v22 = vld [vmem:[%s6728_s1 + $0x320] sm:$0xff]  }
  0xa4   :  { %v5177_v23 = vld [vmem:[%s6728_s1 + $0x2a0] sm:$0xff]  }
  0xaa   :  { %2529 = vmatmul.mubr.bf16.gmra.mxu1 %v5073_v24  ;;  %2690 = vmatmul.mubr.bf16.gmra.mxu0 %v5074_v25  ;;  %v5191_v25 = vld [vmem:[%s6728_s1 + $0x2d8] sm:$0xff]  }
  0xab   :  { %2536 = vmatprep.mubr.bf16.mxu1 %v5075_v26  ;;  %2697 = vmatprep.mubr.bf16.mxu0 %v5077_v27 }
  0xb2   :  { %2537 = vmatmul.mubr.bf16.gmra.mxu1 %v5079_v28  ;;  %2698 = vmatmul.mubr.bf16.gmra.mxu0 %v5080_v29  ;;  %v5143_v28 = vld [vmem:[%s6729_s0 + $0xf8] ss:$56 sps:$4 sm:$0xff]  }
  0xb3   :  { %2544 = vmatprep.mubr.bf16.mxu1 %v5085_v30  ;;  %2705 = vmatprep.mubr.bf16.mxu0 %v5087_v31  ;;  %v5144_v29 = vld [vmem:[%s6729_s0 + $0x100] ss:$56 sps:$4 sm:$0xff]  }
  0xba   :  { %2545 = vmatmul.mubr.bf16.gmra.mxu1 %v5089_v32  ;;  %2706 = vmatmul.mubr.bf16.gmra.mxu0 %v5090_v33 }
  0xbb   :  { %2552 = vmatprep.mubr.bf16.mxu1 %v5091_v34  ;;  %2713 = vmatprep.mubr.bf16.mxu0 %v5093_v35  ;;  %v5147_v35 = vld [vmem:[%s6729_s0 + $0x16c] ss:$56 sps:$4 sm:$0xff]  }
  0xc2   :  { %2553 = vmatmul.mubr.bf16.gmra.mxu1 %v5095_v36  ;;  %2714 = vmatmul.mubr.bf16.gmra.mxu0 %v5096_v37  ;;  %v5149_v36 = vld [vmem:[%s6729_s0 + $0x174] ss:$56 sps:$4 sm:$0xff]  }
  0xc3   :  { %2560 = vmatprep.mubr.bf16.mxu1 %v5101_v38  ;;  %2721 = vmatprep.mubr.bf16.mxu0 %v5103_v39  ;;  %v5169_v39 = vld [vmem:[%s6728_s1 + $0x318] sm:$0xff]  }
  0xca   :  { %2561 = vmatmul.mubr.bf16.gmra.mxu1 %v5105_v40  ;;  %2722 = vmatmul.mubr.bf16.gmra.mxu0 %v5106_v41  ;;  %v5192_v40 = vld [vmem:[%s6728_s1 + $0x298] sm:$0xff]  }
  0xcb   :  { %2568 = vmatprep.mubr.bf16.mxu1 %v5107_v42  ;;  %2729 = vmatprep.mubr.bf16.mxu0 %v5109_v43  ;;  %v5207_v43 = vld [vmem:[%s6728_s1 + $0x2d0] sm:$0xff]  }
  0xd2   :  { %2569 = vmatmul.mubr.bf16.gmra.mxu1 %v5111_v44  ;;  %2730 = vmatmul.mubr.bf16.gmra.mxu0 %v5112_v45 }
  0xd3   :  { %2576 = vmatprep.mubr.bf16.mxu1 %v5117_v46  ;;  %2737 = vmatprep.mubr.bf16.mxu0 %v5119_v47 }
  0xda   :  { %2577 = vmatmul.mubr.bf16.gmra.mxu1 %v5121_v48  ;;  %2738 = vmatmul.mubr.bf16.gmra.mxu0 %v5122_v49  ;;  %v5184_v49 = vld [vmem:[%s6728_s1 + $0x310] sm:$0xff]  }
  0xdb   :  { %2778 = vmatprep.mubr.bf16.mxu1 %v5125_v50  ;;  %2939 = vmatprep.mubr.bf16.mxu0 %v5128_v51  ;;  %v5208_v50 = vld [vmem:[%s6728_s1 + $0x290] sm:$0xff]  }
  0xe2   :  { %v4225_v61 = vpop.f32.mrf.mxu0  ;;  %v4273_v62 = vpop.f32.mrf.mxu1  ;;  %2779 = vmatmul.mubr.bf16.vlgmr.msra.gmra.mxu1 %v5123_v52  ;;  %2940 = vmatmul.mubr.bf16.vlgmr.msra.gmra.mxu0 %v5126_v53  ;;  %v5222_v53 = vld [vmem:[%s6728_s1 + $0x2c8] sm:$0xff]  }
  0xe3   :  { %4770 = vmatpush3.bf16.msra.mxu1 %v5130_v54  ;;  %3230 = vmatpush1.bf16.msra.mxu0 %v5131_v55 }
  0xe4   :  { %v4226_v1 = vpop.f32.mrf.mxu0  ;;  %v4274_v2 = vpop.f32.mrf.mxu1  ;;  %2786 = vmatprep.mubr.bf16.mxu1 %v5132_v56  ;;  %2947 = vmatprep.mubr.bf16.mxu0 %v5134_v57  ;;  %v5152_v56 = vld [vmem:[%s6729_s0 + $0x168] ss:$56 sps:$4 sm:$0xff]  }
  0xe5   :  { %v5944_v5 = vadd.f32 %v4226_v1, %v4225_v61  ;;  %v4275_v6 = vadd.f32 %v4274_v2, %v4273_v62  ;;  %3231 = vmatprep.subr.bf16.mxu0 %v5343_v14  ;;  %4771 = vmatprep.subr.bf16.mxu1 %v5145_v58  ;;  %v5153_v57 = vld [vmem:[%s6729_s0 + $0x170] ss:$56 sps:$4 sm:$0xff]  }
  0xe6   :  { %v4228_v8 = vpop.f32.mrf.mxu0  ;;  %v4276_v9 = vpop.f32.mrf.mxu1  ;;  %v5223_v1 = vld [vmem:[%s6728_s1 + $0x288] sm:$0xff]  }
  0xe7   :  { %v5951_v10 = vadd.f32 %v4275_v6, %v5933_v63  ;;  %3232 = vmatpush1.bf16.msra.mxu0 %v5138_v59  ;;  %4772 = vmatpush3.bf16.msra.mxu1 %v5146_v60  ;;  %v5156_v59 = vld [vmem:[%s6729_s0 + $0x1dc] ss:$56 sps:$4 sm:$0xff]  }
  0xe8   :  { %v4229_v13 = vpop.f32.mrf.mxu0  ;;  %v4277_v15 = vpop.f32.mrf.mxu1  ;;  %3233 = vmatprep.subr.bf16.mxu0 %v5343_v14  ;;  %4773 = vmatprep.subr.bf16.mxu1 %v5160_v0  ;;  %v5159_v60 = vld [vmem:[%s6729_s0 + $0x1e4] ss:$56 sps:$4 sm:$0xff]   ;;  %v5193_v0 = vld [vmem:[%s6728_s1 + $0x308] sm:$0xff]  }
  0xe9   :  { %v5966_v18 = vadd.f32 %v4229_v13, %v4228_v8  ;;  %v4278_v19 = vadd.f32 %v4277_v15, %v4276_v9  ;;  %v5239_v13 = vld [vmem:[%s6728_s1 + $0x280] sm:$0xff]  }
  0xea   :  { %v4231_v20 = vpop.f32.mrf.mxu0  ;;  %v4279_v21 = vpop.f32.mrf.mxu1  ;;  %2787 = vmatmul.mubr.bf16.gmra.mxu1 %v5136_v3  ;;  %2948 = vmatmul.mubr.bf16.gmra.mxu0 %v5137_v4  ;;  %v5238_v4 = vld [vmem:[%s6728_s1 + $0x2c0] sm:$0xff]  }
  0xeb   :  { %v5975_v24 = vadd.f32 %v4278_v19, %v5933_v63  ;;  %2794 = vmatprep.mubr.bf16.mxu1 %v5139_v7  ;;  %2955 = vmatprep.mubr.bf16.mxu0 %v5141_v11 }
  0xec   :  { %v4232_v26 = vpop.f32.mrf.mxu0  ;;  %v4280_v27 = vpop.f32.mrf.mxu1  ;;  %3234 = vmatpush1.bf16.msra.mxu0 %v5151_v12  ;;  %4774 = vmatpush3.bf16.msra.mxu1 %v5161_v16  ;;  %v5200_v12 = vld [vmem:[%s6728_s1 + $0x300] sm:$0xff]  }
  0xed   :  { %v5986_v30 = vadd.f32 %v4232_v26, %v4231_v20  ;;  %v4281_v31 = vadd.f32 %v4280_v27, %v4279_v21  ;;  %3235 = vmatprep.subr.bf16.mxu0 %v5343_v14  ;;  %4775 = vmatprep.subr.bf16.mxu1 %v5176_v17  ;;  %v5154_v20 = vld [vmem:[%s6729_s0 + $0x1d8] ss:$56 sps:$4 sm:$0xff]  }
  0xee   :  { %v4234_v32 = vpop.f32.mrf.mxu0  ;;  %v4282_v33 = vpop.f32.mrf.mxu1  ;;  %v5157_v21 = vld [vmem:[%s6729_s0 + $0x1e0] ss:$56 sps:$4 sm:$0xff]  }
  0xef   :  { %v5990_v34 = vadd.f32 %v4281_v31, %v5933_v63 }
  0xf0   :  { %v4235_v37 = vpop.f32.mrf.mxu0  ;;  %v4283_v38 = vpop.f32.mrf.mxu1  ;;  %3236 = vmatpush1.bf16.msra.mxu0 %v5162_v22  ;;  %4776 = vmatpush3.bf16.msra.mxu1 %v5177_v23  ;;  %v5165_v23 = vld [vmem:[%s6729_s0 + $0x24c] ss:$56 sps:$4 sm:$0xff]  }
  0xf1   :  { %v6004_v41 = vadd.f32 %v4235_v37, %v4234_v32  ;;  %v4284_v42 = vadd.f32 %v4283_v38, %v4282_v33  ;;  %3237 = vmatprep.subr.bf16.mxu0 %v5343_v14  ;;  %4777 = vmatprep.subr.bf16.mxu1 %v5191_v25  ;;  %v5168_v25 = vld [vmem:[%s6729_s0 + $0x254] ss:$56 sps:$4 sm:$0xff]  }
  0xf2   :  { %v4237_v44 = vpop.f32.mrf.mxu0  ;;  %v4285_v45 = vpop.f32.mrf.mxu1  ;;  %2795 = vmatmul.mubr.bf16.gmra.mxu1 %v5143_v28  ;;  %2956 = vmatmul.mubr.bf16.gmra.mxu0 %v5144_v29  ;;  %v5215_v28 = vld [vmem:[%s6728_s1 + $0x358] sm:$0xff]   ;;  %v5224_v38 = vld [vmem:[%s6728_s1 + $0x350] sm:$0xff]  }
  0xf3   :  { %v6011_v46 = vadd.f32 %v4284_v42, %v5933_v63  ;;  %2802 = vmatprep.mubr.bf16.mxu1 %v5147_v35  ;;  %2963 = vmatprep.mubr.bf16.mxu0 %v5149_v36 }
  0xf4   :  { %v4238_v47 = vpop.f32.mrf.mxu0  ;;  %v4286_v48 = vpop.f32.mrf.mxu1  ;;  %3238 = vmatpush1.bf16.msra.mxu0 %v5169_v39  ;;  %4778 = vmatpush3.bf16.msra.mxu1 %v5192_v40 }
  0xf5   :  { %v6019_v51 = vadd.f32 %v4238_v47, %v4237_v44  ;;  %v4287_v52 = vadd.f32 %v4286_v48, %v4285_v45  ;;  %3239 = vmatprep.subr.bf16.mxu0 %v5343_v14  ;;  %4779 = vmatprep.subr.bf16.mxu1 %v5207_v43  ;;  %v5163_v44 = vld [vmem:[%s6729_s0 + $0x248] ss:$56 sps:$4 sm:$0xff]   ;;  %v5172_v48 = vld [vmem:[%s6729_s0 + $0x2bc] ss:$56 sps:$4 sm:$0xff]  }
  0xf6   :  { %v4240_v54 = vpop.f32.mrf.mxu0  ;;  %v4288_v55 = vpop.f32.mrf.mxu1  ;;  %v5166_v45 = vld [vmem:[%s6729_s0 + $0x250] ss:$56 sps:$4 sm:$0xff]  }
  0xf7   :  { %v6032_v58 = vadd.f32 %v4287_v52, %v5933_v63 }
  0xf8   :  { %v4241_v61 = vpop.f32.mrf.mxu0  ;;  %v4289_v62 = vpop.f32.mrf.mxu1  ;;  %3240 = vmatpush1.bf16.msra.mxu0 %v5184_v49  ;;  %4780 = vmatpush3.bf16.msra.mxu1 %v5208_v50  ;;  %v5175_v49 = vld [vmem:[%s6729_s0 + $0x2c4] ss:$56 sps:$4 sm:$0xff]  }
  0xf9   :  { %v6046_v2 = vadd.f32 %v4241_v61, %v4240_v54  ;;  %v4290_v3 = vadd.f32 %v4289_v62, %v4288_v55  ;;  %3241 = vmatprep.subr.bf16.mxu0 %v5343_v14  ;;  %4781 = vmatprep.subr.bf16.mxu1 %v5222_v53  ;;  %v5231_v53 = vld [vmem:[%s6728_s1 + $0x348] sm:$0xff]   ;;  %v5246_v62 = vld [vmem:[%s6728_s1 + $0x340] sm:$0xff]  }
  0xfa   :  { %v4243_v6 = vpop.f32.mrf.mxu0  ;;  %v4291_v7 = vpop.f32.mrf.mxu1  ;;  %2803 = vmatmul.mubr.bf16.gmra.mxu1 %v5152_v56  ;;  %2964 = vmatmul.mubr.bf16.gmra.mxu0 %v5153_v57 }
  0xfb   :  { %v6053_v8 = vadd.f32 %v4290_v3, %v5933_v63  ;;  %2810 = vmatprep.mubr.bf16.mxu1 %v5156_v59  ;;  %2971 = vmatprep.mubr.bf16.mxu0 %v5159_v60 }
  0xfc   :  { %v4244_v9 = vpop.f32.mrf.mxu0  ;;  %v4292_v11 = vpop.f32.mrf.mxu1  ;;  %3242 = vmatpush1.bf16.msra.mxu0 %v5193_v0  ;;  %4782 = vmatpush3.bf16.msra.mxu1 %v5223_v1 }
  0xfd   :  { %v6061_v15 = vadd.f32 %v4244_v9, %v4243_v6  ;;  %v4293_v16 = vadd.f32 %v4292_v11, %v4291_v7  ;;  %3243 = vmatprep.subr.bf16.mxu0 %v5343_v14  ;;  %4783 = vmatprep.subr.bf16.mxu1 %v5238_v4  ;;  %v5170_v6 = vld [vmem:[%s6729_s0 + $0x2b8] ss:$56 sps:$4 sm:$0xff]   ;;  %v5180_v11 = vld [vmem:[%s6729_s0 + $0x32c] ss:$56 sps:$4 sm:$0xff]  }
  0xfe   :  { %v4246_v17 = vpop.f32.mrf.mxu0  ;;  %v4294_v19 = vpop.f32.mrf.mxu1  ;;  %v5173_v7 = vld [vmem:[%s6729_s0 + $0x2c0] ss:$56 sps:$4 sm:$0xff]  }
  0xff   :  { %v6071_v22 = vadd.f32 %v4293_v16, %v5933_v63 }
 0x100   :  { %v4247_v26 = vpop.f32.mrf.mxu0  ;;  %v4295_v27 = vpop.f32.mrf.mxu1  ;;  %3244 = vmatpush1.bf16.msra.mxu0 %v5200_v12  ;;  %4784 = vmatpush3.bf16.msra.mxu1 %v5239_v13 }
 0x101   :  { %v6082_v29 = vadd.f32 %v4247_v26, %v4246_v17  ;;  %v4296_v31 = vadd.f32 %v4295_v27, %v4294_v19  ;;  %3253 = vmatprep.subr.bf16.mxu0 %v5343_v14 }
 0x102   :  { %v4249_v32 = vpop.f32.mrf.mxu0  ;;  %v4297_v33 = vpop.f32.mrf.mxu1  ;;  %2811 = vmatmul.mubr.bf16.gmra.mxu1 %v5154_v20  ;;  %2972 = vmatmul.mubr.bf16.gmra.mxu0 %v5157_v21 }
 0x103   :  { %v6086_v35 = vadd.f32 %v4296_v31, %v5933_v63  ;;  %2818 = vmatprep.mubr.bf16.mxu1 %v5165_v23  ;;  %2979 = vmatprep.mubr.bf16.mxu0 %v5168_v25  ;;  %v5178_v31 = vld [vmem:[%s6729_s0 + $0x328] ss:$56 sps:$4 sm:$0xff]  }
 0x104   :  { %v4250_v36 = vpop.f32.mrf.mxu0  ;;  %v4298_v37 = vpop.f32.mrf.mxu1  ;;  %3254 = vmatpush2.bf16.msra.mxu0 %v5215_v28 }
 0x105   :  { %v6091_v39 = vadd.f32 %v4250_v36, %v4249_v32  ;;  %v4299_v40 = vadd.f32 %v4298_v37, %v4297_v33  ;;  %3255 = vmatprep.subr.bf16.mxu0 %v5343_v14  ;;  %v5181_v32 = vld [vmem:[%s6729_s0 + $0x330] ss:$56 sps:$4 sm:$0xff]   ;;  %v5187_v33 = vld [vmem:[%s6729_s0 + $0x39c] ss:$56 sps:$4 sm:$0xff]  }
 0x106   :  { %v4252_v42 = vpop.f32.mrf.mxu0  ;;  %v4300_v43 = vpop.f32.mrf.mxu1  ;;  %v5190_v36 = vld [vmem:[%s6729_s0 + $0x3a4] ss:$56 sps:$4 sm:$0xff]  }
 0x107   :  { %v6101_v47 = vadd.f32 %v4299_v40, %v5933_v63 }
 0x108   :  { %v4253_v50 = vpop.f32.mrf.mxu0  ;;  %v4301_v52 = vpop.f32.mrf.mxu1  ;;  %3256 = vmatpush2.bf16.msra.mxu0 %v5224_v38 }
 0x109   :  { %v6112_v54 = vadd.f32 %v4253_v50, %v4252_v42  ;;  %v4302_v55 = vadd.f32 %v4301_v52, %v4300_v43  ;;  %3257 = vmatprep.subr.bf16.mxu0 %v5343_v14  ;;  %v5185_v52 = vld [vmem:[%s6729_s0 + $0x398] ss:$56 sps:$4 sm:$0xff]  }
 0x10a   :  { %v4255_v56 = vpop.f32.mrf.mxu0  ;;  %v4303_v57 = vpop.f32.mrf.mxu1  ;;  %2819 = vmatmul.mubr.bf16.gmra.mxu1 %v5163_v44  ;;  %2980 = vmatmul.mubr.bf16.gmra.mxu0 %v5166_v45 }
 0x10b   :  { %v6116_v59 = vadd.f32 %v4302_v55, %v5933_v63  ;;  %2826 = vmatprep.mubr.bf16.mxu1 %v5172_v48  ;;  %2987 = vmatprep.mubr.bf16.mxu0 %v5175_v49  ;;  %v5196_v55 = vld [vmem:[%s6729_s0 + $0x40c] ss:$56 sps:$4 sm:$0xff]  }
 0x10c   :  { %v4256_v60 = vpop.f32.mrf.mxu0  ;;  %v4304_v61 = vpop.f32.mrf.mxu1  ;;  %3258 = vmatpush2.bf16.msra.mxu0 %v5231_v53  ;;  %v5188_v53 = vld [vmem:[%s6729_s0 + $0x3a0] ss:$56 sps:$4 sm:$0xff]  }
 0x10d   :  { %v6121_v0 = vadd.f32 %v4256_v60, %v4255_v56  ;;  %v4305_v1 = vadd.f32 %v4304_v61, %v4303_v57  ;;  %3259 = vmatprep.subr.bf16.mxu0 %v5343_v14  ;;  %v5183_v14 = vld [vmem:[%s6729_s0 + $0x334] ss:$56 sps:$4 sm:$0xff]  }
 0x10e   :  { %v4258_v3 = vpop.f32.mrf.mxu0  ;;  %v4306_v4 = vpop.f32.mrf.mxu1  ;;  %v5199_v56 = vld [vmem:[%s6729_s0 + $0x414] ss:$56 sps:$4 sm:$0xff]  }
 0x10f   :  { %v6131_v9 = vadd.f32 %v4305_v1, %v5933_v63 }
 0x110   :  { %v4259_v12 = vpop.f32.mrf.mxu0  ;;  %v4307_v13 = vpop.f32.mrf.mxu1  ;;  %3260 = vmatpush2.bf16.msra.mxu0 %v5246_v62 }
 0x111   :  { %v6139_v16 = vadd.f32 %v4259_v12, %v4258_v3  ;;  %v4308_v17 = vadd.f32 %v4307_v13, %v4306_v4  ;;  %v5194_v13 = vld [vmem:[%s6729_s0 + $0x408] ss:$56 sps:$4 sm:$0xff]  }
 0x112   :  { %v4261_v19 = vpop.f32.mrf.mxu0  ;;  %v4309_v20 = vpop.f32.mrf.mxu1  ;;  %2827 = vmatmul.mubr.bf16.gmra.mxu1 %v5170_v6  ;;  %2988 = vmatmul.mubr.bf16.gmra.mxu0 %v5173_v7  ;;  %v2298_v6 = vadd.f32 %v5944_v5, %v5933_v63  ;;  %v5206_v5 = vld [vmem:[%s6729_s0 + $0x484] ss:$56 sps:$4 sm:$0xff]  }
 0x113   :  { %v6142_v21 = vadd.f32 %v4308_v17, %v5933_v63  ;;  %2834 = vmatprep.mubr.bf16.mxu1 %v5180_v11  ;;  %2995 = vmatprep.mubr.bf16.mxu0 %v5183_v14  ;;  %v5197_v17 = vld [vmem:[%s6729_s0 + $0x410] ss:$56 sps:$4 sm:$0xff]   ;;  %v5203_v20 = vld [vmem:[%s6729_s0 + $0x47c] ss:$56 sps:$4 sm:$0xff]  }
 0x114   :  { %v4262_v23 = vpop.f32.mrf.mxu0  ;;  %v4310_v25 = vpop.f32.mrf.mxu1 }
 0x115   :  { %v6144_v26 = vadd.f32 %v4262_v23, %v4261_v19 }
 0x116   :  { %v4264_v27 = vpop.f32.mrf.mxu0  ;;  %v4312_v28 = vpop.f32.mrf.mxu1 }
 0x118   :  { %v4265_v37 = vpop.f32.mrf.mxu0  ;;  %v4313_v38 = vpop.f32.mrf.mxu1 }
 0x119   :  { %v6158_v40 = vadd.f32 %v4265_v37, %v4264_v27  ;;  %v2301_v27 = vadd.f32 %v5966_v18, %v5933_v63 }
 0x11a   :  { %v4267_v42 = vpop.f32.mrf.mxu0  ;;  %v4315_v43 = vpop.f32.mrf.mxu1  ;;  %2835 = vmatmul.mubr.bf16.gmra.mxu1 %v5178_v31  ;;  %2996 = vmatmul.mubr.bf16.gmra.mxu0 %v5181_v32 }
 0x11b   :  { %2842 = vmatprep.mubr.bf16.mxu1 %v5187_v33  ;;  %3003 = vmatprep.mubr.bf16.mxu0 %v5190_v36  ;;  %v2306_v43 = vadd.f32 %v5986_v30, %v5933_v63  ;;  %v5214_v30 = vld [vmem:[%s6729_s0 + $0x4f4] ss:$56 sps:$4 sm:$0xff]  }
 0x11c   :  { %v4268_v44 = vpop.f32.mrf.mxu0  ;;  %v4316_v45 = vpop.f32.mrf.mxu1 }
 0x11d   :  { %v6160_v48 = vadd.f32 %v4268_v44, %v4267_v42 }
 0x11e   :  { %v4270_v49 = vpop.f32.mrf.mxu0  ;;  %v4318_v50 = vpop.f32.mrf.mxu1 }
 0x120   :  { %v4271_v57 = vpop.f32.mrf.mxu0  ;;  %v4319_v60 = vpop.f32.mrf.mxu1 }
 0x121   :  { %v6174_v61 = vadd.f32 %v4271_v57, %v4270_v49 }
 0x122   :  { %v4337_v62 = vpop.f32.mrf.mxu1  ;;  %v4449_v1 = vpop.f32.mrf.mxu0  ;;  %2843 = vmatmul.mubr.bf16.gmra.mxu1 %v5185_v52  ;;  %3004 = vmatmul.mubr.bf16.gmra.mxu0 %v5188_v53  ;;  %v5201_v52 = vld [vmem:[%s6729_s0 + $0x478] ss:$56 sps:$4 sm:$0xff]  }
 0x123   :  { %2850 = vmatprep.mubr.bf16.mxu1 %v5196_v55  ;;  %3011 = vmatprep.mubr.bf16.mxu0 %v5199_v56  ;;  %v5204_v53 = vld [vmem:[%s6729_s0 + $0x480] ss:$56 sps:$4 sm:$0xff]   ;;  %v5211_v56 = vld [vmem:[%s6729_s0 + $0x4ec] ss:$56 sps:$4 sm:$0xff]  }
 0x124   :  { %v4338_v3 = vpop.f32.mrf.mxu1  ;;  %v4450_v4 = vpop.f32.mrf.mxu0 }
 0x125   :  { %v4339_v7 = vadd.f32 %v4338_v3, %v4337_v62  ;;  %v4451_v11 = vadd.f32 %v4450_v4, %v4449_v1  ;;  %v2309_v62 = vadd.f32 %v6004_v41, %v5933_v63 }
 0x126   :  { %v4340_v14 = vpop.f32.mrf.mxu1  ;;  %v4452_v12 = vpop.f32.mrf.mxu0 }
 0x127   :  { %v2459_v19 = vadd.f32 %v4339_v7, %v2298_v6 }
 0x128   :  { %v4341_v23 = vpop.f32.mrf.mxu1  ;;  %v4453_v25 = vpop.f32.mrf.mxu0 }
 0x129   :  { %v6192_v28 = vadd.f32 %v4451_v11, %v2459_v19  ;;  %v4342_v31 = vadd.f32 %v4341_v23, %v4340_v14  ;;  %v4454_v32 = vadd.f32 %v4453_v25, %v4452_v12  ;;  %v5209_v23 = vld [vmem:[%s6729_s0 + $0x4e8] ss:$56 sps:$4 sm:$0xff]  }
 0x12a   :  { %v4343_v33 = vpop.f32.mrf.mxu1  ;;  %v4455_v36 = vpop.f32.mrf.mxu0  ;;  %2851 = vmatmul.mubr.bf16.gmra.mxu1 %v5194_v13  ;;  %3012 = vmatmul.mubr.bf16.gmra.mxu0 %v5197_v17  ;;  %v2314_v13 = vadd.f32 %v6019_v51, %v5933_v63  ;;  %v5212_v25 = vld [vmem:[%s6729_s0 + $0x4f0] ss:$56 sps:$4 sm:$0xff]   ;;  %v5221_v51 = vld [vmem:[%s6729_s0 + $0x564] ss:$56 sps:$4 sm:$0xff]  }
 0x12b   :  { %v2462_v37 = vadd.f32 %v4342_v31, %v2301_v27  ;;  %2858 = vmatprep.mubr.bf16.mxu1 %v5203_v20  ;;  %3019 = vmatprep.mubr.bf16.mxu0 %v5206_v5  ;;  %v5218_v31 = vld [vmem:[%s6729_s0 + $0x55c] ss:$56 sps:$4 sm:$0xff]  }
 0x12c   :  { %v4344_v38 = vpop.f32.mrf.mxu1  ;;  %v4456_v42 = vpop.f32.mrf.mxu0 }
 0x12d   :  { %v6196_v44 = vadd.f32 %v4454_v32, %v2462_v37  ;;  %v4345_v45 = vadd.f32 %v4344_v38, %v4343_v33  ;;  %v4457_v18 = vadd.f32 %v4456_v42, %v4455_v36  ;;  %v2317_v36 = vadd.f32 %v6046_v2, %v5933_v63 }
 0x12e   :  { %v4346_v49 = vpop.f32.mrf.mxu1  ;;  %v4458_v50 = vpop.f32.mrf.mxu0 }
 0x12f   :  { %v2467_v55 = vadd.f32 %v4345_v45, %v2306_v43 }
 0x130   :  { %v4347_v57 = vpop.f32.mrf.mxu1  ;;  %v4459_v60 = vpop.f32.mrf.mxu0 }
 0x131   :  { %v6212_v1 = vadd.f32 %v4457_v18, %v2467_v55  ;;  %v4348_v3 = vadd.f32 %v4347_v57, %v4346_v49  ;;  %v4460_v4 = vadd.f32 %v4459_v60, %v4458_v50  ;;  %v5216_v57 = vld [vmem:[%s6729_s0 + $0x558] ss:$56 sps:$4 sm:$0xff]  }
 0x132   :  { %v4349_v6 = vpop.f32.mrf.mxu1  ;;  %v4461_v7 = vpop.f32.mrf.mxu0  ;;  %2859 = vmatmul.mubr.bf16.gmra.mxu1 %v5201_v52  ;;  %3020 = vmatmul.mubr.bf16.gmra.mxu0 %v5204_v53  ;;  %v2322_v52 = vadd.f32 %v6061_v15, %v5933_v63  ;;  %v5219_v60 = vld [vmem:[%s6729_s0 + $0x560] ss:$56 sps:$4 sm:$0xff]   ;;  %v5230_v15 = vld [vmem:[%s6729_s0 + $0x5d4] ss:$56 sps:$4 sm:$0xff]  }
 0x133   :  { %v2470_v11 = vadd.f32 %v4348_v3, %v2309_v62  ;;  %2866 = vmatprep.mubr.bf16.mxu1 %v5211_v56  ;;  %3027 = vmatprep.mubr.bf16.mxu0 %v5214_v30  ;;  %v5227_v3 = vld [vmem:[%s6729_s0 + $0x5cc] ss:$56 sps:$4 sm:$0xff]  }
 0x134   :  { %v4350_v14 = vpop.f32.mrf.mxu1  ;;  %v4462_v12 = vpop.f32.mrf.mxu0 }
 0x135   :  { %v6216_v17 = vadd.f32 %v4460_v4, %v2470_v11  ;;  %v4351_v19 = vadd.f32 %v4350_v14, %v4349_v6  ;;  %v4463_v41 = vadd.f32 %v4462_v12, %v4461_v7  ;;  %v2325_v7 = vadd.f32 %v6082_v29, %v5933_v63 }
 0x136   :  { %v4352_v20 = vpop.f32.mrf.mxu1  ;;  %v4464_v5 = vpop.f32.mrf.mxu0 }
 0x137   :  { %v2475_v27 = vadd.f32 %v4351_v19, %v2314_v13 }
 0x138   :  { %v4353_v32 = vpop.f32.mrf.mxu1  ;;  %v4465_v33 = vpop.f32.mrf.mxu0 }
 0x139   :  { %v6232_v37 = vadd.f32 %v4463_v41, %v2475_v27  ;;  %v4354_v38 = vadd.f32 %v4353_v32, %v4352_v20  ;;  %v4466_v42 = vadd.f32 %v4465_v33, %v4464_v5  ;;  %v5225_v32 = vld [vmem:[%s6729_s0 + $0x5c8] ss:$56 sps:$4 sm:$0xff]  }
 0x13a   :  { %v4355_v43 = vpop.f32.mrf.mxu1  ;;  %v4467_v45 = vpop.f32.mrf.mxu0  ;;  %2867 = vmatmul.mubr.bf16.gmra.mxu1 %v5209_v23  ;;  %3028 = vmatmul.mubr.bf16.gmra.mxu0 %v5212_v25  ;;  %v2330_v23 = vadd.f32 %v6091_v39, %v5933_v63  ;;  %v5228_v33 = vld [vmem:[%s6729_s0 + $0x5d0] ss:$56 sps:$4 sm:$0xff]   ;;  %v5237_v39 = vld [vmem:[%s6729_s0 + $0x644] ss:$56 sps:$4 sm:$0xff]  }
 0x13b   :  { %v2478_v18 = vadd.f32 %v4354_v38, %v2317_v36  ;;  %2874 = vmatprep.mubr.bf16.mxu1 %v5218_v31  ;;  %3035 = vmatprep.mubr.bf16.mxu0 %v5221_v51  ;;  %v5234_v38 = vld [vmem:[%s6729_s0 + $0x63c] ss:$56 sps:$4 sm:$0xff]  }
 0x13c   :  { %v4356_v49 = vpop.f32.mrf.mxu1  ;;  %v4468_v50 = vpop.f32.mrf.mxu0 }
 0x13d   :  { %v6236_v53 = vadd.f32 %v4466_v42, %v2478_v18  ;;  %v4357_v55 = vadd.f32 %v4356_v49, %v4355_v43  ;;  %v4469_v2 = vadd.f32 %v4468_v50, %v4467_v45  ;;  %v2333_v45 = vadd.f32 %v6112_v54, %v5933_v63 }
 0x13e   :  { %v4358_v56 = vpop.f32.mrf.mxu1  ;;  %v4470_v30 = vpop.f32.mrf.mxu0 }
 0x13f   :  { %v2483_v62 = vadd.f32 %v4357_v55, %v2322_v52 }
 0x140   :  { %v4359_v4 = vpop.f32.mrf.mxu1  ;;  %v4471_v6 = vpop.f32.mrf.mxu0 }
 0x141   :  { %v6252_v11 = vadd.f32 %v4469_v2, %v2483_v62  ;;  %v4360_v14 = vadd.f32 %v4359_v4, %v4358_v56  ;;  %v4472_v12 = vadd.f32 %v4471_v6, %v4470_v30  ;;  %v5232_v4 = vld [vmem:[%s6729_s0 + $0x638] ss:$56 sps:$4 sm:$0xff]  }
 0x142   :  { %v4361_v13 = vpop.f32.mrf.mxu1  ;;  %v4473_v19 = vpop.f32.mrf.mxu0  ;;  %2875 = vmatmul.mubr.bf16.gmra.mxu1 %v5216_v57  ;;  %3036 = vmatmul.mubr.bf16.gmra.mxu0 %v5219_v60  ;;  %v2338_v57 = vadd.f32 %v6121_v0, %v5933_v63  ;;  %v5235_v6 = vld [vmem:[%s6729_s0 + $0x640] ss:$56 sps:$4 sm:$0xff]   ;;  %v5245_v0 = vld [vmem:[%s6729_s0 + $0x6b4] ss:$56 sps:$4 sm:$0xff]  }
 0x143   :  { %v2486_v41 = vadd.f32 %v4360_v14, %v2325_v7  ;;  %2882 = vmatprep.mubr.bf16.mxu1 %v5227_v3  ;;  %3043 = vmatprep.mubr.bf16.mxu0 %v5230_v15  ;;  %v5242_v14 = vld [vmem:[%s6729_s0 + $0x6ac] ss:$56 sps:$4 sm:$0xff]  }
 0x144   :  { %v4362_v20 = vpop.f32.mrf.mxu1  ;;  %v4474_v5 = vpop.f32.mrf.mxu0 }
 0x145   :  { %v6256_v25 = vadd.f32 %v4472_v12, %v2486_v41  ;;  %v4363_v27 = vadd.f32 %v4362_v20, %v4361_v13  ;;  %v4475_v29 = vadd.f32 %v4474_v5, %v4473_v19  ;;  %v2341_v19 = vadd.f32 %v6139_v16, %v5933_v63 }
 0x146   :  { %v4364_v31 = vpop.f32.mrf.mxu1  ;;  %v4476_v51 = vpop.f32.mrf.mxu0 }
 0x147   :  { %v2491_v36 = vadd.f32 %v4363_v27, %v2330_v23 }
 0x148   :  { %v4365_v42 = vpop.f32.mrf.mxu1  ;;  %v4477_v43 = vpop.f32.mrf.mxu0 }
 0x149   :  { %v6272_v18 = vadd.f32 %v4475_v29, %v2491_v36  ;;  %v4366_v49 = vadd.f32 %v4365_v42, %v4364_v31  ;;  %v4478_v50 = vadd.f32 %v4477_v43, %v4476_v51  ;;  %v5240_v42 = vld [vmem:[%s6729_s0 + $0x6a8] ss:$56 sps:$4 sm:$0xff]  }
 0x14a   :  { %v4367_v52 = vpop.f32.mrf.mxu1  ;;  %v4479_v55 = vpop.f32.mrf.mxu0  ;;  %2883 = vmatmul.mubr.bf16.gmra.mxu1 %v5225_v32  ;;  %3044 = vmatmul.mubr.bf16.gmra.mxu0 %v5228_v33  ;;  %v2346_v32 = vadd.f32 %v6144_v26, %v5933_v63  ;;  %v5243_v43 = vld [vmem:[%s6729_s0 + $0x6b0] ss:$56 sps:$4 sm:$0xff]   ;;  %v5252_v26 = vld [vmem:[%s6729_s0 + $0x34] ss:$56 sps:$4 sm:$0xff]  }
 0x14b   :  { %v2494_v2 = vadd.f32 %v4366_v49, %v2333_v45  ;;  %2890 = vmatprep.mubr.bf16.mxu1 %v5234_v38  ;;  %3051 = vmatprep.mubr.bf16.mxu0 %v5237_v39  ;;  %v5249_v49 = vld [vmem:[%s6729_s0 + $0x2c] ss:$56 sps:$4 sm:$0xff]  }
 0x14c   :  { %v4368_v56 = vpop.f32.mrf.mxu1  ;;  %v4480_v30 = vpop.f32.mrf.mxu0 }
 0x14d   :  { %v6276_v60 = vadd.f32 %v4478_v50, %v2494_v2  ;;  %v4369_v62 = vadd.f32 %v4368_v56, %v4367_v52  ;;  %v4481_v54 = vadd.f32 %v4480_v30, %v4479_v55  ;;  %v2349_v55 = vadd.f32 %v6158_v40, %v5933_v63 }
 0x14e   :  { %v4370_v3 = vpop.f32.mrf.mxu1  ;;  %v4482_v15 = vpop.f32.mrf.mxu0 }
 0x14f   :  { %v2499_v7 = vadd.f32 %v4369_v62, %v2338_v57 }
 0x150   :  { %v4371_v12 = vpop.f32.mrf.mxu1  ;;  %v4483_v13 = vpop.f32.mrf.mxu0 }
 0x151   :  { %v6292_v41 = vadd.f32 %v4481_v54, %v2499_v7  ;;  %v4372_v20 = vadd.f32 %v4371_v12, %v4370_v3  ;;  %v4484_v5 = vadd.f32 %v4483_v13, %v4482_v15  ;;  %v5247_v12 = vld [vmem:[%s6729_s0 + $0x28] ss:$56 sps:$4 sm:$0xff]  }
 0x152   :  { %v4373_v23 = vpop.f32.mrf.mxu1  ;;  %v4485_v27 = vpop.f32.mrf.mxu0  ;;  %2891 = vmatmul.mubr.bf16.gmra.mxu1 %v5232_v4  ;;  %3052 = vmatmul.mubr.bf16.gmra.mxu0 %v5235_v6  ;;  %v2354_v4 = vadd.f32 %v6160_v48, %v5933_v63  ;;  %v5250_v13 = vld [vmem:[%s6729_s0 + $0x30] ss:$56 sps:$4 sm:$0xff]   ;;  %v5256_v48 = vld [vmem:[%s6729_s0 + $0xa4] ss:$56 sps:$4 sm:$0xff]  }
 0x153   :  { %v2502_v29 = vadd.f32 %v4372_v20, %v2341_v19  ;;  %2898 = vmatprep.mubr.bf16.mxu1 %v5242_v14  ;;  %3059 = vmatprep.mubr.bf16.mxu0 %v5245_v0  ;;  %v5255_v20 = vld [vmem:[%s6729_s0 + $0x9c] ss:$56 sps:$4 sm:$0xff]  }
 0x154   :  { %v4374_v31 = vpop.f32.mrf.mxu1  ;;  %v4486_v51 = vpop.f32.mrf.mxu0 }
 0x155   :  { %v6296_v33 = vadd.f32 %v4484_v5, %v2502_v29  ;;  %v4375_v36 = vadd.f32 %v4374_v31, %v4373_v23  ;;  %v4487_v16 = vadd.f32 %v4486_v51, %v4485_v27  ;;  %v2357_v27 = vadd.f32 %v6174_v61, %v5933_v63  ;;  %v5253_v61 = vld [vmem:[%s6729_s0 + $0x98] ss:$56 sps:$4 sm:$0xff]  }
 0x156   :  { %v4376_v38 = vpop.f32.mrf.mxu1  ;;  %v4488_v39 = vpop.f32.mrf.mxu0 }
 0x157   :  { %v2507_v45 = vadd.f32 %v4375_v36, %v2346_v32 }
 0x158   :  { %v4377_v50 = vpop.f32.mrf.mxu1  ;;  %v4489_v52 = vpop.f32.mrf.mxu0 }
 0x159   :  { %v6312_v2 = vadd.f32 %v4487_v16, %v2507_v45  ;;  %v4378_v56 = vadd.f32 %v4377_v50, %v4376_v38  ;;  %v4490_v30 = vadd.f32 %v4489_v52, %v4488_v39  ;;  %v5261_v52 = vld [vmem:[%s6729_s0 + $0x10c] ss:$56 sps:$4 sm:$0xff]  }
 0x15a   :  { %v4379_v57 = vpop.f32.mrf.mxu1  ;;  %v4491_v62 = vpop.f32.mrf.mxu0  ;;  %2899 = vmatmul.mubr.bf16.gmra.mxu1 %v5240_v42  ;;  %3060 = vmatmul.mubr.bf16.gmra.mxu0 %v5243_v43 }
 0x15b   :  { %v2510_v54 = vadd.f32 %v4378_v56, %v2349_v55  ;;  %3100 = vmatprep.mubr.bf16.mxu1 %v5249_v49  ;;  %4050 = vmatprep.mubr.msk.bf16.mxu0 %vm2214_vm0, %v5252_v26  ;;  %v5258_v26 = vld [vmem:[%s6729_s0 + $0xa0] ss:$56 sps:$4 sm:$0xff]   ;;  %v5262_v55 = vld [vmem:[%s6729_s0 + $0x114] ss:$56 sps:$4 sm:$0xff]  }
 0x15c   :  { %v4380_v3 = vpop.f32.mrf.mxu1  ;;  %v4492_v15 = vpop.f32.mrf.mxu0 }
 0x15d   :  { %v6317_v6 = vadd.f32 %v4490_v30, %v2510_v54  ;;  %v4381_v40 = vadd.f32 %v4380_v3, %v4379_v57  ;;  %v4493_v7 = vadd.f32 %v4492_v15, %v4491_v62 }
 0x15e   :  { %v4382_v14 = vpop.f32.mrf.mxu1  ;;  %v4494_v0 = vpop.f32.mrf.mxu0 }
 0x15f   :  { %v2515_v19 = vadd.f32 %v4381_v40, %v2354_v4 }
 0x160   :  { %v4383_v5 = vpop.f32.mrf.mxu1  ;;  %v4495_v23 = vpop.f32.mrf.mxu0 }
 0x161   :  { %v6333_v29 = vadd.f32 %v4493_v7, %v2515_v19  ;;  %v4384_v31 = vadd.f32 %v4383_v5, %v4382_v14  ;;  %v4496_v51 = vadd.f32 %v4495_v23, %v4494_v0  ;;  %v5259_v19 = vld [vmem:[%s6729_s0 + $0x108] ss:$56 sps:$4 sm:$0xff]   ;;  %v5268_v5 = vld [vmem:[%s6729_s0 + $0x184] ss:$56 sps:$4 sm:$0xff]  }
 0x162   :  { %v4385_v32 = vpop.f32.mrf.mxu1  ;;  %v4497_v36 = vpop.f32.mrf.mxu0  ;;  %3101 = vmatmul.mubr.bf16.vlgmr.msra.gmra.mxu1 %v5247_v12  ;;  %3262 = vmatmul.mubr.bf16.vlgmr.msra.gmra.mxu0 %v5250_v13 }
 0x163   :  { %v2518_v16 = vadd.f32 %v4384_v31, %v2357_v27  ;;  %3108 = vmatprep.mubr.bf16.mxu1 %v5255_v20  ;;  %4051 = vmatprep.mubr.msk.bf16.mxu0 %vm2214_vm0, %v5256_v48  ;;  %v5264_v20 = vld [vmem:[%s6729_s0 + $0x110] ss:$56 sps:$4 sm:$0xff]   ;;  %v5267_v48 = vld [vmem:[%s6729_s0 + $0x17c] ss:$56 sps:$4 sm:$0xff]  }
 0x164   :  { %v4386_v38 = vpop.f32.mrf.mxu1  ;;  %v4498_v39 = vpop.f32.mrf.mxu0 }
 0x165   :  { %v6336_v42 = vadd.f32 %v4496_v51, %v2518_v16  ;;  %v4387_v43 = vadd.f32 %v4386_v38, %v4385_v32  ;;  %v4499_v45 = vadd.f32 %v4498_v39, %v4497_v36 }
 0x166   :  { %v4388_v49 = vpop.f32.mrf.mxu1  ;;  %v4500_v63 = vpop.f32.mrf.mxu0 }
 0x167   :  { %v2523_v50 = vadd.f32 %v4387_v43, %v5951_v10 }
 0x168   :  { %v4389_v56 = vpop.f32.mrf.mxu1  ;;  %v4501_v30 = vpop.f32.mrf.mxu0 }
 0x169   :  { %v6351_v57 = vadd.f32 %v4499_v45, %v2523_v50  ;;  %v4390_v62 = vadd.f32 %v4389_v56, %v4388_v49  ;;  %v4502_v54 = vadd.f32 %v4501_v30, %v4500_v63  ;;  %v5270_v50 = vld [vmem:[%s6729_s0 + $0x180] ss:$56 sps:$4 sm:$0xff]  }
 0x16a   :  { %v4391_v3 = vpop.f32.mrf.mxu1  ;;  %v4503_v15 = vpop.f32.mrf.mxu0  ;;  %3109 = vmatmul.mubr.bf16.gmra.mxu1 %v5253_v61  ;;  %3270 = vmatmul.mubr.bf16.gmra.mxu0 %v5258_v26  ;;  %v5265_v26 = vld [vmem:[%s6729_s0 + $0x178] ss:$56 sps:$4 sm:$0xff]  }
 0x16b   :  { %v2526_v10 = vadd.f32 %v4390_v62, %v5975_v24  ;;  %3116 = vmatprep.mubr.bf16.mxu1 %v5261_v52  ;;  %4052 = vmatprep.mubr.msk.bf16.mxu0 %vm2214_vm0, %v5262_v55  ;;  %v5273_v52 = vld [vmem:[%s6729_s0 + $0x1ec] ss:$56 sps:$4 sm:$0xff]  }
 0x16c   :  { %v4392_v4 = vpop.f32.mrf.mxu1  ;;  %v4504_v40 = vpop.f32.mrf.mxu0  ;;  %v5274_v55 = vld [vmem:[%s6729_s0 + $0x1f4] ss:$56 sps:$4 sm:$0xff]  }
 0x16d   :  { %v6355_v7 = vadd.f32 %v4502_v54, %v2526_v10  ;;  %v4393_v14 = vadd.f32 %v4392_v4, %v4391_v3  ;;  %v4505_v0 = vadd.f32 %v4504_v40, %v4503_v15 }
 0x16e   :  { %v4394_v12 = vpop.f32.mrf.mxu1  ;;  %v4506_v13 = vpop.f32.mrf.mxu0 }
 0x16f   :  { %v2531_v24 = vadd.f32 %v4393_v14, %v5990_v34 }
 0x170   :  { %v4395_v23 = vpop.f32.mrf.mxu1  ;;  %v4507_v27 = vpop.f32.mrf.mxu0 }
 0x171   :  { %v6370_v31 = vadd.f32 %v4505_v0, %v2531_v24  ;;  %v4396_v51 = vadd.f32 %v4395_v23, %v4394_v12  ;;  %v4508_v32 = vadd.f32 %v4507_v27, %v4506_v13  ;;  %v5276_v24 = vld [vmem:[%s6729_s0 + $0x1f0] ss:$56 sps:$4 sm:$0xff]  }
 0x172   :  { %v4397_v36 = vpop.f32.mrf.mxu1  ;;  %v4509_v16 = vpop.f32.mrf.mxu0  ;;  %3117 = vmatmul.mubr.bf16.gmra.mxu1 %v5259_v19  ;;  %3278 = vmatmul.mubr.bf16.gmra.mxu0 %v5264_v20  ;;  %v5271_v20 = vld [vmem:[%s6729_s0 + $0x1e8] ss:$56 sps:$4 sm:$0xff]  }
 0x173   :  { %v2534_v34 = vadd.f32 %v4396_v51, %v6011_v46  ;;  %3124 = vmatprep.mubr.bf16.mxu1 %v5267_v48  ;;  %4053 = vmatprep.mubr.msk.bf16.mxu0 %vm2214_vm0, %v5268_v5  ;;  %v5279_v48 = vld [vmem:[%s6729_s0 + $0x25c] ss:$56 sps:$4 sm:$0xff]  }
 0x174   :  { %v4398_v38 = vpop.f32.mrf.mxu1  ;;  %v4510_v39 = vpop.f32.mrf.mxu0  ;;  %v5280_v5 = vld [vmem:[%s6729_s0 + $0x264] ss:$56 sps:$4 sm:$0xff]  }
 0x175   :  { %v6374_v43 = vadd.f32 %v4508_v32, %v2534_v34  ;;  %v4399_v45 = vadd.f32 %v4398_v38, %v4397_v36  ;;  %v4511_v49 = vadd.f32 %v4510_v39, %v4509_v16 }
 0x176   :  { %v4400_v63 = vpop.f32.mrf.mxu1  ;;  %v4512_v61 = vpop.f32.mrf.mxu0 }
 0x177   :  { %v2539_v46 = vadd.f32 %v4399_v45, %v6032_v58 }
 0x178   :  { %v4401_v56 = vpop.f32.mrf.mxu1  ;;  %v4513_v30 = vpop.f32.mrf.mxu0 }
 0x179   :  { %v6389_v62 = vadd.f32 %v4511_v49, %v2539_v46  ;;  %v4402_v54 = vadd.f32 %v4401_v56, %v4400_v63  ;;  %v4514_v3 = vadd.f32 %v4513_v30, %v4512_v61  ;;  %v5282_v46 = vld [vmem:[%s6729_s0 + $0x260] ss:$56 sps:$4 sm:$0xff]  }
 0x17a   :  { %v4403_v15 = vpop.f32.mrf.mxu1  ;;  %v4515_v10 = vpop.f32.mrf.mxu0  ;;  %3125 = vmatmul.mubr.bf16.gmra.mxu1 %v5265_v26  ;;  %3286 = vmatmul.mubr.bf16.gmra.mxu0 %v5270_v50  ;;  %v5277_v50 = vld [vmem:[%s6729_s0 + $0x258] ss:$56 sps:$4 sm:$0xff]  }
 0x17b   :  { %v2542_v58 = vadd.f32 %v4402_v54, %v6053_v8  ;;  %3132 = vmatprep.mubr.bf16.mxu1 %v5273_v52  ;;  %4054 = vmatprep.mubr.msk.bf16.mxu0 %vm2214_vm0, %v5274_v55  ;;  %v5285_v52 = vld [vmem:[%s6729_s0 + $0x2cc] ss:$56 sps:$4 sm:$0xff]  }
 0x17c   :  { %v4404_v4 = vpop.f32.mrf.mxu1  ;;  %v4516_v40 = vpop.f32.mrf.mxu0  ;;  %v5286_v55 = vld [vmem:[%s6729_s0 + $0x2d4] ss:$56 sps:$4 sm:$0xff]  }
 0x17d   :  { %v6393_v14 = vadd.f32 %v4514_v3, %v2542_v58  ;;  %v4405_v0 = vadd.f32 %v4404_v4, %v4403_v15  ;;  %v4517_v12 = vadd.f32 %v4516_v40, %v4515_v10 }
 0x17e   :  { %v4406_v13 = vpop.f32.mrf.mxu1  ;;  %v4518_v19 = vpop.f32.mrf.mxu0 }
 0x17f   :  { %v2547_v8 = vadd.f32 %v4405_v0, %v6071_v22 }
 0x180   :  { %v4407_v23 = vpop.f32.mrf.mxu1  ;;  %v4519_v27 = vpop.f32.mrf.mxu0 }
 0x181   :  { %v6408_v51 = vadd.f32 %v4517_v12, %v2547_v8  ;;  %v4408_v32 = vadd.f32 %v4407_v23, %v4406_v13  ;;  %v4520_v36 = vadd.f32 %v4519_v27, %v4518_v19  ;;  %v5288_v8 = vld [vmem:[%s6729_s0 + $0x2d0] ss:$56 sps:$4 sm:$0xff]  }
 0x182   :  { %v4409_v16 = vpop.f32.mrf.mxu1  ;;  %v4521_v34 = vpop.f32.mrf.mxu0  ;;  %3133 = vmatmul.mubr.bf16.gmra.mxu1 %v5271_v20  ;;  %3294 = vmatmul.mubr.bf16.gmra.mxu0 %v5276_v24  ;;  %v5283_v24 = vld [vmem:[%s6729_s0 + $0x2c8] ss:$56 sps:$4 sm:$0xff]  }
 0x183   :  { %v2550_v22 = vadd.f32 %v4408_v32, %v6086_v35  ;;  %3140 = vmatprep.mubr.bf16.mxu1 %v5279_v48  ;;  %4055 = vmatprep.mubr.msk.bf16.mxu0 %vm2214_vm0, %v5280_v5  ;;  %v5291_v48 = vld [vmem:[%s6729_s0 + $0x33c] ss:$56 sps:$4 sm:$0xff]  }
 0x184   :  { %v4410_v38 = vpop.f32.mrf.mxu1  ;;  %v4522_v39 = vpop.f32.mrf.mxu0  ;;  %v5292_v5 = vld [vmem:[%s6729_s0 + $0x344] ss:$56 sps:$4 sm:$0xff]  }
 0x185   :  { %v6412_v45 = vadd.f32 %v4520_v36, %v2550_v22  ;;  %v4411_v49 = vadd.f32 %v4410_v38, %v4409_v16  ;;  %v4523_v63 = vadd.f32 %v4522_v39, %v4521_v34 }
 0x186   :  { %v4412_v61 = vpop.f32.mrf.mxu1  ;;  %v4524_v26 = vpop.f32.mrf.mxu0 }
 0x187   :  { %v2555_v35 = vadd.f32 %v4411_v49, %v6101_v47 }
 0x188   :  { %v4413_v56 = vpop.f32.mrf.mxu1  ;;  %v4525_v30 = vpop.f32.mrf.mxu0 }
 0x189   :  { %v6427_v54 = vadd.f32 %v4523_v63, %v2555_v35  ;;  %v4414_v3 = vadd.f32 %v4413_v56, %v4412_v61  ;;  %v4526_v15 = vadd.f32 %v4525_v30, %v4524_v26  ;;  %v5289_v26 = vld [vmem:[%s6729_s0 + $0x338] ss:$56 sps:$4 sm:$0xff]  }
 0x18a   :  { %v4415_v10 = vpop.f32.mrf.mxu1  ;;  %v4527_v58 = vpop.f32.mrf.mxu0  ;;  %3141 = vmatmul.mubr.bf16.gmra.mxu1 %v5277_v50  ;;  %3302 = vmatmul.mubr.bf16.gmra.mxu0 %v5282_v46  ;;  %v5294_v50 = vld [vmem:[%s6729_s0 + $0x340] ss:$56 sps:$4 sm:$0xff]   ;;  %v5298_v46 = vld [vmem:[%s6729_s0 + $0x3b4] ss:$56 sps:$4 sm:$0xff]  }
 0x18b   :  { %v2558_v47 = vadd.f32 %v4414_v3, %v6116_v59  ;;  %3148 = vmatprep.mubr.bf16.mxu1 %v5285_v52  ;;  %4056 = vmatprep.mubr.msk.bf16.mxu0 %vm2214_vm0, %v5286_v55 }
 0x18c   :  { %v4416_v4 = vpop.f32.mrf.mxu1  ;;  %v4528_v40 = vpop.f32.mrf.mxu0 }
 0x18d   :  { %v6431_v0 = vadd.f32 %v4526_v15, %v2558_v47  ;;  %v4417_v12 = vadd.f32 %v4416_v4, %v4415_v10  ;;  %v4529_v13 = vadd.f32 %v4528_v40, %v4527_v58  ;;  %v5295_v58 = vld [vmem:[%s6729_s0 + $0x3a8] ss:$56 sps:$4 sm:$0xff]   ;;  %v5303_v4 = vld [vmem:[%s6729_s0 + $0x41c] ss:$56 sps:$4 sm:$0xff]  }
 0x18e   :  { %v4418_v19 = vpop.f32.mrf.mxu1  ;;  %v4530_v20 = vpop.f32.mrf.mxu0  ;;  %v5300_v47 = vld [vmem:[%s6729_s0 + $0x3b0] ss:$56 sps:$4 sm:$0xff]   ;;  %v5304_v40 = vld [vmem:[%s6729_s0 + $0x424] ss:$56 sps:$4 sm:$0xff]  }
 0x18f   :  { %v2563_v59 = vadd.f32 %v4417_v12, %v6131_v9 }
 0x190   :  { %v4419_v23 = vpop.f32.mrf.mxu1  ;;  %v4531_v27 = vpop.f32.mrf.mxu0 }
 0x191   :  { %v6446_v32 = vadd.f32 %v4529_v13, %v2563_v59  ;;  %v4420_v36 = vadd.f32 %v4419_v23, %v4418_v19  ;;  %v4532_v16 = vadd.f32 %v4531_v27, %v4530_v20  ;;  %v5301_v27 = vld [vmem:[%s6729_s0 + $0x418] ss:$56 sps:$4 sm:$0xff]  }
 0x192   :  { %v4421_v34 = vpop.f32.mrf.mxu1  ;;  %v4533_v22 = vpop.f32.mrf.mxu0  ;;  %3149 = vmatmul.mubr.bf16.gmra.mxu1 %v5283_v24  ;;  %3310 = vmatmul.mubr.bf16.gmra.mxu0 %v5288_v8 }
 0x193   :  { %v2566_v9 = vadd.f32 %v4420_v36, %v6142_v21  ;;  %3156 = vmatprep.mubr.bf16.mxu1 %v5291_v48  ;;  %4057 = vmatprep.mubr.msk.bf16.mxu0 %vm2214_vm0, %v5292_v5  ;;  %v5297_v21 = vld [vmem:[%s6729_s0 + $0x3ac] ss:$56 sps:$4 sm:$0xff]   ;;  %v5306_v36 = vld [vmem:[%s6729_s0 + $0x420] ss:$56 sps:$4 sm:$0xff]  }
 0x194   :  { %v4422_v38 = vpop.f32.mrf.mxu1  ;;  %v4534_v39 = vpop.f32.mrf.mxu0  ;;  %v5309_v34 = vld [vmem:[%s6729_s0 + $0x48c] ss:$56 sps:$4 sm:$0xff]  }
 0x195   :  { %v6450_v49 = vadd.f32 %v4532_v16, %v2566_v9  ;;  %v5310_v22 = vld [vmem:[%s6729_s0 + $0x494] ss:$56 sps:$4 sm:$0xff]  }
 0x196   :  { %v4424_v63 = vpop.f32.mrf.mxu1  ;;  %v4536_v61 = vpop.f32.mrf.mxu0 }
 0x198   :  { %v4425_v35 = vpop.f32.mrf.mxu1  ;;  %v4537_v52 = vpop.f32.mrf.mxu0 }
 0x19a   :  { %v4427_v55 = vpop.f32.mrf.mxu1  ;;  %v4539_v56 = vpop.f32.mrf.mxu0  ;;  %3157 = vmatmul.mubr.bf16.gmra.mxu1 %v5289_v26  ;;  %3318 = vmatmul.mubr.bf16.gmra.mxu0 %v5294_v50 }
 0x19b   :  { %3164 = vmatprep.mubr.bf16.mxu1 %v5297_v21  ;;  %4058 = vmatprep.mubr.msk.bf16.mxu0 %vm2214_vm0, %v5298_v46 }
 0x19c   :  { %v4428_v30 = vpop.f32.mrf.mxu1  ;;  %v4540_v3 = vpop.f32.mrf.mxu0 }
 0x19d   :  { %v5307_v3 = vld [vmem:[%s6729_s0 + $0x488] ss:$56 sps:$4 sm:$0xff]  }
 0x19e   :  { %v4430_v15 = vpop.f32.mrf.mxu1  ;;  %v4542_v10 = vpop.f32.mrf.mxu0 }
 0x19f   :  { %v5312_v15 = vld [vmem:[%s6729_s0 + $0x490] ss:$56 sps:$4 sm:$0xff]   ;;  %v5315_v10 = vld [vmem:[%s6729_s0 + $0x4fc] ss:$56 sps:$4 sm:$0xff]  }
 0x1a0   :  { %v4431_v12 = vpop.f32.mrf.mxu1  ;;  %v4543_v13 = vpop.f32.mrf.mxu0 }
 0x1a2   :  { %v4561_v19 = vpop.f32.mrf.mxu1  ;;  %v4673_v20 = vpop.f32.mrf.mxu0  ;;  %3165 = vmatmul.mubr.bf16.gmra.mxu1 %v5295_v58  ;;  %3326 = vmatmul.mubr.bf16.gmra.mxu0 %v5300_v47  ;;  %v5316_v58 = vld [vmem:[%s6729_s0 + $0x504] ss:$56 sps:$4 sm:$0xff]  }
 0x1a3   :  { %3172 = vmatprep.mubr.bf16.mxu1 %v5303_v4  ;;  %4059 = vmatprep.mubr.msk.bf16.mxu0 %vm2214_vm0, %v5304_v40  ;;  %v5344_v40 = vmov 0.0|0.0  }
 0x1a4   :  { %v4562_v24 = vpop.f32.mrf.mxu1  ;;  %v4674_v8 = vpop.f32.mrf.mxu0  ;;  %v4094_v12 = vcombine.low %v5344_v40, %v5344_v40  ;;  %v4095_v13 = vcombine.high %v5344_v40, %v5344_v40  ;;  %v5328_v40 = vld [vmem:[%s6729_s0 + $0x5e4] ss:$56 sps:$4 sm:$0xff]  }
 0x1a5   :  { %v4563_v59 = vadd.f32 %v4562_v24, %v4561_v19  ;;  %v4675_v48 = vadd.f32 %v4674_v8, %v4673_v20 }
 0x1a6   :  { %v4564_v5 = vpop.f32.mrf.mxu1  ;;  %v4676_v23 = vpop.f32.mrf.mxu0  ;;  %3709 = vst [vmem:[%s6731_s3 + $0x70] sm:$0xf] %v4094_v12  ;;  %3710 = vst [vmem:[%s6731_s3 + $0x74] sm:$0xf] %v4095_v13 }
 0x1a7   :  { %v2781_v16 = vadd.f32 %v4563_v59, %v6192_v28  ;;  %3711 = vst [vmem:[%s6731_s3 + $0x78] sm:$0xf] %v4094_v12  ;;  %3712 = vst [vmem:[%s6731_s3 + $0x7c] sm:$0xf] %v4095_v13 }
 0x1a8   :  { %v4565_v9 = vpop.f32.mrf.mxu1  ;;  %v4677_v38 = vpop.f32.mrf.mxu0 }
 0x1a9   :  { %v6491_v39 = vadd.f32 %v4675_v48, %v2781_v16  ;;  %v4566_v63 = vadd.f32 %v4565_v9, %v4564_v5  ;;  %v4678_v61 = vadd.f32 %v4677_v38, %v4676_v23  ;;  %v5318_v9 = vld [vmem:[%s6729_s0 + $0x500] ss:$56 sps:$4 sm:$0xff]   ;;  %v5321_v38 = vld [vmem:[%s6729_s0 + $0x56c] ss:$56 sps:$4 sm:$0xff]  }
 0x1aa   :  { %v4567_v26 = vpop.f32.mrf.mxu1  ;;  %v4679_v50 = vpop.f32.mrf.mxu0  ;;  %3173 = vmatmul.mubr.bf16.gmra.mxu1 %v5301_v27  ;;  %3334 = vmatmul.mubr.bf16.gmra.mxu0 %v5306_v36 }
 0x1ab   :  { %v2784_v28 = vadd.f32 %v4566_v63, %v6196_v44  ;;  %3180 = vmatprep.mubr.bf16.mxu1 %v5309_v34  ;;  %4060 = vmatprep.mubr.msk.bf16.mxu0 %vm2214_vm0, %v5310_v22  ;;  %v5313_v22 = vld [vmem:[%s6729_s0 + $0x4f8] ss:$56 sps:$4 sm:$0xff]   ;;  %v5322_v63 = vld [vmem:[%s6729_s0 + $0x574] ss:$56 sps:$4 sm:$0xff]  }
 0x1ac   :  { %v4568_v21 = vpop.f32.mrf.mxu1  ;;  %v4680_v46 = vpop.f32.mrf.mxu0 }
 0x1ad   :  { %v6495_v35 = vadd.f32 %v4678_v61, %v2784_v28  ;;  %v4569_v52 = vadd.f32 %v4568_v21, %v4567_v26  ;;  %v4681_v55 = vadd.f32 %v4680_v46, %v4679_v50 }
 0x1ae   :  { %v4570_v56 = vpop.f32.mrf.mxu1  ;;  %v4682_v30 = vpop.f32.mrf.mxu0 }
 0x1af   :  { %v2789_v44 = vadd.f32 %v4569_v52, %v6212_v1 }
 0x1b0   :  { %v4571_v47 = vpop.f32.mrf.mxu1  ;;  %v4683_v4 = vpop.f32.mrf.mxu0 }
 0x1b1   :  { %v6510_v19 = vadd.f32 %v4681_v55, %v2789_v44  ;;  %v4572_v20 = vadd.f32 %v4571_v47, %v4570_v56  ;;  %v4684_v24 = vadd.f32 %v4683_v4, %v4682_v30  ;;  %v5324_v47 = vld [vmem:[%s6729_s0 + $0x570] ss:$56 sps:$4 sm:$0xff]   ;;  %v5327_v4 = vld [vmem:[%s6729_s0 + $0x5dc] ss:$56 sps:$4 sm:$0xff]  }
 0x1b2   :  { %v4573_v8 = vpop.f32.mrf.mxu1  ;;  %v4685_v59 = vpop.f32.mrf.mxu0  ;;  %3181 = vmatmul.mubr.bf16.gmra.mxu1 %v5307_v3  ;;  %3342 = vmatmul.mubr.bf16.gmra.mxu0 %v5312_v15 }
 0x1b3   :  { %v2792_v1 = vadd.f32 %v4572_v20, %v6216_v17  ;;  %3188 = vmatprep.mubr.bf16.mxu1 %v5315_v10  ;;  %4061 = vmatprep.mubr.msk.bf16.mxu0 %vm2214_vm0, %v5316_v58  ;;  %v5319_v58 = vld [vmem:[%s6729_s0 + $0x568] ss:$56 sps:$4 sm:$0xff]  }
 0x1b4   :  { %v4574_v48 = vpop.f32.mrf.mxu1  ;;  %v4686_v5 = vpop.f32.mrf.mxu0 }
 0x1b5   :  { %v6526_v23 = vadd.f32 %v4684_v24, %v2792_v1  ;;  %v4575_v27 = vadd.f32 %v4574_v48, %v4573_v8  ;;  %v4687_v36 = vadd.f32 %v4686_v5, %v4685_v59 }
 0x1b6   :  { %v4576_v16 = vpop.f32.mrf.mxu1  ;;  %v4688_v34 = vpop.f32.mrf.mxu0 }
 0x1b7   :  { %v2797_v17 = vadd.f32 %v4575_v27, %v6232_v37 }
 0x1b8   :  { %v4577_v61 = vpop.f32.mrf.mxu1  ;;  %v4689_v26 = vpop.f32.mrf.mxu0 }
 0x1b9   :  { %v6541_v50 = vadd.f32 %v4687_v36, %v2797_v17  ;;  %v4578_v28 = vadd.f32 %v4577_v61, %v4576_v16  ;;  %v4690_v21 = vadd.f32 %v4689_v26, %v4688_v34  ;;  %v5330_v17 = vld [vmem:[%s6729_s0 + $0x5e0] ss:$56 sps:$4 sm:$0xff]  }
 0x1ba   :  { %v4579_v46 = vpop.f32.mrf.mxu1  ;;  %v4691_v52 = vpop.f32.mrf.mxu0  ;;  %3189 = vmatmul.mubr.bf16.gmra.mxu1 %v5313_v22  ;;  %3350 = vmatmul.mubr.bf16.gmra.mxu0 %v5318_v9  ;;  %v5325_v9 = vld [vmem:[%s6729_s0 + $0x5d8] ss:$56 sps:$4 sm:$0xff]  }
 0x1bb   :  { %v2800_v37 = vadd.f32 %v4578_v28, %v6236_v53  ;;  %3196 = vmatprep.mubr.bf16.mxu1 %v5321_v38  ;;  %4062 = vmatprep.mubr.msk.bf16.mxu0 %vm2214_vm0, %v5322_v63  ;;  %v5333_v38 = vld [vmem:[%s6729_s0 + $0x64c] ss:$56 sps:$4 sm:$0xff]  }
 0x1bc   :  { %v4580_v55 = vpop.f32.mrf.mxu1  ;;  %v4692_v56 = vpop.f32.mrf.mxu0  ;;  %v5334_v63 = vld [vmem:[%s6729_s0 + $0x654] ss:$56 sps:$4 sm:$0xff]  }
 0x1bd   :  { %v6545_v30 = vadd.f32 %v4690_v21, %v2800_v37  ;;  %v4581_v3 = vadd.f32 %v4580_v55, %v4579_v46  ;;  %v4693_v15 = vadd.f32 %v4692_v56, %v4691_v52 }
 0x1be   :  { %v4582_v44 = vpop.f32.mrf.mxu1  ;;  %v4694_v10 = vpop.f32.mrf.mxu0 }
 0x1bf   :  { %v2805_v53 = vadd.f32 %v4581_v3, %v6252_v11 }
 0x1c0   :  { %v4583_v12 = vpop.f32.mrf.mxu1  ;;  %v4695_v13 = vpop.f32.mrf.mxu0 }
 0x1c1   :  { %v6560_v20 = vadd.f32 %v4693_v15, %v2805_v53  ;;  %v4584_v24 = vadd.f32 %v4583_v12, %v4582_v44  ;;  %v4696_v8 = vadd.f32 %v4695_v13, %v4694_v10  ;;  %v5336_v53 = vld [vmem:[%s6729_s0 + $0x650] ss:$56 sps:$4 sm:$0xff]  }
 0x1c2   :  { %v4585_v59 = vpop.f32.mrf.mxu1  ;;  %v4697_v1 = vpop.f32.mrf.mxu0  ;;  %3197 = vmatmul.mubr.bf16.gmra.mxu1 %v5319_v58  ;;  %3358 = vmatmul.mubr.bf16.gmra.mxu0 %v5324_v47  ;;  %v5331_v47 = vld [vmem:[%s6729_s0 + $0x648] ss:$56 sps:$4 sm:$0xff]  }
 0x1c3   :  { %v2808_v11 = vadd.f32 %v4584_v24, %v6256_v25  ;;  %3204 = vmatprep.mubr.bf16.mxu1 %v5327_v4  ;;  %4063 = vmatprep.mubr.msk.bf16.mxu0 %vm2214_vm0, %v5328_v40  ;;  %v5339_v4 = vld [vmem:[%s6729_s0 + $0x6bc] ss:$56 sps:$4 sm:$0xff]  }
 0x1c4   :  { %v4586_v48 = vpop.f32.mrf.mxu1  ;;  %v4698_v5 = vpop.f32.mrf.mxu0  ;;  %v5340_v40 = vld [vmem:[%s6729_s0 + $0x6c4] ss:$56 sps:$4 sm:$0xff]  }
 0x1c5   :  { %v6564_v27 = vadd.f32 %v4696_v8, %v2808_v11  ;;  %v4587_v36 = vadd.f32 %v4586_v48, %v4585_v59  ;;  %v4699_v16 = vadd.f32 %v4698_v5, %v4697_v1 }
 0x1c6   :  { %v4588_v34 = vpop.f32.mrf.mxu1  ;;  %v4700_v22 = vpop.f32.mrf.mxu0 }
 0x1c7   :  { %v2813_v25 = vadd.f32 %v4587_v36, %v6272_v18 }
 0x1c8   :  { %v4589_v61 = vpop.f32.mrf.mxu1  ;;  %v4701_v26 = vpop.f32.mrf.mxu0 }
 0x1c9   :  { %v6579_v28 = vadd.f32 %v4699_v16, %v2813_v25  ;;  %v4590_v21 = vadd.f32 %v4589_v61, %v4588_v34  ;;  %v4702_v46 = vadd.f32 %v4701_v26, %v4700_v22  ;;  %v5342_v25 = vld [vmem:[%s6729_s0 + $0x6c0] ss:$56 sps:$4 sm:$0xff]  }
 0x1ca   :  { %v4591_v52 = vpop.f32.mrf.mxu1  ;;  %v4703_v37 = vpop.f32.mrf.mxu0  ;;  %3205 = vmatmul.mubr.bf16.gmra.mxu1 %v5325_v9  ;;  %3366 = vmatmul.mubr.bf16.gmra.mxu0 %v5330_v17  ;;  %v5337_v17 = vld [vmem:[%s6729_s0 + $0x6b8] ss:$56 sps:$4 sm:$0xff]  }
 0x1cb   :  { %v2816_v18 = vadd.f32 %v4590_v21, %v6276_v60  ;;  %3212 = vmatprep.mubr.bf16.mxu1 %v5333_v38  ;;  %4064 = vmatprep.mubr.msk.bf16.mxu0 %vm2214_vm0, %v5334_v63 }
 0x1cc   :  { %v4592_v55 = vpop.f32.mrf.mxu1  ;;  %v4704_v56 = vpop.f32.mrf.mxu0 }
 0x1cd   :  { %v6583_v3 = vadd.f32 %v4702_v46, %v2816_v18  ;;  %v4593_v15 = vadd.f32 %v4592_v55, %v4591_v52  ;;  %v4705_v44 = vadd.f32 %v4704_v56, %v4703_v37 }
 0x1ce   :  { %v4594_v10 = vpop.f32.mrf.mxu1  ;;  %v4706_v58 = vpop.f32.mrf.mxu0 }
 0x1cf   :  { %v2821_v60 = vadd.f32 %v4593_v15, %v6292_v41 }
 0x1d0   :  { %v4595_v12 = vpop.f32.mrf.mxu1  ;;  %v4707_v13 = vpop.f32.mrf.mxu0 }
 0x1d1   :  { %v6598_v24 = vadd.f32 %v4705_v44, %v2821_v60  ;;  %v4596_v8 = vadd.f32 %v4595_v12, %v4594_v10  ;;  %v4708_v59 = vadd.f32 %v4707_v13, %v4706_v58 }
 0x1d2   :  { %v4597_v1 = vpop.f32.mrf.mxu1  ;;  %v4709_v11 = vpop.f32.mrf.mxu0  ;;  %3213 = vmatmul.mubr.bf16.gmra.mxu1 %v5331_v47  ;;  %3374 = vmatmul.mubr.bf16.gmra.mxu0 %v5336_v53 }
 0x1d3   :  { %v2824_v41 = vadd.f32 %v4596_v8, %v6296_v33  ;;  %3220 = vmatprep.mubr.bf16.mxu1 %v5339_v4  ;;  %4065 = vmatprep.mubr.msk.bf16.mxu0 %vm2214_vm0, %v5340_v40 }
 0x1d4   :  { %v4598_v48 = vpop.f32.mrf.mxu1  ;;  %v4710_v5 = vpop.f32.mrf.mxu0 }
 0x1d5   :  { %v6602_v36 = vadd.f32 %v4708_v59, %v2824_v41  ;;  %v4599_v16 = vadd.f32 %v4598_v48, %v4597_v1  ;;  %v4711_v34 = vadd.f32 %v4710_v5, %v4709_v11 }
 0x1d6   :  { %v4600_v22 = vpop.f32.mrf.mxu1  ;;  %v4712_v9 = vpop.f32.mrf.mxu0 }
 0x1d7   :  { %v2829_v33 = vadd.f32 %v4599_v16, %v6312_v2 }
 0x1d8   :  { %v4601_v38 = vpop.f32.mrf.mxu1  ;;  %v4713_v63 = vpop.f32.mrf.mxu0 }
 0x1d9   :  { %v6611_v61 = vadd.f32 %v4711_v34, %v2829_v33  ;;  %v4602_v26 = vadd.f32 %v4601_v38, %v4600_v22  ;;  %v4714_v21 = vadd.f32 %v4713_v63, %v4712_v9 }
 0x1da   :  { %v4603_v46 = vpop.f32.mrf.mxu1  ;;  %v4715_v52 = vpop.f32.mrf.mxu0  ;;  %3221 = vmatmul.mubr.bf16.gmra.mxu1 %v5337_v17  ;;  %3382 = vmatmul.mubr.bf16.gmra.mxu0 %v5342_v25 }
 0x1db   :  { %v2832_v37 = vadd.f32 %v4602_v26, %v6317_v6 }
 0x1dc   :  { %v4604_v18 = vpop.f32.mrf.mxu1  ;;  %v4716_v55 = vpop.f32.mrf.mxu0 }
 0x1dd   :  { %v6614_v56 = vadd.f32 %v4714_v21, %v2832_v37  ;;  %v4605_v15 = vadd.f32 %v4604_v18, %v4603_v46  ;;  %v4717_v44 = vadd.f32 %v4716_v55, %v4715_v52 }
 0x1de   :  { %v4606_v10 = vpop.f32.mrf.mxu1  ;;  %v4718_v2 = vpop.f32.mrf.mxu0 }
 0x1df   :  { %v2837_v58 = vadd.f32 %v4605_v15, %v6333_v29 }
 0x1e0   :  { %v4607_v47 = vpop.f32.mrf.mxu1  ;;  %v4719_v53 = vpop.f32.mrf.mxu0 }
 0x1e1   :  { %v6617_v60 = vadd.f32 %v4717_v44, %v2837_v58  ;;  %v4608_v4 = vadd.f32 %v4607_v47, %v4606_v10  ;;  %v4720_v40 = vadd.f32 %v4719_v53, %v4718_v2 }
 0x1e2   :  { %v4609_v12 = vpop.f32.mrf.mxu1  ;;  %v4721_v13 = vpop.f32.mrf.mxu0 }
 0x1e3   :  { %v2840_v6 = vadd.f32 %v4608_v4, %v6336_v42 }
 0x1e4   :  { %v4610_v8 = vpop.f32.mrf.mxu1  ;;  %v4722_v59 = vpop.f32.mrf.mxu0 }
 0x1e5   :  { %v6620_v1 = vadd.f32 %v4720_v40, %v2840_v6  ;;  %v4611_v11 = vadd.f32 %v4610_v8, %v4609_v12  ;;  %v4723_v41 = vadd.f32 %v4722_v59, %v4721_v13 }
 0x1e6   :  { %v4612_v48 = vpop.f32.mrf.mxu1  ;;  %v4724_v5 = vpop.f32.mrf.mxu0 }
 0x1e7   :  { %v2845_v29 = vadd.f32 %v4611_v11, %v6351_v57 }
 0x1e8   :  { %v4613_v16 = vpop.f32.mrf.mxu1  ;;  %v4725_v34 = vpop.f32.mrf.mxu0 }
 0x1e9   :  { %v6623_v22 = vadd.f32 %v4723_v41, %v2845_v29  ;;  %v4614_v9 = vadd.f32 %v4613_v16, %v4612_v48  ;;  %v4726_v17 = vadd.f32 %v4725_v34, %v4724_v5 }
 0x1ea   :  { %v4615_v25 = vpop.f32.mrf.mxu1  ;;  %v4727_v33 = vpop.f32.mrf.mxu0 }
 0x1eb   :  { %v2848_v42 = vadd.f32 %v4614_v9, %v6355_v7 }
 0x1ec   :  { %v4616_v38 = vpop.f32.mrf.mxu1  ;;  %v4728_v63 = vpop.f32.mrf.mxu0 }
 0x1ed   :  { %v6626_v26 = vadd.f32 %v4726_v17, %v2848_v42  ;;  %v4617_v21 = vadd.f32 %v4616_v38, %v4615_v25  ;;  %v4729_v46 = vadd.f32 %v4728_v63, %v4727_v33 }
 0x1ee   :  { %v4618_v52 = vpop.f32.mrf.mxu1  ;;  %v4730_v37 = vpop.f32.mrf.mxu0 }
 0x1ef   :  { %v2853_v57 = vadd.f32 %v4617_v21, %v6370_v31 }
 0x1f0   :  { %v4619_v18 = vpop.f32.mrf.mxu1  ;;  %v4731_v55 = vpop.f32.mrf.mxu0 }
 0x1f1   :  { %v6629_v15 = vadd.f32 %v4729_v46, %v2853_v57  ;;  %v4620_v44 = vadd.f32 %v4619_v18, %v4618_v52  ;;  %v4732_v10 = vadd.f32 %v4731_v55, %v4730_v37 }
 0x1f2   :  { %v4621_v2 = vpop.f32.mrf.mxu1  ;;  %v4733_v58 = vpop.f32.mrf.mxu0 }
 0x1f3   :  { %v2856_v7 = vadd.f32 %v4620_v44, %v6374_v43 }
 0x1f4   :  { %v4622_v47 = vpop.f32.mrf.mxu1  ;;  %v4734_v53 = vpop.f32.mrf.mxu0 }
 0x1f5   :  { %v6632_v4 = vadd.f32 %v4732_v10, %v2856_v7  ;;  %v4623_v40 = vadd.f32 %v4622_v47, %v4621_v2  ;;  %v4735_v12 = vadd.f32 %v4734_v53, %v4733_v58 }
 0x1f6   :  { %v4624_v13 = vpop.f32.mrf.mxu1  ;;  %v4736_v6 = vpop.f32.mrf.mxu0 }
 0x1f7   :  { %v2861_v31 = vadd.f32 %v4623_v40, %v6389_v62 }
 0x1f8   :  { %v4625_v8 = vpop.f32.mrf.mxu1  ;;  %v4737_v59 = vpop.f32.mrf.mxu0 }
 0x1f9   :  { %v6635_v11 = vadd.f32 %v4735_v12, %v2861_v31  ;;  %v4626_v41 = vadd.f32 %v4625_v8, %v4624_v13  ;;  %v4738_v48 = vadd.f32 %v4737_v59, %v4736_v6 }
 0x1fa   :  { %v4627_v5 = vpop.f32.mrf.mxu1  ;;  %v4739_v29 = vpop.f32.mrf.mxu0 }
 0x1fb   :  { %v2864_v43 = vadd.f32 %v4626_v41, %v6393_v14 }
 0x1fc   :  { %v4628_v16 = vpop.f32.mrf.mxu1  ;;  %v4740_v34 = vpop.f32.mrf.mxu0 }
 0x1fd   :  { %v6638_v9 = vadd.f32 %v4738_v48, %v2864_v43  ;;  %v4629_v17 = vadd.f32 %v4628_v16, %v4627_v5  ;;  %v4741_v25 = vadd.f32 %v4740_v34, %v4739_v29 }
 0x1fe   :  { %v4630_v33 = vpop.f32.mrf.mxu1  ;;  %v4742_v42 = vpop.f32.mrf.mxu0 }
 0x1ff   :  { %v2869_v62 = vadd.f32 %v4629_v17, %v6408_v51 }
 0x200   :  { %v4631_v38 = vpop.f32.mrf.mxu1  ;;  %v4743_v63 = vpop.f32.mrf.mxu0 }
 0x201   :  { %v6641_v21 = vadd.f32 %v4741_v25, %v2869_v62  ;;  %v4632_v46 = vadd.f32 %v4631_v38, %v4630_v33  ;;  %v4744_v52 = vadd.f32 %v4743_v63, %v4742_v42 }
 0x202   :  { %v4633_v37 = vpop.f32.mrf.mxu1  ;;  %v4745_v57 = vpop.f32.mrf.mxu0 }
 0x203   :  { %v2872_v14 = vadd.f32 %v4632_v46, %v6412_v45 }
 0x204   :  { %v4634_v18 = vpop.f32.mrf.mxu1  ;;  %v4746_v55 = vpop.f32.mrf.mxu0 }
 0x205   :  { %v6644_v44 = vadd.f32 %v4744_v52, %v2872_v14  ;;  %v4635_v10 = vadd.f32 %v4634_v18, %v4633_v37  ;;  %v4747_v2 = vadd.f32 %v4746_v55, %v4745_v57 }
 0x206   :  { %v4636_v58 = vpop.f32.mrf.mxu1  ;;  %v4748_v7 = vpop.f32.mrf.mxu0 }
 0x207   :  { %v2877_v51 = vadd.f32 %v4635_v10, %v6427_v54 }
 0x208   :  { %v4637_v47 = vpop.f32.mrf.mxu1  ;;  %v4749_v53 = vpop.f32.mrf.mxu0 }
 0x209   :  { %v6647_v40 = vadd.f32 %v4747_v2, %v2877_v51  ;;  %v4638_v12 = vadd.f32 %v4637_v47, %v4636_v58  ;;  %v4750_v13 = vadd.f32 %v4749_v53, %v4748_v7 }
 0x20a   :  { %v4639_v6 = vpop.f32.mrf.mxu1  ;;  %v4751_v31 = vpop.f32.mrf.mxu0 }
 0x20b   :  { %v2880_v45 = vadd.f32 %v4638_v12, %v6431_v0 }
 0x20c   :  { %v4640_v8 = vpop.f32.mrf.mxu1  ;;  %v4752_v59 = vpop.f32.mrf.mxu0 }
 0x20d   :  { %v6650_v41 = vadd.f32 %v4750_v13, %v2880_v45  ;;  %v4641_v48 = vadd.f32 %v4640_v8, %v4639_v6  ;;  %v4753_v5 = vadd.f32 %v4752_v59, %v4751_v31 }
 0x20e   :  { %v4642_v29 = vpop.f32.mrf.mxu1  ;;  %v4754_v43 = vpop.f32.mrf.mxu0 }
 0x20f   :  { %v2885_v54 = vadd.f32 %v4641_v48, %v6446_v32 }
 0x210   :  { %v4643_v16 = vpop.f32.mrf.mxu1  ;;  %v4755_v34 = vpop.f32.mrf.mxu0 }
 0x211   :  { %v6653_v17 = vadd.f32 %v4753_v5, %v2885_v54  ;;  %v4644_v25 = vadd.f32 %v4643_v16, %v4642_v29  ;;  %v4756_v33 = vadd.f32 %v4755_v34, %v4754_v43 }
 0x212   :  { %v4645_v42 = vpop.f32.mrf.mxu1  ;;  %v4757_v62 = vpop.f32.mrf.mxu0 }
 0x213   :  { %v2888_v0 = vadd.f32 %v4644_v25, %v6450_v49 }
 0x214   :  { %v4646_v38 = vpop.f32.mrf.mxu1  ;;  %v4758_v63 = vpop.f32.mrf.mxu0 }
 0x215   :  { %v6656_v46 = vadd.f32 %v4756_v33, %v2888_v0 }
 0x216   :  { %v4648_v52 = vpop.f32.mrf.mxu1  ;;  %v4760_v37 = vpop.f32.mrf.mxu0 }
 0x218   :  { %v4649_v57 = vpop.f32.mrf.mxu1  ;;  %v4761_v14 = vpop.f32.mrf.mxu0 }
 0x21a   :  { %v4651_v18 = vpop.f32.mrf.mxu1  ;;  %v4763_v32 = vpop.f32.mrf.mxu0 }
 0x21c   :  { %v4652_v55 = vpop.f32.mrf.mxu1  ;;  %v4764_v10 = vpop.f32.mrf.mxu0 }
 0x21e   :  { %v4654_v2 = vpop.f32.mrf.mxu1  ;;  %v4766_v58 = vpop.f32.mrf.mxu0 }
 0x220   :  { %v4655_v7 = vpop.f32.mrf.mxu1  ;;  %v4767_v51 = vpop.f32.mrf.mxu0 }
 0x222   :  { %v4785_v47 = vpop.f32.mrf.mxu1  ;;  %v3263_v53 = vpop.f32.mrf.mxu0 }
 0x224   :  { %v4786_v12 = vpop.f32.mrf.mxu1  ;;  %v3265_v49 = vpop.f32.mrf.mxu0 }
 0x225   :  { %v4787_v13 = vadd.f32 %v4786_v12, %v4785_v47 }
 0x226   :  { %v4788_v6 = vpop.f32.mrf.mxu1  ;;  %v3266_v31 = vpop.f32.mrf.mxu0 }
 0x227   :  { %v3103_v45 = vadd.f32 %v4787_v13, %v6491_v39 }
 0x228   :  { %v4789_v8 = vpop.f32.mrf.mxu1  ;;  %v3268_v59 = vpop.f32.mrf.mxu0 }
 0x229   :  { %v4790_v48 = vadd.f32 %v4789_v8, %v4788_v6  ;;  %v3264_v43 = vadd.f32 %v3263_v53, %v3103_v45 }
 0x22a   :  { %v4791_v5 = vpop.f32.mrf.mxu1  ;;  %v3271_v29 = vpop.f32.mrf.mxu0 }
 0x22b   :  { %v3106_v54 = vadd.f32 %v4790_v48, %v6495_v35  ;;  %v3390_v0 = vmax.f32 %v3264_v43, 0.0 }
 0x22c   :  { %v4792_v16 = vpop.f32.mrf.mxu1  ;;  %v3273_v34 = vpop.f32.mrf.mxu0 }
 0x22d   :  { %v3267_v25 = vadd.f32 %v3266_v31, %v3106_v54  ;;  %v4793_v33 = vadd.f32 %v4792_v16, %v4791_v5 }
 0x22e   :  { %v4794_v42 = vpop.f32.mrf.mxu1  ;;  %v3274_v62 = vpop.f32.mrf.mxu0 }
 0x22f   :  { %v3391_v38 = vmax.f32 %v3267_v25, 0.0  ;;  %v3111_v63 = vadd.f32 %v4793_v33, %v6510_v19 }
 0x230   :  { %v4795_v52 = vpop.f32.mrf.mxu1  ;;  %v3276_v39 = vpop.f32.mrf.mxu0 }
 0x231   :  { %v4129_v37 = vpack.c.bf16 %v3391_v38, %v3390_v0  ;;  %v4796_v57 = vadd.f32 %v4795_v52, %v4794_v42  ;;  %v3272_v35 = vadd.f32 %v3271_v29, %v3111_v63 }
 0x232   :  { %v4797_v14 = vpop.f32.mrf.mxu1  ;;  %v3279_v18 = vpop.f32.mrf.mxu0 }
 0x233   :  { %4130 = vst [vmem:[%s6731_s3] sm:$0xff] %v4129_v37   ;;  %v3114_v32 = vadd.f32 %v4796_v57, %v6526_v23  ;;  %v3392_v19 = vmax.f32 %v3272_v35, 0.0 }
 0x234   :  { %v4798_v55 = vpop.f32.mrf.mxu1  ;;  %v3281_v10 = vpop.f32.mrf.mxu0 }
 0x235   :  { %v3275_v2 = vadd.f32 %v3274_v62, %v3114_v32  ;;  %v4799_v58 = vadd.f32 %v4798_v55, %v4797_v14 }
 0x236   :  { %v4800_v7 = vpop.f32.mrf.mxu1  ;;  %v3282_v51 = vpop.f32.mrf.mxu0 }
 0x237   :  { %v3393_v47 = vmax.f32 %v3275_v2, 0.0  ;;  %v3119_v53 = vadd.f32 %v4799_v58, %v6541_v50 }
 0x238   :  { %v4801_v12 = vpop.f32.mrf.mxu1  ;;  %v3284_v49 = vpop.f32.mrf.mxu0 }
 0x239   :  { %v4134_v13 = vpack.c.bf16 %v3393_v47, %v3392_v19  ;;  %v4802_v6 = vadd.f32 %v4801_v12, %v4800_v7  ;;  %v3280_v23 = vadd.f32 %v3279_v18, %v3119_v53 }
 0x23a   :  { %v4803_v31 = vpop.f32.mrf.mxu1  ;;  %v3287_v45 = vpop.f32.mrf.mxu0 }
 0x23b   :  { %4196 = vst [vmem:[%s6731_s3 + $0x8] sm:$0xff] %v4134_v13   ;;  %v3122_v8 = vadd.f32 %v4802_v6, %v6545_v30  ;;  %v3394_v50 = vmax.f32 %v3280_v23, 0.0 }
 0x23c   :  { %v4804_v59 = vpop.f32.mrf.mxu1  ;;  %v3289_v48 = vpop.f32.mrf.mxu0 }
 0x23d   :  { %v3283_v5 = vadd.f32 %v3282_v51, %v3122_v8  ;;  %v4805_v29 = vadd.f32 %v4804_v59, %v4803_v31 }
 0x23e   :  { %v4806_v43 = vpop.f32.mrf.mxu1  ;;  %v3290_v54 = vpop.f32.mrf.mxu0 }
 0x23f   :  { %v3395_v16 = vmax.f32 %v3283_v5, 0.0  ;;  %v3127_v34 = vadd.f32 %v4805_v29, %v6560_v20 }
 0x240   :  { %v4807_v25 = vpop.f32.mrf.mxu1  ;;  %v3292_v33 = vpop.f32.mrf.mxu0 }
 0x241   :  { %v4139_v42 = vpack.c.bf16 %v3395_v16, %v3394_v50  ;;  %v4808_v62 = vadd.f32 %v4807_v25, %v4806_v43  ;;  %v3288_v30 = vadd.f32 %v3287_v45, %v3127_v34 }
 0x242   :  { %v4809_v0 = vpop.f32.mrf.mxu1  ;;  %v3295_v38 = vpop.f32.mrf.mxu0 }
 0x243   :  { %4197 = vst [vmem:[%s6731_s3 + $0x10] sm:$0xff] %v4139_v42   ;;  %v3130_v63 = vadd.f32 %v4808_v62, %v6564_v27  ;;  %v3396_v20 = vmax.f32 %v3288_v30, 0.0 }
 0x244   :  { %v4810_v52 = vpop.f32.mrf.mxu1  ;;  %v3297_v39 = vpop.f32.mrf.mxu0 }
 0x245   :  { %v3291_v37 = vadd.f32 %v3290_v54, %v3130_v63  ;;  %v4811_v57 = vadd.f32 %v4810_v52, %v4809_v0 }
 0x246   :  { %v4812_v14 = vpop.f32.mrf.mxu1  ;;  %v3298_v18 = vpop.f32.mrf.mxu0 }
 0x247   :  { %v3397_v35 = vmax.f32 %v3291_v37, 0.0  ;;  %v3135_v32 = vadd.f32 %v4811_v57, %v6579_v28 }
 0x248   :  { %v4813_v55 = vpop.f32.mrf.mxu1  ;;  %v3300_v10 = vpop.f32.mrf.mxu0 }
 0x249   :  { %v4144_v2 = vpack.c.bf16 %v3397_v35, %v3396_v20  ;;  %v4814_v58 = vadd.f32 %v4813_v55, %v4812_v14  ;;  %v3296_v27 = vadd.f32 %v3295_v38, %v3135_v32 }
 0x24a   :  { %v4815_v7 = vpop.f32.mrf.mxu1  ;;  %v3303_v51 = vpop.f32.mrf.mxu0 }
 0x24b   :  { %4198 = vst [vmem:[%s6731_s3 + $0x18] sm:$0xff] %v4144_v2   ;;  %v3138_v19 = vadd.f32 %v4814_v58, %v6583_v3  ;;  %v3398_v28 = vmax.f32 %v3296_v27, 0.0 }
 0x24c   :  { %v4816_v47 = vpop.f32.mrf.mxu1  ;;  %v3305_v53 = vpop.f32.mrf.mxu0 }
 0x24d   :  { %v3299_v12 = vadd.f32 %v3298_v18, %v3138_v19  ;;  %v4817_v49 = vadd.f32 %v4816_v47, %v4815_v7 }
 0x24e   :  { %v4818_v13 = vpop.f32.mrf.mxu1  ;;  %v3306_v6 = vpop.f32.mrf.mxu0 }
 0x24f   :  { %v3399_v31 = vmax.f32 %v3299_v12, 0.0  ;;  %v3143_v45 = vadd.f32 %v4817_v49, %v6598_v24 }
 0x250   :  { %v4819_v23 = vpop.f32.mrf.mxu1  ;;  %v3308_v8 = vpop.f32.mrf.mxu0 }
 0x251   :  { %v4149_v59 = vpack.c.bf16 %v3399_v31, %v3398_v28  ;;  %v4820_v48 = vadd.f32 %v4819_v23, %v4818_v13  ;;  %v3304_v3 = vadd.f32 %v3303_v51, %v3143_v45 }
 0x252   :  { %v4821_v5 = vpop.f32.mrf.mxu1  ;;  %v3311_v29 = vpop.f32.mrf.mxu0 }
 0x253   :  { %4199 = vst [vmem:[%s6731_s3 + $0x20] sm:$0xff] %v4149_v59   ;;  %v3146_v43 = vadd.f32 %v4820_v48, %v6602_v36  ;;  %v3400_v24 = vmax.f32 %v3304_v3, 0.0 }
 0x254   :  { %v4822_v54 = vpop.f32.mrf.mxu1  ;;  %v3313_v50 = vpop.f32.mrf.mxu0 }
 0x255   :  { %v3307_v16 = vadd.f32 %v3306_v6, %v3146_v43  ;;  %v4823_v34 = vadd.f32 %v4822_v54, %v4821_v5 }
 0x256   :  { %v4824_v25 = vpop.f32.mrf.mxu1  ;;  %v3314_v33 = vpop.f32.mrf.mxu0 }
 0x257   :  { %v3401_v42 = vmax.f32 %v3307_v16, 0.0  ;;  %v3151_v62 = vadd.f32 %v4823_v34, %v6611_v61 }
 0x258   :  { %v4825_v0 = vpop.f32.mrf.mxu1  ;;  %v3316_v38 = vpop.f32.mrf.mxu0 }
 0x259   :  { %v4154_v30 = vpack.c.bf16 %v3401_v42, %v3400_v24  ;;  %v4826_v63 = vadd.f32 %v4825_v0, %v4824_v25  ;;  %v3312_v36 = vadd.f32 %v3311_v29, %v3151_v62 }
 0x25a   :  { %v4827_v52 = vpop.f32.mrf.mxu1  ;;  %v3319_v39 = vpop.f32.mrf.mxu0 }
 0x25b   :  { %4200 = vst [vmem:[%s6731_s3 + $0x28] sm:$0xff] %v4154_v30   ;;  %v3154_v37 = vadd.f32 %v4826_v63, %v6614_v56  ;;  %v3402_v61 = vmax.f32 %v3312_v36, 0.0 }
 0x25c   :  { %v4828_v57 = vpop.f32.mrf.mxu1  ;;  %v3321_v14 = vpop.f32.mrf.mxu0 }
 0x25d   :  { %v3315_v18 = vadd.f32 %v3314_v33, %v3154_v37  ;;  %v4829_v20 = vadd.f32 %v4828_v57, %v4827_v52 }
 0x25e   :  { %v4830_v35 = vpop.f32.mrf.mxu1  ;;  %v3322_v32 = vpop.f32.mrf.mxu0 }
 0x25f   :  { %v3403_v55 = vmax.f32 %v3315_v18, 0.0  ;;  %v3159_v10 = vadd.f32 %v4829_v20, %v6617_v60 }
 0x260   :  { %v4831_v2 = vpop.f32.mrf.mxu1  ;;  %v3324_v58 = vpop.f32.mrf.mxu0 }
 0x261   :  { %v4159_v7 = vpack.c.bf16 %v3403_v55, %v3402_v61  ;;  %v4832_v51 = vadd.f32 %v4831_v2, %v4830_v35  ;;  %v3320_v56 = vadd.f32 %v3319_v39, %v3159_v10 }
 0x262   :  { %v4833_v27 = vpop.f32.mrf.mxu1  ;;  %v3327_v19 = vpop.f32.mrf.mxu0 }
 0x263   :  { %4201 = vst [vmem:[%s6731_s3 + $0x30] sm:$0xff] %v4159_v7   ;;  %v3162_v47 = vadd.f32 %v4832_v51, %v6620_v1  ;;  %v3404_v60 = vmax.f32 %v3320_v56, 0.0 }
 0x264   :  { %v4834_v53 = vpop.f32.mrf.mxu1  ;;  %v3329_v12 = vpop.f32.mrf.mxu0 }
 0x265   :  { %v3323_v49 = vadd.f32 %v3322_v32, %v3162_v47  ;;  %v4835_v13 = vadd.f32 %v4834_v53, %v4833_v27 }
 0x266   :  { %v4836_v6 = vpop.f32.mrf.mxu1  ;;  %v3330_v28 = vpop.f32.mrf.mxu0 }
 0x267   :  { %v3405_v31 = vmax.f32 %v3323_v49, 0.0  ;;  %v3167_v45 = vadd.f32 %v4835_v13, %v6623_v22 }
 0x268   :  { %v4837_v23 = vpop.f32.mrf.mxu1  ;;  %v3332_v8 = vpop.f32.mrf.mxu0 }
 0x269   :  { %v4164_v59 = vpack.c.bf16 %v3405_v31, %v3404_v60  ;;  %v4838_v48 = vadd.f32 %v4837_v23, %v4836_v6  ;;  %v3328_v1 = vadd.f32 %v3327_v19, %v3167_v45 }
 0x26a   :  { %v4839_v5 = vpop.f32.mrf.mxu1  ;;  %v3335_v29 = vpop.f32.mrf.mxu0 }
 0x26b   :  { %4202 = vst [vmem:[%s6731_s3 + $0x38] sm:$0xff] %v4164_v59   ;;  %v3170_v3 = vadd.f32 %v4838_v48, %v6626_v26  ;;  %v3406_v22 = vmax.f32 %v3328_v1, 0.0 }
 0x26c   :  { %v4840_v43 = vpop.f32.mrf.mxu1  ;;  %v3337_v54 = vpop.f32.mrf.mxu0 }
 0x26d   :  { %v3331_v50 = vadd.f32 %v3330_v28, %v3170_v3  ;;  %v4841_v16 = vadd.f32 %v4840_v43, %v4839_v5 }
 0x26e   :  { %v4842_v34 = vpop.f32.mrf.mxu1  ;;  %v3338_v25 = vpop.f32.mrf.mxu0 }
 0x26f   :  { %v3407_v33 = vmax.f32 %v3331_v50, 0.0  ;;  %v3175_v24 = vadd.f32 %v4841_v16, %v6629_v15 }
 0x270   :  { %v4843_v42 = vpop.f32.mrf.mxu1  ;;  %v3340_v62 = vpop.f32.mrf.mxu0 }
 0x271   :  { %v4169_v0 = vpack.c.bf16 %v3407_v33, %v3406_v22  ;;  %v4844_v38 = vadd.f32 %v4843_v42, %v4842_v34  ;;  %v3336_v26 = vadd.f32 %v3335_v29, %v3175_v24 }
 0x272   :  { %v4845_v30 = vpop.f32.mrf.mxu1  ;;  %v3343_v63 = vpop.f32.mrf.mxu0 }
 0x273   :  { %4203 = vst [vmem:[%s6731_s3 + $0x40] sm:$0xff] %v4169_v0   ;;  %v3178_v52 = vadd.f32 %v4844_v38, %v6632_v4  ;;  %v3408_v15 = vmax.f32 %v3336_v26, 0.0 }
 0x274   :  { %v4846_v39 = vpop.f32.mrf.mxu1  ;;  %v3345_v36 = vpop.f32.mrf.mxu0 }
 0x275   :  { %v3339_v37 = vadd.f32 %v3338_v25, %v3178_v52  ;;  %v4847_v57 = vadd.f32 %v4846_v39, %v4845_v30 }
 0x276   :  { %v4848_v14 = vpop.f32.mrf.mxu1  ;;  %v3346_v18 = vpop.f32.mrf.mxu0 }
 0x277   :  { %v3409_v20 = vmax.f32 %v3339_v37, 0.0  ;;  %v3183_v35 = vadd.f32 %v4847_v57, %v6635_v11 }
 0x278   :  { %v4849_v32 = vpop.f32.mrf.mxu1  ;;  %v3348_v61 = vpop.f32.mrf.mxu0 }
 0x279   :  { %v4174_v55 = vpack.c.bf16 %v3409_v20, %v3408_v15  ;;  %v4850_v10 = vadd.f32 %v4849_v32, %v4848_v14  ;;  %v3344_v4 = vadd.f32 %v3343_v63, %v3183_v35 }
 0x27a   :  { %v4851_v2 = vpop.f32.mrf.mxu1  ;;  %v3351_v58 = vpop.f32.mrf.mxu0 }
 0x27b   :  { %4204 = vst [vmem:[%s6731_s3 + $0x48] sm:$0xff] %v4174_v55   ;;  %v3186_v7 = vadd.f32 %v4850_v10, %v6638_v9  ;;  %v3410_v11 = vmax.f32 %v3344_v4, 0.0 }
 0x27c   :  { %v4852_v51 = vpop.f32.mrf.mxu1  ;;  %v3353_v27 = vpop.f32.mrf.mxu0 }
 0x27d   :  { %v3347_v19 = vadd.f32 %v3346_v18, %v3186_v7  ;;  %v4853_v56 = vadd.f32 %v4852_v51, %v4851_v2 }
 0x27e   :  { %v4854_v47 = vpop.f32.mrf.mxu1  ;;  %v3354_v53 = vpop.f32.mrf.mxu0 }
 0x27f   :  { %v3411_v12 = vmax.f32 %v3347_v19, 0.0  ;;  %v3191_v49 = vadd.f32 %v4853_v56, %v6641_v21 }
 0x280   :  { %v4855_v13 = vpop.f32.mrf.mxu1  ;;  %v3356_v6 = vpop.f32.mrf.mxu0 }
 0x281   :  { %v4179_v28 = vpack.c.bf16 %v3411_v12, %v3410_v11  ;;  %v4856_v60 = vadd.f32 %v4855_v13, %v4854_v47  ;;  %v3352_v9 = vadd.f32 %v3351_v58, %v3191_v49 }
 0x282   :  { %v4857_v31 = vpop.f32.mrf.mxu1  ;;  %v3359_v45 = vpop.f32.mrf.mxu0 }
 0x283   :  { %4205 = vst [vmem:[%s6731_s3 + $0x50] sm:$0xff] %v4179_v28   ;;  %v3194_v23 = vadd.f32 %v4856_v60, %v6644_v44  ;;  %v3412_v21 = vmax.f32 %v3352_v9, 0.0 }
 0x284   :  { %v4858_v8 = vpop.f32.mrf.mxu1  ;;  %v3361_v59 = vpop.f32.mrf.mxu0 }
 0x285   :  { %v3355_v48 = vadd.f32 %v3354_v53, %v3194_v23  ;;  %v4859_v5 = vadd.f32 %v4858_v8, %v4857_v31 }
 0x286   :  { %v4860_v29 = vpop.f32.mrf.mxu1  ;;  %v3362_v1 = vpop.f32.mrf.mxu0 }
 0x287   :  { %v3413_v3 = vmax.f32 %v3355_v48, 0.0  ;;  %v3199_v43 = vadd.f32 %v4859_v5, %v6647_v40 }
 0x288   :  { %v4861_v54 = vpop.f32.mrf.mxu1  ;;  %v3364_v50 = vpop.f32.mrf.mxu0 }
 0x289   :  { %v4184_v16 = vpack.c.bf16 %v3413_v3, %v3412_v21  ;;  %v4862_v34 = vadd.f32 %v4861_v54, %v4860_v29  ;;  %v3360_v44 = vadd.f32 %v3359_v45, %v3199_v43 }
 0x28a   :  { %v4863_v25 = vpop.f32.mrf.mxu1  ;;  %v3367_v22 = vpop.f32.mrf.mxu0 }
 0x28b   :  { %4206 = vst [vmem:[%s6731_s3 + $0x58] sm:$0xff] %v4184_v16   ;;  %v3202_v33 = vadd.f32 %v4862_v34, %v6650_v41  ;;  %v3414_v40 = vmax.f32 %v3360_v44, 0.0 }
 0x28c   :  { %v4864_v24 = vpop.f32.mrf.mxu1  ;;  %v3369_v42 = vpop.f32.mrf.mxu0 }
 0x28d   :  { %v3363_v62 = vadd.f32 %v3362_v1, %v3202_v33  ;;  %v4865_v0 = vadd.f32 %v4864_v24, %v4863_v25 }
 0x28e   :  { %v4866_v38 = vpop.f32.mrf.mxu1  ;;  %v3370_v30 = vpop.f32.mrf.mxu0 }
 0x28f   :  { %v3415_v63 = vmax.f32 %v3363_v62, 0.0  ;;  %v3207_v26 = vadd.f32 %v4865_v0, %v6653_v17 }
 0x290   :  { %v4867_v52 = vpop.f32.mrf.mxu1  ;;  %v3372_v39 = vpop.f32.mrf.mxu0 }
 0x291   :  { %v4189_v36 = vpack.c.bf16 %v3415_v63, %v3414_v40  ;;  %v4868_v37 = vadd.f32 %v4867_v52, %v4866_v38  ;;  %v3368_v41 = vadd.f32 %v3367_v22, %v3207_v26 }
 0x292   :  { %v4869_v57 = vpop.f32.mrf.mxu1  ;;  %v3375_v14 = vpop.f32.mrf.mxu0 }
 0x293   :  { %4207 = vst [vmem:[%s6731_s3 + $0x60] sm:$0xff] %v4189_v36   ;;  %v3210_v18 = vadd.f32 %v4868_v37, %v6656_v46  ;;  %v3416_v55 = vmax.f32 %v3368_v41, 0.0 }
 0x294   :  { %v4870_v15 = vpop.f32.mrf.mxu1  ;;  %v3377_v20 = vpop.f32.mrf.mxu0 }
 0x295   :  { %v3371_v35 = vadd.f32 %v3370_v30, %v3210_v18 }
 0x296   :  { %v4872_v32 = vpop.f32.mrf.mxu1  ;;  %v3378_v61 = vpop.f32.mrf.mxu0 }
 0x297   :  { %v3417_v17 = vmax.f32 %v3371_v35, 0.0 }
 0x298   :  { %v4873_v10 = vpop.f32.mrf.mxu1  ;;  %v3380_v2 = vpop.f32.mrf.mxu0 }
 0x299   :  { %v4194_v58 = vpack.c.bf16 %v3417_v17, %v3416_v55 }
 0x29a   :  { %v4875_v4 = vpop.f32.mrf.mxu1  ;;  %v3383_v7 = vpop.f32.mrf.mxu0 }
 0x29b   :  { %4208 = vst [vmem:[%s6731_s3 + $0x68] sm:$0xff] %v4194_v58  }
 0x29c   :  { %v4876_v51 = vpop.f32.mrf.mxu1  ;;  %v3385_v27 = vpop.f32.mrf.mxu0 }
 0x29e   :  { %v4878_v19 = vpop.f32.mrf.mxu1  ;;  %v3386_v46 = vpop.f32.mrf.mxu0 }
 0x2a0   :  { %v4879_v56 = vpop.f32.mrf.mxu1  ;;  %v3388_v47 = vpop.f32.mrf.mxu0 }

// kernel: sparse_encoder_forward.20
= control target key start
LH: loop header
LB: loop body
LE: loop exit
PB: predicated region body
PF: predicated region fallthrough
CT: control target
= control target key end

     0   :  { %vm1550_vm0 = vcmask 523264   ;;  %s4125_s1 = inlined_call_operand.vmem [shape: bf16[1728,128], index: 1, kind: input, shape index: {}]   ;;  %s4126_s0 = inlined_call_operand.vmem [shape: bf16[128,1728], index: 0, kind: input, shape index: {}]   ;;  %s4127_s2 = inlined_call_operand.vmem [shape: f32[1,128], index: 2, kind: input, shape index: {}]   ;;  %s4128_s3 = inlined_call_operand.vmem [shape: bf16[128,128], index: 3, kind: output, shape index: {}]  }
   0x1   :  { %v3083_v0 = vld [vmem:[%s4125_s1 + $0x78] sm:$0xff]   ;;  %v3085_v2 = vld [vmem:[%s4125_s1 + $0x70] sm:$0xff]   ;;  %v3087_v4 = vld [vmem:[%s4125_s1 + $0x68] sm:$0xff]  }
   0x2   :  { %v3084_v1 = vld [vmem:[%s4125_s1 + $0x38] sm:$0xff]   ;;  %2680 = vmatprep.subr.bf16.mxu0 %v3083_v0  ;;  %3064 = vmatprep.subr.bf16.mxu1 %v3083_v0  ;;  %v3086_v3 = vld [vmem:[%s4125_s1 + $0x30] sm:$0xff]   ;;  %v3088_v5 = vld [vmem:[%s4125_s1 + $0x28] sm:$0xff]  }
   0x3   :  { %2681 = vmatpush3.bf16.msra.mxu0 %v3084_v1  ;;  %3072 = vmatpush3.bf16.msra.mxu1 %v3084_v1  ;;  %v3089_v6 = vld [vmem:[%s4125_s1 + $0x60] sm:$0xff]   ;;  %v3091_v8 = vld [vmem:[%s4125_s1 + $0x58] sm:$0xff]   ;;  %v3093_v10 = vld [vmem:[%s4125_s1 + $0x50] sm:$0xff]  }
   0x4   :  { %2682 = vmatprep.subr.bf16.mxu0 %v3085_v2  ;;  %3065 = vmatprep.subr.bf16.mxu1 %v3085_v2  ;;  %v3090_v7 = vld [vmem:[%s4125_s1 + $0x20] sm:$0xff]   ;;  %v3092_v9 = vld [vmem:[%s4125_s1 + $0x18] sm:$0xff]   ;;  %v3094_v13 = vld [vmem:[%s4125_s1 + $0x10] sm:$0xff]  }
   0x5   :  { %v3101_v11 = vld [vmem:[%s4126_s0 + $0x4] ss:$56 sps:$4 sm:$0xff]   ;;  %v3095_v14 = vld [vmem:[%s4125_s1 + $0x48] sm:$0xff]   ;;  %v3099_v18 = vld [vmem:[%s4126_s0] ss:$56 sps:$4 sm:$0xff]  }
   0x6   :  { %v3104_v12 = vld [vmem:[%s4126_s0 + $0x1c4] ss:$56 sps:$4 sm:$0xff]   ;;  %1607 = vmatprep.mubr.bf16.mxu0 %v3101_v11  ;;  %v3096_v15 = vld [vmem:[%s4125_s1 + $0x8] sm:$0xff]   ;;  %v3102_v19 = vld [vmem:[%s4126_s0 + $0x1c0] ss:$56 sps:$4 sm:$0xff]  }
   0x7   :  { %2683 = vmatpush3.bf16.msra.mxu0 %v3086_v3  ;;  %3073 = vmatpush3.bf16.msra.mxu1 %v3086_v3  ;;  %v3097_v16 = vld [vmem:[%s4125_s1 + $0x40] sm:$0xff]   ;;  %v3105_v20 = vld [vmem:[%s4125_s1 + $0xf8] sm:$0xff]   ;;  %v3109_v24 = vld [vmem:[%s4125_s1 + $0xf0] sm:$0xff]  }
   0x8   :  { %2684 = vmatprep.subr.bf16.mxu0 %v3087_v4  ;;  %3066 = vmatprep.subr.bf16.mxu1 %v3087_v4  ;;  %v3098_v17 = vld [vmem:[%s4125_s1] sm:$0xff]   ;;  %v3106_v21 = vld [vmem:[%s4125_s1 + $0x178] sm:$0xff]   ;;  %v3110_v25 = vld [vmem:[%s4125_s1 + $0x170] sm:$0xff]  }
   0x9   :  { %1639 = vmatprep.mubr.bf16.mxu1 %v3104_v12  ;;  %v3107_v22 = vld [vmem:[%s4125_s1 + $0xb8] sm:$0xff]   ;;  %v3113_v26 = vld [vmem:[%s4126_s0 + $0x74] ss:$56 sps:$4 sm:$0xff]   ;;  %v3117_v31 = vld [vmem:[%s4126_s0 + $0x70] ss:$56 sps:$4 sm:$0xff]  }
   0xa   :  { %v3108_v23 = vld [vmem:[%s4125_s1 + $0x138] sm:$0xff]   ;;  %v3111_v27 = vld [vmem:[%s4125_s1 + $0xb0] sm:$0xff]   ;;  %v3119_v30 = vld [vmem:[%s4125_s1 + $0xe8] sm:$0xff]  }
   0xb   :  { %2685 = vmatpush3.bf16.msra.mxu0 %v3088_v5  ;;  %3074 = vmatpush3.bf16.msra.mxu1 %v3088_v5  ;;  %v3115_v28 = vld [vmem:[%s4126_s0 + $0x234] ss:$56 sps:$4 sm:$0xff]   ;;  %v3118_v33 = vld [vmem:[%s4126_s0 + $0x230] ss:$56 sps:$4 sm:$0xff]   ;;  %v3123_v36 = vld [vmem:[%s4125_s1 + $0xe0] sm:$0xff]  }
   0xc   :  { %2686 = vmatprep.subr.bf16.mxu0 %v3089_v6  ;;  %3067 = vmatprep.subr.bf16.mxu1 %v3089_v6  ;;  %v3112_v29 = vld [vmem:[%s4125_s1 + $0x130] sm:$0xff]   ;;  %v3120_v32 = vld [vmem:[%s4125_s1 + $0x168] sm:$0xff]   ;;  %v3124_v37 = vld [vmem:[%s4125_s1 + $0x160] sm:$0xff]  }
   0xd   :  { %v3121_v34 = vld [vmem:[%s4125_s1 + $0xa8] sm:$0xff]   ;;  %v3127_v38 = vld [vmem:[%s4126_s0 + $0xe4] ss:$56 sps:$4 sm:$0xff]   ;;  %v3131_v43 = vld [vmem:[%s4126_s0 + $0xe0] ss:$56 sps:$4 sm:$0xff]  }
   0xe   :  { %v3122_v35 = vld [vmem:[%s4125_s1 + $0x128] sm:$0xff]   ;;  %v3125_v39 = vld [vmem:[%s4125_s1 + $0xa0] sm:$0xff]   ;;  %v3133_v42 = vld [vmem:[%s4125_s1 + $0xd8] sm:$0xff]  }
   0xf   :  { %2687 = vmatpush3.bf16.msra.mxu0 %v3090_v7  ;;  %3075 = vmatpush3.bf16.msra.mxu1 %v3090_v7  ;;  %v3129_v40 = vld [vmem:[%s4126_s0 + $0x2a4] ss:$56 sps:$4 sm:$0xff]   ;;  %v3132_v44 = vld [vmem:[%s4126_s0 + $0x2a0] ss:$56 sps:$4 sm:$0xff]   ;;  %v3137_v48 = vld [vmem:[%s4125_s1 + $0xd0] sm:$0xff]  }
  0x10   :  { %2688 = vmatprep.subr.bf16.mxu0 %v3091_v8  ;;  %3068 = vmatprep.subr.bf16.mxu1 %v3091_v8  ;;  %v3126_v41 = vld [vmem:[%s4125_s1 + $0x120] sm:$0xff]   ;;  %v3134_v45 = vld [vmem:[%s4125_s1 + $0x158] sm:$0xff]   ;;  %v3138_v49 = vld [vmem:[%s4125_s1 + $0x150] sm:$0xff]  }
  0x11   :  { %v3135_v46 = vld [vmem:[%s4125_s1 + $0x98] sm:$0xff]   ;;  %v3141_v50 = vld [vmem:[%s4126_s0 + $0x154] ss:$56 sps:$4 sm:$0xff]   ;;  %v3145_v55 = vld [vmem:[%s4126_s0 + $0x150] ss:$56 sps:$4 sm:$0xff]  }
  0x12   :  { %v3136_v47 = vld [vmem:[%s4125_s1 + $0x118] sm:$0xff]   ;;  %v3143_v51 = vld [vmem:[%s4126_s0 + $0x314] ss:$56 sps:$4 sm:$0xff]   ;;  %v3146_v56 = vld [vmem:[%s4126_s0 + $0x310] ss:$56 sps:$4 sm:$0xff]  }
  0x13   :  { %2689 = vmatpush3.bf16.msra.mxu0 %v3092_v9  ;;  %3076 = vmatpush3.bf16.msra.mxu1 %v3092_v9  ;;  %v3139_v52 = vld [vmem:[%s4125_s1 + $0x90] sm:$0xff]   ;;  %v3147_v54 = vld [vmem:[%s4125_s1 + $0xc8] sm:$0xff]   ;;  %v3151_v60 = vld [vmem:[%s4125_s1 + $0xc0] sm:$0xff]  }
  0x14   :  { %2690 = vmatprep.subr.bf16.mxu0 %v3093_v10  ;;  %3069 = vmatprep.subr.bf16.mxu1 %v3093_v10  ;;  %v3140_v53 = vld [vmem:[%s4125_s1 + $0x110] sm:$0xff]   ;;  %v3148_v57 = vld [vmem:[%s4125_s1 + $0x148] sm:$0xff]   ;;  %v3152_v61 = vld [vmem:[%s4125_s1 + $0x140] sm:$0xff]  }
  0x15   :  { %v3149_v58 = vld [vmem:[%s4125_s1 + $0x88] sm:$0xff]   ;;  %v3153_v62 = vld [vmem:[%s4125_s1 + $0x80] sm:$0xff]   ;;  %v3161_v4 = vld [vmem:[%s4125_s1 + $0x1f8] sm:$0xff]  }
  0x16   :  { %v3150_v59 = vld [vmem:[%s4125_s1 + $0x108] sm:$0xff]   ;;  %v3154_v63 = vld [vmem:[%s4125_s1 + $0x100] sm:$0xff]   ;;  %v3162_v5 = vld [vmem:[%s4125_s1 + $0x278] sm:$0xff]  }
  0x17   :  { %2691 = vmatpush3.bf16.msra.mxu0 %v3094_v13  ;;  %3077 = vmatpush3.bf16.msra.mxu1 %v3094_v13  ;;  %v3157_v0 = vld [vmem:[%s4126_s0 + $0xc] ss:$56 sps:$4 sm:$0xff]   ;;  %v3155_v1 = vld [vmem:[%s4126_s0 + $0x8] ss:$56 sps:$4 sm:$0xff]   ;;  %v3163_v6 = vld [vmem:[%s4125_s1 + $0x1b8] sm:$0xff]  }
  0x18   :  { %2692 = vmatprep.subr.bf16.mxu0 %v3095_v14  ;;  %3070 = vmatprep.subr.bf16.mxu1 %v3095_v14  ;;  %v3158_v2 = vld [vmem:[%s4126_s0 + $0x10] ss:$56 sps:$4 sm:$0xff]   ;;  %v3160_v3 = vld [vmem:[%s4126_s0 + $0x14] ss:$56 sps:$4 sm:$0xff]   ;;  %v3164_v7 = vld [vmem:[%s4125_s1 + $0x238] sm:$0xff]  }
  0x19   :  { %v3165_v8 = vld [vmem:[%s4126_s0 + $0x7c] ss:$56 sps:$4 sm:$0xff]   ;;  %v3169_v10 = vld [vmem:[%s4126_s0 + $0x78] ss:$56 sps:$4 sm:$0xff]  }
  0x1a   :  { %v3167_v9 = vld [vmem:[%s4126_s0 + $0x84] ss:$56 sps:$4 sm:$0xff]   ;;  %v3170_v11 = vld [vmem:[%s4126_s0 + $0x80] ss:$56 sps:$4 sm:$0xff]   ;;  %v3171_v12 = vld [vmem:[%s4125_s1 + $0x1f0] sm:$0xff]  }
  0x1b   :  { %2693 = vmatpush3.bf16.msra.mxu0 %v3096_v15  ;;  %3078 = vmatpush3.bf16.msra.mxu1 %v3096_v15  ;;  %v3172_v13 = vld [vmem:[%s4125_s1 + $0x270] sm:$0xff]  }
  0x1c   :  { %2694 = vmatprep.subr.bf16.mxu0 %v3097_v16  ;;  %3071 = vmatprep.subr.bf16.mxu1 %v3097_v16  ;;  %v3173_v14 = vld [vmem:[%s4125_s1 + $0x1b0] sm:$0xff]   ;;  %v3175_v16 = vld [vmem:[%s4126_s0 + $0xec] ss:$56 sps:$4 sm:$0xff]  }
  0x1d   :  { %v3174_v15 = vld [vmem:[%s4125_s1 + $0x230] sm:$0xff]  }
  0x1f   :  { %2695 = vmatpush3.bf16.msra.mxu0 %v3098_v17  ;;  %3079 = vmatpush3.bf16.msra.mxu1 %v3098_v17  ;;  %v3177_v17 = vld [vmem:[%s4126_s0 + $0xf4] ss:$56 sps:$4 sm:$0xff]  }
  0x20   :  { %2744 = vmatprep.subr.bf16.mxu1 %v3105_v20  ;;  %2808 = vmatprep.subr.bf16.mxu0 %v3106_v21  ;;  %v3180_v20 = vld [vmem:[%s4126_s0 + $0xf0] ss:$56 sps:$4 sm:$0xff]  }
  0x21   :  { %v3182_v21 = vld [vmem:[%s4125_s1 + $0x268] sm:$0xff]  }
  0x22   :  { %1608 = vmatmul.mubr.bf16.vlgmr.msra.gmra.mxu0 %v3099_v18  ;;  %1640 = vmatmul.mubr.bf16.vlgmr.msra.gmra.mxu1 %v3102_v19  ;;  %v3181_v18 = vld [vmem:[%s4125_s1 + $0x1e8] sm:$0xff]  }
  0x23   :  { %2745 = vmatpush3.bf16.msra.mxu1 %v3107_v22  ;;  %2809 = vmatpush3.bf16.msra.mxu0 %v3108_v23  ;;  %v3179_v19 = vld [vmem:[%s4126_s0 + $0xe8] ss:$56 sps:$4 sm:$0xff]  }
  0x24   :  { %2746 = vmatprep.subr.bf16.mxu1 %v3109_v24  ;;  %2810 = vmatprep.subr.bf16.mxu0 %v3110_v25  ;;  %v3183_v22 = vld [vmem:[%s4125_s1 + $0x1a8] sm:$0xff]   ;;  %v3185_v24 = vld [vmem:[%s4126_s0 + $0x15c] ss:$56 sps:$4 sm:$0xff]  }
  0x25   :  { %1615 = vmatprep.mubr.bf16.mxu0 %v3113_v26  ;;  %1647 = vmatprep.mubr.bf16.mxu1 %v3115_v28  ;;  %v3184_v23 = vld [vmem:[%s4125_s1 + $0x228] sm:$0xff]   ;;  %v3187_v25 = vld [vmem:[%s4126_s0 + $0x164] ss:$56 sps:$4 sm:$0xff]   ;;  %v3189_v28 = vld [vmem:[%s4126_s0 + $0x158] ss:$56 sps:$4 sm:$0xff]  }
  0x26   :  { %v3191_v26 = vld [vmem:[%s4125_s1 + $0x1e0] sm:$0xff]  }
  0x27   :  { %2747 = vmatpush3.bf16.msra.mxu1 %v3111_v27  ;;  %2811 = vmatpush3.bf16.msra.mxu0 %v3112_v29  ;;  %v3192_v27 = vld [vmem:[%s4125_s1 + $0x260] sm:$0xff]  }
  0x28   :  { %2748 = vmatprep.subr.bf16.mxu1 %v3119_v30  ;;  %2812 = vmatprep.subr.bf16.mxu0 %v3120_v32  ;;  %v3193_v29 = vld [vmem:[%s4125_s1 + $0x1a0] sm:$0xff]  }
  0x29   :  { %v3194_v30 = vld [vmem:[%s4125_s1 + $0x220] sm:$0xff]  }
  0x2a   :  { %1616 = vmatmul.mubr.bf16.gmra.mxu0 %v3117_v31  ;;  %1648 = vmatmul.mubr.bf16.gmra.mxu1 %v3118_v33  ;;  %v3190_v31 = vld [vmem:[%s4126_s0 + $0x160] ss:$56 sps:$4 sm:$0xff]   ;;  %v3195_v32 = vld [vmem:[%s4126_s0 + $0x1cc] ss:$56 sps:$4 sm:$0xff]  }
  0x2b   :  { %2749 = vmatpush3.bf16.msra.mxu1 %v3121_v34  ;;  %2813 = vmatpush3.bf16.msra.mxu0 %v3122_v35  ;;  %v3197_v33 = vld [vmem:[%s4126_s0 + $0x1d4] ss:$56 sps:$4 sm:$0xff]   ;;  %v3201_v34 = vld [vmem:[%s4125_s1 + $0x1d8] sm:$0xff]  }
  0x2c   :  { %2750 = vmatprep.subr.bf16.mxu1 %v3123_v36  ;;  %2814 = vmatprep.subr.bf16.mxu0 %v3124_v37  ;;  %v3202_v35 = vld [vmem:[%s4125_s1 + $0x258] sm:$0xff]  }
  0x2d   :  { %1623 = vmatprep.mubr.bf16.mxu0 %v3127_v38  ;;  %1655 = vmatprep.mubr.bf16.mxu1 %v3129_v40  ;;  %v3203_v36 = vld [vmem:[%s4125_s1 + $0x198] sm:$0xff]   ;;  %v3199_v38 = vld [vmem:[%s4126_s0 + $0x1c8] ss:$56 sps:$4 sm:$0xff]  }
  0x2e   :  { %v3204_v37 = vld [vmem:[%s4125_s1 + $0x218] sm:$0xff]  }
  0x2f   :  { %2751 = vmatpush3.bf16.msra.mxu1 %v3125_v39  ;;  %2815 = vmatpush3.bf16.msra.mxu0 %v3126_v41  ;;  %v3200_v39 = vld [vmem:[%s4126_s0 + $0x1d0] ss:$56 sps:$4 sm:$0xff]   ;;  %v3205_v40 = vld [vmem:[%s4126_s0 + $0x23c] ss:$56 sps:$4 sm:$0xff]  }
  0x30   :  { %2752 = vmatprep.subr.bf16.mxu1 %v3133_v42  ;;  %2816 = vmatprep.subr.bf16.mxu0 %v3134_v45  ;;  %v3207_v41 = vld [vmem:[%s4126_s0 + $0x244] ss:$56 sps:$4 sm:$0xff]   ;;  %v3211_v42 = vld [vmem:[%s4125_s1 + $0x1d0] sm:$0xff]  }
  0x31   :  { %v3214_v45 = vld [vmem:[%s4125_s1 + $0x210] sm:$0xff]  }
  0x32   :  { %1624 = vmatmul.mubr.bf16.gmra.mxu0 %v3131_v43  ;;  %1656 = vmatmul.mubr.bf16.gmra.mxu1 %v3132_v44  ;;  %v3212_v43 = vld [vmem:[%s4125_s1 + $0x250] sm:$0xff]  }
  0x33   :  { %2753 = vmatpush3.bf16.msra.mxu1 %v3135_v46  ;;  %2817 = vmatpush3.bf16.msra.mxu0 %v3136_v47  ;;  %v3213_v44 = vld [vmem:[%s4125_s1 + $0x190] sm:$0xff]   ;;  %v3210_v47 = vld [vmem:[%s4126_s0 + $0x240] ss:$56 sps:$4 sm:$0xff]  }
  0x34   :  { %2754 = vmatprep.subr.bf16.mxu1 %v3137_v48  ;;  %2818 = vmatprep.subr.bf16.mxu0 %v3138_v49  ;;  %v3209_v46 = vld [vmem:[%s4126_s0 + $0x238] ss:$56 sps:$4 sm:$0xff]   ;;  %v3215_v48 = vld [vmem:[%s4126_s0 + $0x2ac] ss:$56 sps:$4 sm:$0xff]  }
  0x35   :  { %1631 = vmatprep.mubr.bf16.mxu0 %v3141_v50  ;;  %1663 = vmatprep.mubr.bf16.mxu1 %v3143_v51  ;;  %v3217_v49 = vld [vmem:[%s4126_s0 + $0x2b4] ss:$56 sps:$4 sm:$0xff]  }
  0x36   :  { %v3221_v50 = vld [vmem:[%s4125_s1 + $0x1c8] sm:$0xff]  }
  0x37   :  { %2755 = vmatpush3.bf16.msra.mxu1 %v3139_v52  ;;  %2819 = vmatpush3.bf16.msra.mxu0 %v3140_v53  ;;  %v3222_v51 = vld [vmem:[%s4125_s1 + $0x248] sm:$0xff]  }
  0x38   :  { %2756 = vmatprep.subr.bf16.mxu1 %v3147_v54  ;;  %2820 = vmatprep.subr.bf16.mxu0 %v3148_v57  ;;  %v3223_v52 = vld [vmem:[%s4125_s1 + $0x188] sm:$0xff]   ;;  %v3225_v57 = vld [vmem:[%s4126_s0 + $0x31c] ss:$56 sps:$4 sm:$0xff]  }
  0x39   :  { %v3224_v53 = vld [vmem:[%s4125_s1 + $0x208] sm:$0xff]  }
  0x3a   :  { %1632 = vmatmul.mubr.bf16.gmra.mxu0 %v3145_v55  ;;  %1664 = vmatmul.mubr.bf16.gmra.mxu1 %v3146_v56  ;;  %v3219_v54 = vld [vmem:[%s4126_s0 + $0x2a8] ss:$56 sps:$4 sm:$0xff]  }
  0x3b   :  { %2757 = vmatpush3.bf16.msra.mxu1 %v3149_v58  ;;  %2821 = vmatpush3.bf16.msra.mxu0 %v3150_v59  ;;  %v3220_v55 = vld [vmem:[%s4126_s0 + $0x2b0] ss:$56 sps:$4 sm:$0xff]   ;;  %v3231_v56 = vld [vmem:[%s4125_s1 + $0x1c0] sm:$0xff]  }
  0x3c   :  { %2758 = vmatprep.subr.bf16.mxu1 %v3151_v60  ;;  %2822 = vmatprep.subr.bf16.mxu0 %v3152_v61  ;;  %v3227_v58 = vld [vmem:[%s4126_s0 + $0x324] ss:$56 sps:$4 sm:$0xff]  }
  0x3d   :  { %1704 = vmatprep.mubr.bf16.mxu1 %v3157_v0  ;;  %1801 = vmatprep.mubr.bf16.mxu0 %v3160_v3  ;;  %v3232_v59 = vld [vmem:[%s4125_s1 + $0x240] sm:$0xff]   ;;  %v3359_v0 = vmov 0  }
  0x3e   :  { %v3233_v60 = vld [vmem:[%s4125_s1 + $0x180] sm:$0xff]  }
  0x3f   :  { %2759 = vmatpush3.bf16.msra.mxu1 %v3153_v62  ;;  %2823 = vmatpush3.bf16.msra.mxu0 %v3154_v63  ;;  %v3234_v61 = vld [vmem:[%s4125_s1 + $0x200] sm:$0xff]   ;;  %v3241_v62 = vld [vmem:[%s4125_s1 + $0x2f8] sm:$0xff]  }
  0x40   :  { %2872 = vmatprep.subr.bf16.mxu1 %v3161_v4  ;;  %2936 = vmatprep.subr.bf16.mxu0 %v3162_v5  ;;  %v3229_v63 = vld [vmem:[%s4126_s0 + $0x318] ss:$56 sps:$4 sm:$0xff]   ;;  %v3240_v3 = vld [vmem:[%s4126_s0 + $0x24] ss:$56 sps:$4 sm:$0xff]  }
  0x41   :  { %v3235_v4 = vld [vmem:[%s4126_s0 + $0x18] ss:$56 sps:$4 sm:$0xff]  }
  0x42   :  { %1705 = vmatmul.mubr.bf16.vlgmr.msra.gmra.mxu1 %v3155_v1  ;;  %1802 = vmatmul.mubr.bf16.vlgmr.msra.gmra.mxu0 %v3158_v2  ;;  %v3230_v1 = vld [vmem:[%s4126_s0 + $0x320] ss:$56 sps:$4 sm:$0xff]   ;;  %v3237_v2 = vld [vmem:[%s4126_s0 + $0x1c] ss:$56 sps:$4 sm:$0xff]  }
  0x43   :  { %2873 = vmatpush3.bf16.msra.mxu1 %v3163_v6  ;;  %2937 = vmatpush3.bf16.msra.mxu0 %v3164_v7  ;;  %v3238_v5 = vld [vmem:[%s4126_s0 + $0x20] ss:$56 sps:$4 sm:$0xff]  }
  0x44   :  { %1712 = vmatprep.mubr.bf16.mxu1 %v3165_v8  ;;  %1809 = vmatprep.mubr.bf16.mxu0 %v3167_v9  ;;  %v3242_v6 = vld [vmem:[%s4125_s1 + $0x2b8] sm:$0xff]   ;;  %v3244_v8 = vld [vmem:[%s4126_s0 + $0x8c] ss:$56 sps:$4 sm:$0xff]  }
  0x45   :  { %2874 = vmatprep.subr.bf16.mxu1 %v3171_v12  ;;  %2938 = vmatprep.subr.bf16.mxu0 %v3172_v13  ;;  %v3243_v7 = vld [vmem:[%s4125_s1 + $0x338] sm:$0xff]   ;;  %v3246_v9 = vld [vmem:[%s4126_s0 + $0x94] ss:$56 sps:$4 sm:$0xff]  }
  0x46   :  { %v3252_v12 = vld [vmem:[%s4125_s1 + $0x2b0] sm:$0xff]   ;;  %v3260_v13 = vld [vmem:[%s4125_s1 + $0x2e8] sm:$0xff]  }
  0x47   :  { %2875 = vmatpush3.bf16.msra.mxu1 %v3173_v14  ;;  %2939 = vmatpush3.bf16.msra.mxu0 %v3174_v15  ;;  %v3249_v14 = vld [vmem:[%s4126_s0 + $0x88] ss:$56 sps:$4 sm:$0xff]  }
  0x48   :  { %2876 = vmatprep.subr.bf16.mxu1 %v3181_v18  ;;  %2940 = vmatprep.subr.bf16.mxu0 %v3182_v21  ;;  %v3250_v15 = vld [vmem:[%s4126_s0 + $0x90] ss:$56 sps:$4 sm:$0xff]   ;;  %v3256_v18 = vld [vmem:[%s4126_s0 + $0x104] ss:$56 sps:$4 sm:$0xff]  }
  0x49   :  { %v3262_v21 = vld [vmem:[%s4125_s1 + $0x320] sm:$0xff]  }
  0x4a   :  { %1713 = vmatmul.mubr.bf16.gmra.mxu1 %v3169_v10  ;;  %1810 = vmatmul.mubr.bf16.gmra.mxu0 %v3170_v11  ;;  %v3251_v10 = vld [vmem:[%s4125_s1 + $0x2f0] sm:$0xff]  }
  0x4b   :  { %1720 = vmatprep.mubr.bf16.mxu1 %v3175_v16  ;;  %1817 = vmatprep.mubr.bf16.mxu0 %v3177_v17  ;;  %v3248_v11 = vld [vmem:[%s4125_s1 + $0x330] sm:$0xff]   ;;  %v3253_v16 = vld [vmem:[%s4125_s1 + $0x328] sm:$0xff]  }
  0x4c   :  { %2877 = vmatpush3.bf16.msra.mxu1 %v3183_v22  ;;  %2941 = vmatpush3.bf16.msra.mxu0 %v3184_v23  ;;  %v3254_v17 = vld [vmem:[%s4126_s0 + $0xfc] ss:$56 sps:$4 sm:$0xff]   ;;  %v3258_v22 = vld [vmem:[%s4126_s0 + $0xf8] ss:$56 sps:$4 sm:$0xff]  }
  0x4d   :  { %2878 = vmatprep.subr.bf16.mxu1 %v3191_v26  ;;  %2942 = vmatprep.subr.bf16.mxu0 %v3192_v27  ;;  %v3259_v23 = vld [vmem:[%s4126_s0 + $0x100] ss:$56 sps:$4 sm:$0xff]   ;;  %v3265_v26 = vld [vmem:[%s4126_s0 + $0x174] ss:$56 sps:$4 sm:$0xff]  }
  0x4e   :  { %v3267_v27 = vld [vmem:[%s4125_s1 + $0x318] sm:$0xff]  }
  0x50   :  { %2879 = vmatpush3.bf16.msra.mxu1 %v3193_v29  ;;  %2943 = vmatpush3.bf16.msra.mxu0 %v3194_v30  ;;  %v3280_v29 = vld [vmem:[%s4125_s1 + $0x298] sm:$0xff]   ;;  %v3289_v30 = vld [vmem:[%s4125_s1 + $0x2d0] sm:$0xff]  }
  0x51   :  { %2880 = vmatprep.subr.bf16.mxu1 %v3201_v34  ;;  %2944 = vmatprep.subr.bf16.mxu0 %v3202_v35  ;;  %v3290_v34 = vld [vmem:[%s4125_s1 + $0x290] sm:$0xff]  }
  0x52   :  { %1721 = vmatmul.mubr.bf16.gmra.mxu1 %v3179_v19  ;;  %1818 = vmatmul.mubr.bf16.gmra.mxu0 %v3180_v20  ;;  %v3261_v19 = vld [vmem:[%s4125_s1 + $0x2a8] sm:$0xff]   ;;  %v3270_v20 = vld [vmem:[%s4125_s1 + $0x2e0] sm:$0xff]   ;;  %v3273_v35 = vld [vmem:[%s4126_s0 + $0x1dc] ss:$56 sps:$4 sm:$0xff]  }
  0x53   :  { %1728 = vmatprep.mubr.bf16.mxu1 %v3185_v24  ;;  %1825 = vmatprep.mubr.bf16.mxu0 %v3187_v25  ;;  %v3263_v24 = vld [vmem:[%s4126_s0 + $0x16c] ss:$56 sps:$4 sm:$0xff]  }
  0x54   :  { %2881 = vmatpush3.bf16.msra.mxu1 %v3203_v36  ;;  %2945 = vmatpush3.bf16.msra.mxu0 %v3204_v37  ;;  %v3271_v25 = vld [vmem:[%s4125_s1 + $0x2a0] sm:$0xff]   ;;  %v3281_v37 = vld [vmem:[%s4125_s1 + $0x308] sm:$0xff]  }
  0x55   :  { %2882 = vmatprep.subr.bf16.mxu1 %v3211_v42  ;;  %2946 = vmatprep.subr.bf16.mxu0 %v3212_v43  ;;  %v3275_v36 = vld [vmem:[%s4126_s0 + $0x1e4] ss:$56 sps:$4 sm:$0xff]  }
  0x56   :  { %v3286_v42 = vld [vmem:[%s4125_s1 + $0x300] sm:$0xff]  }
  0x57   :  { %v3282_v43 = vld [vmem:[%s4126_s0 + $0x24c] ss:$56 sps:$4 sm:$0xff]  }
  0x58   :  { %2883 = vmatpush3.bf16.msra.mxu1 %v3213_v44  ;;  %2947 = vmatpush3.bf16.msra.mxu0 %v3214_v45  ;;  %v3284_v44 = vld [vmem:[%s4126_s0 + $0x254] ss:$56 sps:$4 sm:$0xff]   ;;  %v3291_v45 = vld [vmem:[%s4125_s1 + $0x358] sm:$0xff]  }
  0x59   :  { %2884 = vmatprep.subr.bf16.mxu1 %v3221_v50  ;;  %2948 = vmatprep.subr.bf16.mxu0 %v3222_v51  ;;  %v3288_v50 = vld [vmem:[%s4126_s0 + $0x250] ss:$56 sps:$4 sm:$0xff]   ;;  %v3292_v51 = vld [vmem:[%s4126_s0 + $0x2bc] ss:$56 sps:$4 sm:$0xff]  }
  0x5a   :  { %1729 = vmatmul.mubr.bf16.gmra.mxu1 %v3189_v28  ;;  %1826 = vmatmul.mubr.bf16.gmra.mxu0 %v3190_v31  ;;  %v3279_v28 = vld [vmem:[%s4125_s1 + $0x2d8] sm:$0xff]   ;;  %v3268_v31 = vld [vmem:[%s4126_s0 + $0x168] ss:$56 sps:$4 sm:$0xff]  }
  0x5b   :  { %1736 = vmatprep.mubr.bf16.mxu1 %v3195_v32  ;;  %1833 = vmatprep.mubr.bf16.mxu0 %v3197_v33  ;;  %v3269_v32 = vld [vmem:[%s4126_s0 + $0x170] ss:$56 sps:$4 sm:$0xff]  }
  0x5c   :  { %2885 = vmatpush3.bf16.msra.mxu1 %v3223_v52  ;;  %2949 = vmatpush3.bf16.msra.mxu0 %v3224_v53  ;;  %v3272_v33 = vld [vmem:[%s4125_s1 + $0x310] sm:$0xff]   ;;  %v3294_v52 = vld [vmem:[%s4126_s0 + $0x2c4] ss:$56 sps:$4 sm:$0xff]   ;;  %v3305_v53 = vld [vmem:[%s4125_s1 + $0x348] sm:$0xff]  }
  0x5d   :  { %2886 = vmatprep.subr.bf16.mxu1 %v3231_v56  ;;  %2950 = vmatprep.subr.bf16.mxu0 %v3232_v59  ;;  %v3297_v56 = vld [vmem:[%s4126_s0 + $0x2c0] ss:$56 sps:$4 sm:$0xff]  }
  0x5e   :  { %v3306_v59 = vld [vmem:[%s4126_s0 + $0x328] ss:$56 sps:$4 sm:$0xff]  }
  0x60   :  { %2887 = vmatpush3.bf16.msra.mxu1 %v3233_v60  ;;  %2951 = vmatpush3.bf16.msra.mxu0 %v3234_v61  ;;  %v3307_v60 = vld [vmem:[%s4126_s0 + $0x330] ss:$56 sps:$4 sm:$0xff]   ;;  %v3313_v61 = vld [vmem:[%s4126_s0 + $0x2c] ss:$56 sps:$4 sm:$0xff]  }
  0x61   :  { %2157 = vmatprep.subr.bf16.mxu0 %v3359_v0  ;;  %3000 = vmatprep.subr.bf16.mxu1 %v3241_v62  ;;  %v3316_v62 = vld [vmem:[%s4126_s0 + $0x34] ss:$56 sps:$4 sm:$0xff]  }
  0x62   :  { %1737 = vmatmul.mubr.bf16.gmra.mxu1 %v3199_v38  ;;  %1834 = vmatmul.mubr.bf16.gmra.mxu0 %v3200_v39  ;;  %v3298_v38 = vld [vmem:[%s4125_s1 + $0x2c8] sm:$0xff]  }
  0x63   :  { %1744 = vmatprep.mubr.bf16.mxu1 %v3205_v40  ;;  %1841 = vmatprep.mubr.bf16.mxu0 %v3207_v41  ;;  %v3299_v39 = vld [vmem:[%s4125_s1 + $0x288] sm:$0xff]   ;;  %v3277_v40 = vld [vmem:[%s4126_s0 + $0x1d8] ss:$56 sps:$4 sm:$0xff]  }
  0x64   :  { %v3278_v41 = vld [vmem:[%s4126_s0 + $0x1e0] ss:$56 sps:$4 sm:$0xff]  }
  0x6a   :  { %1745 = vmatmul.mubr.bf16.gmra.mxu1 %v3209_v46  ;;  %1842 = vmatmul.mubr.bf16.gmra.mxu0 %v3210_v47  ;;  %v3308_v46 = vld [vmem:[%s4125_s1 + $0x2c0] sm:$0xff]  }
  0x6b   :  { %1752 = vmatprep.mubr.bf16.mxu1 %v3215_v48  ;;  %1849 = vmatprep.mubr.bf16.mxu0 %v3217_v49  ;;  %v3309_v47 = vld [vmem:[%s4125_s1 + $0x280] sm:$0xff]   ;;  %v3300_v48 = vld [vmem:[%s4125_s1 + $0x350] sm:$0xff]  }
  0x6c   :  { %v3287_v49 = vld [vmem:[%s4126_s0 + $0x248] ss:$56 sps:$4 sm:$0xff]  }
  0x72   :  { %1753 = vmatmul.mubr.bf16.gmra.mxu1 %v3219_v54  ;;  %1850 = vmatmul.mubr.bf16.gmra.mxu0 %v3220_v55  ;;  %v3310_v54 = vld [vmem:[%s4125_s1 + $0x340] sm:$0xff]   ;;  %v3296_v55 = vld [vmem:[%s4126_s0 + $0x2b8] ss:$56 sps:$4 sm:$0xff]  }
  0x73   :  { %1760 = vmatprep.mubr.bf16.mxu1 %v3225_v57  ;;  %1857 = vmatprep.mubr.bf16.mxu0 %v3227_v58  ;;  %v3301_v57 = vld [vmem:[%s4126_s0 + $0x32c] ss:$56 sps:$4 sm:$0xff]  }
  0x74   :  { %v3303_v58 = vld [vmem:[%s4126_s0 + $0x334] ss:$56 sps:$4 sm:$0xff]  }
  0x7a   :  { %1761 = vmatmul.mubr.bf16.gmra.mxu1 %v3229_v63  ;;  %1858 = vmatmul.mubr.bf16.gmra.mxu0 %v3230_v1  ;;  %v3311_v63 = vld [vmem:[%s4126_s0 + $0x28] ss:$56 sps:$4 sm:$0xff]   ;;  %v3317_v1 = vld [vmem:[%s4126_s0 + $0x9c] ss:$56 sps:$4 sm:$0xff]  }
  0x7b   :  { %1898 = vmatprep.mubr.bf16.mxu1 %v3237_v2  ;;  %1995 = vmatprep.mubr.bf16.mxu0 %v3240_v3  ;;  %v3319_v2 = vld [vmem:[%s4126_s0 + $0xa4] ss:$56 sps:$4 sm:$0xff]   ;;  %v3321_v3 = vld [vmem:[%s4126_s0 + $0x98] ss:$56 sps:$4 sm:$0xff]  }
  0x82   :  { %1899 = vmatmul.mubr.bf16.vlgmr.msra.gmra.mxu1 %v3235_v4  ;;  %1996 = vmatmul.mubr.bf16.vlgmr.msra.gmra.mxu0 %v3238_v5  ;;  %v3322_v4 = vld [vmem:[%s4126_s0 + $0xa0] ss:$56 sps:$4 sm:$0xff]   ;;  %v3323_v5 = vld [vmem:[%s4126_s0 + $0x10c] ss:$56 sps:$4 sm:$0xff]  }
  0x83   :  { %3001 = vmatpush3.bf16.msra.mxu1 %v3242_v6  ;;  %2158 = vmatpush1.bf16.msra.mxu0 %v3243_v7  ;;  %v3325_v6 = vld [vmem:[%s4126_s0 + $0x114] ss:$56 sps:$4 sm:$0xff]   ;;  %v3327_v7 = vld [vmem:[%s4126_s0 + $0x108] ss:$56 sps:$4 sm:$0xff]  }
  0x84   :  { %2159 = vmatprep.subr.bf16.mxu0 %v3359_v0  ;;  %1906 = vmatprep.mubr.bf16.mxu1 %v3244_v8  ;;  %v3328_v8 = vld [vmem:[%s4126_s0 + $0x110] ss:$56 sps:$4 sm:$0xff]  }
  0x85   :  { %2003 = vmatprep.mubr.bf16.mxu0 %v3246_v9  ;;  %3002 = vmatprep.subr.bf16.mxu1 %v3251_v10  ;;  %v3329_v9 = vld [vmem:[%s4126_s0 + $0x17c] ss:$56 sps:$4 sm:$0xff]  }
  0x86   :  { %v3331_v10 = vld [vmem:[%s4126_s0 + $0x184] ss:$56 sps:$4 sm:$0xff]  }
  0x87   :  { %2160 = vmatpush1.bf16.msra.mxu0 %v3248_v11  ;;  %3003 = vmatpush3.bf16.msra.mxu1 %v3252_v12  ;;  %v3333_v11 = vld [vmem:[%s4126_s0 + $0x178] ss:$56 sps:$4 sm:$0xff]  }
  0x88   :  { %2161 = vmatprep.subr.bf16.mxu0 %v3359_v0  ;;  %3004 = vmatprep.subr.bf16.mxu1 %v3260_v13  ;;  %v3334_v12 = vld [vmem:[%s4126_s0 + $0x180] ss:$56 sps:$4 sm:$0xff]   ;;  %v3335_v13 = vld [vmem:[%s4126_s0 + $0x1ec] ss:$56 sps:$4 sm:$0xff]  }
  0x8a   :  { %1907 = vmatmul.mubr.bf16.gmra.mxu1 %v3249_v14  ;;  %2004 = vmatmul.mubr.bf16.gmra.mxu0 %v3250_v15  ;;  %v3337_v14 = vld [vmem:[%s4126_s0 + $0x1f4] ss:$56 sps:$4 sm:$0xff]   ;;  %v3339_v15 = vld [vmem:[%s4126_s0 + $0x1e8] ss:$56 sps:$4 sm:$0xff]  }
  0x8b   :  { %2162 = vmatpush1.bf16.msra.mxu0 %v3253_v16  ;;  %1914 = vmatprep.mubr.bf16.mxu1 %v3254_v17  ;;  %v3340_v16 = vld [vmem:[%s4126_s0 + $0x1f0] ss:$56 sps:$4 sm:$0xff]   ;;  %v3341_v17 = vld [vmem:[%s4126_s0 + $0x25c] ss:$56 sps:$4 sm:$0xff]  }
  0x8c   :  { %2011 = vmatprep.mubr.bf16.mxu0 %v3256_v18  ;;  %2163 = vmatprep.subr.bf16.mxu0 %v3359_v0  ;;  %v3343_v18 = vld [vmem:[%s4126_s0 + $0x264] ss:$56 sps:$4 sm:$0xff]  }
  0x8d   :  { %3005 = vmatpush3.bf16.msra.mxu1 %v3261_v19 }
  0x8e   :  { %3006 = vmatprep.subr.bf16.mxu1 %v3270_v20 }
  0x8f   :  { %2164 = vmatpush1.bf16.msra.mxu0 %v3262_v21 }
  0x90   :  { %2165 = vmatprep.subr.bf16.mxu0 %v3359_v0 }
  0x91   :  { %3007 = vmatpush3.bf16.msra.mxu1 %v3271_v25 }
  0x92   :  { %1915 = vmatmul.mubr.bf16.gmra.mxu1 %v3258_v22  ;;  %2012 = vmatmul.mubr.bf16.gmra.mxu0 %v3259_v23 }
  0x93   :  { %1922 = vmatprep.mubr.bf16.mxu1 %v3263_v24  ;;  %2019 = vmatprep.mubr.bf16.mxu0 %v3265_v26  ;;  %v3345_v26 = vld [vmem:[%s4126_s0 + $0x258] ss:$56 sps:$4 sm:$0xff]  }
  0x94   :  { %2166 = vmatpush1.bf16.msra.mxu0 %v3267_v27  ;;  %3008 = vmatprep.subr.bf16.mxu1 %v3279_v28  ;;  %v3346_v27 = vld [vmem:[%s4126_s0 + $0x260] ss:$56 sps:$4 sm:$0xff]   ;;  %v3347_v28 = vld [vmem:[%s4126_s0 + $0x2cc] ss:$56 sps:$4 sm:$0xff]  }
  0x95   :  { %2167 = vmatprep.subr.bf16.mxu0 %v3359_v0  ;;  %3009 = vmatpush3.bf16.msra.mxu1 %v3280_v29  ;;  %v3349_v29 = vld [vmem:[%s4126_s0 + $0x2d4] ss:$56 sps:$4 sm:$0xff]  }
  0x96   :  { %3010 = vmatprep.subr.bf16.mxu1 %v3289_v30 }
  0x98   :  { %2168 = vmatpush1.bf16.msra.mxu0 %v3272_v33 }
  0x99   :  { %2169 = vmatprep.subr.bf16.mxu0 %v3359_v0  ;;  %3011 = vmatpush3.bf16.msra.mxu1 %v3290_v34 }
  0x9a   :  { %1923 = vmatmul.mubr.bf16.gmra.mxu1 %v3268_v31  ;;  %2020 = vmatmul.mubr.bf16.gmra.mxu0 %v3269_v32 }
  0x9b   :  { %1930 = vmatprep.mubr.bf16.mxu1 %v3273_v35  ;;  %2027 = vmatprep.mubr.bf16.mxu0 %v3275_v36 }
  0x9c   :  { %2170 = vmatpush1.bf16.msra.mxu0 %v3281_v37  ;;  %3012 = vmatprep.subr.bf16.mxu1 %v3298_v38 }
  0x9d   :  { %2171 = vmatprep.subr.bf16.mxu0 %v3359_v0  ;;  %3013 = vmatpush3.bf16.msra.mxu1 %v3299_v39 }
  0x9e   :  { %3014 = vmatprep.subr.bf16.mxu1 %v3308_v46 }
  0xa0   :  { %2172 = vmatpush1.bf16.msra.mxu0 %v3286_v42  ;;  %v3353_v42 = vld [vmem:[%s4126_s0 + $0x33c] ss:$56 sps:$4 sm:$0xff]  }
  0xa1   :  { %2181 = vmatprep.subr.bf16.mxu0 %v3359_v0  ;;  %3015 = vmatpush3.bf16.msra.mxu1 %v3309_v47 }
  0xa2   :  { %1931 = vmatmul.mubr.bf16.gmra.mxu1 %v3277_v40  ;;  %2028 = vmatmul.mubr.bf16.gmra.mxu0 %v3278_v41  ;;  %v3351_v40 = vld [vmem:[%s4126_s0 + $0x2c8] ss:$56 sps:$4 sm:$0xff]  }
  0xa3   :  { %1938 = vmatprep.mubr.bf16.mxu1 %v3282_v43  ;;  %2035 = vmatprep.mubr.bf16.mxu0 %v3284_v44  ;;  %v3352_v41 = vld [vmem:[%s4126_s0 + $0x2d0] ss:$56 sps:$4 sm:$0xff]   ;;  %v3355_v43 = vld [vmem:[%s4126_s0 + $0x344] ss:$56 sps:$4 sm:$0xff]  }
  0xa4   :  { %2182 = vmatpush2.bf16.msra.mxu0 %v3291_v45 }
  0xa5   :  { %2183 = vmatprep.subr.bf16.mxu0 %v3359_v0 }
  0xa8   :  { %2184 = vmatpush2.bf16.msra.mxu0 %v3300_v48 }
  0xa9   :  { %2185 = vmatprep.subr.bf16.mxu0 %v3359_v0 }
  0xaa   :  { %1939 = vmatmul.mubr.bf16.gmra.mxu1 %v3287_v49  ;;  %2036 = vmatmul.mubr.bf16.gmra.mxu0 %v3288_v50 }
  0xab   :  { %1946 = vmatprep.mubr.bf16.mxu1 %v3292_v51  ;;  %2043 = vmatprep.mubr.bf16.mxu0 %v3294_v52  ;;  %v3357_v52 = vld [vmem:[%s4126_s0 + $0x338] ss:$56 sps:$4 sm:$0xff]  }
  0xac   :  { %2186 = vmatpush2.bf16.msra.mxu0 %v3305_v53  ;;  %v3358_v53 = vld [vmem:[%s4126_s0 + $0x340] ss:$56 sps:$4 sm:$0xff]  }
  0xad   :  { %2187 = vmatprep.subr.bf16.mxu0 %v3359_v0  ;;  %v3314_v0 = vld [vmem:[%s4126_s0 + $0x30] ss:$56 sps:$4 sm:$0xff]  }
  0xb0   :  { %2188 = vmatpush2.bf16.msra.mxu0 %v3310_v54 }
  0xb2   :  { %1947 = vmatmul.mubr.bf16.gmra.mxu1 %v3296_v55  ;;  %2044 = vmatmul.mubr.bf16.gmra.mxu0 %v3297_v56 }
  0xb3   :  { %1954 = vmatprep.mubr.bf16.mxu1 %v3301_v57  ;;  %2051 = vmatprep.mubr.bf16.mxu0 %v3303_v58 }
  0xba   :  { %1955 = vmatmul.mubr.bf16.gmra.mxu1 %v3306_v59  ;;  %2052 = vmatmul.mubr.bf16.gmra.mxu0 %v3307_v60 }
  0xbb   :  { %2092 = vmatprep.mubr.bf16.mxu1 %v3313_v61  ;;  %2642 = vmatprep.mubr.msk.bf16.mxu0 %vm1550_vm0, %v3316_v62 }
  0xc2   :  { %2093 = vmatmul.mubr.bf16.vlgmr.msra.gmra.mxu1 %v3311_v63  ;;  %2190 = vmatmul.mubr.bf16.vlgmr.msra.gmra.mxu0 %v3314_v0  ;;  %v2421_v0 = vld [vmem:[%s4127_s2] ss:$0 sm:$0xff] }
  0xc3   :  { %2100 = vmatprep.mubr.bf16.mxu1 %v3317_v1  ;;  %2643 = vmatprep.mubr.msk.bf16.mxu0 %vm1550_vm0, %v3319_v2 }
  0xca   :  { %2101 = vmatmul.mubr.bf16.gmra.mxu1 %v3321_v3  ;;  %2198 = vmatmul.mubr.bf16.gmra.mxu0 %v3322_v4 }
  0xcb   :  { %2108 = vmatprep.mubr.bf16.mxu1 %v3323_v5  ;;  %2644 = vmatprep.mubr.msk.bf16.mxu0 %vm1550_vm0, %v3325_v6 }
  0xd2   :  { %2109 = vmatmul.mubr.bf16.gmra.mxu1 %v3327_v7  ;;  %2206 = vmatmul.mubr.bf16.gmra.mxu0 %v3328_v8 }
  0xd3   :  { %2116 = vmatprep.mubr.bf16.mxu1 %v3329_v9  ;;  %2645 = vmatprep.mubr.msk.bf16.mxu0 %vm1550_vm0, %v3331_v10 }
  0xda   :  { %2117 = vmatmul.mubr.bf16.gmra.mxu1 %v3333_v11  ;;  %2214 = vmatmul.mubr.bf16.gmra.mxu0 %v3334_v12 }
  0xdb   :  { %2124 = vmatprep.mubr.bf16.mxu1 %v3335_v13  ;;  %2646 = vmatprep.mubr.msk.bf16.mxu0 %vm1550_vm0, %v3337_v14 }
  0xe2   :  { %v2696_v19 = vpop.f32.mrf.mxu0  ;;  %v2720_v20 = vpop.f32.mrf.mxu1  ;;  %2125 = vmatmul.mubr.bf16.gmra.mxu1 %v3339_v15  ;;  %2222 = vmatmul.mubr.bf16.gmra.mxu0 %v3340_v16 }
  0xe3   :  { %2132 = vmatprep.mubr.bf16.mxu1 %v3341_v17  ;;  %2647 = vmatprep.mubr.msk.bf16.mxu0 %vm1550_vm0, %v3343_v18 }
  0xe4   :  { %v2697_v21 = vpop.f32.mrf.mxu0  ;;  %v2721_v22 = vpop.f32.mrf.mxu1 }
  0xe5   :  { %v2698_v23 = vadd.f32 %v2697_v21, %v2696_v19 }
  0xe6   :  { %v2699_v24 = vpop.f32.mrf.mxu0  ;;  %v2723_v25 = vpop.f32.mrf.mxu1 }
  0xe7   :  { %v1610_v5 = vadd.f32 %v2698_v23, %v2421_v0 }
  0xe8   :  { %v2700_v30 = vpop.f32.mrf.mxu0  ;;  %v2724_v31 = vpop.f32.mrf.mxu1 }
  0xe9   :  { %v2701_v32 = vadd.f32 %v2700_v30, %v2699_v24  ;;  %v3360_v31 = vmov 0.0|0.0  }
  0xea   :  { %v2702_v33 = vpop.f32.mrf.mxu0  ;;  %v2726_v34 = vpop.f32.mrf.mxu1  ;;  %2133 = vmatmul.mubr.bf16.gmra.mxu1 %v3345_v26  ;;  %2230 = vmatmul.mubr.bf16.gmra.mxu0 %v3346_v27 }
  0xeb   :  { %2140 = vmatprep.mubr.bf16.mxu1 %v3347_v28  ;;  %2648 = vmatprep.mubr.msk.bf16.mxu0 %vm1550_vm0, %v3349_v29  ;;  %v1613_v13 = vadd.f32 %v2701_v32, %v2421_v0  ;;  %v2654_v32 = vcombine.low %v3360_v31, %v3360_v31 }
  0xec   :  { %v2703_v35 = vpop.f32.mrf.mxu0  ;;  %v2727_v36 = vpop.f32.mrf.mxu1 }
  0xed   :  { %v2704_v37 = vadd.f32 %v2703_v35, %v2702_v33  ;;  %v2655_v33 = vcombine.high %v3360_v31, %v3360_v31  ;;  %2405 = vst [vmem:[%s4128_s3 + $0x10] sm:$0xf] %v2654_v32  ;;  %2407 = vst [vmem:[%s4128_s3 + $0x18] sm:$0xf] %v2654_v32 }
  0xee   :  { %v2705_v38 = vpop.f32.mrf.mxu0  ;;  %v2729_v39 = vpop.f32.mrf.mxu1  ;;  %2409 = vst [vmem:[%s4128_s3 + $0x20] sm:$0xf] %v2654_v32  ;;  %2411 = vst [vmem:[%s4128_s3 + $0x28] sm:$0xf] %v2654_v32 }
  0xef   :  { %v1618_v22 = vadd.f32 %v2704_v37, %v2421_v0  ;;  %2406 = vst [vmem:[%s4128_s3 + $0x14] sm:$0xf] %v2655_v33  ;;  %2408 = vst [vmem:[%s4128_s3 + $0x1c] sm:$0xf] %v2655_v33 }
  0xf0   :  { %v2706_v44 = vpop.f32.mrf.mxu0  ;;  %v2730_v45 = vpop.f32.mrf.mxu1  ;;  %2410 = vst [vmem:[%s4128_s3 + $0x24] sm:$0xf] %v2655_v33  ;;  %2412 = vst [vmem:[%s4128_s3 + $0x2c] sm:$0xf] %v2655_v33 }
  0xf1   :  { %2413 = vst [vmem:[%s4128_s3 + $0x30] sm:$0xf] %v2654_v32  ;;  %2414 = vst [vmem:[%s4128_s3 + $0x34] sm:$0xf] %v2655_v33 }
  0xf2   :  { %v2708_v46 = vpop.f32.mrf.mxu0  ;;  %v2732_v47 = vpop.f32.mrf.mxu1  ;;  %2141 = vmatmul.mubr.bf16.gmra.mxu1 %v3351_v40  ;;  %2238 = vmatmul.mubr.bf16.gmra.mxu0 %v3352_v41  ;;  %2415 = vst [vmem:[%s4128_s3 + $0x38] sm:$0xf] %v2654_v32  ;;  %2416 = vst [vmem:[%s4128_s3 + $0x3c] sm:$0xf] %v2655_v33 }
  0xf3   :  { %2148 = vmatprep.mubr.bf16.mxu1 %v3353_v42  ;;  %2649 = vmatprep.mubr.msk.bf16.mxu0 %vm1550_vm0, %v3355_v43 }
  0xf4   :  { %v2709_v48 = vpop.f32.mrf.mxu0  ;;  %v2733_v49 = vpop.f32.mrf.mxu1 }
  0xf6   :  { %v2711_v50 = vpop.f32.mrf.mxu0  ;;  %v2735_v51 = vpop.f32.mrf.mxu1 }
  0xf8   :  { %v2712_v54 = vpop.f32.mrf.mxu0  ;;  %v2736_v55 = vpop.f32.mrf.mxu1 }
  0xfa   :  { %v2714_v56 = vpop.f32.mrf.mxu0  ;;  %v2738_v57 = vpop.f32.mrf.mxu1  ;;  %2149 = vmatmul.mubr.bf16.gmra.mxu1 %v3357_v52  ;;  %2246 = vmatmul.mubr.bf16.gmra.mxu0 %v3358_v53 }
  0xfc   :  { %v2715_v58 = vpop.f32.mrf.mxu0  ;;  %v2739_v59 = vpop.f32.mrf.mxu1 }
  0xfe   :  { %v2717_v60 = vpop.f32.mrf.mxu0  ;;  %v2741_v61 = vpop.f32.mrf.mxu1 }
 0x100   :  { %v2718_v62 = vpop.f32.mrf.mxu0  ;;  %v2742_v63 = vpop.f32.mrf.mxu1 }
 0x102   :  { %v2760_v1 = vpop.f32.mrf.mxu1  ;;  %v2824_v2 = vpop.f32.mrf.mxu0 }
 0x104   :  { %v2761_v3 = vpop.f32.mrf.mxu1  ;;  %v2825_v4 = vpop.f32.mrf.mxu0 }
 0x105   :  { %v2762_v6 = vadd.f32 %v2761_v3, %v2760_v1  ;;  %v2826_v7 = vadd.f32 %v2825_v4, %v2824_v2 }
 0x106   :  { %v2763_v8 = vpop.f32.mrf.mxu1  ;;  %v2827_v9 = vpop.f32.mrf.mxu0 }
 0x107   :  { %v1707_v10 = vadd.f32 %v2762_v6, %v1610_v5 }
 0x108   :  { %v2764_v11 = vpop.f32.mrf.mxu1  ;;  %v2828_v12 = vpop.f32.mrf.mxu0 }
 0x109   :  { %v4065_v14 = vadd.f32 %v2826_v7, %v1707_v10  ;;  %v2765_v15 = vadd.f32 %v2764_v11, %v2763_v8  ;;  %v2829_v16 = vadd.f32 %v2828_v12, %v2827_v9 }
 0x10a   :  { %v2766_v17 = vpop.f32.mrf.mxu1  ;;  %v2830_v18 = vpop.f32.mrf.mxu0 }
 0x10b   :  { %v1710_v19 = vadd.f32 %v2765_v15, %v1613_v13 }
 0x10c   :  { %v2767_v20 = vpop.f32.mrf.mxu1  ;;  %v2831_v21 = vpop.f32.mrf.mxu0 }
 0x10d   :  { %v4067_v24 = vadd.f32 %v2829_v16, %v1710_v19  ;;  %v2768_v23 = vadd.f32 %v2767_v20, %v2766_v17  ;;  %v2832_v25 = vadd.f32 %v2831_v21, %v2830_v18 }
 0x10e   :  { %v2769_v26 = vpop.f32.mrf.mxu1  ;;  %v2833_v27 = vpop.f32.mrf.mxu0 }
 0x10f   :  { %v1715_v28 = vadd.f32 %v2768_v23, %v1618_v22 }
 0x110   :  { %v2770_v29 = vpop.f32.mrf.mxu1  ;;  %v2834_v30 = vpop.f32.mrf.mxu0 }
 0x111   :  { %v4069_v34 = vadd.f32 %v2832_v25, %v1715_v28 }
 0x112   :  { %v2772_v35 = vpop.f32.mrf.mxu1  ;;  %v2836_v36 = vpop.f32.mrf.mxu0 }
 0x114   :  { %v2773_v37 = vpop.f32.mrf.mxu1  ;;  %v2837_v38 = vpop.f32.mrf.mxu0 }
 0x116   :  { %v2775_v39 = vpop.f32.mrf.mxu1  ;;  %v2839_v40 = vpop.f32.mrf.mxu0 }
 0x118   :  { %v2776_v41 = vpop.f32.mrf.mxu1  ;;  %v2840_v42 = vpop.f32.mrf.mxu0 }
 0x11a   :  { %v2778_v43 = vpop.f32.mrf.mxu1  ;;  %v2842_v44 = vpop.f32.mrf.mxu0 }
 0x11c   :  { %v2779_v45 = vpop.f32.mrf.mxu1  ;;  %v2843_v46 = vpop.f32.mrf.mxu0 }
 0x11e   :  { %v2781_v47 = vpop.f32.mrf.mxu1  ;;  %v2845_v48 = vpop.f32.mrf.mxu0 }
 0x120   :  { %v2782_v49 = vpop.f32.mrf.mxu1  ;;  %v2846_v50 = vpop.f32.mrf.mxu0 }
 0x122   :  { %v2784_v51 = vpop.f32.mrf.mxu1  ;;  %v2848_v52 = vpop.f32.mrf.mxu0 }
 0x124   :  { %v2785_v53 = vpop.f32.mrf.mxu1  ;;  %v2849_v54 = vpop.f32.mrf.mxu0 }
 0x126   :  { %v2787_v55 = vpop.f32.mrf.mxu1  ;;  %v2851_v56 = vpop.f32.mrf.mxu0 }
 0x128   :  { %v2788_v57 = vpop.f32.mrf.mxu1  ;;  %v2852_v58 = vpop.f32.mrf.mxu0 }
 0x12a   :  { %v2790_v59 = vpop.f32.mrf.mxu1  ;;  %v2854_v60 = vpop.f32.mrf.mxu0 }
 0x12c   :  { %v2791_v61 = vpop.f32.mrf.mxu1  ;;  %v2855_v62 = vpop.f32.mrf.mxu0 }
 0x12e   :  { %v2793_v63 = vpop.f32.mrf.mxu1  ;;  %v2857_v0 = vpop.f32.mrf.mxu0 }
 0x130   :  { %v2794_v1 = vpop.f32.mrf.mxu1  ;;  %v2858_v2 = vpop.f32.mrf.mxu0 }
 0x132   :  { %v2796_v3 = vpop.f32.mrf.mxu1  ;;  %v2860_v4 = vpop.f32.mrf.mxu0 }
 0x134   :  { %v2797_v5 = vpop.f32.mrf.mxu1  ;;  %v2861_v6 = vpop.f32.mrf.mxu0 }
 0x136   :  { %v2799_v7 = vpop.f32.mrf.mxu1  ;;  %v2863_v8 = vpop.f32.mrf.mxu0 }
 0x138   :  { %v2800_v9 = vpop.f32.mrf.mxu1  ;;  %v2864_v10 = vpop.f32.mrf.mxu0 }
 0x13a   :  { %v2802_v11 = vpop.f32.mrf.mxu1  ;;  %v2866_v12 = vpop.f32.mrf.mxu0 }
 0x13c   :  { %v2803_v13 = vpop.f32.mrf.mxu1  ;;  %v2867_v15 = vpop.f32.mrf.mxu0 }
 0x13e   :  { %v2805_v16 = vpop.f32.mrf.mxu1  ;;  %v2869_v17 = vpop.f32.mrf.mxu0 }
 0x140   :  { %v2806_v18 = vpop.f32.mrf.mxu1  ;;  %v2870_v19 = vpop.f32.mrf.mxu0 }
 0x142   :  { %v2888_v20 = vpop.f32.mrf.mxu1  ;;  %v2952_v21 = vpop.f32.mrf.mxu0 }
 0x144   :  { %v2889_v22 = vpop.f32.mrf.mxu1  ;;  %v2953_v23 = vpop.f32.mrf.mxu0 }
 0x145   :  { %v2890_v25 = vadd.f32 %v2889_v22, %v2888_v20  ;;  %v2954_v26 = vadd.f32 %v2953_v23, %v2952_v21 }
 0x146   :  { %v2891_v27 = vpop.f32.mrf.mxu1  ;;  %v2955_v28 = vpop.f32.mrf.mxu0 }
 0x147   :  { %v1901_v29 = vadd.f32 %v2890_v25, %v4065_v14 }
 0x148   :  { %v2892_v30 = vpop.f32.mrf.mxu1  ;;  %v2956_v31 = vpop.f32.mrf.mxu0 }
 0x149   :  { %v4108_v32 = vadd.f32 %v2954_v26, %v1901_v29  ;;  %v2893_v33 = vadd.f32 %v2892_v30, %v2891_v27  ;;  %v2957_v38 = vadd.f32 %v2956_v31, %v2955_v28 }
 0x14a   :  { %v2894_v35 = vpop.f32.mrf.mxu1  ;;  %v2958_v36 = vpop.f32.mrf.mxu0 }
 0x14b   :  { %v1904_v37 = vadd.f32 %v2893_v33, %v4067_v24 }
 0x14c   :  { %v2895_v39 = vpop.f32.mrf.mxu1  ;;  %v2959_v40 = vpop.f32.mrf.mxu0 }
 0x14d   :  { %v4111_v41 = vadd.f32 %v2957_v38, %v1904_v37  ;;  %v2896_v42 = vadd.f32 %v2895_v39, %v2894_v35  ;;  %v2960_v14 = vadd.f32 %v2959_v40, %v2958_v36 }
 0x14e   :  { %v2897_v43 = vpop.f32.mrf.mxu1  ;;  %v2961_v44 = vpop.f32.mrf.mxu0 }
 0x14f   :  { %v1909_v45 = vadd.f32 %v2896_v42, %v4069_v34 }
 0x150   :  { %v2898_v46 = vpop.f32.mrf.mxu1  ;;  %v2962_v47 = vpop.f32.mrf.mxu0 }
 0x151   :  { %v4114_v48 = vadd.f32 %v2960_v14, %v1909_v45 }
 0x152   :  { %v2900_v49 = vpop.f32.mrf.mxu1  ;;  %v2964_v50 = vpop.f32.mrf.mxu0 }
 0x154   :  { %v2901_v51 = vpop.f32.mrf.mxu1  ;;  %v2965_v52 = vpop.f32.mrf.mxu0 }
 0x156   :  { %v2903_v24 = vpop.f32.mrf.mxu1  ;;  %v2967_v53 = vpop.f32.mrf.mxu0 }
 0x158   :  { %v2904_v54 = vpop.f32.mrf.mxu1  ;;  %v2968_v55 = vpop.f32.mrf.mxu0 }
 0x15a   :  { %v2906_v56 = vpop.f32.mrf.mxu1  ;;  %v2970_v57 = vpop.f32.mrf.mxu0 }
 0x15c   :  { %v2907_v58 = vpop.f32.mrf.mxu1  ;;  %v2971_v59 = vpop.f32.mrf.mxu0 }
 0x15e   :  { %v2909_v60 = vpop.f32.mrf.mxu1  ;;  %v2973_v61 = vpop.f32.mrf.mxu0 }
 0x160   :  { %v2910_v34 = vpop.f32.mrf.mxu1  ;;  %v2974_v62 = vpop.f32.mrf.mxu0 }
 0x162   :  { %v2912_v63 = vpop.f32.mrf.mxu1  ;;  %v2976_v0 = vpop.f32.mrf.mxu0 }
 0x164   :  { %v2913_v1 = vpop.f32.mrf.mxu1  ;;  %v2977_v2 = vpop.f32.mrf.mxu0 }
 0x165   :  { %v3361_v1 = vmov 0.0  }
 0x166   :  { %v2915_v3 = vpop.f32.mrf.mxu1  ;;  %v2979_v4 = vpop.f32.mrf.mxu0 }
 0x168   :  { %v2916_v5 = vpop.f32.mrf.mxu1  ;;  %v2980_v6 = vpop.f32.mrf.mxu0 }
 0x16a   :  { %v2918_v7 = vpop.f32.mrf.mxu1  ;;  %v2982_v8 = vpop.f32.mrf.mxu0 }
 0x16c   :  { %v2919_v9 = vpop.f32.mrf.mxu1  ;;  %v2983_v10 = vpop.f32.mrf.mxu0 }
 0x16e   :  { %v2921_v11 = vpop.f32.mrf.mxu1  ;;  %v2985_v12 = vpop.f32.mrf.mxu0 }
 0x170   :  { %v2922_v13 = vpop.f32.mrf.mxu1  ;;  %v2986_v15 = vpop.f32.mrf.mxu0 }
 0x172   :  { %v2924_v16 = vpop.f32.mrf.mxu1  ;;  %v2988_v17 = vpop.f32.mrf.mxu0 }
 0x174   :  { %v2925_v18 = vpop.f32.mrf.mxu1  ;;  %v2989_v19 = vpop.f32.mrf.mxu0 }
 0x176   :  { %v2927_v20 = vpop.f32.mrf.mxu1  ;;  %v2991_v21 = vpop.f32.mrf.mxu0 }
 0x178   :  { %v2928_v22 = vpop.f32.mrf.mxu1  ;;  %v2992_v23 = vpop.f32.mrf.mxu0 }
 0x17a   :  { %v2930_v25 = vpop.f32.mrf.mxu1  ;;  %v2994_v26 = vpop.f32.mrf.mxu0 }
 0x17c   :  { %v2931_v27 = vpop.f32.mrf.mxu1  ;;  %v2995_v28 = vpop.f32.mrf.mxu0 }
 0x17e   :  { %v2933_v29 = vpop.f32.mrf.mxu1  ;;  %v2997_v30 = vpop.f32.mrf.mxu0 }
 0x180   :  { %v2934_v31 = vpop.f32.mrf.mxu1  ;;  %v2998_v33 = vpop.f32.mrf.mxu0 }
 0x182   :  { %v3016_v35 = vpop.f32.mrf.mxu1  ;;  %v2191_v36 = vpop.f32.mrf.mxu0 }
 0x184   :  { %v3017_v37 = vpop.f32.mrf.mxu1  ;;  %v2193_v38 = vpop.f32.mrf.mxu0 }
 0x185   :  { %v3018_v39 = vadd.f32 %v3017_v37, %v3016_v35 }
 0x186   :  { %v3019_v40 = vpop.f32.mrf.mxu1  ;;  %v2194_v42 = vpop.f32.mrf.mxu0 }
 0x187   :  { %v2095_v43 = vadd.f32 %v3018_v39, %v4108_v32 }
 0x188   :  { %v3020_v44 = vpop.f32.mrf.mxu1  ;;  %v2196_v45 = vpop.f32.mrf.mxu0 }
 0x189   :  { %v3021_v14 = vadd.f32 %v3020_v44, %v3019_v40  ;;  %v2192_v49 = vadd.f32 %v2191_v36, %v2095_v43 }
 0x18a   :  { %v3022_v46 = vpop.f32.mrf.mxu1  ;;  %v2199_v47 = vpop.f32.mrf.mxu0 }
 0x18b   :  { %v2098_v50 = vadd.f32 %v3021_v14, %v4111_v41  ;;  %v2254_v56 = vmax.f32 %v2192_v49, 0.0 }
 0x18c   :  { %v3023_v51 = vpop.f32.mrf.mxu1  ;;  %v2201_v52 = vpop.f32.mrf.mxu0 }
 0x18d   :  { %v2195_v24 = vadd.f32 %v2194_v42, %v2098_v50  ;;  %v3024_v53 = vadd.f32 %v3023_v51, %v3022_v46 }
 0x18e   :  { %v3025_v54 = vpop.f32.mrf.mxu1  ;;  %v2202_v55 = vpop.f32.mrf.mxu0 }
 0x18f   :  { %v2255_v57 = vmax.f32 %v2195_v24, 0.0  ;;  %v2103_v58 = vadd.f32 %v3024_v53, %v4114_v48 }
 0x190   :  { %v3026_v59 = vpop.f32.mrf.mxu1  ;;  %v2204_v32 = vpop.f32.mrf.mxu0 }
 0x191   :  { %v2673_v60 = vpack.c.bf16 %v2255_v57, %v2254_v56  ;;  %v2200_v61 = vadd.f32 %v2199_v47, %v2103_v58 }
 0x192   :  { %v3028_v34 = vpop.f32.mrf.mxu1  ;;  %v2207_v62 = vpop.f32.mrf.mxu0 }
 0x193   :  { %2674 = vst [vmem:[%s4128_s3] sm:$0xff] %v2673_v60   ;;  %v2256_v41 = vmax.f32 %v2200_v61, 0.0 }
 0x194   :  { %v3029_v63 = vpop.f32.mrf.mxu1  ;;  %v2209_v0 = vpop.f32.mrf.mxu0 }
 0x195   :  { %v2677_v2 = vpack.c.bf16 %v3361_v1, %v2256_v41 }
 0x196   :  { %v3031_v3 = vpop.f32.mrf.mxu1  ;;  %v2210_v4 = vpop.f32.mrf.mxu0 }
 0x197   :  { %2679 = vst [vmem:[%s4128_s3 + $0x8] sm:$0xff] %v2677_v2  }
 0x198   :  { %v3032_v48 = vpop.f32.mrf.mxu1  ;;  %v2212_v5 = vpop.f32.mrf.mxu0 }
 0x19a   :  { %v3034_v6 = vpop.f32.mrf.mxu1  ;;  %v2215_v7 = vpop.f32.mrf.mxu0 }
 0x19c   :  { %v3035_v8 = vpop.f32.mrf.mxu1  ;;  %v2217_v9 = vpop.f32.mrf.mxu0 }
 0x19e   :  { %v3037_v10 = vpop.f32.mrf.mxu1  ;;  %v2218_v11 = vpop.f32.mrf.mxu0 }
 0x1a0   :  { %v3038_v12 = vpop.f32.mrf.mxu1  ;;  %v2220_v13 = vpop.f32.mrf.mxu0 }
 0x1a2   :  { %v3040_v15 = vpop.f32.mrf.mxu1  ;;  %v2223_v16 = vpop.f32.mrf.mxu0 }
 0x1a4   :  { %v3041_v17 = vpop.f32.mrf.mxu1  ;;  %v2225_v18 = vpop.f32.mrf.mxu0 }
 0x1a6   :  { %v3043_v19 = vpop.f32.mrf.mxu1  ;;  %v2226_v20 = vpop.f32.mrf.mxu0 }
 0x1a8   :  { %v3044_v21 = vpop.f32.mrf.mxu1  ;;  %v2228_v22 = vpop.f32.mrf.mxu0 }
 0x1aa   :  { %v3046_v23 = vpop.f32.mrf.mxu1  ;;  %v2231_v25 = vpop.f32.mrf.mxu0 }
 0x1ac   :  { %v3047_v26 = vpop.f32.mrf.mxu1  ;;  %v2233_v27 = vpop.f32.mrf.mxu0 }
 0x1ae   :  { %v3049_v28 = vpop.f32.mrf.mxu1  ;;  %v2234_v29 = vpop.f32.mrf.mxu0 }
 0x1b0   :  { %v3050_v30 = vpop.f32.mrf.mxu1  ;;  %v2236_v31 = vpop.f32.mrf.mxu0 }
 0x1b2   :  { %v3052_v33 = vpop.f32.mrf.mxu1  ;;  %v2239_v35 = vpop.f32.mrf.mxu0 }
 0x1b4   :  { %v3053_v36 = vpop.f32.mrf.mxu1  ;;  %v2241_v37 = vpop.f32.mrf.mxu0 }
 0x1b6   :  { %v3055_v38 = vpop.f32.mrf.mxu1  ;;  %v2242_v39 = vpop.f32.mrf.mxu0 }
 0x1b8   :  { %v3056_v40 = vpop.f32.mrf.mxu1  ;;  %v2244_v42 = vpop.f32.mrf.mxu0 }
 0x1ba   :  { %v3058_v43 = vpop.f32.mrf.mxu1  ;;  %v2247_v44 = vpop.f32.mrf.mxu0 }
 0x1bc   :  { %v3059_v45 = vpop.f32.mrf.mxu1  ;;  %v2249_v14 = vpop.f32.mrf.mxu0 }
 0x1be   :  { %v3061_v46 = vpop.f32.mrf.mxu1  ;;  %v2250_v47 = vpop.f32.mrf.mxu0 }
 0x1c0   :  { %v3062_v49 = vpop.f32.mrf.mxu1  ;;  %v2252_v50 = vpop.f32.mrf.mxu0 }

// kernel: sparse_encoder_forward.23
= control target key start
LH: loop header
LB: loop body
LE: loop exit
PB: predicated region body
PF: predicated region fallthrough
CT: control target
= control target key end

     0   :  { %v617_v0 = vmov 0   ;;  %vm206_vm0 = vcmask 523264   ;;  %v618_v29 = vmov 0.0|0.0   ;;  %v619_v41 = vmov 0.0   ;;  %s804_s1 = inlined_call_operand.vmem [shape: bf16[192,128], index: 1, kind: input, shape index: {}]   ;;  %s805_s0 = inlined_call_operand.vmem [shape: bf16[128,192], index: 0, kind: input, shape index: {}]   ;;  %s806_s3 = inlined_call_operand.vmem [shape: bf16[128,128], index: 3, kind: output, shape index: {}]   ;;  %s807_s2 = inlined_call_operand.vmem [shape: f32[1,128], index: 2, kind: input, shape index: {}]  }
   0x1   :  { %231 = vmatprep.subr.bf16.mxu0 %v617_v0  ;;  %554 = vmatprep.subr.bf16.mxu1 %v617_v0  ;;  %v581_v1 = vld [vmem:[%s804_s1 + $0x38] sm:$0xff]   ;;  %v582_v2 = vld [vmem:[%s804_s1 + $0x30] sm:$0xff]   ;;  %v583_v3 = vld [vmem:[%s804_s1 + $0x28] sm:$0xff]   ;;  %v534_v30 = vcombine.low %v618_v29, %v618_v29  ;;  %v535_v31 = vcombine.high %v618_v29, %v618_v29 }
   0x2   :  { %232 = vmatpush1.bf16.msra.mxu0 %v581_v1  ;;  %566 = vmatpush1.bf16.msra.mxu1 %v581_v1  ;;  %v584_v4 = vld [vmem:[%s804_s1 + $0x20] sm:$0xff]   ;;  %v585_v6 = vld [vmem:[%s804_s1 + $0x18] sm:$0xff]   ;;  %v586_v8 = vld [vmem:[%s804_s1 + $0x10] sm:$0xff]  }
   0x3   :  { %233 = vmatprep.subr.bf16.mxu0 %v617_v0  ;;  %555 = vmatprep.subr.bf16.mxu1 %v617_v0  ;;  %v595_v5 = vld [vmem:[%s805_s0 + $0x4] ss:$8 sps:$4 sm:$0xff]   ;;  %v589_v11 = vld [vmem:[%s804_s1 + $0x58] sm:$0xff]   ;;  %v590_v12 = vld [vmem:[%s804_s1 + $0x50] sm:$0xff]   ;;  %477 = vst [vmem:[%s806_s3 + $0x8] sm:$0xf] %v534_v30 }
   0x4   :  { %v598_v7 = vld [vmem:[%s805_s0 + $0x44] ss:$8 sps:$4 sm:$0xff]   ;;  %524 = vmatprep.mubr.msk.bf16.mxu0 %vm206_vm0, %v595_v5  ;;  %v593_v15 = vld [vmem:[%s805_s0] ss:$8 sps:$4 sm:$0xff]   ;;  %v599_v17 = vld [vmem:[%s805_s0 + $0x14] ss:$8 sps:$4 sm:$0xff]  }
   0x5   :  { %528 = vmatprep.mubr.msk.bf16.mxu1 %vm206_vm0, %v598_v7  ;;  %v587_v9 = vld [vmem:[%s804_s1 + $0x8] sm:$0xff]   ;;  %v588_v10 = vld [vmem:[%s804_s1] sm:$0xff]   ;;  %v601_v18 = vld [vmem:[%s805_s0 + $0x54] ss:$8 sps:$4 sm:$0xff]   ;;  %478 = vst [vmem:[%s806_s3 + $0xc] sm:$0xf] %v535_v31 }
   0x6   :  { %234 = vmatpush1.bf16.msra.mxu0 %v582_v2  ;;  %567 = vmatpush1.bf16.msra.mxu1 %v582_v2  ;;  %v591_v13 = vld [vmem:[%s804_s1 + $0x48] sm:$0xff]   ;;  %v592_v14 = vld [vmem:[%s804_s1 + $0x40] sm:$0xff]   ;;  %v603_v19 = vld [vmem:[%s805_s0 + $0x10] ss:$8 sps:$4 sm:$0xff]   ;;  %479 = vst [vmem:[%s806_s3 + $0x10] sm:$0xf] %v534_v30 }
   0x7   :  { %235 = vmatprep.subr.bf16.mxu0 %v617_v0  ;;  %556 = vmatprep.subr.bf16.mxu1 %v617_v0  ;;  %v596_v16 = vld [vmem:[%s805_s0 + $0x40] ss:$8 sps:$4 sm:$0xff]   ;;  %v604_v20 = vld [vmem:[%s805_s0 + $0x50] ss:$8 sps:$4 sm:$0xff]   ;;  %v605_v21 = vld [vmem:[%s805_s0 + $0x24] ss:$8 sps:$4 sm:$0xff]  }
   0x8   :  { %v607_v22 = vld [vmem:[%s805_s0 + $0x64] ss:$8 sps:$4 sm:$0xff]   ;;  %v609_v23 = vld [vmem:[%s805_s0 + $0x20] ss:$8 sps:$4 sm:$0xff]   ;;  %v611_v25 = vld [vmem:[%s805_s0 + $0x34] ss:$8 sps:$4 sm:$0xff]  }
   0x9   :  { %v610_v24 = vld [vmem:[%s805_s0 + $0x60] ss:$8 sps:$4 sm:$0xff]   ;;  %v613_v26 = vld [vmem:[%s805_s0 + $0x74] ss:$8 sps:$4 sm:$0xff]   ;;  %v615_v27 = vld [vmem:[%s805_s0 + $0x30] ss:$8 sps:$4 sm:$0xff]  }
   0xa   :  { %236 = vmatpush1.bf16.msra.mxu0 %v583_v3  ;;  %568 = vmatpush1.bf16.msra.mxu1 %v583_v3  ;;  %v616_v28 = vld [vmem:[%s805_s0 + $0x70] ss:$8 sps:$4 sm:$0xff]   ;;  %480 = vst [vmem:[%s806_s3 + $0x14] sm:$0xf] %v535_v31  ;;  %481 = vst [vmem:[%s806_s3 + $0x18] sm:$0xf] %v534_v30 }
   0xb   :  { %237 = vmatprep.subr.bf16.mxu0 %v617_v0  ;;  %557 = vmatprep.subr.bf16.mxu1 %v617_v0  ;;  %482 = vst [vmem:[%s806_s3 + $0x1c] sm:$0xf] %v535_v31  ;;  %483 = vst [vmem:[%s806_s3 + $0x20] sm:$0xf] %v534_v30  ;;  %v495_v32 = vld [vmem:[%s807_s2] ss:$0 sm:$0xff] }
   0xc   :  { %484 = vst [vmem:[%s806_s3 + $0x24] sm:$0xf] %v535_v31  ;;  %485 = vst [vmem:[%s806_s3 + $0x28] sm:$0xf] %v534_v30 }
   0xd   :  { %486 = vst [vmem:[%s806_s3 + $0x2c] sm:$0xf] %v535_v31  ;;  %487 = vst [vmem:[%s806_s3 + $0x30] sm:$0xf] %v534_v30 }
   0xe   :  { %238 = vmatpush1.bf16.msra.mxu0 %v584_v4  ;;  %569 = vmatpush1.bf16.msra.mxu1 %v584_v4  ;;  %488 = vst [vmem:[%s806_s3 + $0x34] sm:$0xf] %v535_v31  ;;  %489 = vst [vmem:[%s806_s3 + $0x38] sm:$0xf] %v534_v30 }
   0xf   :  { %239 = vmatprep.subr.bf16.mxu0 %v617_v0  ;;  %558 = vmatprep.subr.bf16.mxu1 %v617_v0  ;;  %490 = vst [vmem:[%s806_s3 + $0x3c] sm:$0xf] %v535_v31 }
  0x12   :  { %240 = vmatpush1.bf16.msra.mxu0 %v585_v6  ;;  %570 = vmatpush1.bf16.msra.mxu1 %v585_v6 }
  0x13   :  { %241 = vmatprep.subr.bf16.mxu0 %v617_v0  ;;  %559 = vmatprep.subr.bf16.mxu1 %v617_v0 }
  0x16   :  { %242 = vmatpush1.bf16.msra.mxu0 %v586_v8  ;;  %571 = vmatpush1.bf16.msra.mxu1 %v586_v8 }
  0x17   :  { %243 = vmatprep.subr.bf16.mxu0 %v617_v0  ;;  %560 = vmatprep.subr.bf16.mxu1 %v617_v0 }
  0x1a   :  { %244 = vmatpush1.bf16.msra.mxu0 %v587_v9  ;;  %572 = vmatpush1.bf16.msra.mxu1 %v587_v9 }
  0x1b   :  { %245 = vmatprep.subr.bf16.mxu0 %v617_v0  ;;  %561 = vmatprep.subr.bf16.mxu1 %v617_v0 }
  0x1e   :  { %246 = vmatpush1.bf16.msra.mxu0 %v588_v10  ;;  %573 = vmatpush1.bf16.msra.mxu1 %v588_v10 }
  0x1f   :  { %255 = vmatprep.subr.bf16.mxu0 %v617_v0  ;;  %562 = vmatprep.subr.bf16.mxu1 %v617_v0 }
  0x22   :  { %256 = vmatpush2.bf16.msra.mxu0 %v589_v11  ;;  %574 = vmatpush2.bf16.msra.mxu1 %v589_v11 }
  0x23   :  { %257 = vmatprep.subr.bf16.mxu0 %v617_v0  ;;  %563 = vmatprep.subr.bf16.mxu1 %v617_v0 }
  0x26   :  { %258 = vmatpush2.bf16.msra.mxu0 %v590_v12  ;;  %575 = vmatpush2.bf16.msra.mxu1 %v590_v12 }
  0x27   :  { %259 = vmatprep.subr.bf16.mxu0 %v617_v0  ;;  %564 = vmatprep.subr.bf16.mxu1 %v617_v0 }
  0x2a   :  { %260 = vmatpush2.bf16.msra.mxu0 %v591_v13  ;;  %576 = vmatpush2.bf16.msra.mxu1 %v591_v13 }
  0x2b   :  { %261 = vmatprep.subr.bf16.mxu0 %v617_v0  ;;  %565 = vmatprep.subr.bf16.mxu1 %v617_v0 }
  0x2e   :  { %262 = vmatpush2.bf16.msra.mxu0 %v592_v14  ;;  %577 = vmatpush2.bf16.msra.mxu1 %v592_v14 }
  0x31   :  { %264 = vmatmul.mubr.bf16.vlgmr.msra.gmra.mxu0 %v593_v15  ;;  %296 = vmatmul.mubr.bf16.vlgmr.msra.gmra.mxu1 %v596_v16 }
  0x32   :  { %525 = vmatprep.mubr.msk.bf16.mxu0 %vm206_vm0, %v599_v17  ;;  %529 = vmatprep.mubr.msk.bf16.mxu1 %vm206_vm0, %v601_v18 }
  0x39   :  { %272 = vmatmul.mubr.bf16.gmra.mxu0 %v603_v19  ;;  %304 = vmatmul.mubr.bf16.gmra.mxu1 %v604_v20 }
  0x3a   :  { %526 = vmatprep.mubr.msk.bf16.mxu0 %vm206_vm0, %v605_v21  ;;  %530 = vmatprep.mubr.msk.bf16.mxu1 %vm206_vm0, %v607_v22 }
  0x41   :  { %280 = vmatmul.mubr.bf16.gmra.mxu0 %v609_v23  ;;  %312 = vmatmul.mubr.bf16.gmra.mxu1 %v610_v24 }
  0x42   :  { %527 = vmatprep.mubr.msk.bf16.mxu0 %vm206_vm0, %v611_v25  ;;  %531 = vmatprep.mubr.msk.bf16.mxu1 %vm206_vm0, %v613_v26 }
  0x49   :  { %288 = vmatmul.mubr.bf16.gmra.mxu0 %v615_v27  ;;  %320 = vmatmul.mubr.bf16.gmra.mxu1 %v616_v28 }
  0xf1   :  { %v265_v33 = vpop.f32.mrf.mxu0  ;;  %v297_v34 = vpop.f32.mrf.mxu1 }
  0xf2   :  { %v266_v35 = vadd.f32 %v495_v32, %v265_v33 }
  0xf3   :  { %v267_v36 = vpop.f32.mrf.mxu0  ;;  %v299_v37 = vpop.f32.mrf.mxu1 }
  0xf4   :  { %v328_v38 = vmax.f32 %v266_v35, 0.0 }
  0xf5   :  { %v268_v39 = vpop.f32.mrf.mxu0  ;;  %v300_v40 = vpop.f32.mrf.mxu1 }
  0xf6   :  { %v552_v42 = vpack.c.bf16 %v619_v41, %v328_v38 }
  0xf7   :  { %v270_v43 = vpop.f32.mrf.mxu0  ;;  %v302_v44 = vpop.f32.mrf.mxu1 }
  0xf8   :  { %553 = vst [vmem:[%s806_s3] sm:$0xff] %v552_v42  }
  0xf9   :  { %v273_v45 = vpop.f32.mrf.mxu0  ;;  %v305_v46 = vpop.f32.mrf.mxu1 }
  0xfb   :  { %v275_v47 = vpop.f32.mrf.mxu0  ;;  %v307_v48 = vpop.f32.mrf.mxu1 }
  0xfd   :  { %v276_v49 = vpop.f32.mrf.mxu0  ;;  %v308_v50 = vpop.f32.mrf.mxu1 }
  0xff   :  { %v278_v51 = vpop.f32.mrf.mxu0  ;;  %v310_v52 = vpop.f32.mrf.mxu1 }
 0x101   :  { %v281_v53 = vpop.f32.mrf.mxu0  ;;  %v313_v54 = vpop.f32.mrf.mxu1 }
 0x103   :  { %v283_v55 = vpop.f32.mrf.mxu0  ;;  %v315_v56 = vpop.f32.mrf.mxu1 }
 0x105   :  { %v284_v57 = vpop.f32.mrf.mxu0  ;;  %v316_v58 = vpop.f32.mrf.mxu1 }
 0x107   :  { %v286_v59 = vpop.f32.mrf.mxu0  ;;  %v318_v60 = vpop.f32.mrf.mxu1 }
 0x109   :  { %v289_v61 = vpop.f32.mrf.mxu0  ;;  %v321_v62 = vpop.f32.mrf.mxu1 }
 0x10b   :  { %v291_v63 = vpop.f32.mrf.mxu0  ;;  %v323_v0 = vpop.f32.mrf.mxu1 }
 0x10d   :  { %v292_v1 = vpop.f32.mrf.mxu0  ;;  %v324_v2 = vpop.f32.mrf.mxu1 }
 0x10f   :  { %v294_v3 = vpop.f32.mrf.mxu0  ;;  %v326_v4 = vpop.f32.mrf.mxu1 }

</bundles_post_ra>
